<compile_context>
chip_gen: v6e
topology: v6e:2x2x1
jax: 0.10.0
libtpu: 0.0.40
codegen_flags: <defaults>
</compile_context>

<pallas_src>
import jax
import jax.numpy as jnp
import numpy as np
from jax import lax
from jax.experimental import pallas as pl
from jax.experimental.pallas import tpu as pltpu


def basic_block_kernel(x_ref, w1_ref, s1_ref, t1_ref, w2_hbm_ref, s2_ref, t2_ref,
                       out_ref, pad_s, patch_s, w2_vmem, w2_sem):
    # Block shapes (batch dim squeezed away by the BlockSpecs):
    #   x_ref    : (H, W, C)       f32   input tile (also the residual)
    #   w1_ref   : (9*C, C)        bf16  im2col-flattened 3x3 HWIO conv1 weights
    #   w2_hbm   : (9*C, C)        bf16  conv2 weights, raw HBM ref (manual DMA)
    #   s*, t*   : (1, C)          f32   folded BN scale / (BN shift + conv bias)
    #   out_ref  : (H, W, C)       f32
    #   pad_s    : (H+2, W+2, C)   bf16  shared zero-padded conv-input scratch
    #   patch_s  : (H*W, 9*C)      bf16  im2col patches scratch (shared by both convs)
    #   w2_vmem  : (9*C, C)        bf16  landing buffer for the w2 DMA
    H, W, C = x_ref.shape
    HW = H * W

    # Kick off the conv2-weight DMA immediately so it overlaps all of conv1.
    w2_copy = pltpu.make_async_copy(w2_hbm_ref, w2_vmem, w2_sem)
    w2_copy.start()

    # Zero only the 1-wide halo border; the interior is fully overwritten below,
    # so no stale data can leak into the conv taps. (Every step — see header.)
    zrow = jnp.zeros((1, W + 2, C), jnp.bfloat16)
    zcol = jnp.zeros((H + 2, 1, C), jnp.bfloat16)
    pad_s[0:1, :, :] = zrow
    pad_s[H + 1:H + 2, :, :] = zrow
    pad_s[:, 0:1, :] = zcol
    pad_s[:, W + 1:W + 2, :] = zcol

    # Conv inputs live in bf16 (the MXU operand dtype); one cast at the store.
    pad_s[1:H + 1, 1:W + 1, :] = x_ref[...].astype(jnp.bfloat16)

    def conv3x3(w_bf16):
        # im2col written straight into lane-aligned column slots of patch_s
        # (C is a multiple of 128, so every slot offset is lane-aligned and no
        # intermediate concatenate buffer is materialized). The conv is then a
        # single (HW, 9C) x (9C, C) MXU matmul with f32 accumulation.
        idx = 0
        for ky in range(3):
            for kx in range(3):
                patch_s[:, idx * C:(idx + 1) * C] = (
                    pad_s[ky:ky + H, kx:kx + W, :].reshape(HW, C))
                idx += 1
        return jnp.dot(patch_s[...], w_bf16, preferred_element_type=jnp.float32)

    # conv1 -> bn1 (+ folded conv1 bias) -> relu
    acc1 = conv3x3(w1_ref[...])
    y1 = jnp.maximum(acc1 * s1_ref[...] + t1_ref[...], 0.0)      # (HW, C) f32

    # Reuse the pad scratch for conv2's input. The halo is still zero, and the
    # interior store data-depends on every conv1 tap load (stateful ref program
    # order), so there is no write-after-read hazard.
    pad_s[1:H + 1, 1:W + 1, :] = y1.astype(jnp.bfloat16).reshape(H, W, C)

    # conv2 weights must have landed by now (DMA overlapped with conv1).
    w2_copy.wait()

    # conv2 -> bn2 (+ folded conv2 bias) -> residual add -> relu.
    # Residual is re-read from x_ref (already resident in VMEM) so no large f32
    # value stays live across both convs.
    acc2 = conv3x3(w2_vmem[...])
    y2 = acc2 * s2_ref[...] + t2_ref[...] + x_ref[...].reshape(HW, C)
    out_ref[...] = jnp.maximum(y2, 0.0).reshape(H, W, C)


def basic_block_pallas(x_nhwc, params):
    """x_nhwc: (N, H, W, C) float32. params: dict from make_params."""
    N, H, W, C = x_nhwc.shape
    assert params["w1"].shape == (9 * C, C), \
        "BasicBlock with downsample=None, stride=1 requires inplanes == planes"

    w1_spec = pl.BlockSpec((9 * C, C), lambda b: (0, 0))   # resident across steps
    v_spec = pl.BlockSpec((1, C), lambda b: (0, 0))

    return pl.pallas_call(
        basic_block_kernel,
        out_shape=jax.ShapeDtypeStruct((N, H, W, C), jnp.float32),
        grid_spec=pltpu.PrefetchScalarGridSpec(
            num_scalar_prefetch=0,
            grid=(N,),
            in_specs=[
                pl.BlockSpec((None, H, W, C), lambda b: (b, 0, 0, 0)),  # x
                w1_spec,                              # w1 (bf16, im2col-flattened)
                v_spec,                               # bn1 scale
                v_spec,                               # bn1 shift (+ conv1 bias)
                pl.BlockSpec(memory_space=pl.ANY),    # w2 stays in HBM, manual DMA
                v_spec,                               # bn2 scale
                v_spec,                               # bn2 shift (+ conv2 bias)
            ],
            out_specs=pl.BlockSpec((None, H, W, C), lambda b: (b, 0, 0, 0)),
            scratch_shapes=[
                pltpu.VMEM((H + 2, W + 2, C), jnp.bfloat16),   # pad scratch
                pltpu.VMEM((H * W, 9 * C), jnp.bfloat16),      # im2col patches
                pltpu.VMEM((9 * C, C), jnp.bfloat16),          # w2 landing buffer
                pltpu.SemaphoreType.DMA,                       # w2 DMA semaphore
            ],
        ),
        compiler_params=pltpu.CompilerParams(
            dimension_semantics=("parallel",),   # N=2 -> one step per TC on v7x
        ),
    )(x_nhwc, params["w1"], params["s1"], params["t1"],
      params["w2"], params["s2"], params["t2"])


def make_params(key, planes, eps=1e-5):
    """Deterministic Conv/BN params; returns kernel-ready and reference forms."""
    C = planes
    ks = jax.random.split(key, 10)
    wscale = 1.0 / np.sqrt(9 * C)
    w1_oihw = wscale * jax.random.normal(ks[0], (C, C, 3, 3), jnp.float32)
    w2_oihw = wscale * jax.random.normal(ks[1], (C, C, 3, 3), jnp.float32)
    b1 = 0.05 * jax.random.normal(ks[2], (C,), jnp.float32)
    b2 = 0.05 * jax.random.normal(ks[3], (C,), jnp.float32)
    g1 = 1.0 + 0.1 * jax.random.normal(ks[4], (C,), jnp.float32)
    be1 = 0.1 * jax.random.normal(ks[5], (C,), jnp.float32)
    m1 = 0.1 * jax.random.normal(ks[6], (C,), jnp.float32)
    v1 = jnp.abs(jax.random.normal(ks[7], (C,), jnp.float32)) + 0.5
    g2 = 1.0 + 0.1 * jax.random.normal(ks[8], (C,), jnp.float32)
    be2 = 0.1 * jax.random.normal(ks[9], (C,), jnp.float32)
    m2 = jnp.zeros((C,), jnp.float32)
    v2 = jnp.ones((C,), jnp.float32)

    s1 = g1 / jnp.sqrt(v1 + eps); t1 = be1 - m1 * s1
    s2 = g2 / jnp.sqrt(v2 + eps); t2 = be2 - m2 * s2

    def to_kernel_w(w_oihw):
        # OIHW -> HWIO -> (ky, kx, Cin) flattened along K, matching the kernel's
        # `for ky: for kx:` im2col tap order. Cast to bf16 for the MXU.
        return (jnp.transpose(w_oihw, (2, 3, 1, 0))
                .reshape(9 * C, C).astype(jnp.bfloat16))

    return {
        # kernel-ready (conv bias folded into BN shift)
        "w1": to_kernel_w(w1_oihw), "s1": s1.reshape(1, C),
        "t1": (t1 + s1 * b1).reshape(1, C),
        "w2": to_kernel_w(w2_oihw), "s2": s2.reshape(1, C),
        "t2": (t2 + s2 * b2).reshape(1, C),
        # reference (PyTorch eval-mode) parameters, all f32
        "w1_oihw": w1_oihw, "w2_oihw": w2_oihw, "b1": b1, "b2": b2,
        "s1_ref": s1, "t1_ref": t1, "s2_ref": s2, "t2_ref": t2,
    }


def reference_basic_block(x_nchw, p):
    """Pure-JAX NCHW reference matching PyTorch semantics (eval-mode BN), f32."""
    def conv(x, w_oihw, b):
        y = lax.conv_general_dilated(
            x, w_oihw, window_strides=(1, 1), padding=((1, 1), (1, 1)),
            dimension_numbers=("NCHW", "OIHW", "NCHW"),
            precision=lax.Precision.HIGHEST)
        return y + b.reshape(1, -1, 1, 1)

    out = conv(x_nchw, p["w1_oihw"], p["b1"])
    out = out * p["s1_ref"].reshape(1, -1, 1, 1) + p["t1_ref"].reshape(1, -1, 1, 1)
    out = jnp.maximum(out, 0.0)
    out = conv(out, p["w2_oihw"], p["b2"])
    out = out * p["s2_ref"].reshape(1, -1, 1, 1) + p["t2_ref"].reshape(1, -1, 1, 1)
    out = out + x_nchw
    return jnp.maximum(out, 0.0)


if __name__ == "__main__":
    key = jax.random.PRNGKey(0)
    k_x, k_p = jax.random.split(key)

    # downsample=None, stride=1 => inplanes == planes. C=128 is a real ResNet
    # BasicBlock width and keeps channels lane-dense (128 lanes) on TPU.
    N, C, H, W = 2, 128, 16, 16
    x_nchw = jax.random.normal(k_x, (N, C, H, W), jnp.float32)
    params = make_params(k_p, planes=C)

    x_nhwc = jnp.transpose(x_nchw, (0, 2, 3, 1))
    out_nhwc = basic_block_pallas(x_nhwc, params)
    out_nchw = jnp.transpose(out_nhwc, (0, 3, 1, 2))
    jax.block_until_ready(out_nchw)

    ref = reference_basic_block(x_nchw, params)
    # Tolerance reflects bf16 MXU operands (f32 accumulation, f32 elementwise).
    np.testing.assert_allclose(np.asarray(out_nchw), np.asarray(ref),
                               rtol=5e-2, atol=5e-2)
    print("KERNEL_OK")
</pallas_src>

<mosaic_0001>
module attributes {stable_mosaic.version = 11 : i64} {
  func.func @basic_block_kernel(%arg0: i32, %arg1: memref<1x16x16x128xf32, #tpu.memory_space<vmem>>, %arg2: memref<1152x128xbf16, #tpu.memory_space<vmem>>, %arg3: memref<1x128xf32, #tpu.memory_space<vmem>>, %arg4: memref<1x128xf32, #tpu.memory_space<vmem>>, %arg5: memref<1152x128xbf16, #tpu.memory_space<any>>, %arg6: memref<1x128xf32, #tpu.memory_space<vmem>>, %arg7: memref<1x128xf32, #tpu.memory_space<vmem>>, %arg8: memref<1x16x16x128xf32, #tpu.memory_space<vmem>>, %arg9: memref<18x18x128xbf16, #tpu.memory_space<vmem>>, %arg10: memref<256x1152xbf16, #tpu.memory_space<vmem>>, %arg11: memref<1152x128xbf16, #tpu.memory_space<vmem>>, %arg12: memref<!tpu.dma_semaphore, #tpu.memory_space<semaphore_mem>>) attributes {dimension_semantics = [#tpu.dimension_semantics<parallel>], iteration_bounds = array<i64: 2>, scalar_prefetch = 0 : i64, scratch_operands = 4 : i64, tpu.core_type = #tpu.core_type<tc>, window_params = [{transform_indices = @transform_0, window_bounds = array<i64: 1, 16, 16, 128>}, {pipeline_mode = #tpu.pipeline_mode<synchronous>, transform_indices = @transform_1, window_bounds = array<i64: 1152, 128>}, {pipeline_mode = #tpu.pipeline_mode<synchronous>, transform_indices = @transform_2, window_bounds = array<i64: 1, 128>}, {pipeline_mode = #tpu.pipeline_mode<synchronous>, transform_indices = @transform_3, window_bounds = array<i64: 1, 128>}, {}, {pipeline_mode = #tpu.pipeline_mode<synchronous>, transform_indices = @transform_5, window_bounds = array<i64: 1, 128>}, {pipeline_mode = #tpu.pipeline_mode<synchronous>, transform_indices = @transform_6, window_bounds = array<i64: 1, 128>}, {transform_indices = @transform_7, window_bounds = array<i64: 1, 16, 16, 128>}]} {
    tpu.enqueue_dma source(%arg5 : memref<1152x128xbf16, #tpu.memory_space<any>>) target(%arg11 : memref<1152x128xbf16, #tpu.memory_space<vmem>>) target_semaphore(%arg12 : memref<!tpu.dma_semaphore, #tpu.memory_space<semaphore_mem>>)
    %cst = arith.constant 0.000000e+00 : bf16
    %0 = vector.broadcast %cst : bf16 to vector<1x18x128xbf16>
    %cst_0 = arith.constant 0.000000e+00 : bf16
    %1 = vector.broadcast %cst_0 : bf16 to vector<18x1x128xbf16>
    %c0 = arith.constant 0 : index
    %c0_1 = arith.constant 0 : index
    %c0_2 = arith.constant 0 : index
    %2 = vector.load %arg9[%c0, %c0_1, %c0_2] : memref<18x18x128xbf16, #tpu.memory_space<vmem>>, vector<1x18x128xbf16>
    tpu.vector_store %arg9[%c0, %c0_1, %c0_2], %0 {strides = array<i32>} : memref<18x18x128xbf16, #tpu.memory_space<vmem>>, vector<1x18x128xbf16>,
    %c17 = arith.constant 17 : index
    %c0_3 = arith.constant 0 : index
    %c0_4 = arith.constant 0 : index
    %3 = vector.load %arg9[%c17, %c0_3, %c0_4] : memref<18x18x128xbf16, #tpu.memory_space<vmem>>, vector<1x18x128xbf16>
    tpu.vector_store %arg9[%c17, %c0_3, %c0_4], %0 {strides = array<i32>} : memref<18x18x128xbf16, #tpu.memory_space<vmem>>, vector<1x18x128xbf16>,
    %c0_5 = arith.constant 0 : index
    %c0_6 = arith.constant 0 : index
    %c0_7 = arith.constant 0 : index
    %4 = vector.load %arg9[%c0_5, %c0_6, %c0_7] : memref<18x18x128xbf16, #tpu.memory_space<vmem>>, vector<18x1x128xbf16>
    tpu.vector_store %arg9[%c0_5, %c0_6, %c0_7], %1 {strides = array<i32>} : memref<18x18x128xbf16, #tpu.memory_space<vmem>>, vector<18x1x128xbf16>,
    %c0_8 = arith.constant 0 : index
    %c17_9 = arith.constant 17 : index
    %c0_10 = arith.constant 0 : index
    %5 = vector.load %arg9[%c0_8, %c17_9, %c0_10] : memref<18x18x128xbf16, #tpu.memory_space<vmem>>, vector<18x1x128xbf16>
    tpu.vector_store %arg9[%c0_8, %c17_9, %c0_10], %1 {strides = array<i32>} : memref<18x18x128xbf16, #tpu.memory_space<vmem>>, vector<18x1x128xbf16>,
    %c0_11 = arith.constant 0 : index
    %c0_12 = arith.constant 0 : index
    %c0_13 = arith.constant 0 : index
    %c0_14 = arith.constant 0 : index
    %6 = vector.load %arg1[%c0_11, %c0_12, %c0_13, %c0_14] : memref<1x16x16x128xf32, #tpu.memory_space<vmem>>, vector<1x16x16x128xf32>
    %7 = vector.shape_cast %6 : vector<1x16x16x128xf32> to vector<16x16x128xf32>
    %8 = arith.truncf %7 : vector<16x16x128xf32> to vector<16x16x128xbf16>
    %c1 = arith.constant 1 : index
    %c1_15 = arith.constant 1 : index
    %c0_16 = arith.constant 0 : index
    %9 = vector.load %arg9[%c1, %c1_15, %c0_16] : memref<18x18x128xbf16, #tpu.memory_space<vmem>>, vector<16x16x128xbf16>
    tpu.vector_store %arg9[%c1, %c1_15, %c0_16], %8 {strides = array<i32>} : memref<18x18x128xbf16, #tpu.memory_space<vmem>>, vector<16x16x128xbf16>,
    %c0_17 = arith.constant 0 : index
    %c0_18 = arith.constant 0 : index
    %10 = vector.load %arg2[%c0_17, %c0_18] : memref<1152x128xbf16, #tpu.memory_space<vmem>>, vector<1152x128xbf16>
    %c0_19 = arith.constant 0 : index
    %c0_20 = arith.constant 0 : index
    %c0_21 = arith.constant 0 : index
    %11 = vector.load %arg9[%c0_19, %c0_20, %c0_21] : memref<18x18x128xbf16, #tpu.memory_space<vmem>>, vector<16x16x128xbf16>
    %12 = vector.shape_cast %11 : vector<16x16x128xbf16> to vector<256x128xbf16>
    %c0_22 = arith.constant 0 : index
    %c0_23 = arith.constant 0 : index
    %13 = vector.load %arg10[%c0_22, %c0_23] : memref<256x1152xbf16, #tpu.memory_space<vmem>>, vector<256x128xbf16>
    tpu.vector_store %arg10[%c0_22, %c0_23], %12 {strides = array<i32>} : memref<256x1152xbf16, #tpu.memory_space<vmem>>, vector<256x128xbf16>,
    %c0_24 = arith.constant 0 : index
    %c1_25 = arith.constant 1 : index
    %c0_26 = arith.constant 0 : index
    %14 = vector.load %arg9[%c0_24, %c1_25, %c0_26] : memref<18x18x128xbf16, #tpu.memory_space<vmem>>, vector<16x16x128xbf16>
    %15 = vector.shape_cast %14 : vector<16x16x128xbf16> to vector<256x128xbf16>
    %c0_27 = arith.constant 0 : index
    %c128 = arith.constant 128 : index
    %16 = vector.load %arg10[%c0_27, %c128] : memref<256x1152xbf16, #tpu.memory_space<vmem>>, vector<256x128xbf16>
    tpu.vector_store %arg10[%c0_27, %c128], %15 {strides = array<i32>} : memref<256x1152xbf16, #tpu.memory_space<vmem>>, vector<256x128xbf16>,
    %c0_28 = arith.constant 0 : index
    %c2 = arith.constant 2 : index
    %c0_29 = arith.constant 0 : index
    %17 = vector.load %arg9[%c0_28, %c2, %c0_29] : memref<18x18x128xbf16, #tpu.memory_space<vmem>>, vector<16x16x128xbf16>
    %18 = vector.shape_cast %17 : vector<16x16x128xbf16> to vector<256x128xbf16>
    %c0_30 = arith.constant 0 : index
    %c256 = arith.constant 256 : index
    %19 = vector.load %arg10[%c0_30, %c256] : memref<256x1152xbf16, #tpu.memory_space<vmem>>, vector<256x128xbf16>
    tpu.vector_store %arg10[%c0_30, %c256], %18 {strides = array<i32>} : memref<256x1152xbf16, #tpu.memory_space<vmem>>, vector<256x128xbf16>,
    %c1_31 = arith.constant 1 : index
    %c0_32 = arith.constant 0 : index
    %c0_33 = arith.constant 0 : index
    %20 = vector.load %arg9[%c1_31, %c0_32, %c0_33] : memref<18x18x128xbf16, #tpu.memory_space<vmem>>, vector<16x16x128xbf16>
    %21 = vector.shape_cast %20 : vector<16x16x128xbf16> to vector<256x128xbf16>
    %c0_34 = arith.constant 0 : index
    %c384 = arith.constant 384 : index
    %22 = vector.load %arg10[%c0_34, %c384] : memref<256x1152xbf16, #tpu.memory_space<vmem>>, vector<256x128xbf16>
    tpu.vector_store %arg10[%c0_34, %c384], %21 {strides = array<i32>} : memref<256x1152xbf16, #tpu.memory_space<vmem>>, vector<256x128xbf16>,
    %c1_35 = arith.constant 1 : index
    %c1_36 = arith.constant 1 : index
    %c0_37 = arith.constant 0 : index
    %23 = vector.load %arg9[%c1_35, %c1_36, %c0_37] : memref<18x18x128xbf16, #tpu.memory_space<vmem>>, vector<16x16x128xbf16>
    %24 = vector.shape_cast %23 : vector<16x16x128xbf16> to vector<256x128xbf16>
    %c0_38 = arith.constant 0 : index
    %c512 = arith.constant 512 : index
    %25 = vector.load %arg10[%c0_38, %c512] : memref<256x1152xbf16, #tpu.memory_space<vmem>>, vector<256x128xbf16>
    tpu.vector_store %arg10[%c0_38, %c512], %24 {strides = array<i32>} : memref<256x1152xbf16, #tpu.memory_space<vmem>>, vector<256x128xbf16>,
    %c1_39 = arith.constant 1 : index
    %c2_40 = arith.constant 2 : index
    %c0_41 = arith.constant 0 : index
    %26 = vector.load %arg9[%c1_39, %c2_40, %c0_41] : memref<18x18x128xbf16, #tpu.memory_space<vmem>>, vector<16x16x128xbf16>
    %27 = vector.shape_cast %26 : vector<16x16x128xbf16> to vector<256x128xbf16>
    %c0_42 = arith.constant 0 : index
    %c640 = arith.constant 640 : index
    %28 = vector.load %arg10[%c0_42, %c640] : memref<256x1152xbf16, #tpu.memory_space<vmem>>, vector<256x128xbf16>
    tpu.vector_store %arg10[%c0_42, %c640], %27 {strides = array<i32>} : memref<256x1152xbf16, #tpu.memory_space<vmem>>, vector<256x128xbf16>,
    %c2_43 = arith.constant 2 : index
    %c0_44 = arith.constant 0 : index
    %c0_45 = arith.constant 0 : index
    %29 = vector.load %arg9[%c2_43, %c0_44, %c0_45] : memref<18x18x128xbf16, #tpu.memory_space<vmem>>, vector<16x16x128xbf16>
    %30 = vector.shape_cast %29 : vector<16x16x128xbf16> to vector<256x128xbf16>
    %c0_46 = arith.constant 0 : index
    %c768 = arith.constant 768 : index
    %31 = vector.load %arg10[%c0_46, %c768] : memref<256x1152xbf16, #tpu.memory_space<vmem>>, vector<256x128xbf16>
    tpu.vector_store %arg10[%c0_46, %c768], %30 {strides = array<i32>} : memref<256x1152xbf16, #tpu.memory_space<vmem>>, vector<256x128xbf16>,
    %c2_47 = arith.constant 2 : index
    %c1_48 = arith.constant 1 : index
    %c0_49 = arith.constant 0 : index
    %32 = vector.load %arg9[%c2_47, %c1_48, %c0_49] : memref<18x18x128xbf16, #tpu.memory_space<vmem>>, vector<16x16x128xbf16>
    %33 = vector.shape_cast %32 : vector<16x16x128xbf16> to vector<256x128xbf16>
    %c0_50 = arith.constant 0 : index
    %c896 = arith.constant 896 : index
    %34 = vector.load %arg10[%c0_50, %c896] : memref<256x1152xbf16, #tpu.memory_space<vmem>>, vector<256x128xbf16>
    tpu.vector_store %arg10[%c0_50, %c896], %33 {strides = array<i32>} : memref<256x1152xbf16, #tpu.memory_space<vmem>>, vector<256x128xbf16>,
    %c2_51 = arith.constant 2 : index
    %c2_52 = arith.constant 2 : index
    %c0_53 = arith.constant 0 : index
    %35 = vector.load %arg9[%c2_51, %c2_52, %c0_53] : memref<18x18x128xbf16, #tpu.memory_space<vmem>>, vector<16x16x128xbf16>
    %36 = vector.shape_cast %35 : vector<16x16x128xbf16> to vector<256x128xbf16>
    %c0_54 = arith.constant 0 : index
    %c1024 = arith.constant 1024 : index
    %37 = vector.load %arg10[%c0_54, %c1024] : memref<256x1152xbf16, #tpu.memory_space<vmem>>, vector<256x128xbf16>
    tpu.vector_store %arg10[%c0_54, %c1024], %36 {strides = array<i32>} : memref<256x1152xbf16, #tpu.memory_space<vmem>>, vector<256x128xbf16>,
    %c0_55 = arith.constant 0 : index
    %c0_56 = arith.constant 0 : index
    %38 = vector.load %arg10[%c0_55, %c0_56] : memref<256x1152xbf16, #tpu.memory_space<vmem>>, vector<256x1152xbf16>
    %cst_57 = arith.constant dense<0.000000e+00> : vector<256x128xf32>
    %39 = tpu.matmul %38, %10, %cst_57 {dimension_numbers = #tpu.dot_dimension_numbers<[1], [0], [0], [1], [0, 0, 1, 1], [], []>} : vector<256x1152xbf16>, vector<1152x128xbf16>, vector<256x128xf32> -> vector<256x128xf32>
    %c0_58 = arith.constant 0 : index
    %c0_59 = arith.constant 0 : index
    %40 = vector.load %arg3[%c0_58, %c0_59] : memref<1x128xf32, #tpu.memory_space<vmem>>, vector<1x128xf32>
    %41 = vector.broadcast %40 : vector<1x128xf32> to vector<256x128xf32>
    %42 = arith.mulf %39, %41 : vector<256x128xf32>
    %c0_60 = arith.constant 0 : index
    %c0_61 = arith.constant 0 : index
    %43 = vector.load %arg4[%c0_60, %c0_61] : memref<1x128xf32, #tpu.memory_space<vmem>>, vector<1x128xf32>
    %44 = vector.broadcast %43 : vector<1x128xf32> to vector<256x128xf32>
    %45 = arith.addf %42, %44 : vector<256x128xf32>
    %cst_62 = arith.constant 0.000000e+00 : f32
    %46 = vector.broadcast %cst_62 : f32 to vector<256x128xf32>
    %47 = arith.maximumf %45, %46 : vector<256x128xf32>
    %48 = arith.truncf %47 : vector<256x128xf32> to vector<256x128xbf16>
    %49 = vector.shape_cast %48 : vector<256x128xbf16> to vector<16x16x128xbf16>
    %c1_63 = arith.constant 1 : index
    %c1_64 = arith.constant 1 : index
    %c0_65 = arith.constant 0 : index
    %50 = vector.load %arg9[%c1_63, %c1_64, %c0_65] : memref<18x18x128xbf16, #tpu.memory_space<vmem>>, vector<16x16x128xbf16>
    tpu.vector_store %arg9[%c1_63, %c1_64, %c0_65], %49 {strides = array<i32>} : memref<18x18x128xbf16, #tpu.memory_space<vmem>>, vector<16x16x128xbf16>,
    tpu.wait_dma2 semaphore(%arg12 : memref<!tpu.dma_semaphore, #tpu.memory_space<semaphore_mem>>) src(%arg5 : memref<1152x128xbf16, #tpu.memory_space<any>>) dst(%arg11 : memref<1152x128xbf16, #tpu.memory_space<vmem>>)
    %c0_66 = arith.constant 0 : index
    %c0_67 = arith.constant 0 : index
    %51 = vector.load %arg11[%c0_66, %c0_67] : memref<1152x128xbf16, #tpu.memory_space<vmem>>, vector<1152x128xbf16>
    %c0_68 = arith.constant 0 : index
    %c0_69 = arith.constant 0 : index
    %c0_70 = arith.constant 0 : index
    %52 = vector.load %arg9[%c0_68, %c0_69, %c0_70] : memref<18x18x128xbf16, #tpu.memory_space<vmem>>, vector<16x16x128xbf16>
    %53 = vector.shape_cast %52 : vector<16x16x128xbf16> to vector<256x128xbf16>
    %c0_71 = arith.constant 0 : index
    %c0_72 = arith.constant 0 : index
    %54 = vector.load %arg10[%c0_71, %c0_72] : memref<256x1152xbf16, #tpu.memory_space<vmem>>, vector<256x128xbf16>
    tpu.vector_store %arg10[%c0_71, %c0_72], %53 {strides = array<i32>} : memref<256x1152xbf16, #tpu.memory_space<vmem>>, vector<256x128xbf16>,
    %c0_73 = arith.constant 0 : index
    %c1_74 = arith.constant 1 : index
    %c0_75 = arith.constant 0 : index
    %55 = vector.load %arg9[%c0_73, %c1_74, %c0_75] : memref<18x18x128xbf16, #tpu.memory_space<vmem>>, vector<16x16x128xbf16>
    %56 = vector.shape_cast %55 : vector<16x16x128xbf16> to vector<256x128xbf16>
    %c0_76 = arith.constant 0 : index
    %c128_77 = arith.constant 128 : index
    %57 = vector.load %arg10[%c0_76, %c128_77] : memref<256x1152xbf16, #tpu.memory_space<vmem>>, vector<256x128xbf16>
    tpu.vector_store %arg10[%c0_76, %c128_77], %56 {strides = array<i32>} : memref<256x1152xbf16, #tpu.memory_space<vmem>>, vector<256x128xbf16>,
    %c0_78 = arith.constant 0 : index
    %c2_79 = arith.constant 2 : index
    %c0_80 = arith.constant 0 : index
    %58 = vector.load %arg9[%c0_78, %c2_79, %c0_80] : memref<18x18x128xbf16, #tpu.memory_space<vmem>>, vector<16x16x128xbf16>
    %59 = vector.shape_cast %58 : vector<16x16x128xbf16> to vector<256x128xbf16>
    %c0_81 = arith.constant 0 : index
    %c256_82 = arith.constant 256 : index
    %60 = vector.load %arg10[%c0_81, %c256_82] : memref<256x1152xbf16, #tpu.memory_space<vmem>>, vector<256x128xbf16>
    tpu.vector_store %arg10[%c0_81, %c256_82], %59 {strides = array<i32>} : memref<256x1152xbf16, #tpu.memory_space<vmem>>, vector<256x128xbf16>,
    %c1_83 = arith.constant 1 : index
    %c0_84 = arith.constant 0 : index
    %c0_85 = arith.constant 0 : index
    %61 = vector.load %arg9[%c1_83, %c0_84, %c0_85] : memref<18x18x128xbf16, #tpu.memory_space<vmem>>, vector<16x16x128xbf16>
    %62 = vector.shape_cast %61 : vector<16x16x128xbf16> to vector<256x128xbf16>
    %c0_86 = arith.constant 0 : index
    %c384_87 = arith.constant 384 : index
    %63 = vector.load %arg10[%c0_86, %c384_87] : memref<256x1152xbf16, #tpu.memory_space<vmem>>, vector<256x128xbf16>
    tpu.vector_store %arg10[%c0_86, %c384_87], %62 {strides = array<i32>} : memref<256x1152xbf16, #tpu.memory_space<vmem>>, vector<256x128xbf16>,
    %c1_88 = arith.constant 1 : index
    %c1_89 = arith.constant 1 : index
    %c0_90 = arith.constant 0 : index
    %64 = vector.load %arg9[%c1_88, %c1_89, %c0_90] : memref<18x18x128xbf16, #tpu.memory_space<vmem>>, vector<16x16x128xbf16>
    %65 = vector.shape_cast %64 : vector<16x16x128xbf16> to vector<256x128xbf16>
    %c0_91 = arith.constant 0 : index
    %c512_92 = arith.constant 512 : index
    %66 = vector.load %arg10[%c0_91, %c512_92] : memref<256x1152xbf16, #tpu.memory_space<vmem>>, vector<256x128xbf16>
    tpu.vector_store %arg10[%c0_91, %c512_92], %65 {strides = array<i32>} : memref<256x1152xbf16, #tpu.memory_space<vmem>>, vector<256x128xbf16>,
    %c1_93 = arith.constant 1 : index
    %c2_94 = arith.constant 2 : index
    %c0_95 = arith.constant 0 : index
    %67 = vector.load %arg9[%c1_93, %c2_94, %c0_95] : memref<18x18x128xbf16, #tpu.memory_space<vmem>>, vector<16x16x128xbf16>
    %68 = vector.shape_cast %67 : vector<16x16x128xbf16> to vector<256x128xbf16>
    %c0_96 = arith.constant 0 : index
    %c640_97 = arith.constant 640 : index
    %69 = vector.load %arg10[%c0_96, %c640_97] : memref<256x1152xbf16, #tpu.memory_space<vmem>>, vector<256x128xbf16>
    tpu.vector_store %arg10[%c0_96, %c640_97], %68 {strides = array<i32>} : memref<256x1152xbf16, #tpu.memory_space<vmem>>, vector<256x128xbf16>,
    %c2_98 = arith.constant 2 : index
    %c0_99 = arith.constant 0 : index
    %c0_100 = arith.constant 0 : index
    %70 = vector.load %arg9[%c2_98, %c0_99, %c0_100] : memref<18x18x128xbf16, #tpu.memory_space<vmem>>, vector<16x16x128xbf16>
    %71 = vector.shape_cast %70 : vector<16x16x128xbf16> to vector<256x128xbf16>
    %c0_101 = arith.constant 0 : index
    %c768_102 = arith.constant 768 : index
    %72 = vector.load %arg10[%c0_101, %c768_102] : memref<256x1152xbf16, #tpu.memory_space<vmem>>, vector<256x128xbf16>
    tpu.vector_store %arg10[%c0_101, %c768_102], %71 {strides = array<i32>} : memref<256x1152xbf16, #tpu.memory_space<vmem>>, vector<256x128xbf16>,
    %c2_103 = arith.constant 2 : index
    %c1_104 = arith.constant 1 : index
    %c0_105 = arith.constant 0 : index
    %73 = vector.load %arg9[%c2_103, %c1_104, %c0_105] : memref<18x18x128xbf16, #tpu.memory_space<vmem>>, vector<16x16x128xbf16>
    %74 = vector.shape_cast %73 : vector<16x16x128xbf16> to vector<256x128xbf16>
    %c0_106 = arith.constant 0 : index
    %c896_107 = arith.constant 896 : index
    %75 = vector.load %arg10[%c0_106, %c896_107] : memref<256x1152xbf16, #tpu.memory_space<vmem>>, vector<256x128xbf16>
    tpu.vector_store %arg10[%c0_106, %c896_107], %74 {strides = array<i32>} : memref<256x1152xbf16, #tpu.memory_space<vmem>>, vector<256x128xbf16>,
    %c2_108 = arith.constant 2 : index
    %c2_109 = arith.constant 2 : index
    %c0_110 = arith.constant 0 : index
    %76 = vector.load %arg9[%c2_108, %c2_109, %c0_110] : memref<18x18x128xbf16, #tpu.memory_space<vmem>>, vector<16x16x128xbf16>
    %77 = vector.shape_cast %76 : vector<16x16x128xbf16> to vector<256x128xbf16>
    %c0_111 = arith.constant 0 : index
    %c1024_112 = arith.constant 1024 : index
    %78 = vector.load %arg10[%c0_111, %c1024_112] : memref<256x1152xbf16, #tpu.memory_space<vmem>>, vector<256x128xbf16>
    tpu.vector_store %arg10[%c0_111, %c1024_112], %77 {strides = array<i32>} : memref<256x1152xbf16, #tpu.memory_space<vmem>>, vector<256x128xbf16>,
    %c0_113 = arith.constant 0 : index
    %c0_114 = arith.constant 0 : index
    %79 = vector.load %arg10[%c0_113, %c0_114] : memref<256x1152xbf16, #tpu.memory_space<vmem>>, vector<256x1152xbf16>
    %cst_115 = arith.constant dense<0.000000e+00> : vector<256x128xf32>
    %80 = tpu.matmul %79, %51, %cst_115 {dimension_numbers = #tpu.dot_dimension_numbers<[1], [0], [0], [1], [0, 0, 1, 1], [], []>} : vector<256x1152xbf16>, vector<1152x128xbf16>, vector<256x128xf32> -> vector<256x128xf32>
    %c0_116 = arith.constant 0 : index
    %c0_117 = arith.constant 0 : index
    %81 = vector.load %arg6[%c0_116, %c0_117] : memref<1x128xf32, #tpu.memory_space<vmem>>, vector<1x128xf32>
    %82 = vector.broadcast %81 : vector<1x128xf32> to vector<256x128xf32>
    %83 = arith.mulf %80, %82 : vector<256x128xf32>
    %c0_118 = arith.constant 0 : index
    %c0_119 = arith.constant 0 : index
    %84 = vector.load %arg7[%c0_118, %c0_119] : memref<1x128xf32, #tpu.memory_space<vmem>>, vector<1x128xf32>
    %85 = vector.broadcast %84 : vector<1x128xf32> to vector<256x128xf32>
    %86 = arith.addf %83, %85 : vector<256x128xf32>
    %c0_120 = arith.constant 0 : index
    %c0_121 = arith.constant 0 : index
    %c0_122 = arith.constant 0 : index
    %c0_123 = arith.constant 0 : index
    %87 = vector.load %arg1[%c0_120, %c0_121, %c0_122, %c0_123] : memref<1x16x16x128xf32, #tpu.memory_space<vmem>>, vector<1x16x16x128xf32>
    %88 = vector.shape_cast %87 : vector<1x16x16x128xf32> to vector<16x16x128xf32>
    %89 = vector.shape_cast %88 : vector<16x16x128xf32> to vector<256x128xf32>
    %90 = arith.addf %86, %89 : vector<256x128xf32>
    %cst_124 = arith.constant 0.000000e+00 : f32
    %91 = vector.broadcast %cst_124 : f32 to vector<256x128xf32>
    %92 = arith.maximumf %90, %91 : vector<256x128xf32>
    %93 = vector.shape_cast %92 : vector<256x128xf32> to vector<16x16x128xf32>
    %c0_125 = arith.constant 0 : index
    %c0_126 = arith.constant 0 : index
    %c0_127 = arith.constant 0 : index
    %c0_128 = arith.constant 0 : index
    %94 = vector.load %arg8[%c0_125, %c0_126, %c0_127, %c0_128] : memref<1x16x16x128xf32, #tpu.memory_space<vmem>>, vector<1x16x16x128xf32>
    %95 = vector.shape_cast %94 : vector<1x16x16x128xf32> to vector<16x16x128xf32>
    %96 = vector.shape_cast %93 : vector<16x16x128xf32> to vector<1x16x16x128xf32>
    tpu.vector_store %arg8[%c0_125, %c0_126, %c0_127, %c0_128], %96 {strides = array<i32>} : memref<1x16x16x128xf32, #tpu.memory_space<vmem>>, vector<1x16x16x128xf32>,
    return
  }
  func.func @transform_0(%arg0: i32) -> (i32, i32, i32, i32) {
    %c0_i32 = arith.constant 0 : i32
    %c0_i32_0 = arith.constant 0 : i32
    %c0_i32_1 = arith.constant 0 : i32
    %c0_i32_2 = arith.constant 0 : i32
    return %arg0, %c0_i32, %c0_i32_0, %c0_i32_1 : i32, i32, i32, i32
  }
  func.func @transform_1(%arg0: i32) -> (i32, i32) {
    %c0_i32 = arith.constant 0 : i32
    %c0_i32_0 = arith.constant 0 : i32
    %c0_i32_1 = arith.constant 0 : i32
    return %c0_i32, %c0_i32_0 : i32, i32
  }
  func.func @transform_2(%arg0: i32) -> (i32, i32) {
    %c0_i32 = arith.constant 0 : i32
    %c0_i32_0 = arith.constant 0 : i32
    %c0_i32_1 = arith.constant 0 : i32
    return %c0_i32, %c0_i32_0 : i32, i32
  }
  func.func @transform_3(%arg0: i32) -> (i32, i32) {
    %c0_i32 = arith.constant 0 : i32
    %c0_i32_0 = arith.constant 0 : i32
    %c0_i32_1 = arith.constant 0 : i32
    return %c0_i32, %c0_i32_0 : i32, i32
  }
  func.func @transform_5(%arg0: i32) -> (i32, i32) {
    %c0_i32 = arith.constant 0 : i32
    %c0_i32_0 = arith.constant 0 : i32
    %c0_i32_1 = arith.constant 0 : i32
    return %c0_i32, %c0_i32_0 : i32, i32
  }
  func.func @transform_6(%arg0: i32) -> (i32, i32) {
    %c0_i32 = arith.constant 0 : i32
    %c0_i32_0 = arith.constant 0 : i32
    %c0_i32_1 = arith.constant 0 : i32
    return %c0_i32, %c0_i32_0 : i32, i32
  }
  func.func @transform_7(%arg0: i32) -> (i32, i32, i32, i32) {
    %c0_i32 = arith.constant 0 : i32
    %c0_i32_0 = arith.constant 0 : i32
    %c0_i32_1 = arith.constant 0 : i32
    %c0_i32_2 = arith.constant 0 : i32
    return %arg0, %c0_i32, %c0_i32_0, %c0_i32_1 : i32, i32, i32, i32
  }
}

</mosaic_0001>

<bundles_post_ra>
// kernel: tpu_custom_call.1
= control target key start
LH: loop header
LB: loop body
LE: loop exit
PB: predicated region body
PF: predicated region fallthrough
CT: control target
= control target key end

     0   :  { %s16836_s0 = inlined_call_operand.hbm [shape: f32[2,16,16,128], index: 0, kind: input, shape index: {}]   ;;  %s16837_s1 = inlined_call_operand.hbm [shape: bf16[1152,128], index: 1, kind: input, shape index: {}]   ;;  %s16838_s2 = inlined_call_operand.vmem [shape: f32[1,128], index: 2, kind: input, shape index: {}]   ;;  %s16839_s3 = inlined_call_operand.vmem [shape: f32[1,128], index: 3, kind: input, shape index: {}]   ;;  %s16840_s4 = inlined_call_operand.hbm [shape: bf16[1152,128], index: 4, kind: input, shape index: {}]   ;;  %s16841_s5 = inlined_call_operand.vmem [shape: f32[1,128], index: 5, kind: input, shape index: {}]   ;;  %s16842_s6 = inlined_call_operand.vmem [shape: f32[1,128], index: 6, kind: input, shape index: {}]   ;;  %s16843_s7 = inlined_call_operand.hbm [shape: f32[2,16,16,128], index: 7, kind: output, shape index: {}]  }
   0x1   :  { %16858 = sst [smem:[#allocation58_spill]] %s16837_s1 }
   0x2   :  { %12 = vsyncpa [#allocation7], 0 }
   0x3   :  { %14 = vsyncpa [#allocation7 + $0x1], 0 }
   0x4   :  { %15 = vsyncpa [#allocation10], 0 }
   0x5   :  { %16 = vsyncpa [#allocation8], 0 }
   0x6   :  { %18 = vsyncpa [#allocation8 + $0x1], 0  ;;  %s13998_s24 = smov 0   ;;  %s14000_s25 = smov 0  }
   0x7   :  { %s14002_s26 = smov 0   ;;  %s14004_s27 = smov 0  }
   0x8 LB: > { %s14019_s28 = sadd.s32 4294967295, %s13945_s27   ;;  %s11487_s29 = sadd.s32 4294967294, %s13945_s27   ;;  %s13945_s27 = sphi %s14004_s27, %s17027_s27   ;;  %s13941_s26 = sphi %s14002_s26, %s17026_s26   ;;  %s13937_s25 = sphi %s14000_s25, %s17025_s25   ;;  %s13933_s24 = sphi %s13998_s24, %s17024_s24  }
   0x9   : > { %p44_p0 = scmp.ne.s32.totalorder %s13937_s25, %s13933_s24  ;;  %p16844_p1 = scmp.eq.s32.totalorder %s14019_s28, 0 }
   0xa   : > { %p179_p3 = scmp.eq.s32.totalorder %s11487_s29, 1  ;;  %p11488_p5 = scmp.ge.s32.totalorder %s13945_s27, 1 }
   0xb   : > { %p14028_p4 = por %p16844_p1, %p44_p0  ;;  %p186_p7 = scmp.lt.s32.totalorder %s13945_s27, 3 }
   0xc   : > { %p14033_p6 = por %p179_p3, %p44_p0  ;;  %s13947_s10 = smov [#allocation9]  }
   0xd   : > { %s16859_s30 = scalar_select %p14028_p4, 1, 0 }
   0xe   : > { %s16860_s8 = scalar_select %p14033_p6, 1, 0 }
   0xf   : > { %p14038_p8 = pnand %p11488_p5, %p186_p7  ;;  %s198_s11 = sshll.u32 %s13947_s10, 4  ;;  %s199_s11 = int_to_ptr.vmem [resolvable:$true] %s198_s11 }
  0x10   : > { %s14052_s13 = sadd.s32 1, %s13945_s27   ;;  %s31_s14 = sadd.s32 1, %s13941_s26 }
  0x11   : > { %s16861_s9 = scalar_select %p14038_p8, 1, 0 }
  0x12   : > { %p13214_p9 = pneg %p14038_p8  ;;  %s28_s15 = ssub.s32 %s13945_s27, %s14052_s13 }
  0x13   : > { %s13812_s16 = scalar_lea.vmem %s199_s11, 9216  ;;  %p13820_p5 = scmp.lt.s32.totalorder %s199_s11, %s199_s11 }
  0x14   : > { %p14047_p11 = pnand %p13214_p9, %p16844_p1  ;;  %p13813_p13 = scmp.ne.s32.totalorder %s199_s11, %s13812_s16 }
  0x15   : > { %p13821_p7 = scmp.lt.s32.totalorder %s13812_s16, %s13812_s16 }
  0x16   : > { %p13803_p12 = pneg %p14047_p11 }
  0x17   : > { %p13822_p10 = por %p13821_p7, %p13820_p5 }
  0x18   : > { %p13815_p0 = pnand %p13813_p13, %p13803_p12 }
  0x1a   : > { %p13816_p3 = pneg %p13815_p0 }
  0x1c   : > { %p13823_p2 = pnand %p13822_p10, %p13816_p3 }
  0x1e   : > { %13826 = shalt.err (!%p13823_p2)
}
  0x1f   : > { %s13948_s17 = smov 64   ;;  %s13949_s18 = smov 4  }
  0x20   : > { %s16863_s1 = sld [smem:[#allocation58_spill]]  ;;  %p29_p9 = scmp.eq.s32.totalorder %s28_s15, 0 }
  0x21   : > { %p38_p12 = scmp.ne.s32.totalorder %s13941_s26, %s13937_s25  ;;  %p39_p10 = scmp.eq.s32.totalorder %s13945_s27, 0 }
  0x22   : > { %p13227_p2 = scmp.lt.s32.totalorder %s13945_s27, 2  ;;  %p16864_p0 = scmp.eq.s32.totalorder %s14019_s28, 1 }
  0x23   : > { %s14069_s21 = scalar_select %p29_p9, %s13941_s26, %s31_s14  }
  0x24   : > { %p40_p13 = por %p39_p10, %p38_p12  ;;  %p14073_p3 = por %p16864_p0, %p38_p12 }
  0x25   : > { %s224_s23 = sand.u32 1, %s13941_s26   ;;  %s12100_s29 = sshll.u32 %s13945_s27, 12 }
  0x26   : > { %13217 = dma.hbm_to_vmem [thread:$0]  (!%p14047_p11), %s16863_s1, 9216, %s199_s11, [#allocation10], %s13948_s17, %s13948_s17, %s13949_s18  }
  0x27   : > { %s16865_s22 = scalar_select %p14073_p3, 1, 0 }
  0x28   : > { %s11491_s10 = sshll.u32 %s224_s23, 8  ;;  %s14082_s19 = scalar_lea.hbm %s16836_s0, %s12100_s29 }
  0x29   : > { %s228_s11 = scalar_lea.vmem [#allocation6], %s11491_s10  ;;  %p14084_p11 = pnand %p13227_p2, %p40_p13 }
  0x2a   : > { %s235_s14 = sshll.u32 %s228_s11, 4  ;;  %s14090_s17 = scalar_lea.sflag [#allocation7], %s224_s23  ;;  %s14088_s14 = int_to_ptr.vmem [resolvable:$true] %s235_s14 }
  0x2b   : > { %s13827_s18 = scalar_lea.hbm %s14082_s19, 4096  ;;  %p13829_p7 = pneg %p14084_p11 }
  0x2c   : > { %p13828_p5 = scmp.ne.s32.totalorder %s14082_s19, %s13827_s18  ;;  %s13832_s10 = scalar_lea.hbm %s16836_s0, 8192 }
  0x2d   : > { %p13833_p10 = scmp.lt.s32.totalorder %s14082_s19, %s16836_s0  ;;  %p13834_p2 = scmp.lt.s32.totalorder %s13832_s10, %s13827_s18 }
  0x2e   : > { %p13830_p9 = pnand %p13829_p7, %p13828_p5 }
  0x2f   : > { %p13835_p13 = por %p13834_p2, %p13833_p10 }
  0x30   : > { %p13831_p12 = pneg %p13830_p9 }
  0x32   : > { %p13836_p0 = pnand %p13835_p13, %p13831_p12 }
  0x34   : > { %13839 = shalt.err (!%p13836_p0)
}
  0x35   : > { %s13840_s23 = scalar_lea.vmem %s14088_s14, 4096  ;;  %s13950_s11 = smov [#allocation6]  }
  0x36   : > { %p13841_p1 = scmp.ne.s32.totalorder %s14088_s14, %s13840_s23  ;;  %s13845_s1 = sshll.u32 %s13950_s11, 4  ;;  %s13846_s1 = int_to_ptr.vmem [resolvable:$false] %s13845_s1 }
  0x37   : > { %s13847_s20 = scalar_lea.vmem %s13846_s1, 8192  ;;  %p13848_p9 = scmp.lt.s32.totalorder %s14088_s14, %s13846_s1 }
  0x38   : > { %p13843_p6 = pnand %p13841_p1, %p13829_p7  ;;  %p13849_p3 = scmp.lt.s32.totalorder %s13847_s20, %s13840_s23 }
  0x3a   : > { %p13844_p5 = pneg %p13843_p6  ;;  %p13850_p4 = por %p13849_p3, %p13848_p9 }
  0x3c   : > { %p13851_p8 = pnand %p13850_p4, %p13844_p5 }
  0x3e   : > { %13854 = shalt.err (!%p13851_p8)
}
  0x3f   : > { %s13951_s18 = smov 128   ;;  %s13952_s29 = smov 8  }
  0x40   : > { %13221 = dma.hbm_to_vmem [thread:$0]  (!%p14084_p11), %s14082_s19, 4096, %s14088_s14, %s14090_s17, %s13951_s18, %s13951_s18, %s13952_s29  }
  0x41   : > { %p16867_p1 = scmp.ne.s32.totalorder %s16861_s9, 0 }
  0x43   : > { %247 = sbr.rel (%p16867_p1) target bundleno = 1549 (0x60d), region = 44 }
  0x48   : > { %s14114_s10 = sand.u32 1, %s13937_s25   ;;  %p16868_p4 = scmp.ne.s32.totalorder %s16859_s30, 0 }
  0x49   : > { %s11495_s1 = sshll.u32 %s14114_s10, 8  ;;  %s250_s12 = scalar_lea.sflag [#allocation7], %s14114_s10 }
  0x4a   : > { %s14120_s16 = scalar_lea.vmem [#allocation6], %s11495_s1 }
  0x4b   : > { %13918 = dma.done.wait (%p16868_p4), %s250_s12, 4096  }
  0x4c   : > { %13920 = vsyncadd (%p16868_p4), %s250_s12, 4294963200  ;;  %p16869_p6 = scmp.eq.s32.totalorder %s14019_s28, 0 }
  0x4e   : > { %13922 = dma.done.wait (%p16869_p6), [#allocation10], 9216   ;;  %p16870_p8 = pmov %p16869_p6 }
  0x4f   : > { %v13953_v0 = vmov 0   ;;  %v13271_v1 = vld [vmem:[#allocation9 + $0x78] sm:$0xff]   ;;  %v13275_v5 = vld [vmem:[#allocation9 + $0x70] sm:$0xff]   ;;  %v13279_v9 = vld [vmem:[#allocation9 + $0x68] sm:$0xff]   ;;  %vm306_vm0 = vsmask.f32 256 }
  0x50   : > { %13924 = vsyncadd (%p16870_p8), [#allocation10], 4294958080  ;;  %298 = vst [vmem:[#allocation2] sm:$0xf] %v13953_v0  ;;  %v13272_v2 = vld [vmem:[#allocation9 + $0xf8] sm:$0xff]   ;;  %12166 = vmatprep.subr.bf16.mxu0 %v13271_v1  ;;  %v13276_v6 = vld [vmem:[#allocation9 + $0xf0] sm:$0xff]  }
  0x51   : > { %299 = vst [vmem:[#allocation2 + $0x4] sm:$0xf] %v13953_v0  ;;  %300 = vst [vmem:[#allocation2 + $0x8] sm:$0x1] %v13953_v0  ;;  %v13273_v3 = vld [vmem:[#allocation9 + $0x38] sm:$0xff]   ;;  %12278 = vmatprep.subr.bf16.mxu1 %v13272_v2  ;;  %v13277_v7 = vld [vmem:[#allocation9 + $0x30] sm:$0xff]  }
  0x52   : > { %302 = vst [vmem:[#allocation2 + $0xcc] sm:$0xf] %v13953_v0  ;;  %303 = vst [vmem:[#allocation2 + $0xd0] sm:$0xf] %v13953_v0  ;;  %v13274_v4 = vld [vmem:[#allocation9 + $0xb8] sm:$0xff]   ;;  %12167 = vmatpush3.bf16.msra.mxu0 %v13273_v3  ;;  %v13278_v8 = vld [vmem:[#allocation9 + $0xb0] sm:$0xff]  }
  0x53   : > { %304 = vst [vmem:[#allocation2 + $0xd4] sm:$0x1] %v13953_v0  ;;  %12279 = vmatpush3.bf16.msra.mxu1 %v13274_v4  ;;  %12168 = vmatprep.subr.bf16.mxu0 %v13275_v5  ;;  %v13280_v10 = vld [vmem:[#allocation9 + $0xe8] sm:$0xff]   ;;  %vm362_vm1 = vsmask.f32 7938  ;;  %v13283_v13 = vld [vmem:[#allocation9 + $0x60] sm:$0xff]  }
  0x54   : > { %12280 = vmatprep.subr.bf16.mxu1 %v13276_v6  ;;  %v13281_v11 = vld [vmem:[#allocation9 + $0x28] sm:$0xff]   ;;  %v13284_v14 = vld [vmem:[#allocation9 + $0xe0] sm:$0xff]   ;;  %v13287_v17 = vld [vmem:[#allocation9 + $0x58] sm:$0xff]   ;;  %vm305_vm2 = vcmask 1040384   ;;  %v16871_v24 = vmov 0  ;;  %vm1786_vm5 = vcmask 1042432  }
  0x55   : > { %v13282_v12 = vld [vmem:[#allocation9 + $0xa8] sm:$0xff]   ;;  %v13285_v15 = vld [vmem:[#allocation9 + $0x20] sm:$0xff]   ;;  %v13288_v18 = vld [vmem:[#allocation9 + $0xd8] sm:$0xff]   ;;  %vm546_vm6 = vsmask.f32 4368  ;;  %vm1787_vm7 = vcmask 1046532  }
  0x56   : > { %12169 = vmatpush3.bf16.msra.mxu0 %v13277_v7  ;;  %v13286_v16 = vld [vmem:[#allocation9 + $0xa0] sm:$0xff]   ;;  %v13289_v19 = vld [vmem:[#allocation9 + $0x18] sm:$0xff]   ;;  %v13291_v21 = vld [vmem:[#allocation9 + $0x50] sm:$0xff]   ;;  %vm1239_vm8 = vsmask.f32 3328  ;;  %v16876_v55 = vmov 0 }
  0x57   : > { %12281 = vmatpush3.bf16.msra.mxu1 %v13278_v8  ;;  %12170 = vmatprep.subr.bf16.mxu0 %v13279_v9  ;;  %v13290_v20 = vld [vmem:[#allocation9 + $0x98] sm:$0xff]   ;;  %v13292_v22 = vld [vmem:[#allocation9 + $0xd0] sm:$0xff]   ;;  %vm14131_vm3 = vmand %vm305_vm2, %vm306_vm0  ;;  %vm1240_vm9 = vsmask.f32 7440  ;;  %vm869_vm11 = vcmask 1043456   ;;  %v16879_v6 = vmov 0 }
  0x58   : > { %12282 = vmatprep.subr.bf16.mxu1 %v13280_v10  ;;  %v13293_v23 = vld [vmem:[#allocation9 + $0x10] sm:$0xff]   ;;  %v16872_v24 = vsel %vm14131_vm3, 4294967295, %v16871_v24  ;;  %vm14136_vm4 = vmand %vm305_vm2, %vm362_vm1  ;;  %v13295_v27 = vld [vmem:[#allocation9 + $0x48] sm:$0xff]   ;;  %s13954_s30 = smov [#allocation4]  }
  0x59   : > { %16873 = vst [vmem:[#allocation20_spill] sm:$0xff] %v16872_v24  ;;  %v13294_v26 = vld [vmem:[#allocation9 + $0x90] sm:$0xff]   ;;  %v13296_v28 = vld [vmem:[#allocation9 + $0xc8] sm:$0xff]   ;;  %v13299_v31 = vld [vmem:[#allocation9 + $0x40] sm:$0xff]   ;;  %s294_s9 = sshll.u32 %s13954_s30, 4  ;;  %s295_s9 = int_to_ptr.vmem [resolvable:$true] %s294_s9 }
  0x5a   : > { %12171 = vmatpush3.bf16.msra.mxu0 %v13281_v11  ;;  %v13297_v29 = vld [vmem:[#allocation9 + $0x8] sm:$0xff]   ;;  %v13300_v32 = vld [vmem:[#allocation9 + $0xc0] sm:$0xff]   ;;  %v364_v36 = vld [vmem:[#allocation2 + $0x8] sm:$0x1]  ;;  %s13863_s19 = scalar_lea.vmem %s295_s9, 9216  ;;  %p13868_p11 = scmp.lt.s32.totalorder %s295_s9, %s295_s9 }
  0x5b   : > { %12283 = vmatpush3.bf16.msra.mxu1 %v13282_v12  ;;  %12172 = vmatprep.subr.bf16.mxu0 %v13283_v13  ;;  %v13298_v30 = vld [vmem:[#allocation9 + $0x88] sm:$0xff]   ;;  %v13301_v33 = vld [vmem:[#allocation9] sm:$0xff]   ;;  %v365_v39 = vsel %vm14136_vm4, 0, %v364_v36  ;;  %v311_v41 = vld [vmem:[#allocation2 + $0xc] sm:$0x1]  ;;  %p13864_p3 = scmp.ne.s32.totalorder %s295_s9, %s13863_s19  ;;  %p13869_p7 = scmp.lt.s32.totalorder %s13863_s19, %s13863_s19 }
  0x5c   : > { %12284 = vmatprep.subr.bf16.mxu1 %v13284_v14  ;;  %v13302_v34 = vld [vmem:[#allocation9 + $0x80] sm:$0xff]   ;;  %v308_v35 = vld [vmem:[#allocation2] sm:$0x1]  ;;  %v1128_v37 = vld [vmem:[#allocation2 + $0x4] sm:$0xf]  ;;  %v312_v44 = vsel %vm14131_vm3, 0, %v311_v41 }
  0x5d   : > { %v309_v38 = vsel %vm14131_vm3, 0, %v308_v35  ;;  %1160 = vst [vmem:[#allocation3 + $0x24] sm:$0xf] %v1128_v37  ;;  %v1192_v40 = vld [vmem:[#allocation2 + $0x4] sm:$0xf]  ;;  %v418_v46 = vld [vmem:[%s14120_s16] sm:$0xff]  ;;  %vm14154_vm10 = vmor %vm1786_vm5, %vm1787_vm7  ;;  %p13870_p12 = por %p13869_p7, %p13868_p11 }
  0x5e   : > { %12173 = vmatpush3.bf16.msra.mxu0 %v13285_v15  ;;  %310 = vst [vmem:[#allocation2] sm:$0x1] %v309_v38  ;;  %366 = vst [vmem:[#allocation2 + $0x8] sm:$0x1] %v365_v39  ;;  %v1252_v42 = vshll.u32 %v1192_v40, 16  ;;  %v1256_v43 = vshrl.u32 %v1192_v40, 16  ;;  %v12101_v49 = vpack.c.bf16 %v418_v46, %v418_v46 }
  0x5f   : > { %12285 = vmatpush3.bf16.msra.mxu1 %v13286_v16  ;;  %12174 = vmatprep.subr.bf16.mxu0 %v13287_v17  ;;  %v367_v45 = vld [vmem:[#allocation2 + $0x14] sm:$0x1]  ;;  %313 = vst [vmem:[#allocation2 + $0xc] sm:$0x1] %v312_v44  ;;  %v419_v48 = vld [vmem:[%s14120_s16 + $0x8] sm:$0xff]  ;;  %v16877_v55 = vsel %vm14154_vm10, 4294967295, %v16876_v55  ;;  %vm14164_vm12 = vmand %vm869_vm11, %vm362_vm1  ;;  %p13871_p10 = pnand %p13870_p12, %p13864_p3 }
  0x60   : > { %12286 = vmatprep.subr.bf16.mxu1 %v13288_v18  ;;  %v368_v47 = vsel %vm14136_vm4, 0, %v367_v45  ;;  %v1690_v50 = vld [vmem:[#allocation2] sm:$0xe]  ;;  %v1691_v51 = vld [vmem:[#allocation2 + $0x4] sm:$0xf]  ;;  %v14150_v52 = vrot.slane %v1252_v42, 5  ;;  %v12102_v54 = vpack.c.bf16 %v419_v48, %v419_v48  ;;  %vm14175_vm13 = vmor %vm306_vm0, %vm546_vm6 }
  0x61   : > { %v1258_v53 = vrot.slane %v1256_v43, 4  ;;  %369 = vst [vmem:[#allocation2 + $0x14] sm:$0x1] %v368_v47  ;;  %16878 = vst [vmem:[#allocation21_spill] sm:$0xff] %v16877_v55  ;;  %v11530_v56 = vrot.slane %v1690_v50, 9  ;;  %v13309_v57 = vld [vmem:[#allocation9 + $0x178] sm:$0xff]  }
  0x62   : > { %12175 = vmatpush3.bf16.msra.mxu0 %v13289_v19  ;;  %v549_v58 = vshrl.u32 %v12101_v49, 16  ;;  %v552_v59 = vshll.u32 %v12101_v49, 16  ;;  %v1791_v60 = vrot.slane %v1691_v51, 5  ;;  %v557_v62 = vshrl.u32 %v12102_v54, 16  ;;  %v314_v3 = vld [vmem:[#allocation2 + $0x18] sm:$0x1]  ;;  %vm14181_vm14 = vmor %vm1239_vm8, %vm1240_vm9 }
  0x63   : > { %12287 = vmatpush3.bf16.msra.mxu1 %v13290_v20  ;;  %12176 = vmatprep.subr.bf16.mxu0 %v13291_v21  ;;  %v1259_v61 = vor.u32 %v1258_v53, %v14150_v52  ;;  %v560_v63 = vshll.u32 %v12102_v54, 16  ;;  %v420_v4 = vld [vmem:[%s14120_s16 + $0x10] sm:$0xff]  ;;  %v421_v5 = vld [vmem:[%s14120_s16 + $0x18] sm:$0xff]  ;;  %v16880_v6 = vsel %vm14164_vm12, 4294967295, %v16879_v6  ;;  %v315_v9 = vsel %vm14131_vm3, 0, %v314_v3  ;;  %v422_v11 = vld [vmem:[%s14120_s16 + $0x20] sm:$0xff] }
  0x64   : > { %12288 = vmatprep.subr.bf16.mxu1 %v13292_v22  ;;  %v551_v0 = vrot.slane %v549_v58, 7  ;;  %v1792_v1 = vsel %vm14154_vm10, %v11530_v56, %v1791_v60  ;;  %v1793_v2 = vrot.slane %v1791_v60, 4  ;;  %16881 = vst [vmem:[#allocation22_spill] sm:$0xff] %v16880_v6  ;;  %v559_v8 = vrot.slane %v557_v62, 7  ;;  %316 = vst [vmem:[#allocation2 + $0x18] sm:$0x1] %v315_v9 }
  0x65   : > { %v1260_v7 = vrot.slane %v1259_v61, 4  ;;  %1933 = vst [vmem:[#allocation3 + $0x8] sm:$0xf] %v1792_v1  ;;  %v12103_v10 = vpack.c.bf16 %v420_v4, %v420_v4  ;;  %v1127_v12 = vld [vmem:[#allocation2] sm:$0xf]  ;;  %v12104_v16 = vpack.c.bf16 %v421_v5, %v421_v5  ;;  %v14171_v17 = vpack.c.bf16 %v422_v11, %v422_v11 }
  0x66   : > { %12177 = vmatpush3.bf16.msra.mxu0 %v13293_v23  ;;  %v1191_v13 = vld [vmem:[#allocation2] sm:$0xf]  ;;  %v1193_v14 = vld [vmem:[#allocation2 + $0x8] sm:$0x1]  ;;  %v554_v15 = vor.u32 %v552_v59, %v551_v0  ;;  %1159 = vst [vmem:[#allocation3] sm:$0xf] %v1127_v12 }
  0x67   : > { %12289 = vmatpush3.bf16.msra.mxu1 %v13294_v26  ;;  %12178 = vmatprep.subr.bf16.mxu0 %v13295_v27  ;;  %v1243_v18 = vshrl.u32 %v1191_v13, 16  ;;  %v1246_v19 = vshll.u32 %v1191_v13, 16  ;;  %v1262_v20 = vshll.u32 %v1193_v14, 16  ;;  %v16882_v21 = vmov 0  ;;  %v871_v23 = vld [vmem:[#allocation2 + $0xc] sm:$0xf] }
  0x68   : > { %12290 = vmatprep.subr.bf16.mxu1 %v13296_v28  ;;  %v16883_v21 = vsel %vm14175_vm13, 4294967295, %v16882_v21  ;;  %v555_v22 = vrot.slane %v551_v0, 4  ;;  %v370_v26 = vld [vmem:[#allocation2 + $0x20] sm:$0x1]  ;;  %v16885_v27 = vmov 0  ;;  %v562_v28 = vor.u32 %v560_v63, %v559_v8 }
  0x69   : > { %16884 = vst [vmem:[#allocation23_spill] sm:$0xff] %v16883_v21  ;;  %v16886_v27 = vsel %vm14181_vm14, 4294967295, %v16885_v27  ;;  %v1248_v35 = vrot.slane %v1246_v19, 5  ;;  %v1264_v36 = vrot.slane %v1262_v20, 5  ;;  %v317_v38 = vld [vmem:[#allocation2 + $0x24] sm:$0x1] }
  0x6a   : > { %12179 = vmatpush3.bf16.msra.mxu0 %v13297_v29  ;;  %16887 = vst [vmem:[#allocation24_spill] sm:$0xff] %v16886_v27  ;;  %v564_v29 = vrot.slane %v559_v8, 4  ;;  %v563_v39 = vsel %vm14175_vm13, %v555_v22, %v562_v28  ;;  %v569_v42 = vshll.u32 %v12103_v10, 16  ;;  %v423_v43 = vld [vmem:[%s14120_s16 + $0x28] sm:$0xff]  ;;  %v574_v47 = vshrl.u32 %v12104_v16, 16 }
  0x6b   : > { %12291 = vmatpush3.bf16.msra.mxu1 %v13298_v30  ;;  %12180 = vmatprep.subr.bf16.mxu0 %v13299_v31  ;;  %v872_v30 = vsel %vm14164_vm12, %v554_v15, %v871_v23  ;;  %v875_v31 = vld [vmem:[#allocation2 + $0x14] sm:$0x1]  ;;  %v1265_v45 = vsel %vm14181_vm14, %v1260_v7, %v1264_v36  ;;  %874 = vst [vmem:[#allocation2 + $0x10] sm:$0xf] %v563_v39  ;;  %v577_v50 = vshll.u32 %v12104_v16, 16  ;;  %v371_v51 = vsel %vm14136_vm4, 0, %v370_v26 }
  0x6c   : > { %12292 = vmatprep.subr.bf16.mxu1 %v13300_v32  ;;  %v1692_v32 = vld [vmem:[#allocation2 + $0x8] sm:$0x1]  ;;  %873 = vst [vmem:[#allocation2 + $0xc] sm:$0xf] %v872_v30  ;;  %v876_v40 = vsel %vm14131_vm3, %v564_v29, %v875_v31  ;;  %1659 = vst [vmem:[#allocation3 + $0x28] sm:$0xf] %v1265_v45  ;;  %v14200_v58 = vpack.c.bf16 %v423_v43, %v423_v43 }
  0x6d   : > { %v1794_v37 = vrot.slane %v1692_v32, 5  ;;  %877 = vst [vmem:[#allocation2 + $0x14] sm:$0x1] %v876_v40  ;;  %v576_v54 = vrot.slane %v574_v47, 7  ;;  %v878_v56 = vld [vmem:[#allocation2 + $0x18] sm:$0xf] }
  0x6e   : > { %12181 = vmatpush3.bf16.msra.mxu0 %v13301_v33  ;;  %v566_v33 = vshrl.u32 %v12103_v10, 16  ;;  %372 = vst [vmem:[#allocation2 + $0x20] sm:$0x1] %v371_v51  ;;  %v583_v60 = vshrl.u32 %v14171_v17, 16  ;;  %v586_v61 = vshll.u32 %v14171_v17, 16  ;;  %v591_v1 = vshrl.u32 %v14200_v58, 16 }
  0x6f   : > { %12293 = vmatpush3.bf16.msra.mxu1 %v13302_v34  ;;  %12390 = vmatprep.subr.bf16.mxu0 %v13309_v57  ;;  %v1245_v34 = vrot.slane %v1243_v18, 4  ;;  %v1795_v46 = vsel %vm14154_vm10, %v1793_v2, %v1794_v37  ;;  %v318_v57 = vsel %vm14131_vm3, 0, %v317_v38  ;;  %v579_v63 = vor.u32 %v577_v50, %v576_v54  ;;  %v424_v23 = vld [vmem:[%s14120_s16 + $0x30] sm:$0xff]  ;;  %v13310_v26 = vld [vmem:[#allocation9 + $0x138] sm:$0xff]   ;;  %v426_v40 = vld [vmem:[%s14120_s16 + $0x40] sm:$0xff] }
  0x70   : > { %v568_v41 = vrot.slane %v566_v33, 7  ;;  %1934 = vst [vmem:[#allocation3 + $0x2c] sm:$0xf] %v1795_v46  ;;  %319 = vst [vmem:[#allocation2 + $0x24] sm:$0x1] %v318_v57  ;;  %v581_v0 = vrot.slane %v576_v54, 4 }
  0x71   : > { %v1249_v44 = vor.u32 %v1248_v35, %v1245_v34  ;;  %v14212_v10 = vrot.slane %v583_v60, 7  ;;  %v425_v33 = vld [vmem:[%s14120_s16 + $0x38] sm:$0xff]  ;;  %v13321_v39 = vld [vmem:[#allocation9 + $0x170] sm:$0xff]   ;;  %v14239_v17 = vrot.slane %v591_v1, 7 }
  0x72   : > { %v571_v48 = vor.u32 %v569_v42, %v568_v41  ;;  %v572_v49 = vrot.slane %v568_v41, 4  ;;  %v1130_v11 = vld [vmem:[#allocation2 + $0x10] sm:$0xf]  ;;  %v13303_v41 = vld [vmem:[#allocation3] ss:$36 sps:$4 sm:$0xff]   ;;  %v13322_v54 = vld [vmem:[#allocation9 + $0x130] sm:$0xff]   ;;  %v14225_v57 = vpack.c.bf16 %v425_v33, %v425_v33 }
  0x73   : > { %v1250_v53 = vrot.slane %v1249_v44, 4  ;;  %v1965_v2 = vld [vmem:[#allocation2 + $0xc] sm:$0xf]  ;;  %v1195_v12 = vld [vmem:[#allocation2 + $0x10] sm:$0xf]  ;;  %v13334_v33 = vld [vmem:[#allocation9 + $0x128] sm:$0xff]  }
  0x74   : > { %v879_v59 = vsel %vm14164_vm12, %v571_v48, %v878_v56  ;;  %v1129_v3 = vld [vmem:[#allocation2 + $0xc] sm:$0xf]  ;;  %1997 = vst [vmem:[#allocation3 + $0xc] sm:$0xf] %v1965_v2  ;;  %v580_v8 = vsel %vm14175_vm13, %v572_v49, %v579_v63  ;;  %1162 = vst [vmem:[#allocation3 + $0x6c] sm:$0xf] %v1130_v11  ;;  %v14223_v56 = vpack.c.bf16 %v424_v23, %v424_v23 }
  0x75   : > { %v1255_v62 = vsel %vm14181_vm14, %v1250_v53, %v14150_v52  ;;  %880 = vst [vmem:[#allocation2 + $0x18] sm:$0xf] %v879_v59  ;;  %v1194_v4 = vld [vmem:[#allocation2 + $0xc] sm:$0xf]  ;;  %1161 = vst [vmem:[#allocation3 + $0x48] sm:$0xf] %v1129_v3  ;;  %v14232_v2 = vpack.c.bf16 %v426_v40, %v426_v40 }
  0x76   : > { %1658 = vst [vmem:[#allocation3 + $0x4] sm:$0xf] %v1255_v62  ;;  %v1267_v5 = vshrl.u32 %v1194_v4, 16  ;;  %v1270_v7 = vshll.u32 %v1194_v4, 16  ;;  %v1693_v9 = vld [vmem:[#allocation2 + $0xc] sm:$0xe] }
  0x77   : > { %v1966_v52 = vld [vmem:[#allocation2 + $0x10] sm:$0xf]  ;;  %881 = vst [vmem:[#allocation2 + $0x1c] sm:$0xf] %v580_v8  ;;  %v1196_v13 = vld [vmem:[#allocation2 + $0x14] sm:$0x1] }
  0x78   : > { %1998 = vst [vmem:[#allocation3 + $0x30] sm:$0xf] %v1966_v52  ;;  %v1269_v14 = vrot.slane %v1267_v5, 4  ;;  %v1272_v15 = vrot.slane %v1270_v7, 5  ;;  %v1276_v16 = vshll.u32 %v1195_v12, 16  ;;  %v1280_v18 = vshrl.u32 %v1195_v12, 16 }
  0x79   : > { %v1286_v19 = vshll.u32 %v1196_v13, 16  ;;  %v1694_v20 = vld [vmem:[#allocation2 + $0x10] sm:$0xf]  ;;  %v1695_v22 = vld [vmem:[#allocation2 + $0x14] sm:$0x1]  ;;  %v11531_v30 = vrot.slane %v1693_v9, 9 }
  0x7a   : > { %v1273_v28 = vor.u32 %v1272_v15, %v1269_v14  ;;  %v1278_v29 = vrot.slane %v1276_v16, 5  ;;  %v1798_v31 = vrot.slane %v1694_v20, 5  ;;  %v882_v32 = vld [vmem:[#allocation2 + $0x20] sm:$0x1]  ;;  %v1282_v34 = vrot.slane %v1280_v18, 4 }
  0x7b   : > { %v1288_v35 = vrot.slane %v1286_v19, 5  ;;  %v1801_v36 = vrot.slane %v1695_v22, 5  ;;  %v883_v38 = vsel %vm14131_vm3, %v581_v0, %v882_v32  ;;  %v13306_v59 = vld [vmem:[#allocation3 + $0x8] ss:$36 sps:$4 sm:$0xff]   ;;  %v588_v0 = vor.u32 %v586_v61, %v14212_v10  ;;  %v373_v9 = vld [vmem:[#allocation2 + $0x2c] sm:$0x1] }
  0x7c   : > { %v1967_v37 = vld [vmem:[#allocation2 + $0x18] sm:$0xf]  ;;  %v1274_v43 = vrot.slane %v1273_v28, 4  ;;  %v1799_v44 = vsel %vm14154_vm10, %v11531_v30, %v1798_v31  ;;  %884 = vst [vmem:[#allocation2 + $0x20] sm:$0x1] %v883_v38  ;;  %v1283_v45 = vor.u32 %v1282_v34, %v1278_v29  ;;  %v1800_v46 = vrot.slane %v1798_v31, 4 }
  0x7d   : > { %v13305_v42 = vld [vmem:[#allocation3 + $0x4] ss:$36 sps:$4 sm:$0xff]   ;;  %1999 = vst [vmem:[#allocation3 + $0x54] sm:$0xf] %v1967_v37  ;;  %1935 = vst [vmem:[#allocation3 + $0x50] sm:$0xf] %v1799_v44 }
  0x7e   : > { %v1131_v47 = vld [vmem:[#allocation2 + $0x18] sm:$0xf]  ;;  %4990 = vmatprep.mubr.bf16.mxu0 %v13305_v42  ;;  %v1279_v49 = vsel %vm14181_vm14, %v1274_v43, %v1278_v29  ;;  %v1968_v50 = vld [vmem:[#allocation2 + $0x1c] sm:$0xf]  ;;  %v1284_v62 = vrot.slane %v1283_v45, 4  ;;  %v1802_v63 = vsel %vm14154_vm10, %v1800_v46, %v1801_v36  ;;  %v589_v12 = vrot.slane %v14212_v10, 4 }
  0x7f   : > { %v1197_v48 = vld [vmem:[#allocation2 + $0x18] sm:$0xf]  ;;  %v1132_v51 = vld [vmem:[#allocation2 + $0x1c] sm:$0xf]  ;;  %1163 = vst [vmem:[#allocation3 + $0x90] sm:$0xf] %v1131_v47  ;;  %4991 = vmatmul.mubr.bf16.vlgmr.msra.gmra.mxu0 %v13303_v41 }
  0x80   : > { %v1198_v53 = vld [vmem:[#allocation2 + $0x1c] sm:$0xf]  ;;  %v13308_v60 = vld [vmem:[#allocation3 + $0xc] ss:$36 sps:$4 sm:$0xff]   ;;  %1660 = vst [vmem:[#allocation3 + $0x4c] sm:$0xf] %v1279_v49  ;;  %12391 = vmatpush3.bf16.msra.mxu0 %v13310_v26  ;;  %v1289_v11 = vsel %vm14181_vm14, %v1284_v62, %v1288_v35 }
  0x81   : > { %2000 = vst [vmem:[#allocation3 + $0x78] sm:$0xf] %v1968_v50  ;;  %1164 = vst [vmem:[#allocation3 + $0xb4] sm:$0xf] %v1132_v51  ;;  %v1291_v3 = vshrl.u32 %v1197_v48, 16  ;;  %v1294_v4 = vshll.u32 %v1197_v48, 16  ;;  %5151 = vmatprep.mubr.bf16.mxu1 %v13308_v60  ;;  %12392 = vmatprep.subr.bf16.mxu0 %v13321_v39 }
  0x82   : > { %1936 = vst [vmem:[#allocation3 + $0x74] sm:$0xf] %v1802_v63  ;;  %v1300_v5 = vshll.u32 %v1198_v53, 16  ;;  %v1304_v7 = vshrl.u32 %v1198_v53, 16  ;;  %v885_v8 = vld [vmem:[#allocation2 + $0x24] sm:$0xf]  ;;  %5152 = vmatmul.mubr.bf16.vlgmr.msra.gmra.mxu1 %v13306_v59 }
  0x83   : > { %v320_v52 = vld [vmem:[#allocation2 + $0x30] sm:$0x1]  ;;  %v594_v61 = vshll.u32 %v14200_v58, 16  ;;  %v1696_v13 = vld [vmem:[#allocation2 + $0x18] sm:$0xe]  ;;  %v13333_v14 = vld [vmem:[#allocation9 + $0x168] sm:$0xff]   ;;  %v886_v1 = vsel %vm14164_vm12, %v588_v0, %v885_v8 }
  0x84   : > { %1661 = vst [vmem:[#allocation3 + $0x70] sm:$0xf] %v1289_v11  ;;  %v1293_v15 = vrot.slane %v1291_v3, 4  ;;  %v1296_v16 = vrot.slane %v1294_v4, 5  ;;  %v1302_v18 = vrot.slane %v1300_v5, 5  ;;  %v1306_v19 = vrot.slane %v1304_v7, 4  ;;  %12393 = vmatpush3.bf16.msra.mxu0 %v13322_v54 }
  0x85   : > { %v1697_v20 = vld [vmem:[#allocation2 + $0x1c] sm:$0xf]  ;;  %v1199_v22 = vld [vmem:[#allocation2 + $0x20] sm:$0x1]  ;;  %v596_v23 = vor.u32 %v594_v61, %v14239_v17  ;;  %v598_v10 = vrot.slane %v14239_v17, 4  ;;  %v11532_v58 = vrot.slane %v1696_v13, 9  ;;  %12394 = vmatprep.subr.bf16.mxu0 %v13333_v14 }
  0x86   : > { %v1698_v26 = vld [vmem:[#allocation2 + $0x20] sm:$0x1]  ;;  %v1297_v28 = vor.u32 %v1296_v16, %v1293_v15  ;;  %v1307_v29 = vor.u32 %v1306_v19, %v1302_v18  ;;  %v1310_v30 = vshll.u32 %v1199_v22, 16  ;;  %887 = vst [vmem:[#allocation2 + $0x24] sm:$0xf] %v886_v1  ;;  %v1805_v31 = vrot.slane %v1697_v20, 5 }
  0x87   : > { %v376_v32 = vld [vmem:[#allocation2 + $0x38] sm:$0x1]  ;;  %v597_v34 = vsel %vm14175_vm13, %v589_v12, %v596_v23  ;;  %v1808_v35 = vrot.slane %v1698_v26, 5  ;;  %v374_v36 = vsel %vm14136_vm4, 0, %v373_v9  ;;  %v321_v37 = vsel %vm14131_vm3, 0, %v320_v52  ;;  %v3640_v39 = vld [vmem:[#allocation3 + $0x48] sm:$0xff] }
  0x88   : > { %v323_v38 = vld [vmem:[#allocation2 + $0x3c] sm:$0x1]  ;;  %v1298_v40 = vrot.slane %v1297_v28, 4  ;;  %v1308_v41 = vrot.slane %v1307_v29, 4  ;;  %v1312_v42 = vrot.slane %v1310_v30, 5  ;;  %v1806_v43 = vsel %vm14154_vm10, %v11532_v58, %v1805_v31  ;;  %12395 = vmatpush3.bf16.msra.mxu0 %v13334_v33  ;;  %v427_v12 = vld [vmem:[%s14120_s16 + $0x48] sm:$0xff] }
  0x89   : > { %888 = vst [vmem:[#allocation2 + $0x28] sm:$0xf] %v597_v34  ;;  %375 = vst [vmem:[#allocation2 + $0x2c] sm:$0x1] %v374_v36  ;;  %v13313_v44 = vld [vmem:[#allocation3 + $0x54] ss:$36 sps:$4 sm:$0xff]   ;;  %v12110_v28 = vpack.c.bf16 %v427_v12, %v427_v12 }
  0x8a   : > { %322 = vst [vmem:[#allocation2 + $0x30] sm:$0x1] %v321_v37  ;;  %v13315_v45 = vld [vmem:[#allocation3 + $0x50] ss:$36 sps:$4 sm:$0xff]   ;;  %v1807_v46 = vrot.slane %v1805_v31, 4  ;;  %v1303_v47 = vsel %vm14181_vm14, %v1298_v40, %v1302_v18  ;;  %v1313_v48 = vsel %vm14181_vm14, %v1308_v41, %v1312_v42  ;;  %v600_v49 = vshrl.u32 %v14223_v56, 16  ;;  %5159 = vmatprep.mubr.bf16.mxu1 %v13313_v44 }
  0x8b   : > { %1937 = vst [vmem:[#allocation3 + $0x98] sm:$0xf] %v1806_v43  ;;  %v603_v50 = vshll.u32 %v14223_v56, 16  ;;  %v3645_v51 = vld [vmem:[#allocation3 + $0x6c] sm:$0xff]  ;;  %1662 = vst [vmem:[#allocation3 + $0x94] sm:$0xf] %v1303_v47  ;;  %5160 = vmatmul.mubr.bf16.gmra.mxu1 %v13315_v45 }
  0x8c   : > { %v13311_v53 = vld [vmem:[#allocation3 + $0x4c] ss:$36 sps:$4 sm:$0xff]   ;;  %1663 = vst [vmem:[#allocation3 + $0xb8] sm:$0xf] %v1313_v48  ;;  %v1809_v54 = vsel %vm14154_vm10, %v1807_v46, %v1808_v35  ;;  %v608_v59 = vshrl.u32 %v14225_v57, 16  ;;  %v611_v60 = vshll.u32 %v14225_v57, 16  ;;  %v11587_v63 = vcombine.low %v3640_v39, %v3645_v51 }
  0x8d   : > { %v377_v62 = vsel %vm14136_vm4, 0, %v376_v32  ;;  %1938 = vst [vmem:[#allocation3 + $0xbc] sm:$0xf] %v1809_v54  ;;  %v602_v56 = vrot.slane %v600_v49, 7  ;;  %v324_v0 = vsel %vm14131_vm3, 0, %v323_v38  ;;  %v617_v3 = vshrl.u32 %v14232_v2, 16  ;;  %4998 = vmatprep.mubr.bf16.mxu0 %v13311_v53 }
  0x8e   : > { %378 = vst [vmem:[#allocation2 + $0x38] sm:$0x1] %v377_v62  ;;  %v1969_v4 = vld [vmem:[#allocation2 + $0x24] sm:$0xf]  ;;  %325 = vst [vmem:[#allocation2 + $0x3c] sm:$0x1] %v324_v0  ;;  %4999 = vmatmul.mubr.bf16.gmra.mxu0 %v11587_v63 }
  0x8f   : > { %v1133_v5 = vld [vmem:[#allocation2 + $0x24] sm:$0xf]  ;;  %2001 = vst [vmem:[#allocation3 + $0x9c] sm:$0xf] %v1969_v4  ;;  %v605_v9 = vor.u32 %v603_v50, %v602_v56  ;;  %v606_v52 = vrot.slane %v602_v56, 4  ;;  %v610_v20 = vrot.slane %v608_v59, 7 }
  0x90   : > { %v1200_v7 = vld [vmem:[#allocation2 + $0x24] sm:$0xf]  ;;  %1165 = vst [vmem:[#allocation3 + $0xd8] sm:$0xf] %v1133_v5  ;;  %v1970_v61 = vld [vmem:[#allocation2 + $0x28] sm:$0xf] }
  0x91   : > { %v1315_v57 = vshrl.u32 %v1200_v7, 16  ;;  %v1318_v8 = vshll.u32 %v1200_v7, 16  ;;  %v1699_v11 = vld [vmem:[#allocation2 + $0x24] sm:$0xe]  ;;  %v889_v13 = vld [vmem:[#allocation2 + $0x2c] sm:$0x1]  ;;  %v613_v17 = vor.u32 %v611_v60, %v610_v20 }
  0x92   : > { %v1134_v14 = vld [vmem:[#allocation2 + $0x28] sm:$0xf]  ;;  %2002 = vst [vmem:[#allocation3 + $0xc0] sm:$0xf] %v1970_v61  ;;  %v890_v15 = vsel %vm14131_vm3, %v598_v10, %v889_v13  ;;  %v13345_v22 = vld [vmem:[#allocation9 + $0x160] sm:$0xff]   ;;  %v615_v33 = vrot.slane %v610_v20, 4 }
  0x93   : > { %1166 = vst [vmem:[#allocation3 + $0xfc] sm:$0xf] %v1134_v14  ;;  %v1201_v16 = vld [vmem:[#allocation2 + $0x28] sm:$0xf]  ;;  %v1317_v18 = vrot.slane %v1315_v57, 4  ;;  %v1320_v19 = vrot.slane %v1318_v8, 5  ;;  %12396 = vmatprep.subr.bf16.mxu0 %v13345_v22  ;;  %v614_v41 = vsel %vm14175_vm13, %v606_v52, %v613_v17 }
  0x94   : > { %891 = vst [vmem:[#allocation2 + $0x2c] sm:$0x1] %v890_v15  ;;  %v1324_v23 = vshll.u32 %v1201_v16, 16  ;;  %v1328_v1 = vshrl.u32 %v1201_v16, 16  ;;  %v892_v26 = vld [vmem:[#allocation2 + $0x30] sm:$0xf] }
  0x95   : > { %v1700_v58 = vld [vmem:[#allocation2 + $0x28] sm:$0xf]  ;;  %v3655_v30 = vld [vmem:[#allocation3 + $0xb4] sm:$0xff]  ;;  %v1321_v32 = vor.u32 %v1320_v19, %v1317_v18  ;;  %v893_v10 = vsel %vm14164_vm12, %v605_v9, %v892_v26  ;;  %v11533_v37 = vrot.slane %v1699_v11, 9  ;;  %v896_v38 = vld [vmem:[#allocation2 + $0x38] sm:$0x1] }
  0x96   : > { %v3650_v29 = vld [vmem:[#allocation3 + $0x90] sm:$0xff]  ;;  %v1326_v35 = vrot.slane %v1324_v23, 5  ;;  %v1330_v36 = vrot.slane %v1328_v1, 4  ;;  %894 = vst [vmem:[#allocation2 + $0x30] sm:$0xf] %v893_v10  ;;  %v13346_v39 = vld [vmem:[#allocation9 + $0x120] sm:$0xff]   ;;  %v897_v43 = vsel %vm14131_vm3, %v615_v33, %v896_v38 }
  0x97   : > { %v13316_v31 = vld [vmem:[#allocation3 + $0x94] ss:$36 sps:$4 sm:$0xff]   ;;  %v11596_v34 = vcombine.low %v3650_v29, %v3655_v30  ;;  %v1322_v40 = vrot.slane %v1321_v32, 4  ;;  %v1812_v42 = vrot.slane %v1700_v58, 5  ;;  %v379_v44 = vld [vmem:[#allocation2 + $0x44] sm:$0x1]  ;;  %12397 = vmatpush3.bf16.msra.mxu0 %v13346_v39 }
  0x98   : > { %5006 = vmatprep.mubr.bf16.mxu0 %v13316_v31  ;;  %v1331_v45 = vor.u32 %v1330_v36, %v1326_v35  ;;  %895 = vst [vmem:[#allocation2 + $0x34] sm:$0xf] %v614_v41  ;;  %898 = vst [vmem:[#allocation2 + $0x38] sm:$0x1] %v897_v43  ;;  %v619_v46 = vrot.slane %v617_v3, 7  ;;  %v620_v47 = vshll.u32 %v14232_v2, 16 }
  0x99   : > { %v625_v48 = vshrl.u32 %v12110_v28, 16  ;;  %v899_v49 = vld [vmem:[#allocation2 + $0x3c] sm:$0xf]  ;;  %5007 = vmatmul.mubr.bf16.gmra.mxu0 %v11596_v34  ;;  %v1327_v50 = vsel %vm14181_vm14, %v1322_v40, %v1326_v35  ;;  %v1813_v51 = vsel %vm14154_vm10, %v11533_v37, %v1812_v42  ;;  %v1814_v53 = vrot.slane %v1812_v42, 4  ;;  %v13318_v59 = vld [vmem:[#allocation3 + $0x9c] ss:$36 sps:$4 sm:$0xff]  }
  0x9a   : > { %v628_v54 = vshll.u32 %v12110_v28, 16  ;;  %v13320_v60 = vld [vmem:[#allocation3 + $0x98] ss:$36 sps:$4 sm:$0xff]   ;;  %v1332_v62 = vrot.slane %v1331_v45, 4  ;;  %1664 = vst [vmem:[#allocation3 + $0xdc] sm:$0xf] %v1327_v50  ;;  %v622_v63 = vor.u32 %v620_v47, %v619_v46  ;;  %5167 = vmatprep.mubr.bf16.mxu1 %v13318_v59 }
  0x9b   : > { %1939 = vst [vmem:[#allocation3 + $0xe0] sm:$0xf] %v1813_v51  ;;  %v1202_v56 = vld [vmem:[#allocation2 + $0x2c] sm:$0x1]  ;;  %v623_v0 = vrot.slane %v619_v46, 4  ;;  %v14285_v3 = vrot.slane %v625_v48, 7  ;;  %5168 = vmatmul.mubr.bf16.gmra.mxu1 %v13320_v60 }
  0x9c   : > { %v1701_v2 = vld [vmem:[#allocation2 + $0x2c] sm:$0x1]  ;;  %v1334_v4 = vshll.u32 %v1202_v56, 16  ;;  %v900_v7 = vsel %vm14164_vm12, %v622_v63, %v899_v49  ;;  %v380_v57 = vsel %vm14136_vm4, 0, %v379_v44  ;;  %v326_v16 = vld [vmem:[#allocation2 + $0x48] sm:$0x1] }
  0x9d   : > { %v1815_v5 = vrot.slane %v1701_v2, 5  ;;  %v1971_v8 = vld [vmem:[#allocation2 + $0x30] sm:$0xf]  ;;  %v630_v11 = vor.u32 %v628_v54, %v14285_v3  ;;  %901 = vst [vmem:[#allocation2 + $0x3c] sm:$0xf] %v900_v7  ;;  %v428_v18 = vld [vmem:[%s14120_s16 + $0x50] sm:$0xff] }
  0x9e   : > { %v1135_v9 = vld [vmem:[#allocation2 + $0x30] sm:$0xf]  ;;  %381 = vst [vmem:[#allocation2 + $0x44] sm:$0x1] %v380_v57  ;;  %v1336_v12 = vrot.slane %v1334_v4, 5  ;;  %v632_v17 = vrot.slane %v14285_v3, 4  ;;  %v14301_v34 = vpack.c.bf16 %v428_v18, %v428_v18 }
  0x9f   : > { %v1203_v52 = vld [vmem:[#allocation2 + $0x30] sm:$0xf]  ;;  %v1816_v61 = vsel %vm14154_vm10, %v1814_v53, %v1815_v5  ;;  %2003 = vst [vmem:[#allocation3 + $0xe4] sm:$0xf] %v1971_v8  ;;  %1167 = vst [vmem:[#allocation3 + $0x120] sm:$0xf] %v1135_v9  ;;  %v631_v23 = vsel %vm14175_vm13, %v623_v0, %v630_v11 }
  0xa0   : > { %v1339_v13 = vshrl.u32 %v1203_v52, 16  ;;  %v1342_v14 = vshll.u32 %v1203_v52, 16  ;;  %v1702_v15 = vld [vmem:[#allocation2 + $0x30] sm:$0xe]  ;;  %1940 = vst [vmem:[#allocation3 + $0x104] sm:$0xf] %v1816_v61  ;;  %v1337_v1 = vsel %vm14181_vm14, %v1332_v62, %v1336_v12 }
  0xa1   : > { %v1972_v19 = vld [vmem:[#allocation2 + $0x34] sm:$0xf]  ;;  %v1205_v26 = vld [vmem:[#allocation2 + $0x38] sm:$0x1]  ;;  %902 = vst [vmem:[#allocation2 + $0x40] sm:$0xf] %v631_v23 }
  0xa2   : > { %v1136_v20 = vld [vmem:[#allocation2 + $0x34] sm:$0xf]  ;;  %2004 = vst [vmem:[#allocation3 + $0x108] sm:$0xf] %v1972_v19  ;;  %v1341_v58 = vrot.slane %v1339_v13, 4  ;;  %v1344_v28 = vrot.slane %v1342_v14, 5 }
  0xa3   : > { %v1204_v22 = vld [vmem:[#allocation2 + $0x34] sm:$0xf]  ;;  %1168 = vst [vmem:[#allocation3 + $0x144] sm:$0xf] %v1136_v20  ;;  %1665 = vst [vmem:[#allocation3 + $0x100] sm:$0xf] %v1337_v1 }
  0xa4   : > { %v1348_v29 = vshll.u32 %v1204_v22, 16  ;;  %v13352_v30 = vld [vmem:[#allocation9 + $0x1f8] sm:$0xff]   ;;  %v1352_v31 = vshrl.u32 %v1204_v22, 16  ;;  %v1358_v32 = vshll.u32 %v1205_v26, 16  ;;  %v1345_v35 = vor.u32 %v1344_v28, %v1341_v58  ;;  %v1704_v37 = vld [vmem:[#allocation2 + $0x38] sm:$0x1] }
  0xa5   : > { %v1703_v33 = vld [vmem:[#allocation2 + $0x34] sm:$0xf]  ;;  %v11534_v38 = vrot.slane %v1702_v15, 9  ;;  %12502 = vmatprep.subr.bf16.mxu1 %v13352_v30  ;;  %v1822_v43 = vrot.slane %v1704_v37, 5  ;;  %v327_v44 = vsel %vm14131_vm3, 0, %v326_v16  ;;  %v634_v60 = vshrl.u32 %v14301_v34, 16 }
  0xa6   : > { %v429_v10 = vld [vmem:[%s14120_s16 + $0x58] sm:$0xff]  ;;  %v1350_v36 = vrot.slane %v1348_v29, 5  ;;  %v1819_v39 = vrot.slane %v1703_v33, 5  ;;  %v1354_v41 = vrot.slane %v1352_v31, 4  ;;  %v1360_v42 = vrot.slane %v1358_v32, 5  ;;  %v430_v11 = vld [vmem:[%s14120_s16 + $0x60] sm:$0xff] }
  0xa7   : > { %v13353_v40 = vld [vmem:[#allocation9 + $0x1b8] sm:$0xff]   ;;  %v1346_v45 = vrot.slane %v1345_v35, 4  ;;  %v1973_v48 = vld [vmem:[#allocation2 + $0x3c] sm:$0xf]  ;;  %v903_v49 = vld [vmem:[#allocation2 + $0x44] sm:$0x1]  ;;  %v12112_v59 = vpack.c.bf16 %v429_v10, %v429_v10 }
  0xa8   : > { %v1820_v46 = vsel %vm14154_vm10, %v11534_v38, %v1819_v39  ;;  %v1821_v47 = vrot.slane %v1819_v39, 4  ;;  %328 = vst [vmem:[#allocation2 + $0x48] sm:$0x1] %v327_v44  ;;  %12503 = vmatpush3.bf16.msra.mxu1 %v13353_v40  ;;  %v1355_v50 = vor.u32 %v1354_v41, %v1350_v36  ;;  %2005 = vst [vmem:[#allocation3 + $0x12c] sm:$0xf] %v1973_v48  ;;  %v3660_v62 = vld [vmem:[#allocation3 + $0xd8] sm:$0xff] }
  0xa9   : > { %1941 = vst [vmem:[#allocation3 + $0x128] sm:$0xf] %v1820_v46  ;;  %v904_v51 = vsel %vm14131_vm3, %v632_v17, %v903_v49  ;;  %v1137_v53 = vld [vmem:[#allocation2 + $0x3c] sm:$0xf]  ;;  %v1351_v63 = vsel %vm14181_vm14, %v1346_v45, %v1350_v36  ;;  %v1974_v9 = vld [vmem:[#allocation2 + $0x40] sm:$0xf]  ;;  %v14321_v38 = vpack.c.bf16 %v430_v11, %v430_v11 }
  0xaa   : > { %v1206_v54 = vld [vmem:[#allocation2 + $0x3c] sm:$0xf]  ;;  %v1823_v56 = vsel %vm14154_vm10, %v1821_v47, %v1822_v43  ;;  %905 = vst [vmem:[#allocation2 + $0x44] sm:$0x1] %v904_v51  ;;  %1169 = vst [vmem:[#allocation3 + $0x168] sm:$0xf] %v1137_v53 }
  0xab   : > { %v1363_v2 = vshrl.u32 %v1206_v54, 16  ;;  %v1366_v0 = vshll.u32 %v1206_v54, 16  ;;  %v1705_v3 = vld [vmem:[#allocation2 + $0x3c] sm:$0xe]  ;;  %v1356_v7 = vrot.slane %v1355_v50, 4  ;;  %v3665_v57 = vld [vmem:[#allocation3 + $0xfc] sm:$0xff] }
  0xac   : > { %v13325_v4 = vld [vmem:[#allocation3 + $0xe4] ss:$36 sps:$4 sm:$0xff]   ;;  %1666 = vst [vmem:[#allocation3 + $0x124] sm:$0xf] %v1351_v63  ;;  %1942 = vst [vmem:[#allocation3 + $0x14c] sm:$0xf] %v1823_v56  ;;  %v11605_v12 = vcombine.low %v3660_v62, %v3665_v57 }
  0xad   : > { %v13327_v5 = vld [vmem:[#allocation3 + $0xe0] ss:$36 sps:$4 sm:$0xff]   ;;  %v1365_v52 = vrot.slane %v1363_v2, 4  ;;  %5175 = vmatprep.mubr.bf16.mxu1 %v13325_v4  ;;  %v1361_v61 = vsel %vm14181_vm14, %v1356_v7, %v1360_v42  ;;  %2006 = vst [vmem:[#allocation3 + $0x150] sm:$0xf] %v1974_v9  ;;  %v1368_v15 = vrot.slane %v1366_v0, 5 }
  0xae   : > { %v13323_v8 = vld [vmem:[#allocation3 + $0xdc] ss:$36 sps:$4 sm:$0xff]   ;;  %v1138_v13 = vld [vmem:[#allocation2 + $0x40] sm:$0xf]  ;;  %v636_v16 = vrot.slane %v634_v60, 7  ;;  %5176 = vmatmul.mubr.bf16.gmra.mxu1 %v13327_v5  ;;  %v637_v20 = vshll.u32 %v14301_v34, 16 }
  0xaf   : > { %v1207_v14 = vld [vmem:[#allocation2 + $0x40] sm:$0xf]  ;;  %5014 = vmatprep.mubr.bf16.mxu0 %v13323_v8  ;;  %1667 = vst [vmem:[#allocation3 + $0x148] sm:$0xf] %v1361_v61  ;;  %1170 = vst [vmem:[#allocation3 + $0x18c] sm:$0xf] %v1138_v13  ;;  %v1369_v1 = vor.u32 %v1368_v15, %v1365_v52 }
  0xb0   : > { %v1372_v18 = vshll.u32 %v1207_v14, 16  ;;  %v1376_v19 = vshrl.u32 %v1207_v14, 16  ;;  %v642_v22 = vshrl.u32 %v12112_v59, 16  ;;  %v1706_v23 = vld [vmem:[#allocation2 + $0x40] sm:$0xf]  ;;  %5015 = vmatmul.mubr.bf16.gmra.mxu0 %v11605_v12  ;;  %v640_v26 = vrot.slane %v636_v16, 4 }
  0xb1   : > { %v645_v58 = vshll.u32 %v12112_v59, 16  ;;  %v11535_v28 = vrot.slane %v1705_v3, 9  ;;  %v431_v29 = vld [vmem:[%s14120_s16 + $0x68] sm:$0xff]  ;;  %v639_v32 = vor.u32 %v637_v20, %v636_v16  ;;  %v906_v33 = vld [vmem:[#allocation2 + $0x48] sm:$0xf]  ;;  %v1370_v36 = vrot.slane %v1369_v1, 4 }
  0xb2   : > { %v1374_v30 = vrot.slane %v1372_v18, 5  ;;  %v1378_v31 = vrot.slane %v1376_v19, 4  ;;  %v14319_v17 = vrot.slane %v642_v22, 7  ;;  %v382_v10 = vld [vmem:[#allocation2 + $0x50] sm:$0x1]  ;;  %v1826_v34 = vrot.slane %v1706_v23, 5 }
  0xb3   : > { %v1208_v35 = vld [vmem:[#allocation2 + $0x44] sm:$0x1]  ;;  %v329_v37 = vld [vmem:[#allocation2 + $0x54] sm:$0x1]  ;;  %v432_v39 = vld [vmem:[%s14120_s16 + $0x70] sm:$0xff]  ;;  %v14326_v46 = vpack.c.bf16 %v431_v29, %v431_v29  ;;  %v907_v48 = vsel %vm14164_vm12, %v639_v32, %v906_v33  ;;  %v383_v5 = vsel %vm14136_vm4, 0, %v382_v10 }
  0xb4   : > { %v433_v40 = vld [vmem:[%s14120_s16 + $0x78] sm:$0xff]  ;;  %v3670_v41 = vld [vmem:[#allocation3 + $0x120] sm:$0xff]  ;;  %v1379_v42 = vor.u32 %v1378_v31, %v1374_v30  ;;  %v1382_v43 = vshll.u32 %v1208_v35, 16  ;;  %v647_v44 = vor.u32 %v645_v58, %v14319_v17  ;;  %v1707_v45 = vld [vmem:[#allocation2 + $0x44] sm:$0x1]  ;;  %v1375_v47 = vsel %vm14181_vm14, %v1370_v36, %v1374_v30 }
  0xb5   : > { %v1827_v49 = vsel %vm14154_vm10, %v11535_v28, %v1826_v34  ;;  %v1828_v50 = vrot.slane %v1826_v34, 4  ;;  %v385_v51 = vld [vmem:[#allocation2 + $0x5c] sm:$0x1]  ;;  %v332_v53 = vld [vmem:[#allocation2 + $0x60] sm:$0x1]  ;;  %v13359_v54 = vld [vmem:[#allocation9 + $0x158] sm:$0xff]   ;;  %v14336_v56 = vpack.c.bf16 %v432_v39, %v432_v39  ;;  %v14340_v7 = vpack.c.bf16 %v433_v40, %v433_v40 }
  0xb6   : > { %v13330_v59 = vld [vmem:[#allocation3 + $0x12c] ss:$36 sps:$4 sm:$0xff]   ;;  %v1380_v62 = vrot.slane %v1379_v42, 4  ;;  %1668 = vst [vmem:[#allocation3 + $0x16c] sm:$0xf] %v1375_v47  ;;  %v648_v63 = vsel %vm14175_vm13, %v640_v26, %v647_v44  ;;  %v3675_v2 = vld [vmem:[#allocation3 + $0x144] sm:$0xff]  ;;  %12398 = vmatprep.subr.bf16.mxu0 %v13359_v54 }
  0xb7   : > { %v13332_v60 = vld [vmem:[#allocation3 + $0x128] ss:$36 sps:$4 sm:$0xff]   ;;  %908 = vst [vmem:[#allocation2 + $0x48] sm:$0xf] %v907_v48  ;;  %1943 = vst [vmem:[#allocation3 + $0x170] sm:$0xf] %v1827_v49  ;;  %5183 = vmatprep.mubr.bf16.mxu1 %v13330_v59  ;;  %v11614_v57 = vcombine.low %v3670_v41, %v3675_v2 }
  0xb8   : > { %v13328_v0 = vld [vmem:[#allocation3 + $0x124] ss:$36 sps:$4 sm:$0xff]   ;;  %v1384_v3 = vrot.slane %v1382_v43, 5  ;;  %909 = vst [vmem:[#allocation2 + $0x4c] sm:$0xf] %v648_v63  ;;  %v1829_v4 = vrot.slane %v1707_v45, 5  ;;  %5184 = vmatmul.mubr.bf16.gmra.mxu1 %v13332_v60 }
  0xb9   : > { %384 = vst [vmem:[#allocation2 + $0x50] sm:$0x1] %v383_v5  ;;  %v330_v8 = vsel %vm14131_vm3, 0, %v329_v37  ;;  %v651_v9 = vshrl.u32 %v14321_v38, 16  ;;  %v654_v52 = vshll.u32 %v14321_v38, 16  ;;  %v13360_v11 = vld [vmem:[#allocation9 + $0x118] sm:$0xff]   ;;  %5022 = vmatprep.mubr.bf16.mxu0 %v13328_v0 }
  0xba   : > { %v1385_v12 = vsel %vm14181_vm14, %v1380_v62, %v1384_v3  ;;  %v1830_v61 = vsel %vm14154_vm10, %v1828_v50, %v1829_v4  ;;  %331 = vst [vmem:[#allocation2 + $0x54] sm:$0x1] %v330_v8  ;;  %v659_v13 = vshrl.u32 %v14326_v46, 16  ;;  %v662_v14 = vshll.u32 %v14326_v46, 16  ;;  %v388_v15 = vld [vmem:[#allocation2 + $0x68] sm:$0x1]  ;;  %5023 = vmatmul.mubr.bf16.gmra.mxu0 %v11614_v57 }
  0xbb   : > { %1669 = vst [vmem:[#allocation3 + $0x190] sm:$0xf] %v1385_v12  ;;  %1944 = vst [vmem:[#allocation3 + $0x194] sm:$0xf] %v1830_v61  ;;  %v653_v16 = vrot.slane %v651_v9, 7  ;;  %v386_v18 = vsel %vm14136_vm4, 0, %v385_v51  ;;  %12399 = vmatpush3.bf16.msra.mxu0 %v13360_v11 }
  0xbc   : > { %v333_v19 = vsel %vm14131_vm3, 0, %v332_v53  ;;  %v668_v20 = vshrl.u32 %v14336_v56, 16  ;;  %v434_v22 = vld [vmem:[%s14120_s16 + $0x80] sm:$0xff]  ;;  %v649_v23 = vrot.slane %v14319_v17, 4  ;;  %v661_v1 = vrot.slane %v659_v13, 7 }
  0xbd   : > { %387 = vst [vmem:[#allocation2 + $0x5c] sm:$0x1] %v386_v18  ;;  %334 = vst [vmem:[#allocation2 + $0x60] sm:$0x1] %v333_v19  ;;  %v671_v26 = vshll.u32 %v14336_v56, 16  ;;  %v676_v58 = vshrl.u32 %v14340_v7, 16  ;;  %v656_v17 = vor.u32 %v654_v52, %v653_v16  ;;  %v14368_v45 = vpack.c.bf16 %v434_v22, %v434_v22 }
  0xbe   : > { %v657_v28 = vrot.slane %v653_v16, 4  ;;  %v14361_v29 = vrot.slane %v668_v20, 7  ;;  %v679_v30 = vshll.u32 %v14340_v7, 16  ;;  %v389_v31 = vsel %vm14136_vm4, 0, %v388_v15  ;;  %v3680_v32 = vld [vmem:[#allocation3 + $0x168] sm:$0xff] }
  0xbf   : > { %v1975_v33 = vld [vmem:[#allocation2 + $0x48] sm:$0xf]  ;;  %v664_v35 = vor.u32 %v662_v14, %v661_v1  ;;  %v666_v36 = vrot.slane %v661_v1, 4  ;;  %390 = vst [vmem:[#allocation2 + $0x68] sm:$0x1] %v389_v31  ;;  %v678_v12 = vrot.slane %v676_v58, 7 }
  0xc0   : > { %v1139_v10 = vld [vmem:[#allocation2 + $0x48] sm:$0xf]  ;;  %v1976_v34 = vld [vmem:[#allocation2 + $0x4c] sm:$0xf]  ;;  %2007 = vst [vmem:[#allocation3 + $0x174] sm:$0xf] %v1975_v33  ;;  %v673_v51 = vor.u32 %v671_v26, %v14361_v29 }
  0xc1   : > { %v1140_v37 = vld [vmem:[#allocation2 + $0x4c] sm:$0xf]  ;;  %1171 = vst [vmem:[#allocation3 + $0x1b0] sm:$0xf] %v1139_v10  ;;  %v1209_v38 = vld [vmem:[#allocation2 + $0x48] sm:$0xf]  ;;  %v665_v43 = vsel %vm14175_vm13, %v657_v28, %v664_v35  ;;  %v681_v1 = vor.u32 %v679_v30, %v678_v12 }
  0xc2   : > { %2008 = vst [vmem:[#allocation3 + $0x198] sm:$0xf] %v1976_v34  ;;  %v910_v39 = vld [vmem:[#allocation2 + $0x50] sm:$0x1]  ;;  %1172 = vst [vmem:[#allocation3 + $0x1d4] sm:$0xf] %v1140_v37 }
  0xc3   : > { %v1210_v40 = vld [vmem:[#allocation2 + $0x4c] sm:$0xf]  ;;  %v1387_v41 = vshrl.u32 %v1209_v38, 16  ;;  %v1390_v42 = vshll.u32 %v1209_v38, 16  ;;  %v911_v46 = vsel %vm14131_vm3, %v649_v23, %v910_v39  ;;  %v913_v49 = vld [vmem:[#allocation2 + $0x54] sm:$0xf] }
  0xc4   : > { %v335_v44 = vld [vmem:[#allocation2 + $0x6c] sm:$0x1]  ;;  %v1396_v47 = vshll.u32 %v1210_v40, 16  ;;  %v1400_v48 = vshrl.u32 %v1210_v40, 16  ;;  %916 = vst [vmem:[#allocation2 + $0x58] sm:$0xf] %v665_v43  ;;  %v914_v62 = vsel %vm14164_vm12, %v656_v17, %v913_v49 }
  0xc5   : > { %v1708_v50 = vld [vmem:[#allocation2 + $0x48] sm:$0xe]  ;;  %912 = vst [vmem:[#allocation2 + $0x50] sm:$0x1] %v911_v46  ;;  %v1389_v59 = vrot.slane %v1387_v41, 4  ;;  %v1392_v60 = vrot.slane %v1390_v42, 5 }
  0xc6   : > { %v3685_v53 = vld [vmem:[#allocation3 + $0x18c] sm:$0xff]  ;;  %v11536_v63 = vrot.slane %v1708_v50, 9  ;;  %v1398_v2 = vrot.slane %v1396_v47, 5  ;;  %v1402_v0 = vrot.slane %v1400_v48, 4  ;;  %915 = vst [vmem:[#allocation2 + $0x54] sm:$0xf] %v914_v62 }
  0xc7   : > { %v13335_v54 = vld [vmem:[#allocation3 + $0x16c] ss:$36 sps:$4 sm:$0xff]   ;;  %v11623_v56 = vcombine.low %v3680_v32, %v3685_v53  ;;  %v1709_v3 = vld [vmem:[#allocation2 + $0x4c] sm:$0xf]  ;;  %v917_v4 = vld [vmem:[#allocation2 + $0x5c] sm:$0x1]  ;;  %v1393_v5 = vor.u32 %v1392_v60, %v1389_v59 }
  0xc8   : > { %5030 = vmatprep.mubr.bf16.mxu0 %v13335_v54  ;;  %v1833_v57 = vrot.slane %v1709_v3, 5  ;;  %v918_v8 = vsel %vm14131_vm3, %v666_v36, %v917_v4  ;;  %v674_v9 = vrot.slane %v14361_v29, 4  ;;  %v920_v52 = vld [vmem:[#allocation2 + $0x60] sm:$0xf]  ;;  %v1403_v11 = vor.u32 %v1402_v0, %v1398_v2  ;;  %v13339_v22 = vld [vmem:[#allocation3 + $0x170] ss:$36 sps:$4 sm:$0xff]  }
  0xc9   : > { %5031 = vmatmul.mubr.bf16.gmra.mxu0 %v11623_v56  ;;  %919 = vst [vmem:[#allocation2 + $0x5c] sm:$0x1] %v918_v8  ;;  %v921_v61 = vsel %vm14164_vm12, %v673_v51, %v920_v52  ;;  %v336_v13 = vsel %vm14131_vm3, 0, %v335_v44  ;;  %v1394_v14 = vrot.slane %v1393_v5, 4  ;;  %v435_v18 = vld [vmem:[%s14120_s16 + $0x88] sm:$0xff]  ;;  %v685_v19 = vshrl.u32 %v14368_v45, 16 }
  0xca   : > { %v1834_v15 = vsel %vm14154_vm10, %v11536_v63, %v1833_v57  ;;  %v1835_v16 = vrot.slane %v1833_v57, 4  ;;  %922 = vst [vmem:[#allocation2 + $0x60] sm:$0xf] %v921_v61  ;;  %337 = vst [vmem:[#allocation2 + $0x6c] sm:$0x1] %v336_v13  ;;  %v1404_v23 = vrot.slane %v1403_v11, 4  ;;  %v682_v35 = vsel %vm14175_vm13, %v674_v9, %v681_v1 }
  0xcb   : > { %v13337_v20 = vld [vmem:[#allocation3 + $0x174] ss:$36 sps:$4 sm:$0xff]   ;;  %1945 = vst [vmem:[#allocation3 + $0x1b8] sm:$0xf] %v1834_v15  ;;  %v1399_v26 = vsel %vm14181_vm14, %v1394_v14, %v1398_v2  ;;  %v1978_v58 = vld [vmem:[#allocation2 + $0x58] sm:$0xf]  ;;  %v14392_v37 = vpack.c.bf16 %v435_v18, %v435_v18 }
  0xcc   : > { %v1142_v28 = vld [vmem:[#allocation2 + $0x58] sm:$0xf]  ;;  %v924_v31 = vld [vmem:[#allocation2 + $0x68] sm:$0x1]  ;;  %5191 = vmatprep.mubr.bf16.mxu1 %v13337_v20  ;;  %v1211_v32 = vld [vmem:[#allocation2 + $0x50] sm:$0x1] }
  0xcd   : > { %v1213_v29 = vld [vmem:[#allocation2 + $0x58] sm:$0xf]  ;;  %1670 = vst [vmem:[#allocation3 + $0x1b4] sm:$0xf] %v1399_v26  ;;  %v1710_v33 = vld [vmem:[#allocation2 + $0x50] sm:$0x1]  ;;  %5192 = vmatmul.mubr.bf16.gmra.mxu1 %v13339_v22 }
  0xce   : > { %2010 = vst [vmem:[#allocation3 + $0x1e0] sm:$0xf] %v1978_v58  ;;  %1174 = vst [vmem:[#allocation3 + $0x21c] sm:$0xf] %v1142_v28  ;;  %v1420_v10 = vshll.u32 %v1213_v29, 16  ;;  %v1424_v17 = vshrl.u32 %v1213_v29, 16 }
  0xcf   : > { %v1406_v7 = vshll.u32 %v1211_v32, 16  ;;  %v1836_v30 = vrot.slane %v1710_v33, 5  ;;  %v1977_v36 = vld [vmem:[#allocation2 + $0x54] sm:$0xf]  ;;  %923 = vst [vmem:[#allocation2 + $0x64] sm:$0xf] %v682_v35 }
  0xd0   : > { %v1141_v34 = vld [vmem:[#allocation2 + $0x54] sm:$0xf]  ;;  %2009 = vst [vmem:[#allocation3 + $0x1bc] sm:$0xf] %v1977_v36  ;;  %v14394_v39 = vrot.slane %v1420_v10, 5  ;;  %v1426_v40 = vrot.slane %v1424_v17, 4 }
  0xd1   : > { %1173 = vst [vmem:[#allocation3 + $0x1f8] sm:$0xf] %v1141_v34  ;;  %v1212_v38 = vld [vmem:[#allocation2 + $0x54] sm:$0xf]  ;;  %v683_v41 = vrot.slane %v678_v12, 4  ;;  %v14396_v42 = vrot.slane %v685_v19, 7  ;;  %v1837_v44 = vsel %vm14154_vm10, %v1835_v16, %v1836_v30 }
  0xd2   : > { %v1408_v43 = vrot.slane %v1406_v7, 5  ;;  %v1214_v46 = vld [vmem:[#allocation2 + $0x5c] sm:$0x1]  ;;  %v1411_v47 = vshrl.u32 %v1212_v38, 16  ;;  %v1414_v48 = vshll.u32 %v1212_v38, 16  ;;  %v1427_v49 = vor.u32 %v1426_v40, %v14394_v39  ;;  %v13366_v0 = vld [vmem:[#allocation9 + $0x1f0] sm:$0xff]  }
  0xd3   : > { %1946 = vst [vmem:[#allocation3 + $0x1dc] sm:$0xf] %v1837_v44  ;;  %v1430_v50 = vshll.u32 %v1214_v46, 16  ;;  %v1711_v51 = vld [vmem:[#allocation2 + $0x54] sm:$0xe]  ;;  %v925_v54 = vsel %vm14131_vm3, %v683_v41, %v924_v31  ;;  %v688_v59 = vshll.u32 %v14368_v45, 16  ;;  %12504 = vmatprep.subr.bf16.mxu1 %v13366_v0 }
  0xd4   : > { %v1712_v53 = vld [vmem:[#allocation2 + $0x58] sm:$0xf]  ;;  %v1409_v60 = vsel %vm14181_vm14, %v1404_v23, %v1408_v43  ;;  %v1413_v62 = vrot.slane %v1411_v47, 4  ;;  %v1416_v63 = vrot.slane %v1414_v48, 5  ;;  %v1713_v56 = vld [vmem:[#allocation2 + $0x5c] sm:$0x1] }
  0xd5   : > { %v11537_v2 = vrot.slane %v1711_v51, 9  ;;  %926 = vst [vmem:[#allocation2 + $0x68] sm:$0x1] %v925_v54  ;;  %1671 = vst [vmem:[#allocation3 + $0x1d8] sm:$0xf] %v1409_v60  ;;  %v1428_v3 = vrot.slane %v1427_v49, 4  ;;  %v690_v11 = vor.u32 %v688_v59, %v14396_v42 }
  0xd6   : > { %v1432_v4 = vrot.slane %v1430_v50, 5  ;;  %v1840_v5 = vrot.slane %v1712_v53, 5  ;;  %v1843_v57 = vrot.slane %v1713_v56, 5  ;;  %v1979_v8 = vld [vmem:[#allocation2 + $0x60] sm:$0xf]  ;;  %v1417_v9 = vor.u32 %v1416_v63, %v1413_v62  ;;  %v436_v19 = vld [vmem:[%s14120_s16 + $0x90] sm:$0xff] }
  0xd7   : > { %2011 = vst [vmem:[#allocation3 + $0x204] sm:$0xf] %v1979_v8  ;;  %v1143_v45 = vld [vmem:[#allocation2 + $0x60] sm:$0xf]  ;;  %v691_v12 = vrot.slane %v14396_v42, 4  ;;  %v437_v20 = vld [vmem:[%s14120_s16 + $0x98] sm:$0xff]  ;;  %v12119_v51 = vpack.c.bf16 %v436_v19, %v436_v19 }
  0xd8   : > { %v1215_v52 = vld [vmem:[#allocation2 + $0x60] sm:$0xf]  ;;  %v1433_v61 = vsel %vm14181_vm14, %v1428_v3, %v1432_v4  ;;  %v1841_v13 = vsel %vm14154_vm10, %v11537_v2, %v1840_v5  ;;  %v1842_v14 = vrot.slane %v1840_v5, 4  ;;  %v1980_v15 = vld [vmem:[#allocation2 + $0x64] sm:$0xf]  ;;  %v3690_v22 = vld [vmem:[#allocation3 + $0x1b0] sm:$0xff]  ;;  %v14425_v53 = vpack.c.bf16 %v437_v20, %v437_v20 }
  0xd9   : > { %v1144_v16 = vld [vmem:[#allocation2 + $0x64] sm:$0xf]  ;;  %1175 = vst [vmem:[#allocation3 + $0x240] sm:$0xf] %v1143_v45  ;;  %v1435_v18 = vshrl.u32 %v1215_v52, 16  ;;  %v1418_v23 = vrot.slane %v1417_v9, 4 }
  0xda   : > { %1673 = vst [vmem:[#allocation3 + $0x220] sm:$0xf] %v1433_v61  ;;  %1947 = vst [vmem:[#allocation3 + $0x200] sm:$0xf] %v1841_v13  ;;  %v1216_v1 = vld [vmem:[#allocation2 + $0x64] sm:$0xf]  ;;  %v1844_v28 = vsel %vm14154_vm10, %v1842_v14, %v1843_v57 }
  0xdb   : > { %2012 = vst [vmem:[#allocation3 + $0x228] sm:$0xf] %v1980_v15  ;;  %1176 = vst [vmem:[#allocation3 + $0x264] sm:$0xf] %v1144_v16  ;;  %v1438_v26 = vshll.u32 %v1215_v52, 16  ;;  %v693_v58 = vshrl.u32 %v14392_v37, 16  ;;  %v1423_v7 = vsel %vm14181_vm14, %v1418_v23, %v14394_v39 }
  0xdc   : > { %v1437_v29 = vrot.slane %v1435_v18, 4  ;;  %v1444_v31 = vshll.u32 %v1216_v1, 16  ;;  %v1448_v32 = vshrl.u32 %v1216_v1, 16  ;;  %v927_v33 = vld [vmem:[#allocation2 + $0x6c] sm:$0xf]  ;;  %v696_v44 = vshll.u32 %v14392_v37, 16 }
  0xdd   : > { %v13367_v10 = vld [vmem:[#allocation9 + $0x1b0] sm:$0xff]   ;;  %v13342_v17 = vld [vmem:[#allocation3 + $0x1bc] ss:$36 sps:$4 sm:$0xff]   ;;  %1948 = vst [vmem:[#allocation3 + $0x224] sm:$0xf] %v1844_v28  ;;  %v1440_v30 = vrot.slane %v1438_v26, 5  ;;  %v928_v36 = vsel %vm14164_vm12, %v690_v11, %v927_v33 }
  0xde   : > { %v13344_v35 = vld [vmem:[#allocation3 + $0x1b8] ss:$36 sps:$4 sm:$0xff]   ;;  %1672 = vst [vmem:[#allocation3 + $0x1fc] sm:$0xf] %v1423_v7  ;;  %v1217_v38 = vld [vmem:[#allocation2 + $0x68] sm:$0x1]  ;;  %12505 = vmatpush3.bf16.msra.mxu1 %v13367_v10  ;;  %5199 = vmatprep.mubr.bf16.mxu1 %v13342_v17 }
  0xdf   : > { %v391_v34 = vld [vmem:[#allocation2 + $0x74] sm:$0x1]  ;;  %v1446_v40 = vrot.slane %v1444_v31, 5  ;;  %v1450_v41 = vrot.slane %v1448_v32, 4  ;;  %v14422_v43 = vrot.slane %v693_v58, 7  ;;  %v3695_v47 = vld [vmem:[#allocation3 + $0x1d4] sm:$0xff]  ;;  %v1441_v48 = vor.u32 %v1440_v30, %v1437_v29  ;;  %5200 = vmatmul.mubr.bf16.gmra.mxu1 %v13344_v35 }
  0xe0   : > { %929 = vst [vmem:[#allocation2 + $0x6c] sm:$0xf] %v928_v36  ;;  %v338_v46 = vld [vmem:[#allocation2 + $0x78] sm:$0x1]  ;;  %v13340_v39 = vld [vmem:[#allocation3 + $0x1b4] ss:$36 sps:$4 sm:$0xff]   ;;  %v11632_v54 = vcombine.low %v3690_v22, %v3695_v47 }
  0xe1   : > { %v1454_v49 = vshll.u32 %v1217_v38, 16  ;;  %v1714_v50 = vld [vmem:[#allocation2 + $0x60] sm:$0xe]  ;;  %v1451_v59 = vor.u32 %v1450_v41, %v1446_v40  ;;  %v698_v60 = vor.u32 %v696_v44, %v14422_v43  ;;  %v700_v37 = vrot.slane %v14422_v43, 4  ;;  %v1715_v62 = vld [vmem:[#allocation2 + $0x64] sm:$0xf]  ;;  %5038 = vmatprep.mubr.bf16.mxu0 %v13340_v39 }
  0xe2   : > { %v1716_v63 = vld [vmem:[#allocation2 + $0x68] sm:$0x1]  ;;  %v438_v56 = vld [vmem:[%s14120_s16 + $0xa0] sm:$0xff]  ;;  %v1442_v2 = vrot.slane %v1441_v48, 4  ;;  %v11538_v3 = vrot.slane %v1714_v50, 9  ;;  %v1847_v4 = vrot.slane %v1715_v62, 5  ;;  %5039 = vmatmul.mubr.bf16.gmra.mxu0 %v11632_v54 }
  0xe3   : > { %v1456_v0 = vrot.slane %v1454_v49, 5  ;;  %v3705_v5 = vld [vmem:[#allocation3 + $0x21c] sm:$0xff]  ;;  %v1452_v57 = vrot.slane %v1451_v59, 4  ;;  %v699_v8 = vsel %vm14175_vm13, %v691_v12, %v698_v60  ;;  %v1850_v9 = vrot.slane %v1716_v63, 5  ;;  %v13349_v42 = vld [vmem:[#allocation3 + $0x204] ss:$36 sps:$4 sm:$0xff]  }
  0xe4   : > { %v392_v45 = vsel %vm14136_vm4, 0, %v391_v34  ;;  %v1447_v52 = vsel %vm14181_vm14, %v1442_v2, %v1446_v40  ;;  %930 = vst [vmem:[#allocation2 + $0x70] sm:$0xf] %v699_v8  ;;  %v1848_v11 = vsel %vm14154_vm10, %v11538_v3, %v1847_v4  ;;  %v1849_v61 = vrot.slane %v1847_v4, 4  ;;  %v13351_v14 = vld [vmem:[#allocation3 + $0x200] ss:$36 sps:$4 sm:$0xff]   ;;  %5207 = vmatprep.mubr.bf16.mxu1 %v13349_v42 }
  0xe5   : > { %393 = vst [vmem:[#allocation2 + $0x74] sm:$0x1] %v392_v45  ;;  %v339_v13 = vsel %vm14131_vm3, 0, %v338_v46  ;;  %v1457_v12 = vsel %vm14181_vm14, %v1452_v57, %v1456_v0  ;;  %1674 = vst [vmem:[#allocation3 + $0x244] sm:$0xf] %v1447_v52  ;;  %v702_v15 = vshrl.u32 %v12119_v51, 16  ;;  %v14444_v16 = vpack.c.bf16 %v438_v56, %v438_v56 }
  0xe6   : > { %1949 = vst [vmem:[#allocation3 + $0x248] sm:$0xf] %v1848_v11  ;;  %340 = vst [vmem:[#allocation2 + $0x78] sm:$0x1] %v339_v13  ;;  %v3700_v18 = vld [vmem:[#allocation3 + $0x1f8] sm:$0xff]  ;;  %v1851_v20 = vsel %vm14154_vm10, %v1849_v61, %v1850_v9  ;;  %v705_v23 = vshll.u32 %v12119_v51, 16 }
  0xe7   : > { %v13347_v19 = vld [vmem:[#allocation3 + $0x1fc] ss:$36 sps:$4 sm:$0xff]   ;;  %1675 = vst [vmem:[#allocation3 + $0x268] sm:$0xf] %v1457_v12  ;;  %v1981_v22 = vld [vmem:[#allocation2 + $0x6c] sm:$0xf]  ;;  %v11641_v1 = vcombine.low %v3700_v18, %v3705_v5  ;;  %5208 = vmatmul.mubr.bf16.gmra.mxu1 %v13351_v14 }
  0xe8   : > { %1950 = vst [vmem:[#allocation3 + $0x26c] sm:$0xf] %v1851_v20  ;;  %2013 = vst [vmem:[#allocation3 + $0x24c] sm:$0xf] %v1981_v22  ;;  %v1145_v26 = vld [vmem:[#allocation2 + $0x6c] sm:$0xf]  ;;  %5046 = vmatprep.mubr.bf16.mxu0 %v13347_v19 }
  0xe9   : > { %v1218_v58 = vld [vmem:[#allocation2 + $0x6c] sm:$0xf]  ;;  %v704_v28 = vrot.slane %v702_v15, 7  ;;  %v710_v29 = vshrl.u32 %v14425_v53, 16  ;;  %1177 = vst [vmem:[#allocation3 + $0x288] sm:$0xf] %v1145_v26 }
  0xea   : > { %v1459_v31 = vshrl.u32 %v1218_v58, 16  ;;  %v1462_v32 = vshll.u32 %v1218_v58, 16  ;;  %v713_v33 = vshll.u32 %v14425_v53, 16  ;;  %v1717_v10 = vld [vmem:[#allocation2 + $0x6c] sm:$0xe]  ;;  %v439_v17 = vld [vmem:[%s14120_s16 + $0xa8] sm:$0xff]  ;;  %5047 = vmatmul.mubr.bf16.gmra.mxu0 %v11641_v1 }
  0xeb   : > { %v707_v35 = vor.u32 %v705_v23, %v704_v28  ;;  %v708_v7 = vrot.slane %v704_v28, 4  ;;  %v14451_v30 = vrot.slane %v710_v29, 7  ;;  %v719_v36 = vshrl.u32 %v14444_v16, 16  ;;  %v13373_v34 = vld [vmem:[#allocation9 + $0x150] sm:$0xff]   ;;  %v394_v41 = vld [vmem:[#allocation2 + $0x80] sm:$0x1] }
  0xec   : > { %v1461_v38 = vrot.slane %v1459_v31, 4  ;;  %v1464_v40 = vrot.slane %v1462_v32, 5  ;;  %v341_v44 = vld [vmem:[#allocation2 + $0x84] sm:$0x1]  ;;  %v1982_v46 = vld [vmem:[#allocation2 + $0x70] sm:$0xf]  ;;  %12400 = vmatprep.subr.bf16.mxu0 %v13373_v34  ;;  %v12122_v60 = vpack.c.bf16 %v439_v17, %v439_v17 }
  0xed   : > { %v931_v47 = vld [vmem:[#allocation2 + $0x74] sm:$0x1]  ;;  %v1146_v39 = vld [vmem:[#allocation2 + $0x70] sm:$0xf]  ;;  %v715_v48 = vor.u32 %v713_v33, %v14451_v30  ;;  %v3710_v49 = vld [vmem:[#allocation3 + $0x240] sm:$0xff]  ;;  %v11539_v59 = vrot.slane %v1717_v10, 9 }
  0xee   : > { %2014 = vst [vmem:[#allocation3 + $0x270] sm:$0xf] %v1982_v46  ;;  %v932_v50 = vsel %vm14131_vm3, %v700_v37, %v931_v47  ;;  %1178 = vst [vmem:[#allocation3 + $0x2ac] sm:$0xf] %v1146_v39  ;;  %v1219_v51 = vld [vmem:[#allocation2 + $0x70] sm:$0xf]  ;;  %v1465_v53 = vor.u32 %v1464_v40, %v1461_v38 }
  0xef   : > { %v934_v54 = vld [vmem:[#allocation2 + $0x78] sm:$0xf]  ;;  %v3715_v62 = vld [vmem:[#allocation3 + $0x264] sm:$0xff]  ;;  %933 = vst [vmem:[#allocation2 + $0x74] sm:$0x1] %v932_v50  ;;  %v1468_v56 = vshll.u32 %v1219_v51, 16  ;;  %v716_v0 = vsel %vm14175_vm13, %v708_v7, %v715_v48 }
  0xf0   : > { %v13354_v63 = vld [vmem:[#allocation3 + $0x244] ss:$36 sps:$4 sm:$0xff]   ;;  %v1472_v2 = vshrl.u32 %v1219_v51, 16  ;;  %v935_v43 = vsel %vm14164_vm12, %v707_v35, %v934_v54  ;;  %v13374_v3 = vld [vmem:[#allocation9 + $0x110] sm:$0xff]   ;;  %v11650_v4 = vcombine.low %v3710_v49, %v3715_v62  ;;  %v1466_v37 = vrot.slane %v1465_v53, 4  ;;  %v441_v20 = vld [vmem:[%s14120_s16 + $0xb8] sm:$0xff] }
  0xf1   : > { %936 = vst [vmem:[#allocation2 + $0x78] sm:$0xf] %v935_v43  ;;  %937 = vst [vmem:[#allocation2 + $0x7c] sm:$0xf] %v716_v0  ;;  %v1718_v5 = vld [vmem:[#allocation2 + $0x70] sm:$0xf]  ;;  %5054 = vmatprep.mubr.bf16.mxu0 %v13354_v63  ;;  %12401 = vmatpush3.bf16.msra.mxu0 %v13374_v3  ;;  %v14484_v46 = vpack.c.bf16 %v441_v20, %v441_v20 }
  0xf2   : > { %v395_v57 = vsel %vm14136_vm4, 0, %v394_v41  ;;  %v342_v8 = vsel %vm14131_vm3, 0, %v341_v44  ;;  %v1470_v9 = vrot.slane %v1468_v56, 5  ;;  %v1474_v45 = vrot.slane %v1472_v2, 4  ;;  %v440_v14 = vld [vmem:[%s14120_s16 + $0xb0] sm:$0xff]  ;;  %5055 = vmatmul.mubr.bf16.gmra.mxu0 %v11650_v4 }
  0xf3   : > { %v1854_v52 = vrot.slane %v1718_v5, 5  ;;  %396 = vst [vmem:[#allocation2 + $0x80] sm:$0x1] %v395_v57  ;;  %343 = vst [vmem:[#allocation2 + $0x84] sm:$0x1] %v342_v8  ;;  %v721_v11 = vrot.slane %v719_v36, 7  ;;  %v14480_v34 = vpack.c.bf16 %v440_v14, %v440_v14 }
  0xf4   : > { %v717_v61 = vrot.slane %v14451_v30, 4  ;;  %v727_v13 = vshrl.u32 %v12122_v60, 16  ;;  %v730_v42 = vshll.u32 %v12122_v60, 16  ;;  %v1471_v12 = vsel %vm14181_vm14, %v1466_v37, %v1470_v9  ;;  %v397_v1 = vld [vmem:[#allocation2 + $0x8c] sm:$0x1] }
  0xf5   : > { %v1475_v15 = vor.u32 %v1474_v45, %v1470_v9  ;;  %v1855_v18 = vsel %vm14154_vm10, %v11539_v59, %v1854_v52  ;;  %v722_v19 = vshll.u32 %v14444_v16, 16  ;;  %1676 = vst [vmem:[#allocation3 + $0x28c] sm:$0xf] %v1471_v12  ;;  %v725_v22 = vrot.slane %v721_v11, 4  ;;  %v344_v26 = vld [vmem:[#allocation2 + $0x90] sm:$0x1] }
  0xf6   : > { %1951 = vst [vmem:[#allocation3 + $0x290] sm:$0xf] %v1855_v18  ;;  %v14475_v23 = vrot.slane %v727_v13, 7  ;;  %v13356_v58 = vld [vmem:[#allocation3 + $0x24c] ss:$36 sps:$4 sm:$0xff]   ;;  %v1856_v29 = vrot.slane %v1854_v52, 4 }
  0xf7   : > { %v13358_v28 = vld [vmem:[#allocation3 + $0x248] ss:$36 sps:$4 sm:$0xff]   ;;  %v1220_v31 = vld [vmem:[#allocation2 + $0x74] sm:$0x1]  ;;  %v1476_v32 = vrot.slane %v1475_v15, 4  ;;  %v398_v16 = vsel %vm14136_vm4, 0, %v397_v1  ;;  %5215 = vmatprep.mubr.bf16.mxu1 %v13356_v58  ;;  %v724_v36 = vor.u32 %v722_v19, %v721_v11 }
  0xf8   : > { %v1719_v33 = vld [vmem:[#allocation2 + $0x74] sm:$0x1]  ;;  %v732_v10 = vor.u32 %v730_v42, %v14475_v23  ;;  %v1478_v17 = vshll.u32 %v1220_v31, 16  ;;  %v1983_v7 = vld [vmem:[#allocation2 + $0x78] sm:$0xf]  ;;  %5216 = vmatmul.mubr.bf16.gmra.mxu1 %v13358_v28  ;;  %v345_v51 = vsel %vm14131_vm3, 0, %v344_v26 }
  0xf9   : > { %v1857_v35 = vrot.slane %v1719_v33, 5  ;;  %v1984_v30 = vld [vmem:[#allocation2 + $0x7c] sm:$0xf]  ;;  %399 = vst [vmem:[#allocation2 + $0x8c] sm:$0x1] %v398_v16  ;;  %v734_v56 = vrot.slane %v14475_v23, 4 }
  0xfa   : > { %2015 = vst [vmem:[#allocation3 + $0x294] sm:$0xf] %v1983_v7  ;;  %2016 = vst [vmem:[#allocation3 + $0x2b8] sm:$0xf] %v1984_v30  ;;  %v938_v38 = vld [vmem:[#allocation2 + $0x80] sm:$0x1]  ;;  %v733_v44 = vsel %vm14175_vm13, %v725_v22, %v732_v10 }
  0xfb   : > { %v1147_v40 = vld [vmem:[#allocation2 + $0x78] sm:$0xf]  ;;  %v1148_v41 = vld [vmem:[#allocation2 + $0x7c] sm:$0xf]  ;;  %v1480_v47 = vrot.slane %v1478_v17, 5  ;;  %v1858_v39 = vsel %vm14154_vm10, %v1856_v29, %v1857_v35  ;;  %v939_v48 = vsel %vm14131_vm3, %v717_v61, %v938_v38  ;;  %v736_v3 = vshrl.u32 %v14480_v34, 16 }
  0xfc   : > { %1179 = vst [vmem:[#allocation3 + $0x2d0] sm:$0xf] %v1147_v40  ;;  %1180 = vst [vmem:[#allocation3 + $0x2f4] sm:$0xf] %v1148_v41  ;;  %v1221_v49 = vld [vmem:[#allocation2 + $0x78] sm:$0xf] }
  0xfd   : > { %v1222_v50 = vld [vmem:[#allocation2 + $0x7c] sm:$0xf]  ;;  %944 = vst [vmem:[#allocation2 + $0x88] sm:$0xf] %v733_v44  ;;  %1952 = vst [vmem:[#allocation3 + $0x2b4] sm:$0xf] %v1858_v39  ;;  %v1481_v63 = vsel %vm14181_vm14, %v1476_v32, %v1480_v47 }
  0xfe   : > { %940 = vst [vmem:[#allocation2 + $0x80] sm:$0x1] %v939_v48  ;;  %v1483_v53 = vshrl.u32 %v1221_v49, 16  ;;  %v1486_v54 = vshll.u32 %v1221_v49, 16  ;;  %v1492_v59 = vshll.u32 %v1222_v50, 16  ;;  %v1496_v60 = vshrl.u32 %v1222_v50, 16 }
  0xff   : > { %v941_v62 = vld [vmem:[#allocation2 + $0x84] sm:$0xf]  ;;  %346 = vst [vmem:[#allocation2 + $0x90] sm:$0x1] %v345_v51  ;;  %v1720_v0 = vld [vmem:[#allocation2 + $0x78] sm:$0xe] }
 0x100   : > { %v942_v2 = vsel %vm14164_vm12, %v724_v36, %v941_v62  ;;  %v1721_v43 = vld [vmem:[#allocation2 + $0x7c] sm:$0xf]  ;;  %1677 = vst [vmem:[#allocation3 + $0x2b0] sm:$0xf] %v1481_v63  ;;  %v1485_v4 = vrot.slane %v1483_v53, 4  ;;  %v1488_v37 = vrot.slane %v1486_v54, 5 }
 0x101   : > { %v1494_v5 = vrot.slane %v1492_v59, 5  ;;  %v1498_v57 = vrot.slane %v1496_v60, 4  ;;  %943 = vst [vmem:[#allocation2 + $0x84] sm:$0xf] %v942_v2  ;;  %v11540_v8 = vrot.slane %v1720_v0, 9  ;;  %v1861_v9 = vrot.slane %v1721_v43, 5 }
 0x102   : > { %v14498_v45 = vrot.slane %v736_v3, 7  ;;  %v739_v52 = vshll.u32 %v14480_v34, 16  ;;  %v1489_v11 = vor.u32 %v1488_v37, %v1485_v4  ;;  %v945_v13 = vld [vmem:[#allocation2 + $0x8c] sm:$0x1]  ;;  %v744_v42 = vshrl.u32 %v14484_v46, 16  ;;  %v13380_v12 = vld [vmem:[#allocation9 + $0x1e8] sm:$0xff]  }
 0x103   : > { %v1499_v61 = vor.u32 %v1498_v57, %v1494_v5  ;;  %v747_v14 = vshll.u32 %v14484_v46, 16  ;;  %v13381_v15 = vld [vmem:[#allocation9 + $0x1a8] sm:$0xff]   ;;  %v1862_v19 = vsel %vm14154_vm10, %v11540_v8, %v1861_v9  ;;  %v1863_v20 = vrot.slane %v1861_v9, 4  ;;  %12506 = vmatprep.subr.bf16.mxu1 %v13380_v12  ;;  %v13363_v28 = vld [vmem:[#allocation3 + $0x294] ss:$36 sps:$4 sm:$0xff]   ;;  %v442_v51 = vld [vmem:[%s14120_s16 + $0xc0] sm:$0xff] }
 0x104   : > { %v3720_v18 = vld [vmem:[#allocation3 + $0x288] sm:$0xff]  ;;  %v946_v22 = vsel %vm14131_vm3, %v734_v56, %v945_v13  ;;  %v1490_v23 = vrot.slane %v1489_v11, 4  ;;  %1953 = vst [vmem:[#allocation3 + $0x2d8] sm:$0xf] %v1862_v19  ;;  %v1986_v26 = vld [vmem:[#allocation2 + $0x88] sm:$0xf]  ;;  %12507 = vmatpush3.bf16.msra.mxu1 %v13381_v15  ;;  %v741_v17 = vor.u32 %v739_v52, %v14498_v45  ;;  %5223 = vmatprep.mubr.bf16.mxu1 %v13363_v28 }
 0x105   : > { %v1500_v1 = vrot.slane %v1499_v61, 4  ;;  %947 = vst [vmem:[#allocation2 + $0x8c] sm:$0x1] %v946_v22  ;;  %v1150_v58 = vld [vmem:[#allocation2 + $0x88] sm:$0xf]  ;;  %v742_v31 = vrot.slane %v14498_v45, 4  ;;  %v14521_v4 = vpack.c.bf16 %v442_v51, %v442_v51 }
 0x106   : > { %v13365_v29 = vld [vmem:[#allocation3 + $0x290] ss:$36 sps:$4 sm:$0xff]   ;;  %2018 = vst [vmem:[#allocation3 + $0x300] sm:$0xf] %v1986_v26  ;;  %1182 = vst [vmem:[#allocation3 + $0x33c] sm:$0xf] %v1150_v58  ;;  %v1495_v33 = vsel %vm14181_vm14, %v1490_v23, %v1494_v5 }
 0x107   : > { %v1223_v32 = vld [vmem:[#allocation2 + $0x80] sm:$0x1]  ;;  %v1225_v16 = vld [vmem:[#allocation2 + $0x88] sm:$0xf]  ;;  %1678 = vst [vmem:[#allocation3 + $0x2d4] sm:$0xf] %v1495_v33  ;;  %5224 = vmatmul.mubr.bf16.gmra.mxu1 %v13365_v29 }
 0x108   : > { %v1722_v10 = vld [vmem:[#allocation2 + $0x80] sm:$0x1]  ;;  %v3725_v35 = vld [vmem:[#allocation3 + $0x2ac] sm:$0xff]  ;;  %v1502_v30 = vshll.u32 %v1223_v32, 16  ;;  %v1516_v34 = vshll.u32 %v1225_v16, 16  ;;  %v1520_v54 = vshrl.u32 %v1225_v16, 16 }
 0x109   : > { %v13361_v7 = vld [vmem:[#allocation3 + $0x28c] ss:$36 sps:$4 sm:$0xff]   ;;  %v1864_v36 = vrot.slane %v1722_v10, 5  ;;  %v11659_v38 = vcombine.low %v3720_v18, %v3725_v35  ;;  %v948_v50 = vld [vmem:[#allocation2 + $0x90] sm:$0xf]  ;;  %v14514_v59 = vrot.slane %v744_v42, 7 }
 0x10a   : > { %v1985_v40 = vld [vmem:[#allocation2 + $0x84] sm:$0xf]  ;;  %5062 = vmatprep.mubr.bf16.mxu0 %v13361_v7  ;;  %v1504_v47 = vrot.slane %v1502_v30, 5  ;;  %v1518_v53 = vrot.slane %v1516_v34, 5  ;;  %v949_v60 = vsel %vm14164_vm12, %v741_v17, %v948_v50  ;;  %v1724_v43 = vld [vmem:[#allocation2 + $0x88] sm:$0xf] }
 0x10b   : > { %v1149_v41 = vld [vmem:[#allocation2 + $0x84] sm:$0xf]  ;;  %v1865_v39 = vsel %vm14154_vm10, %v1863_v20, %v1864_v36  ;;  %2017 = vst [vmem:[#allocation3 + $0x2dc] sm:$0xf] %v1985_v40  ;;  %5063 = vmatmul.mubr.bf16.gmra.mxu0 %v11659_v38  ;;  %950 = vst [vmem:[#allocation2 + $0x90] sm:$0xf] %v949_v60  ;;  %v749_v57 = vor.u32 %v747_v14, %v14514_v59 }
 0x10c   : > { %v1224_v44 = vld [vmem:[#allocation2 + $0x84] sm:$0xf]  ;;  %1181 = vst [vmem:[#allocation3 + $0x318] sm:$0xf] %v1149_v41  ;;  %1954 = vst [vmem:[#allocation3 + $0x2fc] sm:$0xf] %v1865_v39  ;;  %v1505_v63 = vsel %vm14181_vm14, %v1500_v1, %v1504_v47 }
 0x10d   : > { %v1507_v48 = vshrl.u32 %v1224_v44, 16  ;;  %v1510_v49 = vshll.u32 %v1224_v44, 16  ;;  %v1723_v62 = vld [vmem:[#allocation2 + $0x84] sm:$0xe]  ;;  %v1226_v56 = vld [vmem:[#allocation2 + $0x8c] sm:$0x1]  ;;  %v750_v19 = vsel %vm14175_vm13, %v742_v31, %v749_v57 }
 0x10e   : > { %v443_v3 = vld [vmem:[%s14120_s16 + $0xc8] sm:$0xff]  ;;  %1679 = vst [vmem:[#allocation3 + $0x2f8] sm:$0xf] %v1505_v63  ;;  %v1522_v37 = vrot.slane %v1520_v54, 4  ;;  %v1526_v5 = vshll.u32 %v1226_v56, 16  ;;  %v751_v8 = vrot.slane %v14514_v59, 4 }
 0x10f   : > { %v1509_v2 = vrot.slane %v1507_v48, 4  ;;  %v1512_v0 = vrot.slane %v1510_v49, 5  ;;  %v1725_v9 = vld [vmem:[#allocation2 + $0x8c] sm:$0x1]  ;;  %v13387_v45 = vld [vmem:[#allocation9 + $0x148] sm:$0xff]   ;;  %v11541_v11 = vrot.slane %v1723_v62, 9  ;;  %v12126_v28 = vpack.c.bf16 %v443_v3, %v443_v3 }
 0x110   : > { %v1868_v61 = vrot.slane %v1724_v43, 5  ;;  %v1871_v13 = vrot.slane %v1725_v9, 5  ;;  %v400_v42 = vld [vmem:[#allocation2 + $0x98] sm:$0x1]  ;;  %v13388_v12 = vld [vmem:[#allocation9 + $0x108] sm:$0xff]   ;;  %v1523_v15 = vor.u32 %v1522_v37, %v1518_v53  ;;  %v1528_v18 = vrot.slane %v1526_v5, 5  ;;  %12402 = vmatprep.subr.bf16.mxu0 %v13387_v45 }
 0x111   : > { %v1513_v52 = vor.u32 %v1512_v0, %v1509_v2  ;;  %v401_v20 = vsel %vm14136_vm4, 0, %v400_v42  ;;  %v347_v46 = vld [vmem:[#allocation2 + $0x9c] sm:$0x1]  ;;  %951 = vst [vmem:[#allocation2 + $0x94] sm:$0xf] %v750_v19  ;;  %12403 = vmatpush3.bf16.msra.mxu0 %v13388_v12  ;;  %v3730_v26 = vld [vmem:[#allocation3 + $0x2d0] sm:$0xff] }
 0x112   : > { %v1869_v22 = vsel %vm14154_vm10, %v11541_v11, %v1868_v61  ;;  %v1870_v23 = vrot.slane %v1868_v61, 4  ;;  %402 = vst [vmem:[#allocation2 + $0x98] sm:$0x1] %v401_v20  ;;  %v348_v1 = vsel %vm14131_vm3, 0, %v347_v46  ;;  %v1524_v58 = vrot.slane %v1523_v15, 4  ;;  %v444_v17 = vld [vmem:[%s14120_s16 + $0xd0] sm:$0xff] }
 0x113   : > { %v1514_v14 = vrot.slane %v1513_v52, 4  ;;  %1955 = vst [vmem:[#allocation3 + $0x320] sm:$0xf] %v1869_v22  ;;  %349 = vst [vmem:[#allocation2 + $0x9c] sm:$0x1] %v348_v1  ;;  %v753_v29 = vshrl.u32 %v14521_v4, 16  ;;  %v14545_v0 = vpack.c.bf16 %v444_v17, %v444_v17 }
 0x114   : > { %v13370_v31 = vld [vmem:[#allocation3 + $0x2dc] ss:$36 sps:$4 sm:$0xff]   ;;  %v1872_v10 = vsel %vm14154_vm10, %v1870_v23, %v1871_v13  ;;  %v756_v16 = vshll.u32 %v14521_v4, 16  ;;  %v1529_v35 = vsel %vm14181_vm14, %v1524_v58, %v1528_v18  ;;  %v1987_v7 = vld [vmem:[#allocation2 + $0x90] sm:$0xf]  ;;  %v761_v48 = vshrl.u32 %v12126_v28, 16 }
 0x115   : > { %v13372_v32 = vld [vmem:[#allocation3 + $0x2d8] ss:$36 sps:$4 sm:$0xff]   ;;  %v1519_v33 = vsel %vm14181_vm14, %v1514_v14, %v1518_v53  ;;  %1956 = vst [vmem:[#allocation3 + $0x344] sm:$0xf] %v1872_v10  ;;  %5231 = vmatprep.mubr.bf16.mxu1 %v13370_v31  ;;  %1681 = vst [vmem:[#allocation3 + $0x340] sm:$0xf] %v1529_v35 }
 0x116   : > { %1680 = vst [vmem:[#allocation3 + $0x31c] sm:$0xf] %v1519_v33  ;;  %v1151_v30 = vld [vmem:[#allocation2 + $0x90] sm:$0xf]  ;;  %2019 = vst [vmem:[#allocation3 + $0x324] sm:$0xf] %v1987_v7  ;;  %5232 = vmatmul.mubr.bf16.gmra.mxu1 %v13372_v32 }
 0x117   : > { %v1227_v36 = vld [vmem:[#allocation2 + $0x90] sm:$0xf]  ;;  %1183 = vst [vmem:[#allocation3 + $0x360] sm:$0xf] %v1151_v30  ;;  %v755_v44 = vrot.slane %v753_v29, 7  ;;  %v764_v49 = vshll.u32 %v12126_v28, 16 }
 0x118   : > { %v3735_v34 = vld [vmem:[#allocation3 + $0x2f4] sm:$0xff]  ;;  %v1531_v40 = vshrl.u32 %v1227_v36, 16  ;;  %v1534_v41 = vshll.u32 %v1227_v36, 16  ;;  %v13394_v62 = vld [vmem:[#allocation9 + $0x1e0] sm:$0xff]   ;;  %v1988_v63 = vld [vmem:[#allocation2 + $0x94] sm:$0xf] }
 0x119   : > { %v13368_v38 = vld [vmem:[#allocation3 + $0x2d4] ss:$36 sps:$4 sm:$0xff]   ;;  %v11668_v39 = vcombine.low %v3730_v26, %v3735_v34  ;;  %v758_v54 = vor.u32 %v756_v16, %v755_v44  ;;  %v759_v60 = vrot.slane %v755_v44, 4  ;;  %v952_v56 = vld [vmem:[#allocation2 + $0x98] sm:$0x1]  ;;  %v14551_v37 = vrot.slane %v761_v48, 7  ;;  %12508 = vmatprep.subr.bf16.mxu1 %v13394_v62 }
 0x11a   : > { %v445_v47 = vld [vmem:[%s14120_s16 + $0xd8] sm:$0xff]  ;;  %5070 = vmatprep.mubr.bf16.mxu0 %v13368_v38  ;;  %v1533_v51 = vrot.slane %v1531_v40, 4  ;;  %v1536_v53 = vrot.slane %v1534_v41, 5  ;;  %2020 = vst [vmem:[#allocation3 + $0x348] sm:$0xf] %v1988_v63  ;;  %v953_v43 = vsel %vm14131_vm3, %v751_v8, %v952_v56  ;;  %v13395_v58 = vld [vmem:[#allocation9 + $0x1a0] sm:$0xff]  }
 0x11b   : > { %v1726_v50 = vld [vmem:[#allocation2 + $0x90] sm:$0xe]  ;;  %5071 = vmatmul.mubr.bf16.gmra.mxu0 %v11668_v39  ;;  %v1152_v2 = vld [vmem:[#allocation2 + $0x94] sm:$0xf]  ;;  %v955_v5 = vld [vmem:[#allocation2 + $0x9c] sm:$0xf]  ;;  %v12128_v59 = vpack.c.bf16 %v445_v47, %v445_v47  ;;  %v766_v8 = vor.u32 %v764_v49, %v14551_v37  ;;  %12509 = vmatpush3.bf16.msra.mxu1 %v13395_v58 }
 0x11c   : > { %1184 = vst [vmem:[#allocation3 + $0x384] sm:$0xf] %v1152_v2  ;;  %v1228_v3 = vld [vmem:[#allocation2 + $0x94] sm:$0xf]  ;;  %v1537_v4 = vor.u32 %v1536_v53, %v1533_v51  ;;  %v11542_v57 = vrot.slane %v1726_v50, 9  ;;  %v956_v52 = vsel %vm14164_vm12, %v758_v54, %v955_v5  ;;  %v768_v12 = vrot.slane %v14551_v37, 4 }
 0x11d   : > { %954 = vst [vmem:[#allocation2 + $0x98] sm:$0x1] %v953_v43  ;;  %v1540_v9 = vshll.u32 %v1228_v3, 16  ;;  %v1544_v45 = vshrl.u32 %v1228_v3, 16  ;;  %v1727_v11 = vld [vmem:[#allocation2 + $0x94] sm:$0xf]  ;;  %v767_v23 = vsel %vm14175_vm13, %v759_v60, %v766_v8 }
 0x11e   : > { %v403_v61 = vld [vmem:[#allocation2 + $0xa4] sm:$0x1]  ;;  %v3740_v13 = vld [vmem:[#allocation3 + $0x318] sm:$0xff]  ;;  %v1538_v42 = vrot.slane %v1537_v4, 4  ;;  %957 = vst [vmem:[#allocation2 + $0x9c] sm:$0xf] %v956_v52 }
 0x11f   : > { %v1875_v15 = vrot.slane %v1727_v11, 5  ;;  %v350_v18 = vld [vmem:[#allocation2 + $0xa8] sm:$0x1]  ;;  %v3745_v19 = vld [vmem:[#allocation3 + $0x33c] sm:$0xff]  ;;  %v1542_v46 = vrot.slane %v1540_v9, 5  ;;  %v1546_v14 = vrot.slane %v1544_v45, 4 }
 0x120   : > { %v13375_v20 = vld [vmem:[#allocation3 + $0x31c] ss:$36 sps:$4 sm:$0xff]   ;;  %v11677_v22 = vcombine.low %v3740_v13, %v3745_v19  ;;  %958 = vst [vmem:[#allocation2 + $0xa0] sm:$0xf] %v767_v23  ;;  %v404_v31 = vsel %vm14136_vm4, 0, %v403_v61  ;;  %v351_v32 = vsel %vm14131_vm3, 0, %v350_v18 }
 0x121   : > { %v1876_v1 = vsel %vm14154_vm10, %v11542_v57, %v1875_v15  ;;  %v1877_v26 = vrot.slane %v1875_v15, 4  ;;  %5078 = vmatprep.mubr.bf16.mxu0 %v13375_v20  ;;  %v1543_v28 = vsel %vm14181_vm14, %v1538_v42, %v1542_v46  ;;  %v1547_v29 = vor.u32 %v1546_v14, %v1542_v46  ;;  %405 = vst [vmem:[#allocation2 + $0xa4] sm:$0x1] %v404_v31  ;;  %v13377_v35 = vld [vmem:[#allocation3 + $0x324] ss:$36 sps:$4 sm:$0xff]  }
 0x122   : > { %1957 = vst [vmem:[#allocation3 + $0x368] sm:$0xf] %v1876_v1  ;;  %1682 = vst [vmem:[#allocation3 + $0x364] sm:$0xf] %v1543_v28  ;;  %v770_v33 = vshrl.u32 %v14545_v0, 16  ;;  %v773_v10 = vshll.u32 %v14545_v0, 16  ;;  %5239 = vmatprep.mubr.bf16.mxu1 %v13377_v35 }
 0x123   : > { %352 = vst [vmem:[#allocation2 + $0xa8] sm:$0x1] %v351_v32  ;;  %v778_v16 = vshrl.u32 %v12128_v59, 16  ;;  %v781_v17 = vshll.u32 %v12128_v59, 16  ;;  %5079 = vmatmul.mubr.bf16.gmra.mxu0 %v11677_v22  ;;  %v13379_v7 = vld [vmem:[#allocation3 + $0x320] ss:$36 sps:$4 sm:$0xff]  }
 0x124   : > { %v1548_v30 = vrot.slane %v1547_v29, 4  ;;  %v1229_v36 = vld [vmem:[#allocation2 + $0x98] sm:$0x1]  ;;  %v772_v38 = vrot.slane %v770_v33, 7  ;;  %5240 = vmatmul.mubr.bf16.gmra.mxu1 %v13379_v7  ;;  %v406_v2 = vld [vmem:[#allocation2 + $0xb0] sm:$0x1] }
 0x125   : > { %v1728_v34 = vld [vmem:[#allocation2 + $0x98] sm:$0x1]  ;;  %v14569_v40 = vrot.slane %v778_v16, 7  ;;  %v1550_v41 = vshll.u32 %v1229_v36, 16  ;;  %v1989_v47 = vld [vmem:[#allocation2 + $0x9c] sm:$0xf] }
 0x126   : > { %v1878_v44 = vrot.slane %v1728_v34, 5  ;;  %v1153_v39 = vld [vmem:[#allocation2 + $0x9c] sm:$0xf]  ;;  %2021 = vst [vmem:[#allocation3 + $0x36c] sm:$0xf] %v1989_v47  ;;  %v775_v49 = vor.u32 %v773_v10, %v772_v38  ;;  %v776_v50 = vrot.slane %v772_v38, 4 }
 0x127   : > { %1185 = vst [vmem:[#allocation3 + $0x3a8] sm:$0xf] %v1153_v39  ;;  %v1230_v48 = vld [vmem:[#allocation2 + $0x9c] sm:$0xf]  ;;  %v783_v51 = vor.u32 %v781_v17, %v14569_v40  ;;  %v785_v53 = vrot.slane %v14569_v40, 4  ;;  %v1552_v60 = vrot.slane %v1550_v41, 5 }
 0x128   : > { %v1729_v54 = vld [vmem:[#allocation2 + $0x9c] sm:$0xe]  ;;  %v1879_v62 = vsel %vm14154_vm10, %v1877_v26, %v1878_v44  ;;  %v1555_v63 = vshrl.u32 %v1230_v48, 16  ;;  %v1558_v56 = vshll.u32 %v1230_v48, 16  ;;  %v353_v0 = vld [vmem:[#allocation2 + $0xb4] sm:$0x1] }
 0x129   : > { %v446_v43 = vld [vmem:[%s14120_s16 + $0xe0] sm:$0xff]  ;;  %1958 = vst [vmem:[#allocation3 + $0x38c] sm:$0xf] %v1879_v62  ;;  %v1990_v3 = vld [vmem:[#allocation2 + $0xa0] sm:$0xf]  ;;  %v784_v57 = vsel %vm14175_vm13, %v776_v50, %v783_v51  ;;  %v1553_v45 = vsel %vm14181_vm14, %v1548_v30, %v1552_v60  ;;  %v11543_v18 = vrot.slane %v1729_v54, 9 }
 0x12a   : > { %v1154_v4 = vld [vmem:[#allocation2 + $0xa0] sm:$0xf]  ;;  %v14578_v9 = vpack.c.bf16 %v446_v43, %v446_v43  ;;  %2022 = vst [vmem:[#allocation3 + $0x390] sm:$0xf] %v1990_v3  ;;  %v959_v52 = vld [vmem:[#allocation2 + $0xa4] sm:$0x1] }
 0x12b   : > { %v1231_v5 = vld [vmem:[#allocation2 + $0xa0] sm:$0xf]  ;;  %1186 = vst [vmem:[#allocation3 + $0x3cc] sm:$0xf] %v1154_v4  ;;  %v1557_v11 = vrot.slane %v1555_v63, 4  ;;  %v1560_v61 = vrot.slane %v1558_v56, 5  ;;  %v960_v13 = vsel %vm14131_vm3, %v768_v12, %v959_v52 }
 0x12c   : > { %v1564_v59 = vshll.u32 %v1231_v5, 16  ;;  %965 = vst [vmem:[#allocation2 + $0xac] sm:$0xf] %v784_v57  ;;  %1683 = vst [vmem:[#allocation3 + $0x388] sm:$0xf] %v1553_v45  ;;  %v1568_v42 = vshrl.u32 %v1231_v5, 16 }
 0x12d   : > { %v962_v8 = vld [vmem:[#allocation2 + $0xa8] sm:$0xf]  ;;  %v1730_v15 = vld [vmem:[#allocation2 + $0xa0] sm:$0xf]  ;;  %961 = vst [vmem:[#allocation2 + $0xa4] sm:$0x1] %v960_v13  ;;  %v1561_v19 = vor.u32 %v1560_v61, %v1557_v11 }
 0x12e   : > { %v1566_v20 = vrot.slane %v1564_v59, 5  ;;  %v963_v46 = vsel %vm14164_vm12, %v775_v49, %v962_v8  ;;  %v1882_v14 = vrot.slane %v1730_v15, 5  ;;  %v447_v22 = vld [vmem:[%s14120_s16 + $0xe8] sm:$0xff]  ;;  %v13401_v23 = vld [vmem:[#allocation9 + $0x140] sm:$0xff]   ;;  %v1570_v1 = vrot.slane %v1568_v42, 4  ;;  %v13403_v7 = vld [vmem:[#allocation9 + $0x1d8] sm:$0xff]  }
 0x12f   : > { %964 = vst [vmem:[#allocation2 + $0xa8] sm:$0xf] %v963_v46  ;;  %v407_v37 = vsel %vm14136_vm4, 0, %v406_v2  ;;  %v354_v12 = vsel %vm14131_vm3, 0, %v353_v0  ;;  %v14593_v26 = vpack.c.bf16 %v447_v22, %v447_v22  ;;  %v13402_v58 = vld [vmem:[#allocation9 + $0x100] sm:$0xff]   ;;  %v1562_v29 = vrot.slane %v1561_v19, 4  ;;  %12404 = vmatprep.subr.bf16.mxu0 %v13401_v23  ;;  %12510 = vmatprep.subr.bf16.mxu1 %v13403_v7 }
 0x130   : > { %v3750_v28 = vld [vmem:[#allocation3 + $0x360] sm:$0xff]  ;;  %v1883_v31 = vsel %vm14154_vm10, %v11543_v18, %v1882_v14  ;;  %v1884_v32 = vrot.slane %v1882_v14, 4  ;;  %408 = vst [vmem:[#allocation2 + $0xb0] sm:$0x1] %v407_v37  ;;  %355 = vst [vmem:[#allocation2 + $0xb4] sm:$0x1] %v354_v12  ;;  %v1571_v10 = vor.u32 %v1570_v1, %v1566_v20  ;;  %12405 = vmatpush3.bf16.msra.mxu0 %v13402_v58 }
 0x131   : > { %v787_v33 = vshrl.u32 %v14578_v9, 16  ;;  %1959 = vst [vmem:[#allocation3 + $0x3b0] sm:$0xf] %v1883_v31  ;;  %v790_v16 = vshll.u32 %v14578_v9, 16  ;;  %v795_v17 = vshrl.u32 %v14593_v26, 16  ;;  %v798_v35 = vshll.u32 %v14593_v26, 16 }
 0x132   : > { %v1567_v30 = vsel %vm14181_vm14, %v1562_v29, %v1566_v20  ;;  %v13404_v34 = vld [vmem:[#allocation9 + $0x198] sm:$0xff]   ;;  %v13384_v38 = vld [vmem:[#allocation3 + $0x36c] ss:$36 sps:$4 sm:$0xff]   ;;  %v1572_v44 = vrot.slane %v1571_v10, 4  ;;  %v409_v29 = vld [vmem:[#allocation2 + $0xbc] sm:$0x1] }
 0x133   : > { %v14603_v36 = vrot.slane %v787_v33, 7  ;;  %v13386_v41 = vld [vmem:[#allocation3 + $0x368] ss:$36 sps:$4 sm:$0xff]   ;;  %1684 = vst [vmem:[#allocation3 + $0x3ac] sm:$0xf] %v1567_v30  ;;  %12511 = vmatpush3.bf16.msra.mxu1 %v13404_v34  ;;  %5247 = vmatprep.mubr.bf16.mxu1 %v13384_v38  ;;  %v14613_v42 = vrot.slane %v795_v17, 7 }
 0x134   : > { %v3755_v47 = vld [vmem:[#allocation3 + $0x384] sm:$0xff]  ;;  %v1992_v48 = vld [vmem:[#allocation2 + $0xac] sm:$0xf]  ;;  %v1232_v51 = vld [vmem:[#allocation2 + $0xa4] sm:$0x1]  ;;  %5248 = vmatmul.mubr.bf16.gmra.mxu1 %v13386_v41  ;;  %v410_v17 = vsel %vm14136_vm4, 0, %v409_v29 }
 0x135   : > { %v13382_v39 = vld [vmem:[#allocation3 + $0x364] ss:$36 sps:$4 sm:$0xff]   ;;  %v793_v49 = vrot.slane %v14603_v36, 4  ;;  %v11686_v50 = vcombine.low %v3750_v28, %v3755_v47  ;;  %v1731_v54 = vld [vmem:[#allocation2 + $0xa4] sm:$0x1]  ;;  %v1574_v62 = vshll.u32 %v1232_v51, 16  ;;  %v792_v0 = vor.u32 %v790_v16, %v14603_v36 }
 0x136   : > { %2024 = vst [vmem:[#allocation3 + $0x3d8] sm:$0xf] %v1992_v48  ;;  %v1156_v60 = vld [vmem:[#allocation2 + $0xac] sm:$0xf]  ;;  %5086 = vmatprep.mubr.bf16.mxu0 %v13382_v39  ;;  %v1885_v63 = vrot.slane %v1731_v54, 5  ;;  %v800_v22 = vor.u32 %v798_v35, %v14613_v42  ;;  %v802_v28 = vrot.slane %v14613_v42, 4 }
 0x137   : > { %v1991_v56 = vld [vmem:[#allocation2 + $0xa8] sm:$0xf]  ;;  %1188 = vst [vmem:[#allocation3 + $0x414] sm:$0xf] %v1156_v60  ;;  %5087 = vmatmul.mubr.bf16.gmra.mxu0 %v11686_v50  ;;  %v966_v43 = vld [vmem:[#allocation2 + $0xb0] sm:$0x1] }
 0x138   : > { %v1155_v2 = vld [vmem:[#allocation2 + $0xa8] sm:$0xf]  ;;  %2023 = vst [vmem:[#allocation3 + $0x3b4] sm:$0xf] %v1991_v56  ;;  %v1234_v4 = vld [vmem:[#allocation2 + $0xac] sm:$0xf]  ;;  %v1886_v57 = vsel %vm14154_vm10, %v1884_v32, %v1885_v63  ;;  %v967_v9 = vsel %vm14131_vm3, %v785_v53, %v966_v43  ;;  %v801_v58 = vsel %vm14175_vm13, %v793_v49, %v800_v22 }
 0x139   : > { %1187 = vst [vmem:[#allocation3 + $0x3f0] sm:$0xf] %v1155_v2  ;;  %v1233_v3 = vld [vmem:[#allocation2 + $0xa8] sm:$0xf]  ;;  %v1576_v5 = vrot.slane %v1574_v62, 5  ;;  %v1588_v59 = vshll.u32 %v1234_v4, 16 }
 0x13a   : > { %v1579_v45 = vshrl.u32 %v1233_v3, 16  ;;  %v969_v52 = vld [vmem:[#allocation2 + $0xb4] sm:$0xf]  ;;  %v1732_v11 = vld [vmem:[#allocation2 + $0xa8] sm:$0xe]  ;;  %v1582_v61 = vshll.u32 %v1233_v3, 16 }
 0x13b   : > { %1960 = vst [vmem:[#allocation3 + $0x3d4] sm:$0xf] %v1886_v57  ;;  %968 = vst [vmem:[#allocation2 + $0xb0] sm:$0x1] %v967_v9  ;;  %v1592_v13 = vshrl.u32 %v1234_v4, 16  ;;  %v1577_v15 = vsel %vm14181_vm14, %v1572_v44, %v1576_v5  ;;  %v970_v40 = vsel %vm14164_vm12, %v792_v0, %v969_v52  ;;  %v11544_v53 = vrot.slane %v1732_v11, 9 }
 0x13c   : > { %v1733_v8 = vld [vmem:[#allocation2 + $0xac] sm:$0xf]  ;;  %v1581_v18 = vrot.slane %v1579_v45, 4  ;;  %1685 = vst [vmem:[#allocation3 + $0x3d0] sm:$0xf] %v1577_v15  ;;  %v1584_v20 = vrot.slane %v1582_v61, 5 }
 0x13d   : > { %v13405_v19 = vld [vmem:[#allocation9 + $0x1d0] sm:$0xff]   ;;  %v1590_v46 = vrot.slane %v1588_v59, 5  ;;  %v1594_v14 = vrot.slane %v1592_v13, 4  ;;  %971 = vst [vmem:[#allocation2 + $0xb4] sm:$0xf] %v970_v40  ;;  %v1889_v1 = vrot.slane %v1733_v8, 5 }
 0x13e   : > { %v448_v23 = vld [vmem:[%s14120_s16 + $0xf0] sm:$0xff]  ;;  %12512 = vmatprep.subr.bf16.mxu1 %v13405_v19  ;;  %v1585_v12 = vor.u32 %v1584_v20, %v1581_v18  ;;  %v356_v31 = vld [vmem:[#allocation2 + $0xc0] sm:$0x1]  ;;  %v449_v32 = vld [vmem:[%s14120_s16 + $0xf8] sm:$0xff]  ;;  %972 = vst [vmem:[#allocation2 + $0xb8] sm:$0xf] %v801_v58 }
 0x13f   : > { %v12131_v37 = vpack.c.bf16 %v448_v23, %v448_v23  ;;  %v1595_v26 = vor.u32 %v1594_v14, %v1590_v46  ;;  %v3760_v33 = vld [vmem:[#allocation3 + $0x3a8] sm:$0xff]  ;;  %v1890_v10 = vsel %vm14154_vm10, %v11544_v53, %v1889_v1  ;;  %v1891_v16 = vrot.slane %v1889_v1, 4  ;;  %411 = vst [vmem:[#allocation2 + $0xbc] sm:$0x1] %v410_v17  ;;  %v13410_v38 = vld [vmem:[#allocation9 + $0x190] sm:$0xff]   ;;  %v13414_v1 = vld [vmem:[#allocation9 + $0x1c0] sm:$0xff]  }
 0x140   : > { %v357_v35 = vsel %vm14131_vm3, 0, %v356_v31  ;;  %v1586_v7 = vrot.slane %v1585_v12, 4  ;;  %1961 = vst [vmem:[#allocation3 + $0x3f8] sm:$0xf] %v1890_v10  ;;  %v14631_v36 = vpack.c.bf16 %v449_v32, %v449_v32  ;;  %v13391_v41 = vld [vmem:[#allocation3 + $0x3b4] ss:$36 sps:$4 sm:$0xff]   ;;  %12513 = vmatpush3.bf16.msra.mxu1 %v13410_v38 }
 0x141   : > { %v1596_v30 = vrot.slane %v1595_v26, 4  ;;  %358 = vst [vmem:[#allocation2 + $0xc0] sm:$0x1] %v357_v35  ;;  %v804_v34 = vshrl.u32 %v12131_v37, 16  ;;  %v807_v47 = vshll.u32 %v12131_v37, 16  ;;  %5255 = vmatprep.mubr.bf16.mxu1 %v13391_v41  ;;  %v13412_v11 = vld [vmem:[#allocation9 + $0x1c8] sm:$0xff]  }
 0x142   : > { %v13393_v44 = vld [vmem:[#allocation3 + $0x3b0] ss:$36 sps:$4 sm:$0xff]   ;;  %v1235_v39 = vld [vmem:[#allocation2 + $0xb0] sm:$0x1]  ;;  %v1591_v48 = vsel %vm14181_vm14, %v1586_v7, %v1590_v46  ;;  %v812_v51 = vshrl.u32 %v14631_v36, 16  ;;  %v815_v56 = vshll.u32 %v14631_v36, 16  ;;  %12514 = vmatprep.subr.bf16.mxu1 %v13412_v11 }
 0x143   : > { %v1734_v49 = vld [vmem:[#allocation2 + $0xb0] sm:$0x1]  ;;  %v14635_v50 = vrot.slane %v804_v34, 7  ;;  %v3765_v54 = vld [vmem:[#allocation3 + $0x3cc] sm:$0xff]  ;;  %v1598_v62 = vshll.u32 %v1235_v39, 16  ;;  %5256 = vmatmul.mubr.bf16.gmra.mxu1 %v13393_v44  ;;  %v13418_v10 = vld [vmem:[#allocation9 + $0x180] sm:$0xff]  }
 0x144   : > { %v13389_v60 = vld [vmem:[#allocation3 + $0x3ac] ss:$36 sps:$4 sm:$0xff]   ;;  %1686 = vst [vmem:[#allocation3 + $0x3f4] sm:$0xf] %v1591_v48  ;;  %v1892_v63 = vrot.slane %v1734_v49, 5  ;;  %v11695_v2 = vcombine.low %v3760_v33, %v3765_v54  ;;  %v14649_v22 = vrot.slane %v812_v51, 7 }
 0x145   : > { %v1993_v0 = vld [vmem:[#allocation2 + $0xb4] sm:$0xf]  ;;  %v809_v4 = vor.u32 %v807_v47, %v14635_v50  ;;  %5094 = vmatprep.mubr.bf16.mxu0 %v13389_v60  ;;  %v1600_v5 = vrot.slane %v1598_v62, 5  ;;  %v1994_v61 = vld [vmem:[#allocation2 + $0xb8] sm:$0xf]  ;;  %v13413_v19 = vld [vmem:[#allocation9 + $0x188] sm:$0xff]  }
 0x146   : > { %v1157_v43 = vld [vmem:[#allocation2 + $0xb4] sm:$0xf]  ;;  %v1893_v57 = vsel %vm14154_vm10, %v1891_v16, %v1892_v63  ;;  %2025 = vst [vmem:[#allocation3 + $0x3fc] sm:$0xf] %v1993_v0  ;;  %5095 = vmatmul.mubr.bf16.gmra.mxu0 %v11695_v2  ;;  %v1158_v59 = vld [vmem:[#allocation2 + $0xb8] sm:$0xf]  ;;  %12515 = vmatpush3.bf16.msra.mxu1 %v13413_v19  ;;  %v817_v31 = vor.u32 %v815_v56, %v14649_v22 }
 0x147   : > { %v1236_v3 = vld [vmem:[#allocation2 + $0xb4] sm:$0xf]  ;;  %1189 = vst [vmem:[#allocation3 + $0x438] sm:$0xf] %v1157_v43  ;;  %1962 = vst [vmem:[#allocation3 + $0x41c] sm:$0xf] %v1893_v57  ;;  %v1601_v8 = vsel %vm14181_vm14, %v1596_v30, %v1600_v5  ;;  %12516 = vmatprep.subr.bf16.mxu1 %v13414_v1 }
 0x148   : > { %v1603_v9 = vshrl.u32 %v1236_v3, 16  ;;  %v1606_v45 = vshll.u32 %v1236_v3, 16  ;;  %v1735_v52 = vld [vmem:[#allocation2 + $0xb4] sm:$0xe]  ;;  %v1237_v13 = vld [vmem:[#allocation2 + $0xb8] sm:$0xf] }
 0x149   : > { %2026 = vst [vmem:[#allocation3 + $0x420] sm:$0xf] %v1994_v61  ;;  %v973_v15 = vld [vmem:[#allocation2 + $0xbc] sm:$0x1]  ;;  %1190 = vst [vmem:[#allocation3 + $0x45c] sm:$0xf] %v1158_v59 }
 0x14a   : > { %v1605_v18 = vrot.slane %v1603_v9, 4  ;;  %v1608_v40 = vrot.slane %v1606_v45, 5  ;;  %v1612_v53 = vshll.u32 %v1237_v13, 16  ;;  %1687 = vst [vmem:[#allocation3 + $0x418] sm:$0xf] %v1601_v8  ;;  %v974_v20 = vsel %vm14131_vm3, %v802_v28, %v973_v15  ;;  %12517 = vmatpush3.bf16.msra.mxu1 %v13418_v10 }
 0x14b   : > { %v1616_v46 = vshrl.u32 %v1237_v13, 16  ;;  %v810_v14 = vrot.slane %v14635_v50, 4  ;;  %v976_v23 = vld [vmem:[#allocation2 + $0xc0] sm:$0xf]  ;;  %975 = vst [vmem:[#allocation2 + $0xbc] sm:$0x1] %v974_v20 }
 0x14c   : > { %v1609_v37 = vor.u32 %v1608_v40, %v1605_v18  ;;  %v1614_v12 = vrot.slane %v1612_v53, 5  ;;  %v977_v26 = vsel %vm14164_vm12, %v809_v4, %v976_v23  ;;  %v1736_v58 = vld [vmem:[#allocation2 + $0xb8] sm:$0xf]  ;;  %v11545_v29 = vrot.slane %v1735_v52, 9  ;;  %v3770_v32 = vld [vmem:[#allocation3 + $0x3f0] sm:$0xff]  ;;  %v14660_v52 = vld [vmem:[#allocation9 + $0x238] sm:$0xff]  }
 0x14d   : > { %v1618_v42 = vrot.slane %v1616_v46, 4  ;;  %978 = vst [vmem:[#allocation2 + $0xc0] sm:$0xf] %v977_v26  ;;  %v1896_v28 = vrot.slane %v1736_v58, 5  ;;  %v818_v17 = vsel %vm14175_vm13, %v810_v14, %v817_v31  ;;  %v2029_v36 = vld [vmem:[#allocation2 + $0xc] sm:$0xf]  ;;  %13110 = vmatprep.subr.bf16.mxu0 %v14660_v52 }
 0x14e   : > { %v1610_v33 = vrot.slane %v1609_v37, 4  ;;  %979 = vst [vmem:[#allocation2 + $0xc4] sm:$0xf] %v818_v17  ;;  %v2030_v34 = vld [vmem:[#allocation2 + $0x10] sm:$0xf]  ;;  %v2078_v49 = vshrl.u32 %v2029_v36, 16 }
 0x14f   : > { %v1619_v16 = vor.u32 %v1618_v42, %v1614_v12  ;;  %v1897_v35 = vsel %vm14154_vm10, %v11545_v29, %v1896_v28  ;;  %v1898_v7 = vrot.slane %v1896_v28, 4  ;;  %v2031_v38 = vld [vmem:[#allocation2 + $0x14] sm:$0x1]  ;;  %v2081_v50 = vshll.u32 %v2029_v36, 16  ;;  %v2525_v45 = vld [vmem:[#allocation2 + $0xc] sm:$0xe] }
 0x150   : > { %v1615_v30 = vsel %vm14181_vm14, %v1610_v33, %v1614_v12  ;;  %1963 = vst [vmem:[#allocation3 + $0x440] sm:$0xf] %v1897_v35  ;;  %v13398_v41 = vld [vmem:[#allocation3 + $0x3fc] ss:$36 sps:$4 sm:$0xff]   ;;  %v2087_v51 = vshll.u32 %v2030_v34, 16  ;;  %v2091_v63 = vshrl.u32 %v2030_v34, 16 }
 0x151   : > { %v13400_v44 = vld [vmem:[#allocation3 + $0x3f8] ss:$36 sps:$4 sm:$0xff]   ;;  %v1620_v47 = vrot.slane %v1619_v16, 4  ;;  %1688 = vst [vmem:[#allocation3 + $0x43c] sm:$0xf] %v1615_v30  ;;  %5263 = vmatprep.mubr.bf16.mxu1 %v13398_v41  ;;  %v2097_v56 = vshll.u32 %v2031_v38, 16 }
 0x152   : > { %v3775_v39 = vld [vmem:[#allocation3 + $0x414] sm:$0xff]  ;;  %v1238_v60 = vld [vmem:[#allocation2 + $0xbc] sm:$0x1]  ;;  %5264 = vmatmul.mubr.bf16.gmra.mxu1 %v13400_v44  ;;  %v2080_v3 = vrot.slane %v2078_v49, 4  ;;  %v2083_v4 = vrot.slane %v2081_v50, 5  ;;  %v2089_v5 = vrot.slane %v2087_v51, 5 }
 0x153   : > { %v13396_v48 = vld [vmem:[#allocation3 + $0x3f4] ss:$36 sps:$4 sm:$0xff]   ;;  %v11704_v54 = vcombine.low %v3770_v32, %v3775_v39  ;;  %v1737_v62 = vld [vmem:[#allocation2 + $0xbc] sm:$0x1]  ;;  %v1622_v2 = vshll.u32 %v1238_v60, 16  ;;  %v2093_v57 = vrot.slane %v2091_v63, 4 }
 0x154   : > { %5102 = vmatprep.mubr.bf16.mxu0 %v13396_v48  ;;  %v1899_v0 = vrot.slane %v1737_v62, 5  ;;  %v1995_v43 = vld [vmem:[#allocation2 + $0xc0] sm:$0xf]  ;;  %v2099_v9 = vrot.slane %v2097_v56, 5  ;;  %v2084_v59 = vor.u32 %v2083_v4, %v2080_v3  ;;  %v2526_v13 = vld [vmem:[#allocation2 + $0x10] sm:$0xf] }
 0x155   : > { %5103 = vmatmul.mubr.bf16.gmra.mxu0 %v11704_v54  ;;  %2027 = vst [vmem:[#allocation3 + $0x444] sm:$0xf] %v1995_v43  ;;  %v1624_v11 = vrot.slane %v1622_v2, 5  ;;  %v2527_v8 = vld [vmem:[#allocation2 + $0x14] sm:$0x1]  ;;  %v11546_v15 = vrot.slane %v2525_v45, 9  ;;  %v2094_v40 = vor.u32 %v2093_v57, %v2089_v5 }
 0x156   : > { %v1900_v61 = vsel %vm14154_vm10, %v1898_v7, %v1899_v0  ;;  %v1996_v18 = vld [vmem:[#allocation2 + $0xc4] sm:$0xf]  ;;  %v2623_v53 = vrot.slane %v2526_v13, 5  ;;  %v2626_v19 = vrot.slane %v2527_v8, 5  ;;  %v2085_v46 = vrot.slane %v2084_v59, 4 }
 0x157   : > { %1964 = vst [vmem:[#allocation3 + $0x464] sm:$0xf] %v1900_v61  ;;  %v1625_v20 = vsel %vm14181_vm14, %v1620_v47, %v1624_v11  ;;  %2028 = vst [vmem:[#allocation3 + $0x468] sm:$0xf] %v1996_v18  ;;  %v2095_v14 = vrot.slane %v2094_v40, 4 }
 0x158   : > { %1689 = vst [vmem:[#allocation3 + $0x460] sm:$0xf] %v1625_v20  ;;  %v2624_v23 = vsel %vm14154_vm10, %v11546_v15, %v2623_v53  ;;  %v2625_v1 = vrot.slane %v2623_v53, 4  ;;  %v2798_v37 = vld [vmem:[#allocation2 + $0x18] sm:$0xf]  ;;  %v2090_v12 = vsel %vm14181_vm14, %v2085_v46, %v2089_v5  ;;  %v3780_v16 = vld [vmem:[#allocation3 + $0x438] sm:$0xff] }
 0x159   : > { %2765 = vst [vmem:[#allocation3 + $0x14] sm:$0xf] %v2624_v23  ;;  %v2799_v26 = vld [vmem:[#allocation2 + $0x1c] sm:$0xf]  ;;  %2830 = vst [vmem:[#allocation3 + $0x18] sm:$0xf] %v2798_v37  ;;  %v2100_v42 = vsel %vm14181_vm14, %v2095_v14, %v2099_v9 }
 0x15a   : > { %v2862_v58 = vld [vmem:[#allocation2 + $0x18] sm:$0xf]  ;;  %v2863_v29 = vld [vmem:[#allocation2 + $0x1c] sm:$0xf]  ;;  %2493 = vst [vmem:[#allocation3 + $0x10] sm:$0xf] %v2090_v12  ;;  %v2627_v31 = vsel %vm14154_vm10, %v2625_v1, %v2626_v19 }
 0x15b   : > { %2831 = vst [vmem:[#allocation3 + $0x3c] sm:$0xf] %v2799_v26  ;;  %v2864_v28 = vld [vmem:[#allocation2 + $0x20] sm:$0x1]  ;;  %v2911_v32 = vshrl.u32 %v2862_v58, 16  ;;  %v2914_v33 = vshll.u32 %v2862_v58, 16 }
 0x15c   : > { %v2032_v10 = vld [vmem:[#allocation2 + $0x18] sm:$0xf]  ;;  %2494 = vst [vmem:[#allocation3 + $0x34] sm:$0xf] %v2100_v42  ;;  %2766 = vst [vmem:[#allocation3 + $0x38] sm:$0xf] %v2627_v31 }
 0x15d   : > { %v2920_v17 = vshll.u32 %v2863_v29, 16  ;;  %v2924_v35 = vshrl.u32 %v2863_v29, 16  ;;  %v2930_v7 = vshll.u32 %v2864_v28, 16  ;;  %v2033_v30 = vld [vmem:[#allocation2 + $0x1c] sm:$0xf]  ;;  %v2913_v36 = vrot.slane %v2911_v32, 4 }
 0x15e   : > { %v2916_v34 = vrot.slane %v2914_v33, 5  ;;  %v2034_v38 = vld [vmem:[#allocation2 + $0x20] sm:$0x1]  ;;  %v2102_v41 = vshrl.u32 %v2032_v10, 16  ;;  %v2105_v44 = vshll.u32 %v2032_v10, 16  ;;  %v2111_v49 = vshll.u32 %v2033_v30, 16 }
 0x15f   : > { %v2922_v47 = vrot.slane %v2920_v17, 5  ;;  %v2926_v39 = vrot.slane %v2924_v35, 4  ;;  %v2932_v48 = vrot.slane %v2930_v7, 5  ;;  %v2528_v50 = vld [vmem:[#allocation2 + $0x18] sm:$0xe]  ;;  %v2115_v3 = vshrl.u32 %v2033_v30, 16  ;;  %v12182_v7 = vpop.f32.mrf.mxu0 }
 0x160   : > { %v13408_v51 = vld [vmem:[#allocation3 + $0x444] ss:$36 sps:$4 sm:$0xff]   ;;  %v2917_v60 = vor.u32 %v2916_v34, %v2913_v36  ;;  %v2104_v62 = vrot.slane %v2102_v41, 4  ;;  %v3785_v63 = vld [vmem:[#allocation3 + $0x45c] sm:$0xff]  ;;  %v2107_v0 = vrot.slane %v2105_v44, 5  ;;  %v2113_v43 = vrot.slane %v2111_v49, 5 }
 0x161   : > { %v13411_v54 = vld [vmem:[#allocation3 + $0x440] ss:$36 sps:$4 sm:$0xff]   ;;  %v2927_v2 = vor.u32 %v2926_v39, %v2922_v47  ;;  %5271 = vmatprep.mubr.bf16.mxu1 %v13408_v51  ;;  %v11713_v4 = vcombine.low %v3780_v16, %v3785_v63  ;;  %v2121_v57 = vshll.u32 %v2034_v38, 16  ;;  %v2530_v45 = vld [vmem:[#allocation2 + $0x20] sm:$0x1]  ;;  %v2117_v59 = vrot.slane %v2115_v3, 4 }
 0x162   : > { %v13406_v56 = vld [vmem:[#allocation3 + $0x43c] ss:$36 sps:$4 sm:$0xff]   ;;  %v2918_v5 = vrot.slane %v2917_v60, 4  ;;  %v2529_v9 = vld [vmem:[#allocation2 + $0x1c] sm:$0xf]  ;;  %5272 = vmatmul.mubr.bf16.gmra.mxu1 %v13411_v54  ;;  %v2108_v61 = vor.u32 %v2107_v0, %v2104_v62  ;;  %v11547_v13 = vrot.slane %v2528_v50, 9  ;;  %v12183_v54 = vpop.f32.mrf.mxu0 }
 0x163   : > { %5110 = vmatprep.mubr.bf16.mxu0 %v13406_v56  ;;  %v2928_v11 = vrot.slane %v2927_v2, 4  ;;  %v2800_v8 = vld [vmem:[#allocation2 + $0x24] sm:$0xf]  ;;  %v13417_v15 = vld [vmem:[#allocation3 + $0x14] ss:$36 sps:$4 sm:$0xff]   ;;  %v2123_v40 = vrot.slane %v2121_v57, 5  ;;  %v2118_v20 = vor.u32 %v2117_v59, %v2113_v43  ;;  %v12294_v2 = vpop.f32.mrf.mxu1 }
 0x164   : > { %5111 = vmatmul.mubr.bf16.gmra.mxu0 %v11713_v4  ;;  %v2923_v18 = vsel %vm14181_vm14, %v2918_v5, %v2922_v47  ;;  %2832 = vst [vmem:[#allocation3 + $0x60] sm:$0xf] %v2800_v8  ;;  %v2109_v19 = vrot.slane %v2108_v61, 4  ;;  %v2630_v46 = vrot.slane %v2529_v9, 5  ;;  %v2801_v14 = vld [vmem:[#allocation2 + $0x28] sm:$0xf]  ;;  %v12185_v57 = vpop.f32.mrf.mxu0  ;;  %v12184_v61 = vadd.f32 %v12183_v54, %v12182_v7 }
 0x165   : > { %v2933_v53 = vsel %vm14181_vm14, %v2928_v11, %v2932_v48  ;;  %3326 = vst [vmem:[#allocation3 + $0x1c] sm:$0xf] %v2923_v18  ;;  %v2865_v23 = vld [vmem:[#allocation2 + $0x24] sm:$0xf]  ;;  %5312 = vmatprep.mubr.bf16.mxu0 %v13417_v15  ;;  %v2633_v1 = vrot.slane %v2530_v45, 5  ;;  %v2119_v42 = vrot.slane %v2118_v20, 4  ;;  %v12295_v59 = vpop.f32.mrf.mxu1 }
 0x166   : > { %3327 = vst [vmem:[#allocation3 + $0x40] sm:$0xf] %v2933_v53  ;;  %2833 = vst [vmem:[#allocation3 + $0x84] sm:$0xf] %v2801_v14  ;;  %v2866_v37 = vld [vmem:[#allocation2 + $0x28] sm:$0xf]  ;;  %v2114_v29 = vsel %vm14181_vm14, %v2109_v19, %v2113_v43  ;;  %v2631_v31 = vsel %vm14154_vm10, %v11547_v13, %v2630_v46  ;;  %v12186_v19 = vpop.f32.mrf.mxu0 }
 0x167   : > { %v2867_v12 = vld [vmem:[#allocation2 + $0x2c] sm:$0x1]  ;;  %v2935_v26 = vshrl.u32 %v2865_v23, 16  ;;  %v2632_v28 = vrot.slane %v2630_v46, 4  ;;  %v2035_v32 = vld [vmem:[#allocation2 + $0x24] sm:$0xf]  ;;  %v2124_v30 = vsel %vm14181_vm14, %v2119_v42, %v2123_v40 }
 0x168   : > { %v13415_v58 = vld [vmem:[#allocation3 + $0x10] ss:$36 sps:$4 sm:$0xff]   ;;  %2495 = vst [vmem:[#allocation3 + $0x58] sm:$0xf] %v2114_v29  ;;  %2767 = vst [vmem:[#allocation3 + $0x5c] sm:$0xf] %v2631_v31 }
 0x169   : > { %v2937_v33 = vrot.slane %v2935_v26, 4  ;;  %v2938_v10 = vshll.u32 %v2865_v23, 16  ;;  %v2944_v16 = vshll.u32 %v2866_v37, 16  ;;  %v2948_v17 = vshrl.u32 %v2866_v37, 16  ;;  %v2036_v35 = vld [vmem:[#allocation2 + $0x28] sm:$0xf] }
 0x16a   : > { %v2634_v36 = vsel %vm14154_vm10, %v2632_v28, %v2633_v1  ;;  %v2954_v34 = vshll.u32 %v2867_v12, 16  ;;  %v2037_v38 = vld [vmem:[#allocation2 + $0x2c] sm:$0x1]  ;;  %v2126_v41 = vshrl.u32 %v2035_v32, 16  ;;  %2496 = vst [vmem:[#allocation3 + $0x7c] sm:$0xf] %v2124_v30  ;;  %v12297_v1 = vpop.f32.mrf.mxu1 }
 0x16b   : > { %2768 = vst [vmem:[#allocation3 + $0x80] sm:$0xf] %v2634_v36  ;;  %v2940_v44 = vrot.slane %v2938_v10, 5  ;;  %v2946_v47 = vrot.slane %v2944_v16, 5  ;;  %v2950_v39 = vrot.slane %v2948_v17, 4  ;;  %v2129_v48 = vshll.u32 %v2035_v32, 16 }
 0x16c   : > { %v2531_v49 = vld [vmem:[#allocation2 + $0x24] sm:$0xe]  ;;  %v2532_v50 = vld [vmem:[#allocation2 + $0x28] sm:$0xf]  ;;  %v14687_v51 = vld [vmem:[#allocation2 + $0x2c] sm:$0x1]  ;;  %5313 = vmatmul.mubr.bf16.vlgmr.msra.gmra.mxu0 %v13415_v58  ;;  %v12296_v10 = vadd.f32 %v12295_v59, %v12294_v2  ;;  %v12187_v16 = vadd.f32 %v12186_v19, %v12185_v57  ;;  %v12298_v17 = vpop.f32.mrf.mxu1 }
 0x16d   : > { %v2956_v60 = vrot.slane %v2954_v34, 5  ;;  %v2128_v62 = vrot.slane %v2126_v41, 4  ;;  %v2135_v63 = vshll.u32 %v2036_v35, 16  ;;  %v2139_v56 = vshrl.u32 %v2036_v35, 16  ;;  %v13432_v5 = vld [vmem:[#allocation9 + $0x230] sm:$0xff]   ;;  %13111 = vmatpush3.bf16.msra.mxu0 %v14660_v52  ;;  %v13445_v53 = vld [vmem:[#allocation9 + $0x228] sm:$0xff]  }
 0x16e   : > { %v2941_v0 = vor.u32 %v2940_v44, %v2937_v33  ;;  %v2951_v43 = vor.u32 %v2950_v39, %v2946_v47  ;;  %v2131_v3 = vrot.slane %v2129_v48, 5  ;;  %v2145_v4 = vshll.u32 %v2037_v38, 16  ;;  %v13420_v9 = vld [vmem:[#allocation3 + $0x18] ss:$36 sps:$4 sm:$0xff]   ;;  %13112 = vmatprep.subr.bf16.mxu0 %v13432_v5  ;;  %v14695_v42 = vld [vmem:[#allocation9 + $0x220] sm:$0xff]  }
 0x16f   : > { %v13422_v45 = vld [vmem:[#allocation3 + $0x1c] ss:$36 sps:$4 sm:$0xff]   ;;  %v2137_v11 = vrot.slane %v2135_v63, 5  ;;  %v2141_v18 = vrot.slane %v2139_v56, 4  ;;  %v2802_v40 = vld [vmem:[#allocation2 + $0x30] sm:$0xf]  ;;  %v12299_v38 = vadd.f32 %v12298_v17, %v12297_v1  ;;  %v14709_v56 = vadd.f32 %v12296_v10, %v12184_v61 }
 0x170   : > { %v2942_v13 = vrot.slane %v2941_v0, 4  ;;  %v2952_v8 = vrot.slane %v2951_v43, 4  ;;  %v2132_v15 = vor.u32 %v2131_v3, %v2128_v62  ;;  %5473 = vmatprep.mubr.bf16.mxu1 %v13422_v45  ;;  %v2147_v20 = vrot.slane %v2145_v4, 5  ;;  %2834 = vst [vmem:[#allocation3 + $0xa8] sm:$0xf] %v2802_v40  ;;  %v14707_v63 = vld [vmem:[#allocation9 + $0x218] sm:$0xff]  }
 0x171   : > { %v11548_v46 = vrot.slane %v2531_v49, 9  ;;  %v2637_v14 = vrot.slane %v2532_v50, 5  ;;  %v2640_v23 = vrot.slane %v14687_v51, 5  ;;  %5474 = vmatmul.mubr.bf16.vlgmr.msra.gmra.mxu1 %v13420_v9  ;;  %v2142_v26 = vor.u32 %v2141_v18, %v2137_v11  ;;  %v2803_v58 = vld [vmem:[#allocation2 + $0x34] sm:$0xf]  ;;  %13113 = vmatpush3.bf16.msra.mxu0 %v13432_v5  ;;  %v14703_v49 = vpop.f32.mrf.mxu1  ;;  %v12188_v5 = vpop.f32.mrf.mxu0 }
 0x172   : > { %v2947_v52 = vsel %vm14181_vm14, %v2942_v13, %v2946_v47  ;;  %v2957_v37 = vsel %vm14181_vm14, %v2952_v8, %v2956_v60  ;;  %v2133_v12 = vrot.slane %v2132_v15, 4  ;;  %v2868_v29 = vld [vmem:[#allocation2 + $0x30] sm:$0xf]  ;;  %v13423_v31 = vld [vmem:[#allocation3 + $0x5c] ss:$36 sps:$4 sm:$0xff]   ;;  %13114 = vmatprep.subr.bf16.mxu0 %v13445_v53  ;;  %v14714_v1 = vadd.f32 %v12299_v38, %v12187_v16 }
 0x173   : > { %v13425_v28 = vld [vmem:[#allocation3 + $0x58] ss:$36 sps:$4 sm:$0xff]   ;;  %3328 = vst [vmem:[#allocation3 + $0x64] sm:$0xf] %v2947_v52  ;;  %3329 = vst [vmem:[#allocation3 + $0x88] sm:$0xf] %v2957_v37  ;;  %v2638_v32 = vsel %vm14154_vm10, %v11548_v46, %v2637_v14  ;;  %5320 = vmatprep.mubr.bf16.mxu0 %v13423_v31  ;;  %v12301_v57 = vpop.f32.mrf.mxu1 }
 0x174   : > { %v2639_v33 = vrot.slane %v2637_v14, 4  ;;  %2835 = vst [vmem:[#allocation3 + $0xcc] sm:$0xf] %v2803_v58  ;;  %v2138_v35 = vsel %vm14181_vm14, %v2133_v12, %v2137_v11  ;;  %v2143_v7 = vrot.slane %v2142_v26, 4  ;;  %2769 = vst [vmem:[#allocation3 + $0xa4] sm:$0xf] %v2638_v32  ;;  %5321 = vmatmul.mubr.bf16.gmra.mxu0 %v13425_v28 }
 0x175   : > { %v2869_v30 = vld [vmem:[#allocation2 + $0x34] sm:$0xf]  ;;  %v2870_v36 = vld [vmem:[#allocation2 + $0x38] sm:$0x1]  ;;  %v2959_v34 = vshrl.u32 %v2868_v29, 16  ;;  %v2962_v44 = vshll.u32 %v2868_v29, 16  ;;  %13115 = vmatpush3.bf16.msra.mxu0 %v13445_v53  ;;  %v12303_v46 = vpop.f32.mrf.mxu1 }
 0x176   : > { %2497 = vst [vmem:[#allocation3 + $0xa0] sm:$0xf] %v2138_v35  ;;  %v2641_v41 = vsel %vm14154_vm10, %v2639_v33, %v2640_v23  ;;  %v2968_v47 = vshll.u32 %v2869_v30, 16  ;;  %v2972_v39 = vshrl.u32 %v2869_v30, 16  ;;  %v2038_v48 = vld [vmem:[#allocation2 + $0x30] sm:$0xf]  ;;  %v2148_v50 = vsel %vm14181_vm14, %v2143_v7, %v2147_v20  ;;  %13116 = vmatprep.subr.bf16.mxu0 %v14695_v42  ;;  %v12189_v20 = vpop.f32.mrf.mxu0 }
 0x177   : > { %2770 = vst [vmem:[#allocation3 + $0xc8] sm:$0xf] %v2641_v41  ;;  %v2961_v51 = vrot.slane %v2959_v34, 4  ;;  %v2978_v54 = vshll.u32 %v2870_v36, 16  ;;  %v2039_v60 = vld [vmem:[#allocation2 + $0x34] sm:$0xf]  ;;  %v14716_v52 = vadd.f32 %v12189_v20, %v12188_v5  ;;  %v12304_v32 = vpop.f32.mrf.mxu1  ;;  %v12302_v41 = vadd.f32 %v12301_v57, %v14703_v49 }
 0x178   : > { %v2040_v62 = vld [vmem:[#allocation2 + $0x38] sm:$0x1]  ;;  %2498 = vst [vmem:[#allocation3 + $0xc4] sm:$0xf] %v2148_v50  ;;  %v2964_v2 = vrot.slane %v2962_v44, 5  ;;  %v2970_v0 = vrot.slane %v2968_v47, 5  ;;  %v12191_v28 = vpop.f32.mrf.mxu0 }
 0x179   : > { %v2974_v43 = vrot.slane %v2972_v39, 4  ;;  %v2150_v3 = vshrl.u32 %v2038_v48, 16  ;;  %v2534_v4 = vld [vmem:[#allocation2 + $0x30] sm:$0xe]  ;;  %v2980_v9 = vrot.slane %v2978_v54, 5  ;;  %v2153_v45 = vshll.u32 %v2038_v48, 16  ;;  %13117 = vmatpush3.bf16.msra.mxu0 %v14695_v42 }
 0x17a   : > { %v2159_v11 = vshll.u32 %v2039_v60, 16  ;;  %v2163_v59 = vshrl.u32 %v2039_v60, 16  ;;  %v2535_v13 = vld [vmem:[#allocation2 + $0x34] sm:$0xf]  ;;  %v2965_v8 = vor.u32 %v2964_v2, %v2961_v51  ;;  %v2169_v18 = vshll.u32 %v2040_v62, 16  ;;  %v14718_v37 = vld [vmem:[#allocation9 + $0x210] sm:$0xff]   ;;  %13118 = vmatprep.subr.bf16.mxu0 %v14707_v63  ;;  %v12192_v44 = vpop.f32.mrf.mxu0 }
 0x17b   : > { %v2975_v15 = vor.u32 %v2974_v43, %v2970_v0  ;;  %v2152_v61 = vrot.slane %v2150_v3, 4  ;;  %v14712_v40 = vld [vmem:[#allocation2 + $0x38] sm:$0x1]  ;;  %v2804_v19 = vld [vmem:[#allocation2 + $0x3c] sm:$0xf]  ;;  %v2155_v53 = vrot.slane %v2153_v45, 5  ;;  %v12193_v51 = vadd.f32 %v12192_v44, %v12191_v28 }
 0x17c   : > { %v13426_v14 = vld [vmem:[#allocation3 + $0x64] ss:$36 sps:$4 sm:$0xff]   ;;  %v2161_v23 = vrot.slane %v2159_v11, 5  ;;  %2836 = vst [vmem:[#allocation3 + $0xf0] sm:$0xf] %v2804_v19  ;;  %v2966_v26 = vrot.slane %v2965_v8, 4  ;;  %v12305_v54 = vadd.f32 %v12304_v32, %v12303_v46  ;;  %v14731_v49 = vpop.f32.mrf.mxu0 }
 0x17d   : > { %v13428_v12 = vld [vmem:[#allocation3 + $0x60] ss:$36 sps:$4 sm:$0xff]   ;;  %v2976_v58 = vrot.slane %v2975_v15, 4  ;;  %v2165_v29 = vrot.slane %v2163_v59, 4  ;;  %v2171_v31 = vrot.slane %v2169_v18, 5  ;;  %5481 = vmatprep.mubr.bf16.mxu1 %v13426_v14  ;;  %v2156_v33 = vor.u32 %v2155_v53, %v2152_v61  ;;  %13119 = vmatpush3.bf16.msra.mxu0 %v14707_v63  ;;  %v13497_v45 = vld [vmem:[#allocation9 + $0x208] sm:$0xff]  }
 0x17e   : > { %v11549_v10 = vrot.slane %v2534_v4, 9  ;;  %v2644_v17 = vrot.slane %v2535_v13, 5  ;;  %v2647_v16 = vrot.slane %v14712_v40, 5  ;;  %v2805_v35 = vld [vmem:[#allocation2 + $0x40] sm:$0xf]  ;;  %5482 = vmatmul.mubr.bf16.gmra.mxu1 %v13428_v12  ;;  %v2971_v7 = vsel %vm14181_vm14, %v2966_v26, %v2970_v0  ;;  %13120 = vmatprep.subr.bf16.mxu0 %v14718_v37  ;;  %v12195_v61 = vpop.f32.mrf.mxu0 }
 0x17f   : > { %v2981_v30 = vsel %vm14181_vm14, %v2976_v58, %v2980_v9  ;;  %v2166_v36 = vor.u32 %v2165_v29, %v2161_v23  ;;  %2837 = vst [vmem:[#allocation3 + $0x114] sm:$0xf] %v2805_v35  ;;  %v2871_v42 = vld [vmem:[#allocation2 + $0x3c] sm:$0xf]  ;;  %v2872_v34 = vld [vmem:[#allocation2 + $0x40] sm:$0xf]  ;;  %v12306_v58 = vpop.f32.mrf.mxu1  ;;  %v14744_v35 = vadd.f32 %v12302_v41, %v14716_v52 }
 0x180   : > { %v2873_v38 = vld [vmem:[#allocation2 + $0x44] sm:$0x1]  ;;  %v13429_v47 = vld [vmem:[#allocation3 + $0xa4] ss:$36 sps:$4 sm:$0xff]   ;;  %3330 = vst [vmem:[#allocation3 + $0xac] sm:$0xf] %v2971_v7  ;;  %v2645_v50 = vsel %vm14154_vm10, %v11549_v10, %v2644_v17  ;;  %v12197_v29 = vpop.f32.mrf.mxu0  ;;  %v14746_v7 = vadd.f32 %v12305_v54, %v12193_v51 }
 0x181   : > { %v13431_v39 = vld [vmem:[#allocation3 + $0xa0] ss:$36 sps:$4 sm:$0xff]   ;;  %3331 = vst [vmem:[#allocation3 + $0xd0] sm:$0xf] %v2981_v30  ;;  %v2157_v48 = vrot.slane %v2156_v33, 4  ;;  %v2167_v60 = vrot.slane %v2166_v36, 4  ;;  %5328 = vmatprep.mubr.bf16.mxu0 %v13429_v47  ;;  %13121 = vmatpush3.bf16.msra.mxu0 %v14718_v37  ;;  %v12307_v30 = vpop.f32.mrf.mxu1 }
 0x182   : > { %v2646_v62 = vrot.slane %v2644_v17, 4  ;;  %2771 = vst [vmem:[#allocation3 + $0xec] sm:$0xf] %v2645_v50  ;;  %v2983_v2 = vshrl.u32 %v2871_v42, 16  ;;  %v2986_v0 = vshll.u32 %v2871_v42, 16  ;;  %v2992_v4 = vshll.u32 %v2872_v34, 16  ;;  %5329 = vmatmul.mubr.bf16.gmra.mxu0 %v13431_v39  ;;  %13122 = vmatprep.subr.bf16.mxu0 %v13497_v45  ;;  %v12198_v44 = vpop.f32.mrf.mxu0 }
 0x183   : > { %v2041_v43 = vld [vmem:[#allocation2 + $0x3c] sm:$0xf]  ;;  %v2162_v3 = vsel %vm14181_vm14, %v2157_v48, %v2161_v23  ;;  %v2996_v5 = vshrl.u32 %v2872_v34, 16  ;;  %v3002_v57 = vshll.u32 %v2873_v38, 16  ;;  %v2042_v9 = vld [vmem:[#allocation2 + $0x40] sm:$0xf]  ;;  %v2172_v11 = vsel %vm14181_vm14, %v2167_v60, %v2171_v31  ;;  %v12309_v52 = vpop.f32.mrf.mxu1 }
 0x184   : > { %2499 = vst [vmem:[#allocation3 + $0xe8] sm:$0xf] %v2162_v3  ;;  %v2648_v63 = vsel %vm14154_vm10, %v2646_v62, %v2647_v16  ;;  %v2985_v59 = vrot.slane %v2983_v2, 4  ;;  %v2988_v13 = vrot.slane %v2986_v0, 5  ;;  %v2043_v8 = vld [vmem:[#allocation2 + $0x44] sm:$0x1]  ;;  %v12196_v2 = vadd.f32 %v12195_v61, %v14731_v49 }
 0x185   : > { %v2537_v15 = vld [vmem:[#allocation2 + $0x3c] sm:$0xe]  ;;  %2500 = vst [vmem:[#allocation3 + $0x10c] sm:$0xf] %v2172_v11  ;;  %2772 = vst [vmem:[#allocation3 + $0x110] sm:$0xf] %v2648_v63  ;;  %13123 = vmatpush3.bf16.msra.mxu0 %v13497_v45  ;;  %v12308_v0 = vadd.f32 %v12307_v30, %v12306_v58 }
 0x186   : > { %v2994_v18 = vrot.slane %v2992_v4, 5  ;;  %v2998_v40 = vrot.slane %v2996_v5, 4  ;;  %v3004_v19 = vrot.slane %v3002_v57, 5  ;;  %v2174_v20 = vshrl.u32 %v2041_v43, 16  ;;  %v2538_v46 = vld [vmem:[#allocation2 + $0x40] sm:$0xf] }
 0x187   : > { %v2989_v14 = vor.u32 %v2988_v13, %v2985_v59  ;;  %v2177_v53 = vshll.u32 %v2041_v43, 16  ;;  %v2183_v23 = vshll.u32 %v2042_v9, 16  ;;  %v2187_v12 = vshrl.u32 %v2042_v9, 16  ;;  %v14740_v26 = vld [vmem:[#allocation2 + $0x44] sm:$0x1]  ;;  %v12310_v9 = vpop.f32.mrf.mxu1 }
 0x188   : > { %v2999_v31 = vor.u32 %v2998_v40, %v2994_v18  ;;  %v2176_v28 = vrot.slane %v2174_v20, 4  ;;  %v2193_v32 = vshll.u32 %v2043_v8, 16  ;;  %v11550_v33 = vrot.slane %v2537_v15, 9  ;;  %v13433_v10 = vld [vmem:[#allocation3 + $0xac] ss:$36 sps:$4 sm:$0xff]  }
 0x189   : > { %v2990_v17 = vrot.slane %v2989_v14, 4  ;;  %v2179_v16 = vrot.slane %v2177_v53, 5  ;;  %v13435_v36 = vld [vmem:[#allocation3 + $0xa8] ss:$36 sps:$4 sm:$0xff]   ;;  %v2185_v34 = vrot.slane %v2183_v23, 5  ;;  %v2189_v38 = vrot.slane %v2187_v12, 4  ;;  %5489 = vmatprep.mubr.bf16.mxu1 %v13433_v10 }
 0x18a   : > { %v3000_v42 = vrot.slane %v2999_v31, 4  ;;  %v2195_v37 = vrot.slane %v2193_v32, 5  ;;  %v2651_v48 = vrot.slane %v2538_v46, 5  ;;  %v2654_v50 = vrot.slane %v14740_v26, 5  ;;  %v2806_v60 = vld [vmem:[#allocation2 + $0x48] sm:$0xf]  ;;  %5490 = vmatmul.mubr.bf16.gmra.mxu1 %v13435_v36 }
 0x18b   : > { %v2995_v47 = vsel %vm14181_vm14, %v2990_v17, %v2994_v18  ;;  %v2180_v39 = vor.u32 %v2179_v16, %v2176_v28  ;;  %v2190_v51 = vor.u32 %v2189_v38, %v2185_v34  ;;  %v2807_v54 = vld [vmem:[#allocation2 + $0x4c] sm:$0xf]  ;;  %2838 = vst [vmem:[#allocation3 + $0x138] sm:$0xf] %v2806_v60  ;;  %v2874_v62 = vld [vmem:[#allocation2 + $0x48] sm:$0xf]  ;;  %v12199_v57 = vadd.f32 %v12198_v44, %v12197_v29 }
 0x18c   : > { %v3005_v41 = vsel %vm14181_vm14, %v3000_v42, %v3004_v19  ;;  %3332 = vst [vmem:[#allocation3 + $0xf4] sm:$0xf] %v2995_v47  ;;  %v13436_v43 = vld [vmem:[#allocation3 + $0xec] ss:$36 sps:$4 sm:$0xff]   ;;  %v2652_v5 = vsel %vm14154_vm10, %v11550_v33, %v2651_v48  ;;  %2839 = vst [vmem:[#allocation3 + $0x15c] sm:$0xf] %v2807_v54  ;;  %v14756_v13 = vadd.f32 %v12308_v0, %v12196_v2 }
 0x18d   : > { %v13438_v3 = vld [vmem:[#allocation3 + $0xe8] ss:$36 sps:$4 sm:$0xff]   ;;  %3333 = vst [vmem:[#allocation3 + $0x118] sm:$0xf] %v3005_v41  ;;  %v2181_v4 = vrot.slane %v2180_v39, 4  ;;  %v2191_v45 = vrot.slane %v2190_v51, 4  ;;  %v12311_v8 = vadd.f32 %v12310_v9, %v12309_v52  ;;  %5336 = vmatprep.mubr.bf16.mxu0 %v13436_v43 }
 0x18e   : > { %v2653_v11 = vrot.slane %v2651_v48, 4  ;;  %2773 = vst [vmem:[#allocation3 + $0x134] sm:$0xf] %v2652_v5  ;;  %v2875_v63 = vld [vmem:[#allocation2 + $0x4c] sm:$0xf]  ;;  %v3007_v15 = vshrl.u32 %v2874_v62, 16  ;;  %5337 = vmatmul.mubr.bf16.gmra.mxu0 %v13438_v3 }
 0x18f   : > { %v2876_v59 = vld [vmem:[#allocation2 + $0x50] sm:$0x1]  ;;  %v2186_v49 = vsel %vm14181_vm14, %v2181_v4, %v2185_v34  ;;  %v3010_v61 = vshll.u32 %v2874_v62, 16  ;;  %v3016_v18 = vshll.u32 %v2875_v63, 16  ;;  %v2044_v40 = vld [vmem:[#allocation2 + $0x48] sm:$0xf]  ;;  %v2196_v20 = vsel %vm14181_vm14, %v2191_v45, %v2195_v37  ;;  %v12200_v62 = vpop.f32.mrf.mxu0 }
 0x190   : > { %v13510_v19 = vld [vmem:[#allocation9 + $0x200] sm:$0xff]   ;;  %2501 = vst [vmem:[#allocation3 + $0x130] sm:$0xf] %v2186_v49  ;;  %v2655_v46 = vsel %vm14154_vm10, %v2653_v11, %v2654_v50  ;;  %v3020_v14 = vshrl.u32 %v2875_v63, 16  ;;  %v3026_v53 = vshll.u32 %v2876_v59, 16  ;;  %v3009_v26 = vrot.slane %v3007_v15, 4  ;;  %v12312_v50 = vpop.f32.mrf.mxu1 }
 0x191   : > { %v2045_v23 = vld [vmem:[#allocation2 + $0x4c] sm:$0xf]  ;;  %v2046_v12 = vld [vmem:[#allocation2 + $0x50] sm:$0x1]  ;;  %2502 = vst [vmem:[#allocation3 + $0x154] sm:$0xf] %v2196_v20  ;;  %13124 = vmatprep.subr.bf16.mxu0 %v13510_v19  ;;  %v14764_v48 = vadd.f32 %v12311_v8, %v12199_v57  ;;  %v12201_v59 = vpop.f32.mrf.mxu0 }
 0x192   : > { %2774 = vst [vmem:[#allocation3 + $0x158] sm:$0xf] %v2655_v46  ;;  %v3012_v58 = vrot.slane %v3010_v61, 5  ;;  %v3018_v29 = vrot.slane %v3016_v18, 5  ;;  %v2198_v31 = vshrl.u32 %v2044_v40, 16  ;;  %v3022_v32 = vrot.slane %v3020_v14, 4  ;;  %13125 = vmatpush3.bf16.msra.mxu0 %v13510_v19  ;;  %v12313_v5 = vpop.f32.mrf.mxu1 }
 0x193   : > { %v2540_v28 = vld [vmem:[#allocation2 + $0x48] sm:$0xe]  ;;  %v3028_v33 = vrot.slane %v3026_v53, 5  ;;  %v2201_v10 = vshll.u32 %v2044_v40, 16  ;;  %v2207_v17 = vshll.u32 %v2045_v23, 16  ;;  %v2211_v42 = vshrl.u32 %v2045_v23, 16 }
 0x194   : > { %v2541_v16 = vld [vmem:[#allocation2 + $0x4c] sm:$0xf]  ;;  %v3013_v30 = vor.u32 %v3012_v58, %v3009_v26  ;;  %v2200_v36 = vrot.slane %v2198_v31, 4  ;;  %v2217_v34 = vshll.u32 %v2046_v12, 16  ;;  %v2542_v38 = vld [vmem:[#allocation2 + $0x50] sm:$0x1]  ;;  %v3023_v47 = vor.u32 %v3022_v32, %v3018_v29  ;;  %v12315_v20 = vpop.f32.mrf.mxu1  ;;  %v12203_v26 = vpop.f32.mrf.mxu0 }
 0x195   : > { %v13439_v37 = vld [vmem:[#allocation3 + $0xf4] ss:$36 sps:$4 sm:$0xff]   ;;  %v2203_v39 = vrot.slane %v2201_v10, 5  ;;  %v2209_v52 = vrot.slane %v2207_v17, 5  ;;  %v2213_v41 = vrot.slane %v2211_v42, 4  ;;  %v11551_v43 = vrot.slane %v2540_v28, 9 }
 0x196   : > { %v13441_v44 = vld [vmem:[#allocation3 + $0xf0] ss:$36 sps:$4 sm:$0xff]   ;;  %v3014_v60 = vrot.slane %v3013_v30, 4  ;;  %v2219_v51 = vrot.slane %v2217_v34, 5  ;;  %v2808_v54 = vld [vmem:[#allocation2 + $0x54] sm:$0xf]  ;;  %5497 = vmatprep.mubr.bf16.mxu1 %v13439_v37  ;;  %v12314_v8 = vadd.f32 %v12313_v5, %v12312_v50  ;;  %v12202_v19 = vadd.f32 %v12201_v59, %v12200_v62  ;;  %v12204_v34 = vpop.f32.mrf.mxu0 }
 0x197   : > { %v3024_v2 = vrot.slane %v3023_v47, 4  ;;  %v2204_v0 = vor.u32 %v2203_v39, %v2200_v36  ;;  %v2658_v3 = vrot.slane %v2541_v16, 5  ;;  %v2809_v4 = vld [vmem:[#allocation2 + $0x58] sm:$0xf]  ;;  %2840 = vst [vmem:[#allocation3 + $0x180] sm:$0xf] %v2808_v54  ;;  %5498 = vmatmul.mubr.bf16.gmra.mxu1 %v13441_v44  ;;  %v2214_v9 = vor.u32 %v2213_v41, %v2209_v52 }
 0x198   : > { %v3019_v57 = vsel %vm14181_vm14, %v3014_v60, %v3018_v29  ;;  %v2661_v45 = vrot.slane %v2542_v38, 5  ;;  %2841 = vst [vmem:[#allocation3 + $0x1a4] sm:$0xf] %v2809_v4  ;;  %v2877_v11 = vld [vmem:[#allocation2 + $0x54] sm:$0xf]  ;;  %v12206_v4 = vpop.f32.mrf.mxu0 }
 0x199   : > { %v2878_v63 = vld [vmem:[#allocation2 + $0x58] sm:$0xf]  ;;  %v13442_v49 = vld [vmem:[#allocation3 + $0x134] ss:$36 sps:$4 sm:$0xff]   ;;  %v3029_v61 = vsel %vm14181_vm14, %v3024_v2, %v3028_v33  ;;  %3334 = vst [vmem:[#allocation3 + $0x13c] sm:$0xf] %v3019_v57  ;;  %v2659_v40 = vsel %vm14154_vm10, %v11551_v43, %v2658_v3  ;;  %v12316_v33 = vpop.f32.mrf.mxu1 }
 0x19a   : > { %v13444_v15 = vld [vmem:[#allocation3 + $0x130] ss:$36 sps:$4 sm:$0xff]   ;;  %v2205_v18 = vrot.slane %v2204_v0, 4  ;;  %3335 = vst [vmem:[#allocation3 + $0x160] sm:$0xf] %v3029_v61  ;;  %v2215_v46 = vrot.slane %v2214_v9, 4  ;;  %5344 = vmatprep.mubr.bf16.mxu0 %v13442_v49  ;;  %v12205_v61 = vadd.f32 %v12204_v34, %v12203_v26 }
 0x19b   : > { %v2660_v14 = vrot.slane %v2658_v3, 4  ;;  %2775 = vst [vmem:[#allocation3 + $0x17c] sm:$0xf] %v2659_v40  ;;  %v2879_v53 = vld [vmem:[#allocation2 + $0x5c] sm:$0x1]  ;;  %v3031_v23 = vshrl.u32 %v2877_v11, 16  ;;  %5345 = vmatmul.mubr.bf16.gmra.mxu0 %v13444_v15  ;;  %v12318_v54 = vpop.f32.mrf.mxu1  ;;  %v14778_v15 = vadd.f32 %v12314_v8, %v12202_v19  ;;  %v12207_v40 = vpop.f32.mrf.mxu0 }
 0x19c   : > { %v3034_v12 = vshll.u32 %v2877_v11, 16  ;;  %v2210_v58 = vsel %vm14181_vm14, %v2205_v18, %v2209_v52  ;;  %v3040_v29 = vshll.u32 %v2878_v63, 16  ;;  %v3044_v31 = vshrl.u32 %v2878_v63, 16  ;;  %v2047_v32 = vld [vmem:[#allocation2 + $0x54] sm:$0xf] }
 0x19d   : > { %v3050_v28 = vshll.u32 %v2879_v53, 16  ;;  %v2220_v10 = vsel %vm14181_vm14, %v2215_v46, %v2219_v51  ;;  %2503 = vst [vmem:[#allocation3 + $0x178] sm:$0xf] %v2210_v58  ;;  %v2662_v17 = vsel %vm14154_vm10, %v2660_v14, %v2661_v45  ;;  %v3033_v16 = vrot.slane %v3031_v23, 4  ;;  %v2048_v36 = vld [vmem:[#allocation2 + $0x58] sm:$0xf]  ;;  %v12319_v11 = vpop.f32.mrf.mxu1  ;;  %v12209_v19 = vpop.f32.mrf.mxu0 }
 0x19e   : > { %v3036_v30 = vrot.slane %v3034_v12, 5  ;;  %v2049_v42 = vld [vmem:[#allocation2 + $0x5c] sm:$0x1]  ;;  %2504 = vst [vmem:[#allocation3 + $0x19c] sm:$0xf] %v2220_v10  ;;  %v3042_v38 = vrot.slane %v3040_v29, 5  ;;  %v12317_v18 = vadd.f32 %v12316_v33, %v12315_v20  ;;  %v12208_v33 = vadd.f32 %v12207_v40, %v12206_v4 }
 0x19f   : > { %2776 = vst [vmem:[#allocation3 + $0x1a0] sm:$0xf] %v2662_v17  ;;  %v3046_v37 = vrot.slane %v3044_v31, 4  ;;  %v3052_v44 = vrot.slane %v3050_v28, 5  ;;  %v2222_v47 = vshrl.u32 %v2047_v32, 16  ;;  %v2225_v60 = vshll.u32 %v2047_v32, 16  ;;  %v12321_v12 = vpop.f32.mrf.mxu1 }
 0x1a0   : > { %v2543_v39 = vld [vmem:[#allocation2 + $0x54] sm:$0xe]  ;;  %v3037_v50 = vor.u32 %v3036_v30, %v3033_v16  ;;  %v2231_v52 = vshll.u32 %v2048_v36, 16  ;;  %v2235_v41 = vshrl.u32 %v2048_v36, 16  ;;  %v2544_v51 = vld [vmem:[#allocation2 + $0x58] sm:$0xf]  ;;  %v14784_v8 = vadd.f32 %v12317_v18, %v12205_v61 }
 0x1a1   : > { %v3047_v62 = vor.u32 %v3046_v37, %v3042_v38  ;;  %v2224_v2 = vrot.slane %v2222_v47, 4  ;;  %v2241_v0 = vshll.u32 %v2049_v42, 16  ;;  %v2545_v43 = vld [vmem:[#allocation2 + $0x5c] sm:$0x1]  ;;  %v11552_v3 = vrot.slane %v2543_v39, 9  ;;  %v12322_v17 = vpop.f32.mrf.mxu1 }
 0x1a2   : > { %v3038_v5 = vrot.slane %v3037_v50, 4  ;;  %v2227_v57 = vrot.slane %v2225_v60, 5  ;;  %v2233_v9 = vrot.slane %v2231_v52, 5  ;;  %v2237_v45 = vrot.slane %v2235_v41, 4  ;;  %v13446_v63 = vld [vmem:[#allocation3 + $0x13c] ss:$36 sps:$4 sm:$0xff]  }
 0x1a3   : > { %v13448_v59 = vld [vmem:[#allocation3 + $0x138] ss:$36 sps:$4 sm:$0xff]   ;;  %v3048_v49 = vrot.slane %v3047_v62, 4  ;;  %v2243_v23 = vrot.slane %v2241_v0, 5  ;;  %5505 = vmatprep.mubr.bf16.mxu1 %v13446_v63  ;;  %v2665_v29 = vrot.slane %v2544_v51, 5  ;;  %v2668_v31 = vrot.slane %v2545_v43, 5 }
 0x1a4   : > { %v3043_v46 = vsel %vm14181_vm14, %v3038_v5, %v3042_v38  ;;  %v2228_v14 = vor.u32 %v2227_v57, %v2224_v2  ;;  %v2238_v53 = vor.u32 %v2237_v45, %v2233_v9  ;;  %v2810_v28 = vld [vmem:[#allocation2 + $0x60] sm:$0xf]  ;;  %5506 = vmatmul.mubr.bf16.gmra.mxu1 %v13448_v59  ;;  %v12320_v10 = vadd.f32 %v12319_v11, %v12318_v54  ;;  %v2811_v42 = vld [vmem:[#allocation2 + $0x64] sm:$0xf]  ;;  %v12210_v38 = vpop.f32.mrf.mxu0  ;;  %v2882_v39 = vld [vmem:[#allocation2 + $0x68] sm:$0x1] }
 0x1a5   : > { %v3053_v58 = vsel %vm14181_vm14, %v3048_v49, %v3052_v44  ;;  %3336 = vst [vmem:[#allocation3 + $0x184] sm:$0xf] %v3043_v46  ;;  %v13451_v26 = vld [vmem:[#allocation3 + $0x178] ss:$36 sps:$4 sm:$0xff]   ;;  %2842 = vst [vmem:[#allocation3 + $0x1c8] sm:$0xf] %v2810_v28  ;;  %v2666_v30 = vsel %vm14154_vm10, %v11552_v3, %v2665_v29  ;;  %v14788_v37 = vadd.f32 %v12322_v17, %v12321_v12 }
 0x1a6   : > { %v13449_v20 = vld [vmem:[#allocation3 + $0x17c] ss:$36 sps:$4 sm:$0xff]   ;;  %3337 = vst [vmem:[#allocation3 + $0x1a8] sm:$0xf] %v3053_v58  ;;  %v2229_v32 = vrot.slane %v2228_v14, 4  ;;  %v2239_v16 = vrot.slane %v2238_v53, 4  ;;  %v14792_v52 = vadd.f32 %v12320_v10, %v12208_v33  ;;  %v12212_v49 = vpop.f32.mrf.mxu0 }
 0x1a7   : > { %v2667_v36 = vrot.slane %v2665_v29, 4  ;;  %v2880_v34 = vld [vmem:[#allocation2 + $0x60] sm:$0xf]  ;;  %5352 = vmatprep.mubr.bf16.mxu0 %v13449_v20  ;;  %2777 = vst [vmem:[#allocation3 + $0x1c4] sm:$0xf] %v2666_v30  ;;  %v3074_v4 = vshll.u32 %v2882_v39, 16  ;;  %v12211_v29 = vadd.f32 %v12210_v38, %v12209_v19  ;;  %v12324_v39 = vpop.f32.mrf.mxu1 }
 0x1a8   : > { %v2234_v44 = vsel %vm14181_vm14, %v2229_v32, %v2233_v9  ;;  %2843 = vst [vmem:[#allocation3 + $0x1ec] sm:$0xf] %v2811_v42  ;;  %v2881_v47 = vld [vmem:[#allocation2 + $0x64] sm:$0xf]  ;;  %v3055_v50 = vshrl.u32 %v2880_v34, 16  ;;  %v3058_v60 = vshll.u32 %v2880_v34, 16  ;;  %5353 = vmatmul.mubr.bf16.gmra.mxu0 %v13451_v26  ;;  %v2244_v41 = vsel %vm14181_vm14, %v2239_v16, %v2243_v23 }
 0x1a9   : > { %2505 = vst [vmem:[#allocation3 + $0x1c0] sm:$0xf] %v2234_v44  ;;  %v2669_v51 = vsel %vm14154_vm10, %v2667_v36, %v2668_v31  ;;  %v3064_v54 = vshll.u32 %v2881_v47, 16  ;;  %v3068_v62 = vshrl.u32 %v2881_v47, 16  ;;  %v2050_v2 = vld [vmem:[#allocation2 + $0x60] sm:$0xf]  ;;  %v12213_v31 = vpop.f32.mrf.mxu0 }
 0x1aa   : > { %v2051_v0 = vld [vmem:[#allocation2 + $0x64] sm:$0xf]  ;;  %2506 = vst [vmem:[#allocation3 + $0x1e4] sm:$0xf] %v2244_v41  ;;  %2778 = vst [vmem:[#allocation3 + $0x1e8] sm:$0xf] %v2669_v51 }
 0x1ab   : > { %v3057_v43 = vrot.slane %v3055_v50, 4  ;;  %v3060_v3 = vrot.slane %v3058_v60, 5  ;;  %v2052_v5 = vld [vmem:[#allocation2 + $0x68] sm:$0x1]  ;;  %v2246_v57 = vshrl.u32 %v2050_v2, 16  ;;  %v3066_v9 = vrot.slane %v3064_v54, 5  ;;  %v12215_v42 = vpop.f32.mrf.mxu0 }
 0x1ac   : > { %v3070_v45 = vrot.slane %v3068_v62, 4  ;;  %v2249_v11 = vshll.u32 %v2050_v2, 16  ;;  %v2255_v63 = vshll.u32 %v2051_v0, 16  ;;  %v2546_v59 = vld [vmem:[#allocation2 + $0x60] sm:$0xe]  ;;  %v3076_v18 = vrot.slane %v3074_v4, 5 }
 0x1ad   : > { %v3061_v61 = vor.u32 %v3060_v3, %v3057_v43  ;;  %v2248_v40 = vrot.slane %v2246_v57, 4  ;;  %v2259_v46 = vshrl.u32 %v2051_v0, 16  ;;  %v2547_v14 = vld [vmem:[#allocation2 + $0x64] sm:$0xf]  ;;  %v13452_v53 = vld [vmem:[#allocation3 + $0x184] ss:$36 sps:$4 sm:$0xff]   ;;  %v14805_v62 = vadd.f32 %v14788_v37, %v12211_v29  ;;  %v12216_v2 = vpop.f32.mrf.mxu0  ;;  %v12325_v57 = vpop.f32.mrf.mxu1 }
 0x1ae   : > { %v13454_v23 = vld [vmem:[#allocation3 + $0x180] ss:$36 sps:$4 sm:$0xff]   ;;  %v3071_v12 = vor.u32 %v3070_v45, %v3066_v9  ;;  %v2251_v58 = vrot.slane %v2249_v11, 5  ;;  %v2257_v20 = vrot.slane %v2255_v63, 5  ;;  %v2265_v32 = vshll.u32 %v2052_v5, 16  ;;  %5513 = vmatprep.mubr.bf16.mxu1 %v13452_v53 }
 0x1af   : > { %v3062_v28 = vrot.slane %v3061_v61, 4  ;;  %v2261_v26 = vrot.slane %v2259_v46, 4  ;;  %v2548_v33 = vld [vmem:[#allocation2 + $0x68] sm:$0x1]  ;;  %v11553_v16 = vrot.slane %v2546_v59, 9  ;;  %v2672_v30 = vrot.slane %v2547_v14, 5  ;;  %5514 = vmatmul.mubr.bf16.gmra.mxu1 %v13454_v23  ;;  %v12327_v53 = vpop.f32.mrf.mxu1 }
 0x1b0   : > { %v3072_v10 = vrot.slane %v3071_v12, 4  ;;  %v2252_v17 = vor.u32 %v2251_v58, %v2248_v40  ;;  %v2812_v36 = vld [vmem:[#allocation2 + $0x6c] sm:$0xf]  ;;  %v2267_v47 = vrot.slane %v2265_v32, 5  ;;  %v2675_v19 = vrot.slane %v2548_v33, 5 }
 0x1b1   : > { %v3067_v34 = vsel %vm14181_vm14, %v3062_v28, %v3066_v9  ;;  %v2262_v44 = vor.u32 %v2261_v26, %v2257_v20  ;;  %v2813_v38 = vld [vmem:[#allocation2 + $0x70] sm:$0xf]  ;;  %2844 = vst [vmem:[#allocation3 + $0x210] sm:$0xf] %v2812_v36  ;;  %v13455_v50 = vld [vmem:[#allocation3 + $0x1c4] ss:$36 sps:$4 sm:$0xff]   ;;  %v2673_v54 = vsel %vm14154_vm10, %v11553_v16, %v2672_v30  ;;  %v12214_v5 = vadd.f32 %v12213_v31, %v12212_v49 }
 0x1b2   : > { %v13457_v60 = vld [vmem:[#allocation3 + $0x1c0] ss:$36 sps:$4 sm:$0xff]   ;;  %v3077_v41 = vsel %vm14181_vm14, %v3072_v10, %v3076_v18  ;;  %3338 = vst [vmem:[#allocation3 + $0x1cc] sm:$0xf] %v3067_v34  ;;  %v2253_v51 = vrot.slane %v2252_v17, 4  ;;  %v2674_v43 = vrot.slane %v2672_v30, 4  ;;  %v12217_v9 = vadd.f32 %v12216_v2, %v12215_v42  ;;  %5360 = vmatprep.mubr.bf16.mxu0 %v13455_v50  ;;  %v12328_v10 = vpop.f32.mrf.mxu1 }
 0x1b3   : > { %2845 = vst [vmem:[#allocation3 + $0x234] sm:$0xf] %v2813_v38  ;;  %3339 = vst [vmem:[#allocation3 + $0x1f0] sm:$0xf] %v3077_v41  ;;  %v2263_v0 = vrot.slane %v2262_v44, 4  ;;  %5361 = vmatmul.mubr.bf16.gmra.mxu0 %v13457_v60 }
 0x1b4   : > { %2779 = vst [vmem:[#allocation3 + $0x20c] sm:$0xf] %v2673_v54  ;;  %v2883_v3 = vld [vmem:[#allocation2 + $0x6c] sm:$0xf]  ;;  %v2884_v4 = vld [vmem:[#allocation2 + $0x70] sm:$0xf]  ;;  %v2258_v45 = vsel %vm14181_vm14, %v2253_v51, %v2257_v20  ;;  %v2676_v18 = vsel %vm14154_vm10, %v2674_v43, %v2675_v19  ;;  %v12326_v51 = vadd.f32 %v12325_v57, %v12324_v39  ;;  %v12329_v54 = vadd.f32 %v12328_v10, %v12327_v53 }
 0x1b5   : > { %v2885_v11 = vld [vmem:[#allocation2 + $0x74] sm:$0x1]  ;;  %v3079_v63 = vshrl.u32 %v2883_v3, 16  ;;  %v3082_v59 = vshll.u32 %v2883_v3, 16  ;;  %v3088_v61 = vshll.u32 %v2884_v4, 16  ;;  %v2268_v37 = vsel %vm14181_vm14, %v2263_v0, %v2267_v47 }
 0x1b6   : > { %2507 = vst [vmem:[#allocation3 + $0x208] sm:$0xf] %v2258_v45  ;;  %v3092_v40 = vshrl.u32 %v2884_v4, 16  ;;  %v3098_v49 = vshll.u32 %v2885_v11, 16  ;;  %v2053_v46 = vld [vmem:[#allocation2 + $0x6c] sm:$0xf] }
 0x1b7   : > { %v2054_v14 = vld [vmem:[#allocation2 + $0x70] sm:$0xf]  ;;  %2508 = vst [vmem:[#allocation3 + $0x22c] sm:$0xf] %v2268_v37  ;;  %2780 = vst [vmem:[#allocation3 + $0x230] sm:$0xf] %v2676_v18  ;;  %v14819_v18 = vadd.f32 %v12329_v54, %v12217_v9 }
 0x1b8   : > { %v3081_v23 = vrot.slane %v3079_v63, 4  ;;  %v3084_v12 = vrot.slane %v3082_v59, 5  ;;  %v3090_v58 = vrot.slane %v3088_v61, 5  ;;  %v2055_v29 = vld [vmem:[#allocation2 + $0x74] sm:$0x1]  ;;  %v2270_v31 = vshrl.u32 %v2053_v46, 16 }
 0x1b9   : > { %v3094_v28 = vrot.slane %v3092_v40, 4  ;;  %v3100_v20 = vrot.slane %v3098_v49, 5  ;;  %v2273_v26 = vshll.u32 %v2053_v46, 16  ;;  %v2279_v32 = vshll.u32 %v2054_v14, 16  ;;  %v2549_v33 = vld [vmem:[#allocation2 + $0x6c] sm:$0xe] }
 0x1ba   : > { %v3085_v17 = vor.u32 %v3084_v12, %v3081_v23  ;;  %v2272_v16 = vrot.slane %v2270_v31, 4  ;;  %v2283_v30 = vshrl.u32 %v2054_v14, 16  ;;  %v2289_v36 = vshll.u32 %v2055_v29, 16  ;;  %v2550_v42 = vld [vmem:[#allocation2 + $0x70] sm:$0xf] }
 0x1bb   : > { %v3095_v34 = vor.u32 %v3094_v28, %v3090_v58  ;;  %v2275_v44 = vrot.slane %v2273_v26, 5  ;;  %v2281_v47 = vrot.slane %v2279_v32, 5  ;;  %v2551_v19 = vld [vmem:[#allocation2 + $0x74] sm:$0x1]  ;;  %v11554_v38 = vrot.slane %v2549_v33, 9  ;;  %v12218_v26 = vpop.f32.mrf.mxu0 }
 0x1bc   : > { %v13459_v50 = vld [vmem:[#allocation3 + $0x1cc] ss:$36 sps:$4 sm:$0xff]   ;;  %v3086_v41 = vrot.slane %v3085_v17, 4  ;;  %v2285_v43 = vrot.slane %v2283_v30, 4  ;;  %v2291_v3 = vrot.slane %v2289_v36, 5  ;;  %v2679_v45 = vrot.slane %v2550_v42, 5 }
 0x1bd   : > { %v13461_v60 = vld [vmem:[#allocation3 + $0x1c8] ss:$36 sps:$4 sm:$0xff]   ;;  %v3096_v2 = vrot.slane %v3095_v34, 4  ;;  %v2276_v0 = vor.u32 %v2275_v44, %v2272_v16  ;;  %5521 = vmatprep.mubr.bf16.mxu1 %v13459_v50  ;;  %v2682_v11 = vrot.slane %v2551_v19, 5  ;;  %v14815_v63 = vadd.f32 %v12326_v51, %v12214_v5  ;;  %v2814_v46 = vld [vmem:[#allocation2 + $0x78] sm:$0xf]  ;;  %v12330_v5 = vpop.f32.mrf.mxu1 }
 0x1be   : > { %v3091_v4 = vsel %vm14181_vm14, %v3086_v41, %v3090_v58  ;;  %5522 = vmatmul.mubr.bf16.gmra.mxu1 %v13461_v60  ;;  %v13462_v59 = vld [vmem:[#allocation3 + $0x20c] ss:$36 sps:$4 sm:$0xff]   ;;  %v2286_v57 = vor.u32 %v2285_v43, %v2281_v47  ;;  %v2680_v40 = vsel %vm14154_vm10, %v11554_v38, %v2679_v45  ;;  %v2681_v49 = vrot.slane %v2679_v45, 4  ;;  %v2815_v14 = vld [vmem:[#allocation2 + $0x7c] sm:$0xf]  ;;  %v12219_v38 = vpop.f32.mrf.mxu0 }
 0x1bf   : > { %v13464_v61 = vld [vmem:[#allocation3 + $0x208] ss:$36 sps:$4 sm:$0xff]   ;;  %v3101_v37 = vsel %vm14181_vm14, %v3096_v2, %v3100_v20  ;;  %3340 = vst [vmem:[#allocation3 + $0x214] sm:$0xf] %v3091_v4  ;;  %v2277_v39 = vrot.slane %v2276_v0, 4  ;;  %5368 = vmatprep.mubr.bf16.mxu0 %v13462_v59  ;;  %v12331_v32 = vpop.f32.mrf.mxu1 }
 0x1c0   : > { %3341 = vst [vmem:[#allocation3 + $0x238] sm:$0xf] %v3101_v37  ;;  %v2287_v23 = vrot.slane %v2286_v57, 4  ;;  %2781 = vst [vmem:[#allocation3 + $0x254] sm:$0xf] %v2680_v40  ;;  %5369 = vmatmul.mubr.bf16.gmra.mxu0 %v13464_v61  ;;  %v2683_v9 = vsel %vm14154_vm10, %v2681_v49, %v2682_v11  ;;  %v12332_v36 = vadd.f32 %v12331_v32, %v12330_v5  ;;  %v12221_v11 = vpop.f32.mrf.mxu0 }
 0x1c1   : > { %v2282_v53 = vsel %vm14181_vm14, %v2277_v39, %v2281_v47  ;;  %2846 = vst [vmem:[#allocation3 + $0x258] sm:$0xf] %v2814_v46  ;;  %2847 = vst [vmem:[#allocation3 + $0x27c] sm:$0xf] %v2815_v14  ;;  %v2886_v12 = vld [vmem:[#allocation2 + $0x78] sm:$0xf]  ;;  %v12333_v50 = vpop.f32.mrf.mxu1  ;;  %v12220_v40 = vadd.f32 %v12219_v38, %v12218_v26 }
 0x1c2   : > { %v2887_v58 = vld [vmem:[#allocation2 + $0x7c] sm:$0xf]  ;;  %2509 = vst [vmem:[#allocation3 + $0x250] sm:$0xf] %v2282_v53  ;;  %v2888_v29 = vld [vmem:[#allocation2 + $0x80] sm:$0x1]  ;;  %v2292_v33 = vsel %vm14181_vm14, %v2287_v23, %v2291_v3 }
 0x1c3   : > { %v3103_v31 = vshrl.u32 %v2886_v12, 16  ;;  %v3106_v28 = vshll.u32 %v2886_v12, 16  ;;  %v3112_v20 = vshll.u32 %v2887_v58, 16  ;;  %2782 = vst [vmem:[#allocation3 + $0x278] sm:$0xf] %v2683_v9  ;;  %v3116_v10 = vshrl.u32 %v2887_v58, 16  ;;  %v12334_v59 = vpop.f32.mrf.mxu1  ;;  %v12222_v12 = vpop.f32.mrf.mxu0 }
 0x1c4   : > { %v3122_v17 = vshll.u32 %v2888_v29, 16  ;;  %v2056_v16 = vld [vmem:[#allocation2 + $0x78] sm:$0xf]  ;;  %v2057_v30 = vld [vmem:[#allocation2 + $0x7c] sm:$0xf]  ;;  %v14829_v49 = vadd.f32 %v12334_v59, %v12333_v50 }
 0x1c5   : > { %2510 = vst [vmem:[#allocation3 + $0x274] sm:$0xf] %v2292_v33  ;;  %v3105_v42 = vrot.slane %v3103_v31, 4  ;;  %v3108_v34 = vrot.slane %v3106_v28, 5  ;;  %v3114_v44 = vrot.slane %v3112_v20, 5  ;;  %v2294_v19 = vshrl.u32 %v2056_v16, 16  ;;  %v12336_v58 = vpop.f32.mrf.mxu1 }
 0x1c6   : > { %v2058_v47 = vld [vmem:[#allocation2 + $0x80] sm:$0x1]  ;;  %v3118_v60 = vrot.slane %v3116_v10, 4  ;;  %v3124_v41 = vrot.slane %v3122_v17, 5  ;;  %v2297_v51 = vshll.u32 %v2056_v16, 16  ;;  %v2303_v54 = vshll.u32 %v2057_v30, 16 }
 0x1c7   : > { %v2552_v2 = vld [vmem:[#allocation2 + $0x78] sm:$0xe]  ;;  %v3109_v0 = vor.u32 %v3108_v34, %v3105_v42  ;;  %v2296_v43 = vrot.slane %v2294_v19, 4  ;;  %v2307_v3 = vshrl.u32 %v2057_v30, 16  ;;  %v2313_v4 = vshll.u32 %v2058_v47, 16  ;;  %v12224_v30 = vpop.f32.mrf.mxu0  ;;  %v12337_v42 = vpop.f32.mrf.mxu1 }
 0x1c8   : > { %v2553_v45 = vld [vmem:[#allocation2 + $0x7c] sm:$0xf]  ;;  %v13465_v61 = vld [vmem:[#allocation3 + $0x214] ss:$36 sps:$4 sm:$0xff]   ;;  %v3119_v39 = vor.u32 %v3118_v60, %v3114_v44  ;;  %v2299_v57 = vrot.slane %v2297_v51, 5  ;;  %v2305_v14 = vrot.slane %v2303_v54, 5  ;;  %v14833_v16 = vadd.f32 %v12332_v36, %v12220_v40 }
 0x1c9   : > { %v13467_v37 = vld [vmem:[#allocation3 + $0x210] ss:$36 sps:$4 sm:$0xff]   ;;  %v3110_v46 = vrot.slane %v3109_v0, 4  ;;  %v2309_v5 = vrot.slane %v2307_v3, 4  ;;  %v2315_v53 = vrot.slane %v2313_v4, 5  ;;  %5529 = vmatprep.mubr.bf16.mxu1 %v13465_v61  ;;  %v11555_v31 = vrot.slane %v2552_v2, 9  ;;  %v12225_v2 = vpop.f32.mrf.mxu0  ;;  %v12339_v59 = vpop.f32.mrf.mxu1 }
 0x1ca   : > { %v2554_v23 = vld [vmem:[#allocation2 + $0x80] sm:$0x1]  ;;  %v3120_v9 = vrot.slane %v3119_v39, 4  ;;  %v2300_v29 = vor.u32 %v2299_v57, %v2296_v43  ;;  %v2686_v28 = vrot.slane %v2553_v45, 5  ;;  %v2816_v20 = vld [vmem:[#allocation2 + $0x84] sm:$0xf]  ;;  %5530 = vmatmul.mubr.bf16.gmra.mxu1 %v13467_v37  ;;  %v12223_v54 = vadd.f32 %v12222_v12, %v12221_v11 }
 0x1cb   : > { %v3115_v32 = vsel %vm14181_vm14, %v3110_v46, %v3114_v44  ;;  %v2310_v26 = vor.u32 %v2309_v5, %v2305_v14  ;;  %v2689_v33 = vrot.slane %v2554_v23, 5  ;;  %v2817_v10 = vld [vmem:[#allocation2 + $0x88] sm:$0xf]  ;;  %2848 = vst [vmem:[#allocation3 + $0x2a0] sm:$0xf] %v2816_v20  ;;  %v12338_v0 = vadd.f32 %v12337_v42, %v12336_v58  ;;  %v12227_v46 = vpop.f32.mrf.mxu0  ;;  %v12340_v42 = vpop.f32.mrf.mxu1 }
 0x1cc   : > { %v2889_v17 = vld [vmem:[#allocation2 + $0x84] sm:$0xf]  ;;  %v13468_v34 = vld [vmem:[#allocation3 + $0x254] ss:$36 sps:$4 sm:$0xff]   ;;  %v3125_v19 = vsel %vm14181_vm14, %v3120_v9, %v3124_v41  ;;  %3342 = vst [vmem:[#allocation3 + $0x25c] sm:$0xf] %v3115_v32  ;;  %v2687_v50 = vsel %vm14154_vm10, %v11555_v31, %v2686_v28 }
 0x1cd   : > { %v13470_v47 = vld [vmem:[#allocation3 + $0x250] ss:$36 sps:$4 sm:$0xff]   ;;  %v2301_v38 = vrot.slane %v2300_v29, 4  ;;  %2849 = vst [vmem:[#allocation3 + $0x2c4] sm:$0xf] %v2817_v10  ;;  %v2311_v44 = vrot.slane %v2310_v26, 4  ;;  %5376 = vmatprep.mubr.bf16.mxu0 %v13468_v34  ;;  %v12228_v20 = vpop.f32.mrf.mxu0 }
 0x1ce   : > { %3343 = vst [vmem:[#allocation3 + $0x280] sm:$0xf] %v3125_v19  ;;  %v2688_v60 = vrot.slane %v2686_v28, 4  ;;  %2783 = vst [vmem:[#allocation3 + $0x29c] sm:$0xf] %v2687_v50  ;;  %v3127_v41 = vshrl.u32 %v2889_v17, 16  ;;  %5377 = vmatmul.mubr.bf16.gmra.mxu0 %v13470_v47 }
 0x1cf   : > { %v2890_v51 = vld [vmem:[#allocation2 + $0x88] sm:$0xf]  ;;  %v2891_v36 = vld [vmem:[#allocation2 + $0x8c] sm:$0x1]  ;;  %v2306_v43 = vsel %vm14181_vm14, %v2301_v38, %v2305_v14  ;;  %v3130_v3 = vshll.u32 %v2889_v17, 16  ;;  %v2316_v61 = vsel %vm14181_vm14, %v2311_v44, %v2315_v53  ;;  %v12230_v50 = vpop.f32.mrf.mxu0 }
 0x1d0   : > { %v3136_v4 = vshll.u32 %v2890_v51, 16  ;;  %v2059_v45 = vld [vmem:[#allocation2 + $0x84] sm:$0xf]  ;;  %2511 = vst [vmem:[#allocation3 + $0x298] sm:$0xf] %v2306_v43  ;;  %v2690_v37 = vsel %vm14154_vm10, %v2688_v60, %v2689_v33  ;;  %v3140_v11 = vshrl.u32 %v2890_v51, 16  ;;  %v12226_v43 = vadd.f32 %v12225_v2, %v12224_v30 }
 0x1d1   : > { %v3146_v39 = vshll.u32 %v2891_v36, 16  ;;  %v2060_v57 = vld [vmem:[#allocation2 + $0x88] sm:$0xf]  ;;  %v2061_v40 = vld [vmem:[#allocation2 + $0x8c] sm:$0x1]  ;;  %v3129_v14 = vrot.slane %v3127_v41, 4  ;;  %v14846_v36 = vadd.f32 %v14829_v49, %v12223_v54  ;;  %v12229_v41 = vadd.f32 %v12228_v20, %v12227_v46 }
 0x1d2   : > { %2512 = vst [vmem:[#allocation3 + $0x2bc] sm:$0xf] %v2316_v61  ;;  %2784 = vst [vmem:[#allocation3 + $0x2c0] sm:$0xf] %v2690_v37  ;;  %v3132_v5 = vrot.slane %v3130_v3, 5  ;;  %v3138_v23 = vrot.slane %v3136_v4, 5  ;;  %v12231_v37 = vpop.f32.mrf.mxu0 }
 0x1d3   : > { %v2318_v12 = vshrl.u32 %v2059_v45, 16  ;;  %v2555_v58 = vld [vmem:[#allocation2 + $0x84] sm:$0xe]  ;;  %v3142_v9 = vrot.slane %v3140_v11, 4  ;;  %v3148_v29 = vrot.slane %v3146_v39, 5  ;;  %v2321_v31 = vshll.u32 %v2059_v45, 16 }
 0x1d4   : > { %v2327_v53 = vshll.u32 %v2060_v57, 16  ;;  %v2556_v28 = vld [vmem:[#allocation2 + $0x88] sm:$0xf]  ;;  %v3133_v32 = vor.u32 %v3132_v5, %v3129_v14  ;;  %v2331_v33 = vshrl.u32 %v2060_v57, 16  ;;  %v2337_v10 = vshll.u32 %v2061_v40, 16  ;;  %v12342_v5 = vpop.f32.mrf.mxu1 }
 0x1d5   : > { %v2320_v26 = vrot.slane %v2318_v12, 4  ;;  %v2557_v17 = vld [vmem:[#allocation2 + $0x8c] sm:$0x1]  ;;  %v3143_v34 = vor.u32 %v3142_v9, %v3138_v23  ;;  %v2323_v47 = vrot.slane %v2321_v31, 5  ;;  %v11556_v38 = vrot.slane %v2555_v58, 9 }
 0x1d6   : > { %v2329_v19 = vrot.slane %v2327_v53, 5  ;;  %v13472_v44 = vld [vmem:[#allocation3 + $0x25c] ss:$36 sps:$4 sm:$0xff]   ;;  %v3134_v51 = vrot.slane %v3133_v32, 4  ;;  %v2333_v45 = vrot.slane %v2331_v33, 4  ;;  %v2339_v61 = vrot.slane %v2337_v10, 5  ;;  %v12343_v53 = vpop.f32.mrf.mxu1 }
 0x1d7   : > { %v13474_v60 = vld [vmem:[#allocation3 + $0x258] ss:$36 sps:$4 sm:$0xff]   ;;  %v3144_v3 = vrot.slane %v3143_v34, 4  ;;  %v2324_v4 = vor.u32 %v2323_v47, %v2320_v26  ;;  %5537 = vmatprep.mubr.bf16.mxu1 %v13472_v44  ;;  %v2693_v39 = vrot.slane %v2556_v28, 5  ;;  %v2696_v57 = vrot.slane %v2557_v17, 5  ;;  %v12233_v28 = vpop.f32.mrf.mxu0 }
 0x1d8   : > { %v3139_v11 = vsel %vm14181_vm14, %v3134_v51, %v3138_v23  ;;  %v2818_v40 = vld [vmem:[#allocation2 + $0x90] sm:$0xf]  ;;  %v14850_v14 = vadd.f32 %v12338_v0, %v12226_v43  ;;  %5538 = vmatmul.mubr.bf16.gmra.mxu1 %v13474_v60  ;;  %v2334_v46 = vor.u32 %v2333_v45, %v2329_v19  ;;  %v12341_v12 = vadd.f32 %v12340_v42, %v12339_v59  ;;  %v2819_v9 = vld [vmem:[#allocation2 + $0x94] sm:$0xf]  ;;  %v2894_v26 = vld [vmem:[#allocation2 + $0x98] sm:$0x1] }
 0x1d9   : > { %v13475_v49 = vld [vmem:[#allocation3 + $0x29c] ss:$36 sps:$4 sm:$0xff]   ;;  %v3149_v30 = vsel %vm14181_vm14, %v3144_v3, %v3148_v29  ;;  %3344 = vst [vmem:[#allocation3 + $0x2a4] sm:$0xf] %v3139_v11  ;;  %v2325_v2 = vrot.slane %v2324_v4, 4  ;;  %v2694_v23 = vsel %vm14154_vm10, %v11556_v38, %v2693_v39  ;;  %v2695_v58 = vrot.slane %v2693_v39, 4  ;;  %v12345_v38 = vpop.f32.mrf.mxu1  ;;  %v12234_v11 = vpop.f32.mrf.mxu0 }
 0x1da   : > { %v13477_v54 = vld [vmem:[#allocation3 + $0x298] ss:$36 sps:$4 sm:$0xff]   ;;  %2850 = vst [vmem:[#allocation3 + $0x2e8] sm:$0xf] %v2818_v40  ;;  %3345 = vst [vmem:[#allocation3 + $0x2c8] sm:$0xf] %v3149_v30  ;;  %v12232_v31 = vadd.f32 %v12231_v37, %v12230_v50  ;;  %5384 = vmatprep.mubr.bf16.mxu0 %v13475_v49  ;;  %v14858_v33 = vadd.f32 %v12341_v12, %v12229_v41  ;;  %v12344_v43 = vadd.f32 %v12343_v53, %v12342_v5 }
 0x1db   : > { %v2892_v0 = vld [vmem:[#allocation2 + $0x90] sm:$0xf]  ;;  %v2330_v20 = vsel %vm14181_vm14, %v2325_v2, %v2329_v19  ;;  %v2335_v29 = vrot.slane %v2334_v46, 4  ;;  %2785 = vst [vmem:[#allocation3 + $0x2e4] sm:$0xf] %v2694_v23  ;;  %5385 = vmatmul.mubr.bf16.gmra.mxu0 %v13477_v54  ;;  %v2697_v10 = vsel %vm14154_vm10, %v2695_v58, %v2696_v57  ;;  %v3170_v44 = vshll.u32 %v2894_v26, 16  ;;  %v12346_v39 = vpop.f32.mrf.mxu1 }
 0x1dc   : > { %2851 = vst [vmem:[#allocation3 + $0x30c] sm:$0xf] %v2819_v9  ;;  %v2893_v32 = vld [vmem:[#allocation2 + $0x94] sm:$0xf]  ;;  %v3151_v59 = vshrl.u32 %v2892_v0, 16  ;;  %v3154_v17 = vshll.u32 %v2892_v0, 16  ;;  %v14864_v0 = vadd.f32 %v12344_v43, %v12232_v31  ;;  %v12235_v53 = vadd.f32 %v12234_v11, %v12233_v28 }
 0x1dd   : > { %2513 = vst [vmem:[#allocation3 + $0x2e0] sm:$0xf] %v2330_v20  ;;  %v3160_v42 = vshll.u32 %v2893_v32, 16  ;;  %v3164_v34 = vshrl.u32 %v2893_v32, 16  ;;  %v2062_v47 = vld [vmem:[#allocation2 + $0x90] sm:$0xf]  ;;  %v2340_v19 = vsel %vm14181_vm14, %v2335_v29, %v2339_v61  ;;  %v12347_v20 = vadd.f32 %v12346_v39, %v12345_v38 }
 0x1de   : > { %2786 = vst [vmem:[#allocation3 + $0x308] sm:$0xf] %v2697_v10  ;;  %v3153_v50 = vrot.slane %v3151_v59, 4  ;;  %v2063_v60 = vld [vmem:[#allocation2 + $0x94] sm:$0xf]  ;;  %v3156_v41 = vrot.slane %v3154_v17, 5 }
 0x1df   : > { %v2064_v51 = vld [vmem:[#allocation2 + $0x98] sm:$0x1]  ;;  %2514 = vst [vmem:[#allocation3 + $0x304] sm:$0xf] %v2340_v19  ;;  %v3162_v3 = vrot.slane %v3160_v42, 5  ;;  %v3166_v4 = vrot.slane %v3164_v34, 4 }
 0x1e0   : > { %v2342_v45 = vshrl.u32 %v2062_v47, 16  ;;  %v2558_v37 = vld [vmem:[#allocation2 + $0x90] sm:$0xe]  ;;  %v3172_v57 = vrot.slane %v3170_v44, 5  ;;  %v2345_v40 = vshll.u32 %v2062_v47, 16  ;;  %v2351_v49 = vshll.u32 %v2063_v60, 16 }
 0x1e1   : > { %v2355_v54 = vshrl.u32 %v2063_v60, 16  ;;  %v2559_v30 = vld [vmem:[#allocation2 + $0x94] sm:$0xf]  ;;  %v3157_v61 = vor.u32 %v3156_v41, %v3153_v50  ;;  %v3167_v2 = vor.u32 %v3166_v4, %v3162_v3  ;;  %v2361_v12 = vshll.u32 %v2064_v51, 16  ;;  %v2560_v23 = vld [vmem:[#allocation2 + $0x98] sm:$0x1]  ;;  %v12348_v51 = vpop.f32.mrf.mxu1 }
 0x1e2   : > { %v2344_v46 = vrot.slane %v2342_v45, 4  ;;  %v13478_v58 = vld [vmem:[#allocation3 + $0x2a4] ss:$36 sps:$4 sm:$0xff]   ;;  %v2347_v9 = vrot.slane %v2345_v40, 5  ;;  %v2353_v26 = vrot.slane %v2351_v49, 5  ;;  %v11557_v34 = vrot.slane %v2558_v37, 9  ;;  %v12236_v49 = vpop.f32.mrf.mxu0 }
 0x1e3   : > { %v13480_v5 = vld [vmem:[#allocation3 + $0x2a0] ss:$36 sps:$4 sm:$0xff]   ;;  %v3158_v29 = vrot.slane %v3157_v61, 4  ;;  %v3168_v32 = vrot.slane %v3167_v2, 4  ;;  %v2357_v59 = vrot.slane %v2355_v54, 4  ;;  %5545 = vmatprep.mubr.bf16.mxu1 %v13478_v58  ;;  %v2363_v42 = vrot.slane %v2361_v12, 5  ;;  %v12349_v54 = vpop.f32.mrf.mxu1 }
 0x1e4   : > { %v2820_v10 = vld [vmem:[#allocation2 + $0x9c] sm:$0xf]  ;;  %v2348_v17 = vor.u32 %v2347_v9, %v2344_v46  ;;  %v2700_v47 = vrot.slane %v2559_v30, 5  ;;  %v2821_v19 = vld [vmem:[#allocation2 + $0xa0] sm:$0xf]  ;;  %5546 = vmatmul.mubr.bf16.gmra.mxu1 %v13480_v5  ;;  %v2703_v38 = vrot.slane %v2560_v23, 5  ;;  %v14872_v37 = vadd.f32 %v12347_v20, %v12235_v53 }
 0x1e5   : > { %2852 = vst [vmem:[#allocation3 + $0x330] sm:$0xf] %v2820_v10  ;;  %v3163_v50 = vsel %vm14181_vm14, %v3158_v29, %v3162_v3  ;;  %v3173_v31 = vsel %vm14181_vm14, %v3168_v32, %v3172_v57  ;;  %v2358_v28 = vor.u32 %v2357_v59, %v2353_v26  ;;  %2853 = vst [vmem:[#allocation3 + $0x354] sm:$0xf] %v2821_v19  ;;  %v2895_v44 = vld [vmem:[#allocation2 + $0x9c] sm:$0xf]  ;;  %v12237_v29 = vpop.f32.mrf.mxu0  ;;  %v12351_v32 = vpop.f32.mrf.mxu1 }
 0x1e6   : > { %v2896_v60 = vld [vmem:[#allocation2 + $0xa0] sm:$0xf]  ;;  %v13483_v41 = vld [vmem:[#allocation3 + $0x2e0] ss:$36 sps:$4 sm:$0xff]   ;;  %3346 = vst [vmem:[#allocation3 + $0x2ec] sm:$0xf] %v3163_v50  ;;  %v2701_v45 = vsel %vm14154_vm10, %v11557_v34, %v2700_v47 }
 0x1e7   : > { %v13481_v43 = vld [vmem:[#allocation3 + $0x2e4] ss:$36 sps:$4 sm:$0xff]   ;;  %3347 = vst [vmem:[#allocation3 + $0x310] sm:$0xf] %v3173_v31  ;;  %v2349_v4 = vrot.slane %v2348_v17, 4  ;;  %v2359_v3 = vrot.slane %v2358_v28, 4  ;;  %v12239_v28 = vpop.f32.mrf.mxu0 }
 0x1e8   : > { %v2702_v11 = vrot.slane %v2700_v47, 4  ;;  %2787 = vst [vmem:[#allocation3 + $0x32c] sm:$0xf] %v2701_v45  ;;  %v2897_v39 = vld [vmem:[#allocation2 + $0xa4] sm:$0x1]  ;;  %v3175_v57 = vshrl.u32 %v2895_v44, 16  ;;  %5392 = vmatprep.mubr.bf16.mxu0 %v13481_v43 }
 0x1e9   : > { %v3178_v40 = vshll.u32 %v2895_v44, 16  ;;  %v2354_v30 = vsel %vm14181_vm14, %v2349_v4, %v2353_v26  ;;  %v3184_v61 = vshll.u32 %v2896_v60, 16  ;;  %v3188_v2 = vshrl.u32 %v2896_v60, 16  ;;  %v2065_v12 = vld [vmem:[#allocation2 + $0x9c] sm:$0xf]  ;;  %5393 = vmatmul.mubr.bf16.gmra.mxu0 %v13483_v41 }
 0x1ea   : > { %v3194_v46 = vshll.u32 %v2897_v39, 16  ;;  %v2364_v23 = vsel %vm14181_vm14, %v2359_v3, %v2363_v42  ;;  %2515 = vst [vmem:[#allocation3 + $0x328] sm:$0xf] %v2354_v30  ;;  %v2704_v58 = vsel %vm14154_vm10, %v2702_v11, %v2703_v38  ;;  %v3177_v5 = vrot.slane %v3175_v57, 4  ;;  %v2066_v53 = vld [vmem:[#allocation2 + $0xa0] sm:$0xf]  ;;  %v12352_v57 = vpop.f32.mrf.mxu1 }
 0x1eb   : > { %v3180_v9 = vrot.slane %v3178_v40, 5  ;;  %v2067_v20 = vld [vmem:[#allocation2 + $0xa4] sm:$0x1]  ;;  %2516 = vst [vmem:[#allocation3 + $0x34c] sm:$0xf] %v2364_v23  ;;  %v3186_v26 = vrot.slane %v3184_v61, 5  ;;  %v12238_v11 = vadd.f32 %v12237_v29, %v12236_v49  ;;  %v12350_v39 = vadd.f32 %v12349_v54, %v12348_v51 }
 0x1ec   : > { %2788 = vst [vmem:[#allocation3 + $0x350] sm:$0xf] %v2704_v58  ;;  %v3190_v59 = vrot.slane %v3188_v2, 4  ;;  %v3196_v10 = vrot.slane %v3194_v46, 5  ;;  %v2366_v17 = vshrl.u32 %v2065_v12, 16  ;;  %v2369_v19 = vshll.u32 %v2065_v12, 16 }
 0x1ed   : > { %v2561_v34 = vld [vmem:[#allocation2 + $0x9c] sm:$0xe]  ;;  %v3181_v47 = vor.u32 %v3180_v9, %v3177_v5  ;;  %v2375_v42 = vshll.u32 %v2066_v53, 16  ;;  %v2379_v50 = vshrl.u32 %v2066_v53, 16  ;;  %v2562_v31 = vld [vmem:[#allocation2 + $0xa0] sm:$0xf]  ;;  %v12240_v5 = vpop.f32.mrf.mxu0 }
 0x1ee   : > { %v3191_v38 = vor.u32 %v3190_v59, %v3186_v26  ;;  %v2368_v44 = vrot.slane %v2366_v17, 4  ;;  %v2385_v60 = vshll.u32 %v2067_v20, 16  ;;  %v2563_v43 = vld [vmem:[#allocation2 + $0xa4] sm:$0x1]  ;;  %v11558_v41 = vrot.slane %v2561_v34, 9 }
 0x1ef   : > { %v13485_v4 = vld [vmem:[#allocation3 + $0x2ec] ss:$36 sps:$4 sm:$0xff]   ;;  %v3182_v45 = vrot.slane %v3181_v47, 4  ;;  %v2371_v3 = vrot.slane %v2369_v19, 5  ;;  %v2377_v61 = vrot.slane %v2375_v42, 5  ;;  %v2381_v2 = vrot.slane %v2379_v50, 4  ;;  %v14888_v47 = vpop.f32.mrf.mxu1 }
 0x1f0   : > { %v13487_v40 = vld [vmem:[#allocation3 + $0x2e8] ss:$36 sps:$4 sm:$0xff]   ;;  %v3192_v30 = vrot.slane %v3191_v38, 4  ;;  %5553 = vmatprep.mubr.bf16.mxu1 %v13485_v4  ;;  %v2387_v23 = vrot.slane %v2385_v60, 5  ;;  %v2707_v58 = vrot.slane %v2562_v31, 5  ;;  %v2710_v51 = vrot.slane %v2563_v43, 5 }
 0x1f1   : > { %v3187_v46 = vsel %vm14181_vm14, %v3182_v45, %v3186_v26  ;;  %v2372_v12 = vor.u32 %v2371_v3, %v2368_v44  ;;  %5554 = vmatmul.mubr.bf16.gmra.mxu1 %v13487_v40  ;;  %v2382_v49 = vor.u32 %v2381_v2, %v2377_v61  ;;  %v2822_v54 = vld [vmem:[#allocation2 + $0xa8] sm:$0xf]  ;;  %v2823_v53 = vld [vmem:[#allocation2 + $0xac] sm:$0xf]  ;;  %v14884_v20 = vadd.f32 %v12350_v39, %v12238_v11  ;;  %v2900_v44 = vld [vmem:[#allocation2 + $0xb0] sm:$0x1]  ;;  %v12355_v45 = vpop.f32.mrf.mxu1 }
 0x1f2   : > { %v3197_v9 = vsel %vm14181_vm14, %v3192_v30, %v3196_v10  ;;  %3348 = vst [vmem:[#allocation3 + $0x334] sm:$0xf] %v3187_v46  ;;  %v13490_v59 = vld [vmem:[#allocation3 + $0x328] ss:$36 sps:$4 sm:$0xff]   ;;  %v2708_v26 = vsel %vm14154_vm10, %v11558_v41, %v2707_v58  ;;  %2854 = vst [vmem:[#allocation3 + $0x378] sm:$0xf] %v2822_v54  ;;  %v12353_v34 = vadd.f32 %v12352_v57, %v12351_v32  ;;  %v12242_v41 = vpop.f32.mrf.mxu0 }
 0x1f3   : > { %v13488_v29 = vld [vmem:[#allocation3 + $0x32c] ss:$36 sps:$4 sm:$0xff]   ;;  %3349 = vst [vmem:[#allocation3 + $0x358] sm:$0xf] %v3197_v9  ;;  %v2373_v17 = vrot.slane %v2372_v12, 4  ;;  %v2383_v10 = vrot.slane %v2382_v49, 4  ;;  %v12241_v31 = vadd.f32 %v12240_v5, %v12239_v28  ;;  %v12357_v54 = vpop.f32.mrf.mxu1 }
 0x1f4   : > { %2855 = vst [vmem:[#allocation3 + $0x39c] sm:$0xf] %v2823_v53  ;;  %v2709_v19 = vrot.slane %v2707_v58, 4  ;;  %2789 = vst [vmem:[#allocation3 + $0x374] sm:$0xf] %v2708_v26  ;;  %5400 = vmatprep.mubr.bf16.mxu0 %v13488_v29  ;;  %v3218_v28 = vshll.u32 %v2900_v44, 16  ;;  %v12243_v12 = vpop.f32.mrf.mxu0 }
 0x1f5   : > { %v2898_v42 = vld [vmem:[#allocation2 + $0xa8] sm:$0xf]  ;;  %v2899_v50 = vld [vmem:[#allocation2 + $0xac] sm:$0xf]  ;;  %v2378_v38 = vsel %vm14181_vm14, %v2373_v17, %v2377_v61  ;;  %5401 = vmatmul.mubr.bf16.gmra.mxu0 %v13490_v59  ;;  %v2388_v32 = vsel %vm14181_vm14, %v2383_v10, %v2387_v23  ;;  %v2070_v2 = vld [vmem:[#allocation2 + $0xb0] sm:$0x1]  ;;  %v12244_v44 = vadd.f32 %v12243_v12, %v12242_v41 }
 0x1f6   : > { %v3199_v60 = vshrl.u32 %v2898_v42, 16  ;;  %v3202_v43 = vshll.u32 %v2898_v42, 16  ;;  %v3208_v4 = vshll.u32 %v2899_v50, 16  ;;  %2517 = vst [vmem:[#allocation3 + $0x370] sm:$0xf] %v2378_v38  ;;  %v2711_v3 = vsel %vm14154_vm10, %v2709_v19, %v2710_v51  ;;  %v12245_v26 = vpop.f32.mrf.mxu0 }
 0x1f7   : > { %v3212_v11 = vshrl.u32 %v2899_v50, 16  ;;  %v2068_v39 = vld [vmem:[#allocation2 + $0xa8] sm:$0xf]  ;;  %v2069_v57 = vld [vmem:[#allocation2 + $0xac] sm:$0xf]  ;;  %v3220_v5 = vrot.slane %v3218_v28, 5  ;;  %v14896_v38 = vadd.f32 %v12353_v34, %v12241_v31 }
 0x1f8   : > { %2518 = vst [vmem:[#allocation3 + $0x394] sm:$0xf] %v2388_v32  ;;  %2790 = vst [vmem:[#allocation3 + $0x398] sm:$0xf] %v2711_v3  ;;  %v3201_v40 = vrot.slane %v3199_v60, 4  ;;  %v3204_v30 = vrot.slane %v3202_v43, 5 }
 0x1f9   : > { %v3210_v61 = vrot.slane %v3208_v4, 5  ;;  %v2390_v46 = vshrl.u32 %v2068_v39, 16  ;;  %v3214_v58 = vrot.slane %v3212_v11, 4  ;;  %v2393_v9 = vshll.u32 %v2068_v39, 16  ;;  %v2564_v49 = vld [vmem:[#allocation2 + $0xa8] sm:$0xe]  ;;  %v12246_v11 = vpop.f32.mrf.mxu0 }
 0x1fa   : > { %v2399_v23 = vshll.u32 %v2069_v57, 16  ;;  %v3205_v53 = vor.u32 %v3204_v30, %v3201_v40  ;;  %v2403_v29 = vshrl.u32 %v2069_v57, 16  ;;  %v2409_v59 = vshll.u32 %v2070_v2, 16  ;;  %v2565_v17 = vld [vmem:[#allocation2 + $0xac] sm:$0xf]  ;;  %v12358_v2 = vpop.f32.mrf.mxu1 }
 0x1fb   : > { %v2392_v51 = vrot.slane %v2390_v46, 4  ;;  %v13491_v10 = vld [vmem:[#allocation3 + $0x334] ss:$36 sps:$4 sm:$0xff]   ;;  %v3215_v42 = vor.u32 %v3214_v58, %v3210_v61  ;;  %v2395_v50 = vrot.slane %v2393_v9, 5  ;;  %v11559_v57 = vrot.slane %v2564_v49, 9  ;;  %v12248_v9 = vpop.f32.mrf.mxu0 }
 0x1fc   : > { %v13493_v19 = vld [vmem:[#allocation3 + $0x330] ss:$36 sps:$4 sm:$0xff]   ;;  %v3206_v60 = vrot.slane %v3205_v53, 4  ;;  %v2401_v43 = vrot.slane %v2399_v23, 5  ;;  %v2405_v4 = vrot.slane %v2403_v29, 4  ;;  %v2411_v32 = vrot.slane %v2409_v59, 5  ;;  %5561 = vmatprep.mubr.bf16.mxu1 %v13491_v10 }
 0x1fd   : > { %v2566_v3 = vld [vmem:[#allocation2 + $0xb0] sm:$0x1]  ;;  %v3216_v28 = vrot.slane %v3215_v42, 4  ;;  %v2396_v39 = vor.u32 %v2395_v50, %v2392_v51  ;;  %v2714_v40 = vrot.slane %v2565_v17, 5  ;;  %v2824_v30 = vld [vmem:[#allocation2 + $0xb4] sm:$0xf]  ;;  %5562 = vmatmul.mubr.bf16.gmra.mxu1 %v13493_v19  ;;  %v12356_v58 = vadd.f32 %v12355_v45, %v14888_v47 }
 0x1fe   : > { %v3211_v46 = vsel %vm14181_vm14, %v3206_v60, %v3210_v61  ;;  %v2406_v34 = vor.u32 %v2405_v4, %v2401_v43  ;;  %v2717_v31 = vrot.slane %v2566_v3, 5  ;;  %v2825_v41 = vld [vmem:[#allocation2 + $0xb8] sm:$0xf]  ;;  %2856 = vst [vmem:[#allocation3 + $0x3c0] sm:$0xf] %v2824_v30  ;;  %v12247_v61 = vadd.f32 %v12246_v11, %v12245_v26  ;;  %v12360_v3 = vpop.f32.mrf.mxu1 }
 0x1ff   : > { %v2901_v12 = vld [vmem:[#allocation2 + $0xb4] sm:$0xf]  ;;  %v13494_v23 = vld [vmem:[#allocation3 + $0x370] ss:$36 sps:$4 sm:$0xff]   ;;  %v3221_v49 = vsel %vm14181_vm14, %v3216_v28, %v3220_v5  ;;  %3350 = vst [vmem:[#allocation3 + $0x37c] sm:$0xf] %v3211_v46  ;;  %v2715_v29 = vsel %vm14154_vm10, %v11559_v57, %v2714_v40  ;;  %v14905_v47 = vadd.f32 %v12356_v58, %v12244_v44  ;;  %v12359_v45 = vadd.f32 %v12358_v2, %v12357_v54  ;;  %v12249_v28 = vpop.f32.mrf.mxu0 }
 0x200   : > { %v13496_v53 = vld [vmem:[#allocation3 + $0x374] ss:$36 sps:$4 sm:$0xff]   ;;  %v2397_v51 = vrot.slane %v2396_v39, 4  ;;  %2857 = vst [vmem:[#allocation3 + $0x3e4] sm:$0xf] %v2825_v41  ;;  %v2407_v59 = vrot.slane %v2406_v34, 4  ;;  %v12361_v34 = vpop.f32.mrf.mxu1 }
 0x201   : > { %3351 = vst [vmem:[#allocation3 + $0x3a0] sm:$0xf] %v3221_v49  ;;  %v2716_v17 = vrot.slane %v2714_v40, 4  ;;  %2791 = vst [vmem:[#allocation3 + $0x3bc] sm:$0xf] %v2715_v29  ;;  %5408 = vmatprep.mubr.bf16.mxu0 %v13496_v53  ;;  %v3223_v42 = vshrl.u32 %v2901_v12, 16 }
 0x202   : > { %v2902_v10 = vld [vmem:[#allocation2 + $0xb8] sm:$0xf]  ;;  %v2903_v19 = vld [vmem:[#allocation2 + $0xbc] sm:$0x1]  ;;  %v2402_v5 = vsel %vm14181_vm14, %v2397_v51, %v2401_v43  ;;  %v3226_v50 = vshll.u32 %v2901_v12, 16  ;;  %5409 = vmatmul.mubr.bf16.gmra.mxu0 %v13494_v23  ;;  %v2412_v26 = vsel %vm14181_vm14, %v2407_v59, %v2411_v32  ;;  %v12251_v59 = vpop.f32.mrf.mxu0 }
 0x203   : > { %v3232_v60 = vshll.u32 %v2902_v10, 16  ;;  %v2071_v4 = vld [vmem:[#allocation2 + $0xb4] sm:$0xf]  ;;  %2519 = vst [vmem:[#allocation3 + $0x3b8] sm:$0xf] %v2402_v5  ;;  %v2718_v44 = vsel %vm14154_vm10, %v2716_v17, %v2717_v31  ;;  %v3236_v11 = vshrl.u32 %v2902_v10, 16  ;;  %v12363_v17 = vpop.f32.mrf.mxu1 }
 0x204   : > { %v3242_v54 = vshll.u32 %v2903_v19, 16  ;;  %v2072_v39 = vld [vmem:[#allocation2 + $0xb8] sm:$0xf]  ;;  %v2073_v57 = vld [vmem:[#allocation2 + $0xbc] sm:$0x1]  ;;  %v3225_v43 = vrot.slane %v3223_v42, 4 }
 0x205   : > { %2520 = vst [vmem:[#allocation3 + $0x3dc] sm:$0xf] %v2412_v26  ;;  %2792 = vst [vmem:[#allocation3 + $0x3e0] sm:$0xf] %v2718_v44  ;;  %v3228_v40 = vrot.slane %v3226_v50, 5  ;;  %v3234_v30 = vrot.slane %v3232_v60, 5  ;;  %v14913_v44 = vadd.f32 %v12359_v45, %v12247_v61 }
 0x206   : > { %v2414_v2 = vshrl.u32 %v2071_v4, 16  ;;  %v2567_v46 = vld [vmem:[#allocation2 + $0xb4] sm:$0xe]  ;;  %v3238_v41 = vrot.slane %v3236_v11, 4  ;;  %v3244_v12 = vrot.slane %v3242_v54, 5  ;;  %v2417_v58 = vshll.u32 %v2071_v4, 16 }
 0x207   : > { %v2423_v32 = vshll.u32 %v2072_v39, 16  ;;  %v2568_v23 = vld [vmem:[#allocation2 + $0xb8] sm:$0xf]  ;;  %v3229_v53 = vor.u32 %v3228_v40, %v3225_v43  ;;  %v2427_v31 = vshrl.u32 %v2072_v39, 16  ;;  %v2433_v51 = vshll.u32 %v2073_v57, 16  ;;  %v12364_v39 = vpop.f32.mrf.mxu1 }
 0x208   : > { %v2416_v49 = vrot.slane %v2414_v2, 4  ;;  %v2569_v29 = vld [vmem:[#allocation2 + $0xbc] sm:$0x1]  ;;  %v3239_v10 = vor.u32 %v3238_v41, %v3234_v30  ;;  %v2419_v19 = vrot.slane %v2417_v58, 5  ;;  %v11560_v42 = vrot.slane %v2567_v46, 9 }
 0x209   : > { %v2425_v5 = vrot.slane %v2423_v32, 5  ;;  %v13498_v50 = vld [vmem:[#allocation3 + $0x378] ss:$36 sps:$4 sm:$0xff]   ;;  %v3230_v26 = vrot.slane %v3229_v53, 4  ;;  %v12250_v11 = vadd.f32 %v12249_v28, %v12248_v9  ;;  %v12362_v4 = vadd.f32 %v12361_v34, %v12360_v3  ;;  %v412_v58 = vld [vmem:[#allocation2 + $0xc8] sm:$0x1]  ;;  %v12252_v32 = vpop.f32.mrf.mxu0 }
 0x20a   : > { %v13500_v60 = vld [vmem:[#allocation3 + $0x37c] ss:$36 sps:$4 sm:$0xff]   ;;  %v3240_v54 = vrot.slane %v3239_v10, 4  ;;  %v2420_v21 = vor.u32 %v2419_v19, %v2416_v49  ;;  %v2429_v43 = vrot.slane %v2427_v31, 4  ;;  %v2435_v40 = vrot.slane %v2433_v51, 5 }
 0x20b   : > { %5569 = vmatprep.mubr.bf16.mxu1 %v13500_v60  ;;  %v3235_v57 = vsel %vm14181_vm14, %v3230_v26, %v3234_v30  ;;  %v2721_v2 = vrot.slane %v2568_v23, 5  ;;  %v2724_v41 = vrot.slane %v2569_v29, 5  ;;  %v14917_v46 = vadd.f32 %v12362_v4, %v12250_v11  ;;  %v2826_v53 = vld [vmem:[#allocation2 + $0xc0] sm:$0xf]  ;;  %v2827_v49 = vld [vmem:[#allocation2 + $0xc4] sm:$0xf] }
 0x20c   : > { %5570 = vmatmul.mubr.bf16.gmra.mxu1 %v13498_v50  ;;  %v13501_v61 = vld [vmem:[#allocation3 + $0x3b8] ss:$36 sps:$4 sm:$0xff]   ;;  %v3245_v9 = vsel %vm14181_vm14, %v3240_v54, %v3244_v12  ;;  %3352 = vst [vmem:[#allocation3 + $0x3c4] sm:$0xf] %v3235_v57  ;;  %v2421_v3 = vrot.slane %v2420_v21, 4  ;;  %v2430_v28 = vor.u32 %v2429_v43, %v2425_v5  ;;  %v413_v23 = vsel %vm14136_vm4, 0, %v412_v58  ;;  %v12366_v43 = vpop.f32.mrf.mxu1 }
 0x20d   : > { %v13503_v45 = vld [vmem:[#allocation3 + $0x3bc] ss:$36 sps:$4 sm:$0xff]   ;;  %3353 = vst [vmem:[#allocation3 + $0x3e8] sm:$0xf] %v3245_v9  ;;  %v2722_v34 = vsel %vm14154_vm10, %v11560_v42, %v2721_v2  ;;  %v2723_v30 = vrot.slane %v2721_v2, 4  ;;  %v12365_v31 = vadd.f32 %v12364_v39, %v12363_v17  ;;  %v819_v51 = vrot.slane %v14649_v22, 4 }
 0x20e   : > { %5416 = vmatprep.mubr.bf16.mxu0 %v13503_v45  ;;  %v2426_v12 = vsel %vm14181_vm14, %v2421_v3, %v2425_v5  ;;  %v2431_v29 = vrot.slane %v2430_v28, 4  ;;  %2793 = vst [vmem:[#allocation3 + $0x404] sm:$0xf] %v2722_v34  ;;  %414 = vst [vmem:[#allocation2 + $0xc8] sm:$0x1] %v413_v23  ;;  %v12253_v19 = vadd.f32 %v12252_v32, %v12251_v59  ;;  %v12367_v28 = vpop.f32.mrf.mxu1 }
 0x20f   : > { %2858 = vst [vmem:[#allocation3 + $0x408] sm:$0xf] %v2826_v53  ;;  %2859 = vst [vmem:[#allocation3 + $0x42c] sm:$0xf] %v2827_v49  ;;  %v2904_v21 = vld [vmem:[#allocation2 + $0xc0] sm:$0xf]  ;;  %5417 = vmatmul.mubr.bf16.gmra.mxu0 %v13501_v61  ;;  %v2725_v42 = vsel %vm14154_vm10, %v2723_v30, %v2724_v41  ;;  %v12254_v41 = vpop.f32.mrf.mxu0 }
 0x210   : > { %v2905_v10 = vld [vmem:[#allocation2 + $0xc4] sm:$0xf]  ;;  %2521 = vst [vmem:[#allocation3 + $0x400] sm:$0xf] %v2426_v12  ;;  %v3247_v17 = vshrl.u32 %v2904_v21, 16  ;;  %v3250_v50 = vshll.u32 %v2904_v21, 16  ;;  %v2436_v5 = vsel %vm14181_vm14, %v2431_v29, %v2435_v40 }
 0x211   : > { %v3256_v22 = vshll.u32 %v2905_v10, 16  ;;  %v2074_v60 = vld [vmem:[#allocation2 + $0xc0] sm:$0xf]  ;;  %2794 = vst [vmem:[#allocation3 + $0x428] sm:$0xf] %v2725_v42  ;;  %v3260_v26 = vshrl.u32 %v2905_v10, 16  ;;  %v12255_v49 = vpop.f32.mrf.mxu0 }
 0x212   : > { %v2075_v11 = vld [vmem:[#allocation2 + $0xc4] sm:$0xf]  ;;  %v2438_v4 = vshrl.u32 %v2074_v60, 16  ;;  %v2441_v54 = vshll.u32 %v2074_v60, 16  ;;  %2522 = vst [vmem:[#allocation3 + $0x424] sm:$0xf] %v2436_v5 }
 0x213   : > { %v3249_v59 = vrot.slane %v3247_v17, 4  ;;  %v3252_v39 = vrot.slane %v3250_v50, 5  ;;  %v3258_v57 = vrot.slane %v3256_v22, 5  ;;  %v2447_v2 = vshll.u32 %v2075_v11, 16  ;;  %v2570_v58 = vld [vmem:[#allocation2 + $0xc0] sm:$0xe]  ;;  %v12369_v50 = vpop.f32.mrf.mxu1 }
 0x214   : > { %v3262_v32 = vrot.slane %v3260_v26, 4  ;;  %v2440_v61 = vrot.slane %v2438_v4, 4  ;;  %v2443_v45 = vrot.slane %v2441_v54, 5  ;;  %v2451_v9 = vshrl.u32 %v2075_v11, 16  ;;  %v2571_v3 = vld [vmem:[#allocation2 + $0xc4] sm:$0xf]  ;;  %v12257_v4 = vpop.f32.mrf.mxu0 }
 0x215   : > { %v3253_v40 = vor.u32 %v3252_v39, %v3249_v59  ;;  %v2449_v34 = vrot.slane %v2447_v2, 5  ;;  %v11561_v30 = vrot.slane %v2570_v58, 9  ;;  %v2728_v23 = vrot.slane %v2571_v3, 5  ;;  %v359_v53 = vld [vmem:[#allocation2 + $0xcc] sm:$0x1]  ;;  %v12370_v2 = vpop.f32.mrf.mxu1 }
 0x216   : > { %v13504_v12 = vld [vmem:[#allocation3 + $0x3c0] ss:$36 sps:$4 sm:$0xff]   ;;  %v3263_v21 = vor.u32 %v3262_v32, %v3258_v57  ;;  %v2444_v10 = vor.u32 %v2443_v45, %v2440_v61  ;;  %v2453_v42 = vrot.slane %v2451_v9, 4  ;;  %v14932_v17 = vadd.f32 %v12365_v31, %v12253_v19  ;;  %v980_v22 = vld [vmem:[#allocation2 + $0xc8] sm:$0x1]  ;;  %v12258_v3 = vpop.f32.mrf.mxu0 }
 0x217   : > { %v13506_v29 = vld [vmem:[#allocation3 + $0x3c4] ss:$36 sps:$4 sm:$0xff]   ;;  %v3254_v60 = vrot.slane %v3253_v40, 4  ;;  %v2729_v5 = vsel %vm14154_vm10, %v11561_v30, %v2728_v23  ;;  %v14936_v26 = vrot.slane %v2728_v23, 4  ;;  %v360_v11 = vsel %vm14131_vm3, 0, %v359_v53 }
 0x218   : > { %5577 = vmatprep.mubr.bf16.mxu1 %v13506_v29  ;;  %v981_v54 = vsel %vm14131_vm3, %v819_v51, %v980_v22  ;;  %v14942_v59 = vrot.slane %v3263_v21, 4  ;;  %v2445_v31 = vrot.slane %v2444_v10, 4  ;;  %v2454_v19 = vor.u32 %v2453_v42, %v2449_v34  ;;  %2795 = vst [vmem:[#allocation3 + $0x44c] sm:$0xf] %v2729_v5  ;;  %361 = vst [vmem:[#allocation2 + $0xcc] sm:$0x1] %v360_v11 }
 0x219   : > { %v415_v39 = vld [vmem:[#allocation2 + $0xd4] sm:$0x1]  ;;  %5578 = vmatmul.mubr.bf16.gmra.mxu1 %v13504_v12  ;;  %982 = vst [vmem:[#allocation2 + $0xc8] sm:$0x1] %v981_v54  ;;  %v3259_v58 = vsel %vm14181_vm14, %v3254_v60, %v3258_v57  ;;  %v2829_v61 = vld [vmem:[#allocation2 + $0xd0] sm:$0xf]  ;;  %v12256_v9 = vadd.f32 %v12255_v49, %v12254_v41  ;;  %v12368_v51 = vadd.f32 %v12367_v28, %v12366_v43 }
 0x21a   : > { %v416_v32 = vsel %vm14136_vm4, 0, %v415_v39  ;;  %v2908_v45 = vld [vmem:[#allocation2 + $0xd0] sm:$0xf]  ;;  %v13507_v40 = vld [vmem:[#allocation3 + $0x400] ss:$36 sps:$4 sm:$0xff]   ;;  %v2450_v23 = vsel %vm14181_vm14, %v2445_v31, %v2449_v34  ;;  %v14950_v53 = vrot.slane %v2454_v19, 4  ;;  %v12259_v12 = vadd.f32 %v12258_v3, %v12257_v4 }
 0x21b   : > { %v13509_v30 = vld [vmem:[#allocation3 + $0x404] ss:$36 sps:$4 sm:$0xff]   ;;  %3354 = vst [vmem:[#allocation3 + $0x40c] sm:$0xf] %v3259_v58  ;;  %417 = vst [vmem:[#allocation2 + $0xd4] sm:$0x1] %v416_v32  ;;  %v12371_v57 = vadd.f32 %v12370_v2, %v12369_v50  ;;  %v14952_v41 = vadd.f32 %v12368_v51, %v12256_v9  ;;  %v12372_v9 = vpop.f32.mrf.mxu1 }
 0x21c   : > { %2861 = vst [vmem:[#allocation3 + $0x474] sm:$0xf] %v2829_v61  ;;  %2523 = vst [vmem:[#allocation3 + $0x448] sm:$0xf] %v2450_v23  ;;  %v3280_v25 = vshll.u32 %v2908_v45, 16  ;;  %v3284_v29 = vshrl.u32 %v2908_v45, 16  ;;  %5424 = vmatprep.mubr.bf16.mxu0 %v13509_v30 }
 0x21d   : > { %v3358_v21 = vld [vmem:[#allocation2 + $0x18] sm:$0xe]  ;;  %v3359_v10 = vld [vmem:[#allocation2 + $0x1c] sm:$0xf]  ;;  %v3360_v43 = vld [vmem:[#allocation2 + $0x20] sm:$0x1]  ;;  %v14954_v22 = vadd.f32 %v12371_v57, %v12259_v12  ;;  %5425 = vmatmul.mubr.bf16.gmra.mxu0 %v13507_v40 }
 0x21e   : > { %v11562_v28 = vrot.slane %v3358_v21, 9  ;;  %v3456_v49 = vrot.slane %v3359_v10, 5  ;;  %v3361_v42 = vld [vmem:[#allocation2 + $0x24] sm:$0xe]  ;;  %v14956_v34 = vrot.slane %v3280_v25, 5  ;;  %v3286_v60 = vrot.slane %v3284_v29, 4  ;;  %v12260_v21 = vpop.f32.mrf.mxu0  ;;  %v12373_v10 = vpop.f32.mrf.mxu1 }
 0x21f   : > { %v3459_v5 = vrot.slane %v3360_v43, 5  ;;  %v3362_v50 = vld [vmem:[#allocation2 + $0x28] sm:$0xf]  ;;  %v11563_v11 = vrot.slane %v3361_v42, 9  ;;  %v3363_v31 = vld [vmem:[#allocation2 + $0x2c] sm:$0x1] }
 0x220   : > { %v3457_v4 = vsel %vm14154_vm10, %v11562_v28, %v3456_v49  ;;  %v3458_v54 = vrot.slane %v3456_v49, 4  ;;  %v3463_v19 = vrot.slane %v3362_v50, 5  ;;  %v3364_v39 = vld [vmem:[#allocation2 + $0x30] sm:$0xe]  ;;  %v2828_v2 = vld [vmem:[#allocation2 + $0xcc] sm:$0xf]  ;;  %v3287_v32 = vor.u32 %v3286_v60, %v14956_v34 }
 0x221   : > { %v2907_v58 = vld [vmem:[#allocation2 + $0xcc] sm:$0xf]  ;;  %3598 = vst [vmem:[#allocation3 + $0x20] sm:$0xf] %v3457_v4  ;;  %v3466_v61 = vrot.slane %v3363_v31, 5  ;;  %v11564_v45 = vrot.slane %v3364_v39, 9  ;;  %v12375_v31 = vpop.f32.mrf.mxu1 }
 0x222   : > { %v2906_v51 = vld [vmem:[#allocation2 + $0xc8] sm:$0x1]  ;;  %2860 = vst [vmem:[#allocation3 + $0x450] sm:$0xf] %v2828_v2  ;;  %v3460_v30 = vsel %vm14154_vm10, %v3458_v54, %v3459_v5  ;;  %v3464_v23 = vsel %vm14154_vm10, %v11563_v11, %v3463_v19  ;;  %v2909_v29 = vld [vmem:[#allocation2 + $0xd4] sm:$0x1]  ;;  %v12261_v54 = vpop.f32.mrf.mxu0 }
 0x223   : > { %v2076_v3 = vld [vmem:[#allocation2 + $0xc8] sm:$0x1]  ;;  %v3266_v12 = vshll.u32 %v2906_v51, 16  ;;  %3599 = vst [vmem:[#allocation3 + $0x44] sm:$0xf] %v3460_v30  ;;  %v3271_v43 = vshrl.u32 %v2907_v58, 16 }
 0x224   : > { %v2572_v40 = vld [vmem:[#allocation2 + $0xc8] sm:$0x1]  ;;  %v2457_v57 = vshll.u32 %v2076_v3, 16  ;;  %3600 = vst [vmem:[#allocation3 + $0x68] sm:$0xf] %v3464_v23  ;;  %v3274_v28 = vshll.u32 %v2907_v58, 16 }
 0x225   : > { %v2731_v25 = vrot.slane %v2572_v40, 5  ;;  %v3288_v49 = vrot.slane %v3287_v32, 4  ;;  %v3290_v42 = vshll.u32 %v2909_v29, 16  ;;  %v3268_v60 = vrot.slane %v3266_v12, 5  ;;  %v3365_v11 = vld [vmem:[#allocation2 + $0x34] sm:$0xf]  ;;  %v12263_v12 = vpop.f32.mrf.mxu0 }
 0x226   : > { %v2459_v50 = vrot.slane %v2457_v57, 5  ;;  %v3465_v4 = vrot.slane %v3463_v19, 4  ;;  %v3273_v39 = vrot.slane %v3271_v43, 4  ;;  %v3276_v2 = vrot.slane %v3274_v28, 5  ;;  %v3366_v3 = vld [vmem:[#allocation2 + $0x38] sm:$0x1] }
 0x227   : > { %v2732_v5 = vsel %vm14154_vm10, %v14936_v26, %v2731_v25  ;;  %v3292_v51 = vrot.slane %v3290_v42, 5  ;;  %v3470_v40 = vrot.slane %v3365_v11, 5  ;;  %v3269_v58 = vsel %vm14181_vm14, %v14942_v59, %v3268_v60  ;;  %v3367_v30 = vld [vmem:[#allocation2 + $0x3c] sm:$0xe]  ;;  %v3368_v23 = vld [vmem:[#allocation2 + $0x40] sm:$0xf] }
 0x228   : > { %2796 = vst [vmem:[#allocation3 + $0x470] sm:$0xf] %v2732_v5  ;;  %v2460_v32 = vsel %vm14181_vm14, %v14950_v53, %v2459_v50  ;;  %v3467_v26 = vsel %vm14154_vm10, %v3465_v4, %v3466_v61  ;;  %v3473_v19 = vrot.slane %v3366_v3, 5  ;;  %3355 = vst [vmem:[#allocation3 + $0x430] sm:$0xf] %v3269_v58  ;;  %v3277_v57 = vor.u32 %v3276_v2, %v3273_v39  ;;  %v12376_v53 = vpop.f32.mrf.mxu1  ;;  %v12264_v5 = vpop.f32.mrf.mxu0 }
 0x229   : > { %2524 = vst [vmem:[#allocation3 + $0x46c] sm:$0xf] %v2460_v32  ;;  %v3293_v25 = vsel %vm14181_vm14, %v3288_v49, %v3292_v51  ;;  %3601 = vst [vmem:[#allocation3 + $0x8c] sm:$0xf] %v3467_v26  ;;  %v3471_v59 = vsel %vm14154_vm10, %v11564_v45, %v3470_v40  ;;  %v3472_v29 = vrot.slane %v3470_v40, 4  ;;  %v11565_v61 = vrot.slane %v3367_v30, 9 }
 0x22a   : > { %v3369_v43 = vld [vmem:[#allocation2 + $0x44] sm:$0x1]  ;;  %3357 = vst [vmem:[#allocation3 + $0x478] sm:$0xf] %v3293_v25  ;;  %3602 = vst [vmem:[#allocation3 + $0xb0] sm:$0xf] %v3471_v59  ;;  %v12262_v50 = vadd.f32 %v12261_v54, %v12260_v21  ;;  %v12374_v39 = vadd.f32 %v12373_v10, %v12372_v9  ;;  %v12265_v3 = vadd.f32 %v12264_v5, %v12263_v12 }
 0x22b   : > { %v3477_v28 = vrot.slane %v3368_v23, 5  ;;  %v3480_v42 = vrot.slane %v3369_v43, 5  ;;  %v3370_v60 = vld [vmem:[#allocation2 + $0x48] sm:$0xe]  ;;  %v3278_v4 = vrot.slane %v3277_v57, 4  ;;  %v3474_v11 = vsel %vm14154_vm10, %v3472_v29, %v3473_v19  ;;  %v12378_v43 = vpop.f32.mrf.mxu1 }
 0x22c   : > { %v11566_v49 = vrot.slane %v3370_v60, 9  ;;  %3603 = vst [vmem:[#allocation3 + $0xd4] sm:$0xf] %v3474_v11  ;;  %v3371_v51 = vld [vmem:[#allocation2 + $0x4c] sm:$0xf]  ;;  %v12377_v40 = vadd.f32 %v12376_v53, %v12375_v31  ;;  %v14987_v26 = vadd.f32 %v12374_v39, %v12262_v50 }
 0x22d   : > { %v3478_v45 = vsel %vm14154_vm10, %v11565_v61, %v3477_v28  ;;  %v3479_v2 = vrot.slane %v3477_v28, 4  ;;  %v3283_v58 = vsel %vm14181_vm14, %v3278_v4, %v14956_v34  ;;  %v3372_v21 = vld [vmem:[#allocation2 + $0x50] sm:$0x1]  ;;  %v3484_v54 = vrot.slane %v3371_v51, 5  ;;  %v3373_v32 = vld [vmem:[#allocation2 + $0x54] sm:$0xe]  ;;  %v12266_v28 = vpop.f32.mrf.mxu0  ;;  %v12379_v11 = vpop.f32.mrf.mxu1 }
 0x22e   : > { %3604 = vst [vmem:[#allocation3 + $0xf8] sm:$0xf] %v3478_v45  ;;  %3356 = vst [vmem:[#allocation3 + $0x454] sm:$0xf] %v3283_v58  ;;  %v3487_v10 = vrot.slane %v3372_v21, 5  ;;  %v11567_v23 = vrot.slane %v3373_v32, 9  ;;  %v14991_v12 = vadd.f32 %v12377_v40, %v12265_v3  ;;  %v12380_v39 = vadd.f32 %v12379_v11, %v12378_v43 }
 0x22f   : > { %v3481_v9 = vsel %vm14154_vm10, %v3479_v2, %v3480_v42  ;;  %v3374_v19 = vld [vmem:[#allocation2 + $0x58] sm:$0xf]  ;;  %v3375_v30 = vld [vmem:[#allocation2 + $0x5c] sm:$0x1]  ;;  %v3485_v34 = vsel %vm14154_vm10, %v11566_v49, %v3484_v54  ;;  %v3486_v57 = vrot.slane %v3484_v54, 4  ;;  %v12267_v49 = vpop.f32.mrf.mxu0  ;;  %v12381_v3 = vpop.f32.mrf.mxu1 }
 0x230   : > { %v13520_v31 = vld [vmem:[#allocation3 + $0x20] ss:$36 sps:$4 sm:$0xff]   ;;  %3605 = vst [vmem:[#allocation3 + $0x11c] sm:$0xf] %v3481_v9  ;;  %v3491_v25 = vrot.slane %v3374_v19, 5  ;;  %v3494_v59 = vrot.slane %v3375_v30, 5  ;;  %v12268_v51 = vadd.f32 %v12267_v49, %v12266_v28 }
 0x231   : > { %v3376_v29 = vld [vmem:[#allocation2 + $0x60] sm:$0xe]  ;;  %v13513_v61 = vld [vmem:[#allocation3 + $0x40c] ss:$36 sps:$4 sm:$0xff]   ;;  %3606 = vst [vmem:[#allocation3 + $0x140] sm:$0xf] %v3485_v34  ;;  %v3488_v50 = vsel %vm14154_vm10, %v3486_v57, %v3487_v10  ;;  %v12269_v21 = vpop.f32.mrf.mxu0  ;;  %v12382_v10 = vpop.f32.mrf.mxu1 }
 0x232   : > { %v13511_v53 = vld [vmem:[#allocation3 + $0x408] ss:$36 sps:$4 sm:$0xff]   ;;  %v3492_v5 = vsel %vm14154_vm10, %v11567_v23, %v3491_v25  ;;  %v3493_v4 = vrot.slane %v3491_v25, 4  ;;  %5585 = vmatprep.mubr.bf16.mxu1 %v13513_v61  ;;  %3607 = vst [vmem:[#allocation3 + $0x164] sm:$0xf] %v3488_v50  ;;  %v11568_v2 = vrot.slane %v3376_v29, 9  ;;  %v15001_v9 = vadd.f32 %v12380_v39, %v12268_v51 }
 0x233   : > { %v13514_v42 = vld [vmem:[#allocation3 + $0x448] ss:$36 sps:$4 sm:$0xff]   ;;  %3608 = vst [vmem:[#allocation3 + $0x188] sm:$0xf] %v3492_v5  ;;  %5586 = vmatmul.mubr.bf16.gmra.mxu1 %v13511_v53  ;;  %v3378_v58 = vld [vmem:[#allocation2 + $0x68] sm:$0x1]  ;;  %v12270_v34 = vpop.f32.mrf.mxu0  ;;  %v12383_v57 = vadd.f32 %v12382_v10, %v12381_v3 }
 0x234   : > { %v13516_v60 = vld [vmem:[#allocation3 + $0x44c] ss:$36 sps:$4 sm:$0xff]   ;;  %v3495_v45 = vsel %vm14154_vm10, %v3493_v4, %v3494_v59  ;;  %v3501_v23 = vrot.slane %v3378_v58, 5  ;;  %v3379_v29 = vld [vmem:[#allocation2 + $0x6c] sm:$0xe]  ;;  %v12271_v43 = vadd.f32 %v12270_v34, %v12269_v21 }
 0x235   : > { %5432 = vmatprep.mubr.bf16.mxu0 %v13516_v60  ;;  %3609 = vst [vmem:[#allocation3 + $0x1ac] sm:$0xf] %v3495_v45  ;;  %v3377_v40 = vld [vmem:[#allocation2 + $0x64] sm:$0xf]  ;;  %v13519_v54 = vld [vmem:[#allocation3 + $0x454] ss:$36 sps:$4 sm:$0xff]  }
 0x236   : > { %5433 = vmatmul.mubr.bf16.gmra.mxu0 %v13514_v42  ;;  %v3498_v32 = vrot.slane %v3377_v40, 5  ;;  %v13517_v19 = vld [vmem:[#allocation3 + $0x450] ss:$36 sps:$4 sm:$0xff]   ;;  %v13521_v30 = vld [vmem:[#allocation3 + $0x68] ss:$36 sps:$4 sm:$0xff]   ;;  %5593 = vmatprep.mubr.bf16.mxu1 %v13519_v54  ;;  %v15007_v60 = vadd.f32 %v12383_v57, %v12271_v43 }
 0x237   : > { %13126 = vmatprep.mubr.bf16.mxu0 %v13520_v31  ;;  %v3380_v53 = vld [vmem:[#allocation2 + $0x70] sm:$0xf]  ;;  %v3381_v61 = vld [vmem:[#allocation2 + $0x74] sm:$0x1]  ;;  %v11569_v31 = vrot.slane %v3379_v29, 9 }
 0x238   : > { %v3499_v25 = vsel %vm14154_vm10, %v11568_v2, %v3498_v32  ;;  %v3500_v59 = vrot.slane %v3498_v32, 4  ;;  %v13522_v28 = vld [vmem:[#allocation3 + $0xb0] ss:$36 sps:$4 sm:$0xff]   ;;  %v3505_v50 = vrot.slane %v3380_v53, 5  ;;  %v3508_v5 = vrot.slane %v3381_v61, 5  ;;  %v12384_v32 = vpop.f32.mrf.mxu1 }
 0x239   : > { %3610 = vst [vmem:[#allocation3 + $0x1d0] sm:$0xf] %v3499_v25  ;;  %v3382_v4 = vld [vmem:[#allocation2 + $0x78] sm:$0xe]  ;;  %v3383_v11 = vld [vmem:[#allocation2 + $0x7c] sm:$0xf] }
 0x23a   : > { %v3502_v42 = vsel %vm14154_vm10, %v3500_v59, %v3501_v23  ;;  %v3384_v49 = vld [vmem:[#allocation2 + $0x80] sm:$0x1]  ;;  %v3506_v39 = vsel %vm14154_vm10, %v11569_v31, %v3505_v50  ;;  %v3507_v45 = vrot.slane %v3505_v50, 4  ;;  %v11570_v2 = vrot.slane %v3382_v4, 9  ;;  %v3385_v3 = vld [vmem:[#allocation2 + $0x84] sm:$0xe]  ;;  %v12272_v59 = vpop.f32.mrf.mxu0  ;;  %v12385_v61 = vpop.f32.mrf.mxu1 }
 0x23b   : > { %3611 = vst [vmem:[#allocation3 + $0x1f4] sm:$0xf] %v3502_v42  ;;  %5594 = vmatmul.mubr.bf16.gmra.mxu1 %v13517_v19  ;;  %v3512_v51 = vrot.slane %v3383_v11, 5  ;;  %3612 = vst [vmem:[#allocation3 + $0x218] sm:$0xf] %v3506_v39  ;;  %v3515_v40 = vrot.slane %v3384_v49, 5 }
 0x23c   : > { %v3386_v58 = vld [vmem:[#allocation2 + $0x88] sm:$0xf]  ;;  %v3387_v21 = vld [vmem:[#allocation2 + $0x8c] sm:$0x1]  ;;  %v11571_v54 = vrot.slane %v3385_v3, 9  ;;  %v3509_v19 = vsel %vm14154_vm10, %v3507_v45, %v3508_v5  ;;  %v12273_v11 = vpop.f32.mrf.mxu0  ;;  %v12387_v3 = vpop.f32.mrf.mxu1 }
 0x23d   : > { %v13523_v10 = vld [vmem:[#allocation3 + $0xf8] ss:$36 sps:$4 sm:$0xff]   ;;  %v3514_v23 = vrot.slane %v3512_v51, 4  ;;  %v3519_v34 = vrot.slane %v3386_v58, 5  ;;  %3613 = vst [vmem:[#allocation3 + $0x23c] sm:$0xf] %v3509_v19 }
 0x23e   : > { %13127 = vmatmul.mubr.bf16.vlgmr.msra.gmra.mxu0 %v13521_v30  ;;  %v3513_v30 = vsel %vm14154_vm10, %v11570_v2, %v3512_v51  ;;  %v3388_v57 = vld [vmem:[#allocation2 + $0x90] sm:$0xe]  ;;  %v3389_v25 = vld [vmem:[#allocation2 + $0x94] sm:$0xf]  ;;  %v3522_v29 = vrot.slane %v3387_v21, 5  ;;  %v12274_v2 = vadd.f32 %v12273_v11, %v12272_v59  ;;  %v12386_v51 = vadd.f32 %v12385_v61, %v12384_v32  ;;  %v12388_v32 = vpop.f32.mrf.mxu1 }
 0x23f   : > { %13130 = vmatprep.mubr.bf16.mxu0 %v13522_v28  ;;  %3614 = vst [vmem:[#allocation3 + $0x260] sm:$0xf] %v3513_v30  ;;  %v3390_v43 = vld [vmem:[#allocation2 + $0x98] sm:$0x1]  ;;  %v11572_v53 = vrot.slane %v3388_v57, 9  ;;  %v3516_v31 = vsel %vm14154_vm10, %v3514_v23, %v3515_v40  ;;  %v3520_v28 = vsel %vm14154_vm10, %v11571_v54, %v3519_v34  ;;  %v3521_v42 = vrot.slane %v3519_v34, 4  ;;  %v12275_v23 = vpop.f32.mrf.mxu0 }
 0x240   : > { %v3526_v50 = vrot.slane %v3389_v25, 5  ;;  %v3391_v5 = vld [vmem:[#allocation2 + $0x9c] sm:$0xe]  ;;  %v3392_v4 = vld [vmem:[#allocation2 + $0xa0] sm:$0xf]  ;;  %v3529_v39 = vrot.slane %v3390_v43, 5  ;;  %v15023_v59 = vadd.f32 %v12386_v51, %v12274_v2  ;;  %v12389_v51 = vadd.f32 %v12388_v32, %v12387_v3 }
 0x241   : > { %v13524_v49 = vld [vmem:[#allocation3 + $0x140] ss:$36 sps:$4 sm:$0xff]   ;;  %3615 = vst [vmem:[#allocation3 + $0x284] sm:$0xf] %v3516_v31  ;;  %3616 = vst [vmem:[#allocation3 + $0x2a8] sm:$0xf] %v3520_v28  ;;  %v3523_v58 = vsel %vm14154_vm10, %v3521_v42, %v3522_v29  ;;  %v12276_v42 = vpop.f32.mrf.mxu0 }
 0x242   : > { %v11573_v45 = vrot.slane %v3391_v5, 9  ;;  %v3527_v40 = vsel %vm14154_vm10, %v11572_v53, %v3526_v50  ;;  %v3528_v21 = vrot.slane %v3526_v50, 4  ;;  %v3393_v54 = vld [vmem:[#allocation2 + $0xa4] sm:$0x1]  ;;  %v3533_v19 = vrot.slane %v3392_v4, 5  ;;  %16888 = vst [vmem:[#allocation25_spill] sm:$0xff] %v15023_v59 }
 0x243   : > { %v3394_v30 = vld [vmem:[#allocation2 + $0xa8] sm:$0xe]  ;;  %3617 = vst [vmem:[#allocation3 + $0x2cc] sm:$0xf] %v3523_v58  ;;  %3618 = vst [vmem:[#allocation3 + $0x2f0] sm:$0xf] %v3527_v40  ;;  %v12277_v2 = vadd.f32 %v12276_v42, %v12275_v23  ;;  %v12406_v58 = vpop.f32.mrf.mxu0 }
 0x244   : > { %v3536_v34 = vrot.slane %v3393_v54, 5  ;;  %v3395_v57 = vld [vmem:[#allocation2 + $0xac] sm:$0xf]  ;;  %v3396_v25 = vld [vmem:[#allocation2 + $0xb0] sm:$0x1]  ;;  %v11574_v43 = vrot.slane %v3394_v30, 9  ;;  %v3530_v29 = vsel %vm14154_vm10, %v3528_v21, %v3529_v39  ;;  %v3534_v53 = vsel %vm14154_vm10, %v11573_v45, %v3533_v19 }
 0x245   : > { %v3535_v61 = vrot.slane %v3533_v19, 4  ;;  %v3540_v31 = vrot.slane %v3395_v57, 5  ;;  %v3397_v28 = vld [vmem:[#allocation2 + $0xb4] sm:$0xe]  ;;  %3619 = vst [vmem:[#allocation3 + $0x314] sm:$0xf] %v3530_v29  ;;  %v15033_v19 = vadd.f32 %v12389_v51, %v12277_v2  ;;  %v12407_v57 = vpop.f32.mrf.mxu0 }
 0x246   : > { %13131 = vmatmul.mubr.bf16.gmra.mxu0 %v13523_v10  ;;  %3620 = vst [vmem:[#allocation3 + $0x338] sm:$0xf] %v3534_v53  ;;  %v3543_v50 = vrot.slane %v3396_v25, 5  ;;  %v3398_v5 = vld [vmem:[#allocation2 + $0xb8] sm:$0xf]  ;;  %v11575_v11 = vrot.slane %v3397_v28, 9  ;;  %v12408_v29 = vadd.f32 %v12407_v57, %v12406_v58  ;;  %v15039_v53 = vpop.f32.mrf.mxu1 }
 0x247   : > { %13134 = vmatprep.mubr.bf16.mxu0 %v13524_v49  ;;  %v3399_v4 = vld [vmem:[#allocation2 + $0xbc] sm:$0x1]  ;;  %v13525_v10 = vld [vmem:[#allocation3 + $0x188] ss:$36 sps:$4 sm:$0xff]   ;;  %v3537_v39 = vsel %vm14154_vm10, %v3535_v61, %v3536_v34  ;;  %v3541_v45 = vsel %vm14154_vm10, %v11574_v43, %v3540_v31  ;;  %v3542_v40 = vrot.slane %v3540_v31, 4  ;;  %v3547_v49 = vrot.slane %v3398_v5, 5  ;;  %v12409_v61 = vpop.f32.mrf.mxu0 }
 0x248   : > { %3621 = vst [vmem:[#allocation3 + $0x35c] sm:$0xf] %v3537_v39  ;;  %3622 = vst [vmem:[#allocation3 + $0x380] sm:$0xf] %v3541_v45  ;;  %v3550_v21 = vrot.slane %v3399_v4, 5  ;;  %v15044_v4 = vadd.f32 %v12408_v29, %v14709_v56 }
 0x249   : > { %v3400_v54 = vld [vmem:[#allocation2 + $0xc0] sm:$0xe]  ;;  %16889 = vst [vmem:[#allocation26_spill] sm:$0xff] %v15033_v19  ;;  %v13526_v30 = vld [vmem:[#allocation3 + $0x1d0] ss:$36 sps:$4 sm:$0xff]   ;;  %v3544_v3 = vsel %vm14154_vm10, %v3542_v40, %v3543_v50  ;;  %v3548_v23 = vsel %vm14154_vm10, %v11575_v11, %v3547_v49  ;;  %v3549_v34 = vrot.slane %v3547_v49, 4  ;;  %v15046_v11 = vpop.f32.mrf.mxu1  ;;  %v12410_v2 = vpop.f32.mrf.mxu0 }
 0x24a   : > { %v3401_v25 = vld [vmem:[#allocation2 + $0xc4] sm:$0xf]  ;;  %v3402_v43 = vld [vmem:[#allocation2 + $0xc8] sm:$0x1]  ;;  %v11576_v32 = vrot.slane %v3400_v54, 9  ;;  %v12411_v49 = vadd.f32 %v12410_v2, %v12409_v61 }
 0x24b   : > { %3623 = vst [vmem:[#allocation3 + $0x3a4] sm:$0xf] %v3544_v3  ;;  %3624 = vst [vmem:[#allocation3 + $0x3c8] sm:$0xf] %v3548_v23  ;;  %v3551_v31 = vsel %vm14154_vm10, %v3549_v34, %v3550_v21  ;;  %v3554_v28 = vrot.slane %v3401_v25, 5  ;;  %v3557_v42 = vrot.slane %v3402_v43, 5  ;;  %v15050_v21 = vpop.f32.mrf.mxu1 }
 0x24c   : > { %v3403_v5 = vld [vmem:[#allocation2 + $0xcc] sm:$0xe]  ;;  %v3404_v50 = vld [vmem:[#allocation2 + $0xd0] sm:$0xf]  ;;  %3625 = vst [vmem:[#allocation3 + $0x3ec] sm:$0xf] %v3551_v31  ;;  %v15057_v23 = vadd.f32 %v12411_v49, %v14714_v1 }
 0x24d   : > { %v3555_v51 = vsel %vm14154_vm10, %v11576_v32, %v3554_v28  ;;  %v3556_v39 = vrot.slane %v3554_v28, 4  ;;  %v3405_v45 = vld [vmem:[#allocation2 + $0xd4] sm:$0x1]  ;;  %v11577_v58 = vrot.slane %v3403_v5, 9  ;;  %v3561_v40 = vrot.slane %v3404_v50, 5  ;;  %v15061_v32 = vpop.f32.mrf.mxu1 }
 0x24e   : > { %13135 = vmatmul.mubr.bf16.gmra.mxu0 %v13525_v10  ;;  %3626 = vst [vmem:[#allocation3 + $0x410] sm:$0xf] %v3555_v51  ;;  %v12412_v10 = vpop.f32.mrf.mxu0  ;;  %v13527_v3 = vld [vmem:[#allocation3 + $0x218] ss:$36 sps:$4 sm:$0xff]   ;;  %v13528_v25 = vld [vmem:[#allocation3 + $0x260] ss:$36 sps:$4 sm:$0xff]  }
 0x24f   : > { %13138 = vmatprep.mubr.bf16.mxu0 %v13526_v30  ;;  %v3558_v56 = vsel %vm14154_vm10, %v3556_v39, %v3557_v42  ;;  %v3562_v54 = vsel %vm14154_vm10, %v11577_v58, %v3561_v40  ;;  %v3563_v57 = vrot.slane %v3561_v40, 4  ;;  %v3564_v30 = vrot.slane %v3405_v45, 5  ;;  %v15066_v42 = vpop.f32.mrf.mxu1  ;;  %v13529_v2 = vld [vmem:[#allocation3 + $0x2a8] ss:$36 sps:$4 sm:$0xff]   ;;  %v13530_v51 = vld [vmem:[#allocation3 + $0x2f0] ss:$36 sps:$4 sm:$0xff]  }
 0x250   : > { %3627 = vst [vmem:[#allocation3 + $0x434] sm:$0xf] %v3558_v56  ;;  %3628 = vst [vmem:[#allocation3 + $0x458] sm:$0xf] %v3562_v54  ;;  %v12413_v34 = vpop.f32.mrf.mxu0  ;;  %v13531_v54 = vld [vmem:[#allocation3 + $0x338] ss:$36 sps:$4 sm:$0xff]  }
 0x251   : > { %v3565_v43 = vsel %vm14154_vm10, %v3563_v57, %v3564_v30  ;;  %v12414_v29 = vadd.f32 %v12413_v34, %v12412_v10  ;;  %v15068_v5 = vpop.f32.mrf.mxu1 }
 0x252   : > { %3629 = vst [vmem:[#allocation3 + $0x47c] sm:$0xf] %v3565_v43  ;;  %v12415_v61 = vpop.f32.mrf.mxu0  ;;  %v13532_v30 = vld [vmem:[#allocation3 + $0x380] ss:$36 sps:$4 sm:$0xff]  }
 0x253   : > { %v15064_v31 = vadd.f32 %v12414_v29, %v14744_v35  ;;  %v15073_v39 = vpop.f32.mrf.mxu1 }
 0x254   : > { %v12416_v28 = vpop.f32.mrf.mxu0 }
 0x255   : > { %v12417_v1 = vadd.f32 %v12416_v28, %v12415_v61  ;;  %v15075_v35 = vpop.f32.mrf.mxu1  ;;  %v13533_v28 = vld [vmem:[#allocation3 + $0x3c8] ss:$36 sps:$4 sm:$0xff]  }
 0x256   : > { %13139 = vmatmul.mubr.bf16.gmra.mxu0 %v13527_v3  ;;  %v12418_v45 = vpop.f32.mrf.mxu0 }
 0x257   : > { %13142 = vmatprep.mubr.bf16.mxu0 %v13528_v25  ;;  %v15071_v50 = vadd.f32 %v12417_v1, %v14746_v7  ;;  %v15080_v57 = vpop.f32.mrf.mxu1 }
 0x258   : > { %v12419_v58 = vpop.f32.mrf.mxu0 }
 0x259   : > { %v12420_v40 = vadd.f32 %v12419_v58, %v12418_v45  ;;  %v15082_v3 = vpop.f32.mrf.mxu1 }
 0x25a   : > { %v12421_v49 = vpop.f32.mrf.mxu0 }
 0x25b   : > { %v15078_v10 = vadd.f32 %v12420_v40, %v14756_v13  ;;  %v15087_v25 = vpop.f32.mrf.mxu1 }
 0x25c   : > { %v12422_v56 = vpop.f32.mrf.mxu0 }
 0x25d   : > { %v12423_v7 = vadd.f32 %v12422_v56, %v12421_v49  ;;  %v15089_v61 = vpop.f32.mrf.mxu1 }
 0x25e   : > { %13143 = vmatmul.mubr.bf16.gmra.mxu0 %v13529_v2  ;;  %v12424_v43 = vpop.f32.mrf.mxu0  ;;  %v13534_v2 = vld [vmem:[#allocation3 + $0x410] ss:$36 sps:$4 sm:$0xff]  }
 0x25f   : > { %13146 = vmatprep.mubr.bf16.mxu0 %v13530_v51  ;;  %v15085_v34 = vadd.f32 %v12423_v7, %v14764_v48  ;;  %v15094_v58 = vpop.f32.mrf.mxu1  ;;  %v13535_v7 = vld [vmem:[#allocation3 + $0x458] ss:$36 sps:$4 sm:$0xff]  }
 0x260   : > { %v12425_v29 = vpop.f32.mrf.mxu0 }
 0x261   : > { %v12426_v13 = vadd.f32 %v12425_v29, %v12424_v43  ;;  %v15096_v40 = vpop.f32.mrf.mxu1 }
 0x262   : > { %v12427_v1 = vpop.f32.mrf.mxu0 }
 0x263   : > { %v15092_v51 = vadd.f32 %v12426_v13, %v14778_v15  ;;  %v15101_v56 = vpop.f32.mrf.mxu1 }
 0x264   : > { %v12428_v45 = vpop.f32.mrf.mxu0 }
 0x265   : > { %v12429_v48 = vadd.f32 %v12428_v45, %v12427_v1  ;;  %v15103_v29 = vpop.f32.mrf.mxu1 }
 0x266   : > { %13147 = vmatmul.mubr.bf16.gmra.mxu0 %v13531_v54  ;;  %v12430_v54 = vpop.f32.mrf.mxu0 }
 0x267   : > { %13150 = vmatprep.mubr.bf16.mxu0 %v13532_v30  ;;  %v15099_v49 = vadd.f32 %v12429_v48, %v14784_v8 }
 0x268   : > { %v12431_v30 = vpop.f32.mrf.mxu0 }
 0x269   : > { %v12432_v43 = vadd.f32 %v12431_v30, %v12430_v54 }
 0x26a   : > { %v12433_v15 = vpop.f32.mrf.mxu0 }
 0x26b   : > { %v15106_v13 = vadd.f32 %v12432_v43, %v14792_v52 }
 0x26d   : > { %16890 = vst [vmem:[#allocation27_spill] sm:$0xff] %v15106_v13 }
 0x26e   : > { %13151 = vmatmul.mubr.bf16.gmra.mxu0 %v13533_v28  ;;  %v12434_v28 = vpop.f32.mrf.mxu0 }
 0x26f   : > { %13154 = vmatprep.mubr.bf16.mxu0 %v13534_v2  ;;  %v12435_v1 = vadd.f32 %v12434_v28, %v12433_v15  ;;  %v15108_v2 = vpop.f32.mrf.mxu1 }
 0x270   : > { %v12436_v48 = vpop.f32.mrf.mxu0 }
 0x271   : > { %v15111_v8 = vadd.f32 %v12435_v1, %v14805_v62  ;;  %v15113_v45 = vpop.f32.mrf.mxu1 }
 0x272   : > { %v12437_v54 = vpop.f32.mrf.mxu0 }
 0x273   : > { %16891 = vst [vmem:[#allocation28_spill] sm:$0xff] %v15111_v8  ;;  %v15115_v27 = vpop.f32.mrf.mxu1  ;;  %v12438_v55 = vadd.f32 %v12437_v54, %v12436_v48 }
 0x275   : > { %v15117_v30 = vpop.f32.mrf.mxu1  ;;  %v15120_v52 = vadd.f32 %v12438_v55, %v14815_v63 }
 0x276   : > { %13155 = vmatmul.mubr.bf16.gmra.mxu0 %v13535_v7  ;;  %v12439_v7 = vpop.f32.mrf.mxu0 }
 0x277   : > { %16892 = vst [vmem:[#allocation29_spill] sm:$0xff] %v15120_v52  ;;  %v15122_v15 = vpop.f32.mrf.mxu1 }
 0x278   : > { %v12440_v43 = vpop.f32.mrf.mxu0 }
 0x279   : > { %v12441_v28 = vadd.f32 %v12440_v43, %v12439_v7  ;;  %v15124_v24 = vpop.f32.mrf.mxu1 }
 0x27a   : > { %v12442_v6 = vpop.f32.mrf.mxu0 }
 0x27b   : > { %v15127_v62 = vadd.f32 %v12441_v28, %v14819_v18  ;;  %v15129_v1 = vpop.f32.mrf.mxu1 }
 0x27c   : > { %v12443_v19 = vpop.f32.mrf.mxu0 }
 0x27d   : > { %16893 = vst [vmem:[#allocation30_spill] sm:$0xff] %v15127_v62  ;;  %v12444_v8 = vadd.f32 %v12443_v19, %v12442_v6  ;;  %v15131_v13 = vpop.f32.mrf.mxu1 }
 0x27e   : > { %v12445_v48 = vpop.f32.mrf.mxu0 }
 0x27f   : > { %v15134_v55 = vadd.f32 %v12444_v8, %v14833_v16  ;;  %v15136_v52 = vpop.f32.mrf.mxu1 }
 0x280   : > { %v12446_v63 = vpop.f32.mrf.mxu0 }
 0x281   : > { %16894 = vst [vmem:[#allocation31_spill] sm:$0xff] %v15134_v55  ;;  %v12447_v54 = vadd.f32 %v12446_v63, %v12445_v48  ;;  %v15141_v18 = vpop.f32.mrf.mxu1 }
 0x282   : > { %v12448_v43 = vpop.f32.mrf.mxu0 }
 0x283   : > { %v15139_v7 = vadd.f32 %v12447_v54, %v14846_v36  ;;  %v15143_v28 = vpop.f32.mrf.mxu1 }
 0x284   : > { %16896 = vst [vmem:[#allocation33_spill] sm:$0xff] %v15143_v28  ;;  %v12449_v62 = vpop.f32.mrf.mxu0 }
 0x285   : > { %16895 = vst [vmem:[#allocation32_spill] sm:$0xff] %v15139_v7  ;;  %v12450_v6 = vadd.f32 %v12449_v62, %v12448_v43  ;;  %v15145_v19 = vpop.f32.mrf.mxu1 }
 0x286   : > { %16897 = vst [vmem:[#allocation34_spill] sm:$0xff] %v15145_v19  ;;  %v12451_v59 = vpop.f32.mrf.mxu0 }
 0x287   : > { %v15148_v16 = vadd.f32 %v12450_v6, %v14850_v14 }
 0x288   : > { %v12452_v8 = vpop.f32.mrf.mxu0 }
 0x289   : > { %16898 = vst [vmem:[#allocation35_spill] sm:$0xff] %v15148_v16  ;;  %v12453_v48 = vadd.f32 %v12452_v8, %v12451_v59 }
 0x28a   : > { %v15150_v63 = vpop.f32.mrf.mxu1 }
 0x28b   : > { %v15153_v36 = vadd.f32 %v12453_v48, %v14858_v33 }
 0x28c   : > { %v15155_v54 = vpop.f32.mrf.mxu1 }
 0x28d   : > { %16899 = vst [vmem:[#allocation36_spill] sm:$0xff] %v15153_v36 }
 0x28e   : > { %v15157_v7 = vpop.f32.mrf.mxu1  ;;  %v12454_v55 = vpop.f32.mrf.mxu0 }
 0x28f   : > { %16900 = vst [vmem:[#allocation37_spill] sm:$0xff] %v15157_v7 }
 0x290   : > { %v12455_v28 = vpop.f32.mrf.mxu0  ;;  %v15159_v43 = vpop.f32.mrf.mxu1 }
 0x291   : > { %v12456_v62 = vadd.f32 %v12455_v28, %v12454_v55  ;;  %16901 = vst [vmem:[#allocation38_spill] sm:$0xff] %v15159_v43 }
 0x292   : > { %v12457_v19 = vpop.f32.mrf.mxu0 }
 0x293   : > { %v15162_v14 = vadd.f32 %v12456_v62, %v14864_v0 }
 0x294   : > { %v12458_v6 = vpop.f32.mrf.mxu0 }
 0x295   : > { %16902 = vst [vmem:[#allocation39_spill] sm:$0xff] %v15162_v14  ;;  %v12459_v59 = vadd.f32 %v12458_v6, %v12457_v19 }
 0x297   : > { %v15167_v33 = vadd.f32 %v12459_v59, %v14872_v37 }
 0x298   : > { %v15164_v8 = vpop.f32.mrf.mxu1 }
 0x299   : > { %16903 = vst [vmem:[#allocation40_spill] sm:$0xff] %v15167_v33 }
 0x29a   : > { %v15169_v48 = vpop.f32.mrf.mxu1 }
 0x29b   : > { %v12460_v36 = vpop.f32.mrf.mxu0 }
 0x29c   : > { %v15171_v16 = vpop.f32.mrf.mxu1 }
 0x29d   : > { %16904 = vst [vmem:[#allocation41_spill] sm:$0xff] %v15171_v16  ;;  %v12461_v7 = vpop.f32.mrf.mxu0 }
 0x29e   : > { %v12462_v55 = vadd.f32 %v12461_v7, %v12460_v36  ;;  %v15173_v28 = vpop.f32.mrf.mxu1 }
 0x29f   : > { %16905 = vst [vmem:[#allocation42_spill] sm:$0xff] %v15173_v28  ;;  %v12463_v43 = vpop.f32.mrf.mxu0 }
 0x2a0   : > { %v15176_v0 = vadd.f32 %v12462_v55, %v14884_v20 }
 0x2a1   : > { %v12464_v62 = vpop.f32.mrf.mxu0 }
 0x2a2   : > { %16906 = vst [vmem:[#allocation43_spill] sm:$0xff] %v15176_v0  ;;  %v12465_v19 = vadd.f32 %v12464_v62, %v12463_v43 }
 0x2a4   : > { %v15178_v6 = vpop.f32.mrf.mxu1  ;;  %v15181_v37 = vadd.f32 %v12465_v19, %v14896_v38 }
 0x2a6   : > { %16907 = vst [vmem:[#allocation44_spill] sm:$0xff] %v15181_v37  ;;  %v15183_v59 = vpop.f32.mrf.mxu1 }
 0x2a7   : > { %16908 = vst [vmem:[#allocation45_spill] sm:$0xff] %v15183_v59 }
 0x2a8   : > { %v15185_v33 = vpop.f32.mrf.mxu1 }
 0x2a9   : > { %16909 = vst [vmem:[#allocation46_spill] sm:$0xff] %v15185_v33  ;;  %v12466_v14 = vpop.f32.mrf.mxu0 }
 0x2aa   : > { %v15187_v7 = vpop.f32.mrf.mxu1 }
 0x2ab   : > { %v12467_v16 = vpop.f32.mrf.mxu0 }
 0x2ac   : > { %v12468_v36 = vadd.f32 %v12467_v16, %v12466_v14 }
 0x2ad   : > { %v12469_v28 = vpop.f32.mrf.mxu0 }
 0x2ae   : > { %v15190_v20 = vadd.f32 %v12468_v36, %v14905_v47 }
 0x2af   : > { %v12470_v55 = vpop.f32.mrf.mxu0 }
 0x2b0   : > { %16910 = vst [vmem:[#allocation47_spill] sm:$0xff] %v15190_v20  ;;  %v12471_v62 = vadd.f32 %v12470_v55, %v12469_v28 }
 0x2b1   : > { %v15192_v43 = vpop.f32.mrf.mxu1 }
 0x2b2   : > { %v15197_v38 = vadd.f32 %v12471_v62, %v14913_v44 }
 0x2b3   : > { %v15194_v0 = vpop.f32.mrf.mxu1 }
 0x2b4   : > { %16911 = vst [vmem:[#allocation48_spill] sm:$0xff] %v15194_v0  ;;  %16912 = vst [vmem:[#allocation49_spill] sm:$0xff] %v15197_v38 }
 0x2b5   : > { %v15199_v19 = vpop.f32.mrf.mxu1  ;;  %v12472_v37 = vpop.f32.mrf.mxu0 }
 0x2b6   : > { %16913 = vst [vmem:[#allocation50_spill] sm:$0xff] %v15199_v19 }
 0x2b7   : > { %v12473_v33 = vpop.f32.mrf.mxu0  ;;  %v15201_v59 = vpop.f32.mrf.mxu1 }
 0x2b8   : > { %16914 = vst [vmem:[#allocation51_spill] sm:$0xff] %v15201_v59  ;;  %v12474_v16 = vadd.f32 %v12473_v33, %v12472_v37 }
 0x2b9   : > { %v12475_v14 = vpop.f32.mrf.mxu0 }
 0x2ba   : > { %v15204_v47 = vadd.f32 %v12474_v16, %v14917_v46 }
 0x2bb   : > { %v12476_v36 = vpop.f32.mrf.mxu0 }
 0x2bc   : > { %16915 = vst [vmem:[#allocation52_spill] sm:$0xff] %v15204_v47  ;;  %v12477_v28 = vadd.f32 %v12476_v36, %v12475_v14 }
 0x2bd   : > { %v15206_v20 = vpop.f32.mrf.mxu1 }
 0x2be   : > { %v15211_v44 = vadd.f32 %v12477_v28, %v14932_v17 }
 0x2bf   : > { %v15208_v55 = vpop.f32.mrf.mxu1 }
 0x2c0   : > { %16916 = vst [vmem:[#allocation53_spill] sm:$0xff] %v15211_v44 }
 0x2c1   : > { %v15213_v38 = vpop.f32.mrf.mxu1 }
 0x2c2   : > { %v12478_v62 = vpop.f32.mrf.mxu0  ;;  %16917 = vst [vmem:[#allocation54_spill] sm:$0xff] %v15213_v38 }
 0x2c3   : > { %v15218_v46 = vpop.f32.mrf.mxu1 }
 0x2c4   : > { %v12479_v19 = vpop.f32.mrf.mxu0 }
 0x2c5   : > { %v12480_v0 = vadd.f32 %v12479_v19, %v12478_v62 }
 0x2c6   : > { %v12481_v59 = vpop.f32.mrf.mxu0 }
 0x2c7   : > { %v15216_v33 = vadd.f32 %v12480_v0, %v14952_v41 }
 0x2c8   : > { %v12482_v37 = vpop.f32.mrf.mxu0 }
 0x2c9   : > { %16918 = vst [vmem:[#allocation55_spill] sm:$0xff] %v15216_v33  ;;  %v12483_v16 = vadd.f32 %v12482_v37, %v12481_v59 }
 0x2cb   : > { %v15221_v14 = vadd.f32 %v12483_v16, %v14954_v22 }
 0x2cc   : > { %v15223_v36 = vpop.f32.mrf.mxu1 }
 0x2cd   : > { %16919 = vst [vmem:[#allocation56_spill] sm:$0xff] %v15221_v14 }
 0x2ce   : > { %v15225_v44 = vpop.f32.mrf.mxu1 }
 0x2cf   : > { %v12484_v17 = vpop.f32.mrf.mxu0  ;;  %16920 = vst [vmem:[#allocation57_spill] sm:$0xff] %v15225_v44 }
 0x2d0   : > { %v15230_v0 = vpop.f32.mrf.mxu1 }
 0x2d1   : > { %v12485_v28 = vpop.f32.mrf.mxu0 }
 0x2d2   : > { %v12486_v47 = vadd.f32 %v12485_v28, %v12484_v17  ;;  %v15235_v22 = vpop.f32.mrf.mxu1 }
 0x2d3   : > { %v12487_v38 = vpop.f32.mrf.mxu0 }
 0x2d4   : > { %v15228_v19 = vadd.f32 %v12486_v47, %v14987_v26 }
 0x2d5   : > { %v12488_v41 = vpop.f32.mrf.mxu0 }
 0x2d6   : > { %v12489_v62 = vadd.f32 %v12488_v41, %v12487_v38 }
 0x2d8   : > { %v15233_v59 = vadd.f32 %v12489_v62, %v14991_v12 }
 0x2d9   : > { %v15237_v14 = vpop.f32.mrf.mxu1 }
 0x2db   : > { %v15242_v47 = vpop.f32.mrf.mxu1 }
 0x2dd   : > { %v12490_v37 = vpop.f32.mrf.mxu0 }
 0x2df   : > { %v12491_v16 = vpop.f32.mrf.mxu0 }
 0x2e0   : > { %v12492_v33 = vadd.f32 %v12491_v16, %v12490_v37 }
 0x2e1   : > { %v12493_v44 = vpop.f32.mrf.mxu0 }
 0x2e2   : > { %v15240_v17 = vadd.f32 %v12492_v33, %v15001_v9 }
 0x2e3   : > { %v12494_v26 = vpop.f32.mrf.mxu0 }
 0x2e4   : > { %v12495_v38 = vadd.f32 %v12494_v26, %v12493_v44 }
 0x2e5   : > { %13874 = shalt.err (!%p13871_p10)  }
 0x2e6   : > { %297 = dma.hbm_to_vmem [thread:$0]  %s16840_s4, 9216, %s295_s9, [#allocation5]  ;;  %v15248_v12 = vadd.f32 %v12495_v38, %v15007_v60  ;;  %v15250_v9 = vpop.f32.mrf.mxu1  ;;  %v12520_v44 = vadd.f32 %v15046_v11, %v15039_v53  ;;  %v12523_v28 = vadd.f32 %v15061_v32, %v15050_v21  ;;  %v12526_v41 = vadd.f32 %v15068_v5, %v15066_v42  ;;  %v16926_v26 = vld [vmem:[#allocation27_spill] sm:$0xff] }
 0x2e7   : > { %v12529_v62 = vadd.f32 %v15075_v35, %v15073_v39  ;;  %v12532_v60 = vadd.f32 %v15082_v3, %v15080_v57  ;;  %v12535_v37 = vadd.f32 %v15089_v61, %v15087_v25  ;;  %v12538_v16 = vadd.f32 %v15096_v40, %v15094_v58  ;;  %s15661_s18 = scalar_lea.vmem [#allocation11], %s11495_s1 }
 0x2e8   : > { %v15252_v33 = vpop.f32.mrf.mxu1  ;;  %v12541_v53 = vadd.f32 %v15103_v29, %v15101_v56  ;;  %v5476_v32 = vadd.f32 %v12520_v44, %v15044_v4  ;;  %v12544_v42 = vadd.f32 %v15113_v45, %v15108_v2  ;;  %v12547_v5 = vadd.f32 %v15117_v30, %v15115_v27  ;;  %v16923_v2 = vld [vmem:[#allocation37_spill] sm:$0xff]  ;;  %v16924_v45 = vld [vmem:[#allocation38_spill] sm:$0xff] }
 0x2e9   : > { %v5484_v35 = vadd.f32 %v12526_v41, %v15064_v31  ;;  %v15281_v57 = vadd.f32 %v12523_v28, %v15057_v23  ;;  %v12550_v3 = vadd.f32 %v15124_v24, %v15122_v15  ;;  %v5487_v61 = vadd.f32 %v12529_v62, %v15071_v50  ;;  %v16921_v50 = vld [vmem:[#allocation33_spill] sm:$0xff]  ;;  %v16929_v28 = vld [vmem:[#allocation42_spill] sm:$0xff] }
 0x2ea   : > { %v15287_v4 = vadd.f32 %v12532_v60, %v15078_v10  ;;  %v15290_v58 = vadd.f32 %v12535_v37, %v15085_v34  ;;  %v12553_v27 = vadd.f32 %v15131_v13, %v15129_v1  ;;  %v15295_v23 = vadd.f32 %v12538_v16, %v15092_v51  ;;  %v16922_v10 = vld [vmem:[#allocation34_spill] sm:$0xff]  ;;  %v16925_v1 = vld [vmem:[#allocation25_spill] sm:$0xff]  ;;  %v16933_v16 = vld [vmem:[#allocation48_spill] sm:$0xff] }
 0x2eb   : > { %v15298_v56 = vadd.f32 %v12541_v53, %v15099_v49  ;;  %v12556_v24 = vadd.f32 %v15141_v18, %v15136_v52  ;;  %v12559_v29 = vadd.f32 %v16922_v10, %v16921_v50  ;;  %v12562_v34 = vadd.f32 %v15155_v54, %v15150_v63  ;;  %v16927_v52 = vld [vmem:[#allocation28_spill] sm:$0xff]  ;;  %v16928_v44 = vld [vmem:[#allocation41_spill] sm:$0xff]  ;;  %v16931_v62 = vld [vmem:[#allocation46_spill] sm:$0xff] }
 0x2ec   : > { %v12565_v13 = vadd.f32 %v16924_v45, %v16923_v2  ;;  %v12568_v51 = vadd.f32 %v15169_v48, %v15164_v8  ;;  %v15314_v38 = vadd.f32 %v12544_v42, %v16926_v26  ;;  %v15317_v18 = vadd.f32 %v12547_v5, %v16927_v52  ;;  %v16930_v54 = vld [vmem:[#allocation45_spill] sm:$0xff]  ;;  %v16935_v42 = vld [vmem:[#allocation51_spill] sm:$0xff]  ;;  %v16936_v50 = vld [vmem:[#allocation30_spill] sm:$0xff] }
 0x2ed   : > { %v12571_v63 = vadd.f32 %v16929_v28, %v16928_v44  ;;  %v12574_v41 = vadd.f32 %v16930_v54, %v15178_v6  ;;  %v12577_v60 = vadd.f32 %v15187_v7, %v16931_v62  ;;  %v16932_v48 = vld [vmem:[#allocation29_spill] sm:$0xff]  ;;  %v12580_v53 = vadd.f32 %v16933_v16, %v15192_v43  ;;  %v16937_v7 = vld [vmem:[#allocation35_spill] sm:$0xff]  ;;  %v16939_v43 = vld [vmem:[#allocation36_spill] sm:$0xff] }
 0x2ee   : > { %v15326_v37 = vadd.f32 %v12550_v3, %v16932_v48  ;;  %v15333_v10 = vadd.f32 %v12553_v27, %v16936_v50  ;;  %v15338_v6 = vld [vmem:[%s16838_s2] ss:$0 sm:$0xff]  ;;  %v15341_v3 = vadd.f32 %v12562_v34, %v16937_v7  ;;  %v16938_v45 = vld [vmem:[#allocation31_spill] sm:$0xff]  ;;  %v15347_v26 = vadd.f32 %v12565_v13, %v16939_v43  ;;  %v16940_v52 = vld [vmem:[#allocation32_spill] sm:$0xff] }
 0x2ef   : > { %v12586_v27 = vadd.f32 %v15208_v55, %v15206_v20  ;;  %v16941_v28 = vld [vmem:[#allocation26_spill] sm:$0xff]  ;;  %v15365_v13 = vld [vmem:[%s16839_s3] ss:$0 sm:$0xff]  ;;  %v16944_v16 = vld [vmem:[#allocation43_spill] sm:$0xff] }
 0x2f0   : > { %v16943_v48 = vld [vmem:[#allocation54_spill] sm:$0xff]  ;;  %v16945_v20 = vld [vmem:[#allocation44_spill] sm:$0xff]  ;;  %v16947_v50 = vld [vmem:[#allocation47_spill] sm:$0xff] }
 0x2f1   : > { %v15371_v55 = vadd.f32 %v12577_v60, %v16945_v20  ;;  %v12598_v60 = vadd.f32 %v15242_v47, %v15237_v14  ;;  %v16951_v14 = vld [vmem:[#allocation53_spill] sm:$0xff] }
 0x2f3   : > { %v15270_v11 = vpop.f32.mrf.mxu1 }
 0x2f5   : > { %v15277_v39 = vpop.f32.mrf.mxu1 }
 0x2f6   : > { %v12496_v21 = vpop.f32.mrf.mxu0 }
 0x2f7   : > { %v12605_v40 = vpop.f32.mrf.mxu1 }
 0x2f8   : > { %v12497_v25 = vpop.f32.mrf.mxu0 }
 0x2f9   : > { %v12498_v31 = vadd.f32 %v12497_v25, %v12496_v21  ;;  %v12606_v15 = vpop.f32.mrf.mxu1  ;;  %v16934_v21 = vld [vmem:[#allocation50_spill] sm:$0xff] }
 0x2fa   : > { %v12499_v30 = vpop.f32.mrf.mxu0  ;;  %v12583_v5 = vadd.f32 %v16935_v42, %v16934_v21  ;;  %v15368_v21 = vadd.f32 %v12574_v41, %v16944_v16  ;;  %v16946_v42 = vld [vmem:[#allocation40_spill] sm:$0xff]  ;;  %v12595_v41 = vadd.f32 %v15235_v22, %v15230_v0  ;;  %v12607_v0 = vadd.f32 %v12606_v15, %v12605_v40 }
 0x2fb   : > { %v15311_v49 = vadd.f32 %v12498_v31, %v16925_v1  ;;  %v12608_v25 = vpop.f32.mrf.mxu1  ;;  %v15344_v1 = vadd.f32 %v12556_v24, %v16938_v45  ;;  %v12589_v24 = vadd.f32 %v15218_v46, %v16943_v48  ;;  %v15378_v46 = vadd.f32 %v12580_v53, %v16947_v50  ;;  %v16949_v45 = vld [vmem:[#allocation57_spill] sm:$0xff]  ;;  %v16953_v40 = vld [vmem:[#allocation56_spill] sm:$0xff] }
 0x2fc   : > { %v12500_v8 = vpop.f32.mrf.mxu0  ;;  %v12592_v43 = vadd.f32 %v16949_v45, %v15223_v36  ;;  %v12604_v36 = vadd.f32 %v15277_v39, %v15270_v11  ;;  %v15414_v15 = vadd.f32 %v12595_v41, %v16953_v40 }
 0x2fd   : > { %v12501_v31 = vadd.f32 %v12500_v8, %v12499_v30  ;;  %v15350_v30 = vadd.f32 %v12559_v29, %v16940_v52  ;;  %v12609_v44 = vpop.f32.mrf.mxu1  ;;  %v16942_v8 = vld [vmem:[#allocation39_spill] sm:$0xff]  ;;  %v15399_v47 = vadd.f32 %v12589_v24, %v16951_v14 }
 0x2fe   : > { %v13128_v2 = vpop.f32.mrf.mxu0  ;;  %v15358_v34 = vadd.f32 %v12568_v51, %v16942_v8  ;;  %v12610_v22 = vadd.f32 %v12609_v44, %v12608_v25  ;;  %v15423_v50 = vadd.f32 %v12604_v36, %v15240_v17 }
 0x2ff   : > { %v15355_v54 = vadd.f32 %v12501_v31, %v16941_v28  ;;  %v5645_v62 = vadd.f32 %v13128_v2, %v5484_v35  ;;  %v15374_v35 = vadd.f32 %v12571_v63, %v16946_v42  ;;  %v16948_v2 = vld [vmem:[#allocation49_spill] sm:$0xff]  ;;  %v12601_v63 = vadd.f32 %v15252_v33, %v15250_v9  ;;  %v12611_v52 = vpop.f32.mrf.mxu1  ;;  %v16952_v42 = vld [vmem:[#allocation55_spill] sm:$0xff] }
 0x300   : > { %v5636_v29 = vpop.f32.mrf.mxu0  ;;  %v15381_v7 = vadd.f32 %v12583_v5, %v16948_v2  ;;  %v15408_v11 = vadd.f32 %v12592_v43, %v16952_v42 }
 0x301   : > { %v5772_v51 = vmul.f32 %v15338_v6, %v5645_v62  ;;  %v5637_v31 = vadd.f32 %v5636_v29, %v5476_v32  ;;  %v16950_v62 = vld [vmem:[#allocation52_spill] sm:$0xff]  ;;  %v15411_v39 = vadd.f32 %v12601_v63, %v15233_v59  ;;  %v15426_v59 = vadd.f32 %v12607_v0, %v15248_v12 }
 0x302   : > { %v13129_v32 = vpop.f32.mrf.mxu0  ;;  %v15394_v8 = vadd.f32 %v12586_v27, %v16950_v62  ;;  %v15405_v27 = vadd.f32 %v12598_v60, %v15228_v19  ;;  %v15420_v19 = vadd.f32 %v12610_v22, %v15311_v49  ;;  %v6296_v62 = vld [vmem:[#allocation2 + $0x18] sm:$0xf] }
 0x303   : > { %v5811_v53 = vadd.f32 %v15365_v13, %v5772_v51  ;;  %v5770_v28 = vmul.f32 %v15338_v6, %v5637_v31  ;;  %v5648_v5 = vadd.f32 %v13129_v32, %v5487_v61  ;;  %v12612_v61 = vpop.f32.mrf.mxu1 }
 0x304   : > { %v5639_v48 = vpop.f32.mrf.mxu0  ;;  %v15428_v2 = vadd.f32 %v12612_v61, %v12611_v52 }
 0x305   : > { %v5843_v9 = vmax.f32 %v5811_v53, 0.0  ;;  %v5809_v33 = vadd.f32 %v15365_v13, %v5770_v28  ;;  %v5773_v29 = vmul.f32 %v15338_v6, %v5648_v5  ;;  %v5640_v16 = vadd.f32 %v5639_v48, %v15281_v57 }
 0x306   : > { %v13132_v20 = vpop.f32.mrf.mxu0 }
 0x307   : > { %v12135_v25 = vpack.c.bf16 %v5843_v9, %v5843_v9  ;;  %v5841_v44 = vmax.f32 %v5809_v33, 0.0  ;;  %v5812_v24 = vadd.f32 %v15365_v13, %v5773_v29  ;;  %v5771_v57 = vmul.f32 %v15338_v6, %v5640_v16  ;;  %v6289_v29 = vld [vmem:[#allocation2 + $0xc] sm:$0xf] }
 0x308   : > { %v5661_v51 = vadd.f32 %v13132_v20, %v15295_v23  ;;  %v5652_v31 = vpop.f32.mrf.mxu0 }
 0x309   : > { %v5987_v45 = vshrl.u32 %v12135_v25, 16  ;;  %v12133_v43 = vpack.c.bf16 %v5841_v44, %v5841_v44  ;;  %v5844_v41 = vmax.f32 %v5812_v24, 0.0  ;;  %v5990_v60 = vshll.u32 %v12135_v25, 16 }
 0x30a   : > { %v5810_v63 = vadd.f32 %v15365_v13, %v5771_v57  ;;  %v5776_v23 = vmul.f32 %v15338_v6, %v5661_v51  ;;  %v5653_v32 = vadd.f32 %v5652_v31, %v15287_v4  ;;  %v13133_v49 = vpop.f32.mrf.mxu0 }
 0x30b   : > { %v5989_v53 = vrot.slane %v5987_v45, 7  ;;  %v5970_v28 = vshrl.u32 %v12133_v43, 16  ;;  %v5973_v17 = vshll.u32 %v12133_v43, 16  ;;  %v12136_v5 = vpack.c.bf16 %v5844_v41, %v5844_v41 }
 0x30c   : > { %v5842_v12 = vmax.f32 %v5810_v63, 0.0  ;;  %v5815_v52 = vadd.f32 %v15365_v13, %v5776_v23  ;;  %v5774_v36 = vmul.f32 %v15338_v6, %v5653_v32  ;;  %v5664_v0 = vadd.f32 %v13133_v49, %v15298_v56  ;;  %v5655_v22 = vpop.f32.mrf.mxu0  ;;  %v6300_v56 = vld [vmem:[#allocation2 + $0x20] sm:$0x1] }
 0x30d   : > { %v5992_v48 = vor.u32 %v5990_v60, %v5989_v53  ;;  %v5993_v14 = vrot.slane %v5989_v53, 4  ;;  %v5972_v9 = vrot.slane %v5970_v28, 7  ;;  %v5995_v33 = vshrl.u32 %v12136_v5, 16 }
 0x30e   : > { %v5998_v4 = vshll.u32 %v12136_v5, 16  ;;  %v12134_v16 = vpack.c.bf16 %v5842_v12, %v5842_v12  ;;  %v5847_v61 = vmax.f32 %v5815_v52, 0.0  ;;  %v5813_v20 = vadd.f32 %v15365_v13, %v5774_v36  ;;  %v13136_v42 = vpop.f32.mrf.mxu0 }
 0x30f   : > { %v6297_v25 = vsel %vm14164_vm12, %v5992_v48, %v6296_v62  ;;  %v5975_v44 = vor.u32 %v5973_v17, %v5972_v9  ;;  %v5976_v24 = vrot.slane %v5972_v9, 4  ;;  %v5997_v57 = vrot.slane %v5995_v33, 7  ;;  %v6293_v48 = vld [vmem:[#allocation2 + $0x14] sm:$0x1] }
 0x310   : > { %6298 = vst [vmem:[#allocation2 + $0x18] sm:$0xf] %v6297_v25  ;;  %v5978_v51 = vshrl.u32 %v12134_v16, 16  ;;  %v5981_v31 = vshll.u32 %v12134_v16, 16  ;;  %v12139_v45 = vpack.c.bf16 %v5847_v61, %v5847_v61  ;;  %v5845_v43 = vmax.f32 %v5813_v20, 0.0  ;;  %v5668_v41 = vpop.f32.mrf.mxu0 }
 0x311   : > { %v6290_v60 = vsel %vm14164_vm12, %v5975_v44, %v6289_v29  ;;  %v6000_v63 = vor.u32 %v5998_v4, %v5997_v57  ;;  %v6002_v23 = vrot.slane %v5997_v57, 4  ;;  %v5777_v32 = vmul.f32 %v15338_v6, %v5664_v0  ;;  %v6310_v20 = vld [vmem:[#allocation2 + $0x30] sm:$0xf] }
 0x312   : > { %6291 = vst [vmem:[#allocation2 + $0xc] sm:$0xf] %v6290_v60  ;;  %v5980_v49 = vrot.slane %v5978_v51, 7  ;;  %v6021_v53 = vshrl.u32 %v12139_v45, 16  ;;  %v6024_v28 = vshll.u32 %v12139_v45, 16  ;;  %v12137_v17 = vpack.c.bf16 %v5845_v43, %v5845_v43  ;;  %v13137_v5 = vpop.f32.mrf.mxu0 }
 0x313   : > { %v6001_v12 = vsel %vm14175_vm13, %v5993_v14, %v6000_v63  ;;  %v6301_v36 = vsel %vm14131_vm3, %v6002_v23, %v6300_v56  ;;  %v5816_v9 = vadd.f32 %v15365_v13, %v5777_v32  ;;  %v5656_v33 = vadd.f32 %v5655_v22, %v15290_v58 }
 0x314   : > { %6299 = vst [vmem:[#allocation2 + $0x1c] sm:$0xf] %v6001_v12  ;;  %6302 = vst [vmem:[#allocation2 + $0x20] sm:$0x1] %v6301_v36  ;;  %v5983_v0 = vor.u32 %v5981_v31, %v5980_v49  ;;  %v5985_v29 = vrot.slane %v5980_v49, 4  ;;  %v6023_v4 = vrot.slane %v6021_v53, 7  ;;  %v5671_v61 = vpop.f32.mrf.mxu0  ;;  %v5677_v57 = vadd.f32 %v13136_v42, %v15326_v37 }
 0x315   : > { %v6004_v16 = vshrl.u32 %v12137_v17, 16  ;;  %v6007_v25 = vshll.u32 %v12137_v17, 16  ;;  %v5848_v44 = vmax.f32 %v5816_v9, 0.0  ;;  %v5775_v14 = vmul.f32 %v15338_v6, %v5656_v33  ;;  %v6303_v42 = vld [vmem:[#allocation2 + $0x24] sm:$0xf] }
 0x316   : > { %v5984_v56 = vsel %vm14175_vm13, %v5976_v24, %v5983_v0  ;;  %v6294_v58 = vsel %vm14131_vm3, %v5985_v29, %v6293_v48  ;;  %v6026_v22 = vor.u32 %v6024_v28, %v6023_v4  ;;  %v6027_v51 = vrot.slane %v6023_v4, 4  ;;  %v13140_v31 = vpop.f32.mrf.mxu0  ;;  %v6314_v0 = vld [vmem:[#allocation2 + $0x38] sm:$0x1] }
 0x317   : > { %6292 = vst [vmem:[#allocation2 + $0x10] sm:$0xf] %v5984_v56  ;;  %6295 = vst [vmem:[#allocation2 + $0x14] sm:$0x1] %v6294_v58  ;;  %v15454_v45 = vrot.slane %v6004_v16, 7  ;;  %v12140_v43 = vpack.c.bf16 %v5848_v44, %v5848_v44  ;;  %v5814_v60 = vadd.f32 %v15365_v13, %v5775_v14  ;;  %v5780_v63 = vmul.f32 %v15338_v6, %v5677_v57 }
 0x318   : > { %v6311_v37 = vsel %vm14164_vm12, %v6026_v22, %v6310_v20  ;;  %v5669_v24 = vadd.f32 %v5668_v41, %v15314_v38  ;;  %v5680_v23 = vadd.f32 %v13137_v5, %v15333_v10  ;;  %v5672_v32 = vadd.f32 %v5671_v61, %v15317_v18  ;;  %v5684_v49 = vpop.f32.mrf.mxu0 }
 0x319   : > { %6312 = vst [vmem:[#allocation2 + $0x30] sm:$0xf] %v6311_v37  ;;  %v6009_v53 = vor.u32 %v6007_v25, %v15454_v45  ;;  %v6010_v28 = vrot.slane %v15454_v45, 4  ;;  %v6029_v17 = vshrl.u32 %v12140_v43, 16  ;;  %v6032_v12 = vshll.u32 %v12140_v43, 16 }
 0x31a   : > { %v5846_v36 = vmax.f32 %v5814_v60, 0.0  ;;  %v5819_v48 = vadd.f32 %v15365_v13, %v5780_v63  ;;  %v5778_v9 = vmul.f32 %v15338_v6, %v5669_v24  ;;  %v5781_v33 = vmul.f32 %v15338_v6, %v5680_v23  ;;  %v15468_v38 = vpop.f32.mrf.mxu0 }
 0x31b   : > { %v6304_v18 = vsel %vm14164_vm12, %v6009_v53, %v6303_v42  ;;  %v6031_v10 = vrot.slane %v6029_v17, 7  ;;  %v5779_v41 = vmul.f32 %v15338_v6, %v5672_v32  ;;  %v5693_v5 = vadd.f32 %v13140_v31, %v15341_v3  ;;  %v6307_v53 = vld [vmem:[#allocation2 + $0x2c] sm:$0x1] }
 0x31c   : > { %6305 = vst [vmem:[#allocation2 + $0x24] sm:$0xf] %v6304_v18  ;;  %v12138_v29 = vpack.c.bf16 %v5846_v36, %v5846_v36  ;;  %v5851_v4 = vmax.f32 %v5819_v48, 0.0  ;;  %v5817_v16 = vadd.f32 %v15365_v13, %v5778_v9  ;;  %v5820_v61 = vadd.f32 %v15365_v13, %v5781_v33  ;;  %v15476_v20 = vpop.f32.mrf.mxu0 }
 0x31d   : > { %v6034_v25 = vor.u32 %v6032_v12, %v6031_v10  ;;  %v6036_v44 = vrot.slane %v6031_v10, 4  ;;  %v5818_v14 = vadd.f32 %v15365_v13, %v5779_v41  ;;  %v5784_v57 = vmul.f32 %v15338_v6, %v5693_v5  ;;  %v6324_v41 = vld [vmem:[#allocation2 + $0x48] sm:$0xf] }
 0x31e   : > { %v6012_v56 = vshrl.u32 %v12138_v29, 16  ;;  %v6015_v58 = vshll.u32 %v12138_v29, 16  ;;  %v12143_v22 = vpack.c.bf16 %v5851_v4, %v5851_v4  ;;  %v5849_v3 = vmax.f32 %v5817_v16, 0.0  ;;  %v15480_v31 = vpop.f32.mrf.mxu0 }
 0x31f   : > { %v6035_v45 = vsel %vm14175_vm13, %v6027_v51, %v6034_v25  ;;  %v6315_v43 = vsel %vm14131_vm3, %v6036_v44, %v6314_v0  ;;  %v5852_v60 = vmax.f32 %v5820_v61, 0.0  ;;  %v5850_v63 = vmax.f32 %v5818_v14, 0.0 }
 0x320   : > { %6313 = vst [vmem:[#allocation2 + $0x34] sm:$0xf] %v6035_v45  ;;  %6316 = vst [vmem:[#allocation2 + $0x38] sm:$0x1] %v6315_v43  ;;  %v6014_v37 = vrot.slane %v6012_v56, 7  ;;  %v6055_v42 = vshrl.u32 %v12143_v22, 16  ;;  %v12141_v23 = vpack.c.bf16 %v5849_v3, %v5849_v3  ;;  %v15486_v32 = vpop.f32.mrf.mxu0  ;;  %v5823_v36 = vadd.f32 %v15365_v13, %v5784_v57 }
 0x321   : > { %v6058_v24 = vshll.u32 %v12143_v22, 16  ;;  %v12144_v17 = vpack.c.bf16 %v5852_v60, %v5852_v60  ;;  %v12142_v12 = vpack.c.bf16 %v5850_v63, %v5850_v63  ;;  %v5685_v51 = vadd.f32 %v5684_v49, %v15344_v1  ;;  %v6317_v22 = vld [vmem:[#allocation2 + $0x3c] sm:$0xf]  ;;  %v6328_v3 = vld [vmem:[#allocation2 + $0x50] sm:$0x1] }
 0x322   : > { %v6017_v48 = vor.u32 %v6015_v58, %v6014_v37  ;;  %v6019_v9 = vrot.slane %v6014_v37, 4  ;;  %v6057_v33 = vrot.slane %v6055_v42, 7  ;;  %v6038_v18 = vshrl.u32 %v12141_v23, 16  ;;  %v13145_v10 = vpop.f32.mrf.mxu0 }
 0x323   : > { %v6041_v5 = vshll.u32 %v12141_v23, 16  ;;  %v6063_v0 = vshrl.u32 %v12144_v17, 16  ;;  %v6066_v29 = vshll.u32 %v12144_v17, 16  ;;  %v6046_v4 = vshrl.u32 %v12142_v12, 16  ;;  %v6321_v23 = vld [vmem:[#allocation2 + $0x44] sm:$0x1] }
 0x324   : > { %v6018_v16 = vsel %vm14175_vm13, %v6010_v28, %v6017_v48  ;;  %v6308_v61 = vsel %vm14131_vm3, %v6019_v9, %v6307_v53  ;;  %v6060_v25 = vor.u32 %v6058_v24, %v6057_v33  ;;  %v6061_v44 = vrot.slane %v6057_v33, 4  ;;  %v5703_v14 = vpop.f32.mrf.mxu0 }
 0x325   : > { %6306 = vst [vmem:[#allocation2 + $0x28] sm:$0xf] %v6018_v16  ;;  %6309 = vst [vmem:[#allocation2 + $0x2c] sm:$0x1] %v6308_v61  ;;  %v6040_v1 = vrot.slane %v6038_v18, 7  ;;  %v6065_v49 = vrot.slane %v6063_v0, 7  ;;  %v5782_v28 = vmul.f32 %v15338_v6, %v5685_v51  ;;  %v5696_v43 = vadd.f32 %v15468_v38, %v15347_v26 }
 0x326   : > { %v6048_v57 = vrot.slane %v6046_v4, 7  ;;  %v6049_v56 = vshll.u32 %v12142_v12, 16  ;;  %v6325_v58 = vsel %vm14164_vm12, %v6060_v25, %v6324_v41  ;;  %v5855_v45 = vmax.f32 %v5823_v36, 0.0  ;;  %v15499_v60 = vpop.f32.mrf.mxu0 }
 0x327   : > { %6326 = vst [vmem:[#allocation2 + $0x48] sm:$0xf] %v6325_v58  ;;  %v6043_v63 = vor.u32 %v6041_v5, %v6040_v1  ;;  %v6044_v37 = vrot.slane %v6040_v1, 4  ;;  %v6068_v42 = vor.u32 %v6066_v29, %v6065_v49  ;;  %v6070_v24 = vrot.slane %v6065_v49, 4 }
 0x328   : > { %v6051_v53 = vor.u32 %v6049_v56, %v6048_v57  ;;  %v6053_v17 = vrot.slane %v6048_v57, 4  ;;  %v12147_v12 = vpack.c.bf16 %v5855_v45, %v5855_v45  ;;  %v5821_v48 = vadd.f32 %v15365_v13, %v5782_v28  ;;  %v15502_v9 = vpop.f32.mrf.mxu0  ;;  %v6338_v57 = vld [vmem:[#allocation2 + $0x60] sm:$0xf] }
 0x329   : > { %v6318_v36 = vsel %vm14164_vm12, %v6043_v63, %v6317_v22  ;;  %v6069_v26 = vsel %vm14175_vm13, %v6061_v44, %v6068_v42  ;;  %v6329_v38 = vsel %vm14131_vm3, %v6070_v24, %v6328_v3  ;;  %v5785_v51 = vmul.f32 %v15338_v6, %v5696_v43 }
 0x32a   : > { %6319 = vst [vmem:[#allocation2 + $0x3c] sm:$0xf] %v6318_v36  ;;  %6327 = vst [vmem:[#allocation2 + $0x4c] sm:$0xf] %v6069_v26  ;;  %v6052_v33 = vsel %vm14175_vm13, %v6044_v37, %v6051_v53  ;;  %v6322_v18 = vsel %vm14131_vm3, %v6053_v17, %v6321_v23  ;;  %v6089_v41 = vshrl.u32 %v12147_v12, 16  ;;  %v6092_v5 = vshll.u32 %v12147_v12, 16  ;;  %v15515_v0 = vpop.f32.mrf.mxu0 }
 0x32b   : > { %6330 = vst [vmem:[#allocation2 + $0x50] sm:$0x1] %v6329_v38  ;;  %6320 = vst [vmem:[#allocation2 + $0x40] sm:$0xf] %v6052_v33  ;;  %v5853_v29 = vmax.f32 %v5821_v48, 0.0  ;;  %v5824_v4 = vadd.f32 %v15365_v13, %v5785_v51  ;;  %v5688_v16 = vadd.f32 %v15476_v20, %v15350_v30  ;;  %v5709_v61 = vadd.f32 %v15480_v31, %v15368_v21 }
 0x32c   : > { %6323 = vst [vmem:[#allocation2 + $0x44] sm:$0x1] %v6322_v18  ;;  %v6091_v25 = vrot.slane %v6089_v41, 7  ;;  %v5701_v44 = vadd.f32 %v15486_v32, %v15358_v34  ;;  %v5712_v1 = vadd.f32 %v13145_v10, %v15371_v55  ;;  %v5704_v49 = vadd.f32 %v5703_v14, %v15374_v35  ;;  %v15530_v31 = vpop.f32.mrf.mxu0  ;;  %v6331_v23 = vld [vmem:[#allocation2 + $0x54] sm:$0xf] }
 0x32d   : > { %v12145_v56 = vpack.c.bf16 %v5853_v29, %v5853_v29  ;;  %v5856_v58 = vmax.f32 %v5824_v4, 0.0  ;;  %v5783_v22 = vmul.f32 %v15338_v6, %v5688_v16  ;;  %v5788_v3 = vmul.f32 %v15338_v6, %v5709_v61  ;;  %v6342_v18 = vld [vmem:[#allocation2 + $0x68] sm:$0x1] }
 0x32e   : > { %v6094_v45 = vor.u32 %v6092_v5, %v6091_v25  ;;  %v6095_v30 = vrot.slane %v6091_v25, 4  ;;  %v5786_v20 = vmul.f32 %v15338_v6, %v5701_v44  ;;  %v5789_v21 = vmul.f32 %v15338_v6, %v5712_v1  ;;  %v15539_v36 = vpop.f32.mrf.mxu0 }
 0x32f   : > { %v6072_v34 = vshrl.u32 %v12145_v56, 16  ;;  %v6075_v32 = vshll.u32 %v12145_v56, 16  ;;  %v12148_v55 = vpack.c.bf16 %v5856_v58, %v5856_v58  ;;  %v5822_v35 = vadd.f32 %v15365_v13, %v5783_v22 }
 0x330   : > { %v6339_v10 = vsel %vm14164_vm12, %v6094_v45, %v6338_v57  ;;  %v5827_v14 = vadd.f32 %v15365_v13, %v5788_v3  ;;  %v5825_v28 = vadd.f32 %v15365_v13, %v5786_v20  ;;  %v5828_v43 = vadd.f32 %v15365_v13, %v5789_v21  ;;  %v5732_v58 = vpop.f32.mrf.mxu0  ;;  %v6335_v21 = vld [vmem:[#allocation2 + $0x5c] sm:$0x1] }
 0x331   : > { %6340 = vst [vmem:[#allocation2 + $0x60] sm:$0xf] %v6339_v10  ;;  %v6074_v63 = vrot.slane %v6072_v34, 7  ;;  %v6097_v37 = vshrl.u32 %v12148_v55, 16  ;;  %v6100_v42 = vshll.u32 %v12148_v55, 16  ;;  %v5854_v24 = vmax.f32 %v5822_v35, 0.0 }
 0x332   : > { %v5859_v53 = vmax.f32 %v5827_v14, 0.0  ;;  %v5857_v17 = vmax.f32 %v5825_v28, 0.0  ;;  %v5860_v12 = vmax.f32 %v5828_v43, 0.0  ;;  %v5787_v48 = vmul.f32 %v15338_v6, %v5704_v49  ;;  %v6352_v28 = vld [vmem:[#allocation2 + $0x78] sm:$0xf] }
 0x333   : > { %v6077_v26 = vor.u32 %v6075_v32, %v6074_v63  ;;  %v6078_v38 = vrot.slane %v6074_v63, 4  ;;  %v6099_v51 = vrot.slane %v6097_v37, 7  ;;  %v12146_v33 = vpack.c.bf16 %v5854_v24, %v5854_v24  ;;  %v6345_v43 = vld [vmem:[#allocation2 + $0x6c] sm:$0xf] }
 0x334   : > { %v12151_v41 = vpack.c.bf16 %v5859_v53, %v5859_v53  ;;  %v12149_v5 = vpack.c.bf16 %v5857_v17, %v5857_v17  ;;  %v12152_v29 = vpack.c.bf16 %v5860_v12, %v5860_v12  ;;  %v5826_v4 = vadd.f32 %v15365_v13, %v5787_v48  ;;  %v13153_v53 = vpop.f32.mrf.mxu0 }
 0x335   : > { %v6332_v16 = vsel %vm14164_vm12, %v6077_v26, %v6331_v23  ;;  %v6102_v61 = vor.u32 %v6100_v42, %v6099_v51  ;;  %v6104_v25 = vrot.slane %v6099_v51, 4  ;;  %v6080_v44 = vshrl.u32 %v12146_v33, 16 }
 0x336   : > { %6333 = vst [vmem:[#allocation2 + $0x54] sm:$0xf] %v6332_v16  ;;  %v6083_v1 = vshll.u32 %v12146_v33, 16  ;;  %v6123_v49 = vshrl.u32 %v12151_v41, 16  ;;  %v6126_v57 = vshll.u32 %v12151_v41, 16  ;;  %v6106_v56 = vshrl.u32 %v12149_v5, 16 }
 0x337   : > { %v6103_v22 = vsel %vm14175_vm13, %v6095_v30, %v6102_v61  ;;  %v6343_v3 = vsel %vm14131_vm3, %v6104_v25, %v6342_v18  ;;  %v6082_v45 = vrot.slane %v6080_v44, 7  ;;  %v6109_v20 = vshll.u32 %v12149_v5, 16  ;;  %v15567_v44 = vpop.f32.mrf.mxu0 }
 0x338   : > { %6341 = vst [vmem:[#allocation2 + $0x64] sm:$0xf] %v6103_v22  ;;  %6344 = vst [vmem:[#allocation2 + $0x68] sm:$0x1] %v6343_v3  ;;  %v6125_v34 = vrot.slane %v6123_v49, 7  ;;  %v6108_v32 = vrot.slane %v6106_v56, 7  ;;  %v5725_v30 = vadd.f32 %v15499_v60, %v15394_v8  ;;  %v5717_v18 = vadd.f32 %v15502_v9, %v15378_v46 }
 0x339   : > { %v6131_v55 = vshrl.u32 %v12152_v29, 16  ;;  %v6134_v35 = vshll.u32 %v12152_v29, 16  ;;  %v6085_v10 = vor.u32 %v6083_v1, %v6082_v45  ;;  %v6087_v14 = vrot.slane %v6082_v45, 4  ;;  %v6356_v60 = vld [vmem:[#allocation2 + $0x80] sm:$0x1] }
 0x33a   : > { %v5858_v63 = vmax.f32 %v5826_v4, 0.0  ;;  %v6128_v37 = vor.u32 %v6126_v57, %v6125_v34  ;;  %v6129_v42 = vrot.slane %v6125_v34, 4  ;;  %v6111_v24 = vor.u32 %v6109_v20, %v6108_v32  ;;  %v6349_v57 = vld [vmem:[#allocation2 + $0x74] sm:$0x1]  ;;  %v15582_v34 = vpop.f32.mrf.mxu0 }
 0x33b   : > { %v6112_v23 = vrot.slane %v6108_v32, 4  ;;  %v6086_v17 = vsel %vm14175_vm13, %v6078_v38, %v6085_v10  ;;  %v6336_v12 = vsel %vm14131_vm3, %v6087_v14, %v6335_v21  ;;  %v6133_v48 = vrot.slane %v6131_v55, 7 }
 0x33c   : > { %v12150_v26 = vpack.c.bf16 %v5858_v63, %v5858_v63  ;;  %6334 = vst [vmem:[#allocation2 + $0x58] sm:$0xf] %v6086_v17  ;;  %6337 = vst [vmem:[#allocation2 + $0x5c] sm:$0x1] %v6336_v12  ;;  %v6353_v51 = vsel %vm14164_vm12, %v6128_v37, %v6352_v28  ;;  %v6346_v8 = vsel %vm14164_vm12, %v6111_v24, %v6345_v43  ;;  %v5748_v12 = vpop.f32.mrf.mxu0 }
 0x33d   : > { %v5792_v33 = vmul.f32 %v15338_v6, %v5725_v30  ;;  %6354 = vst [vmem:[#allocation2 + $0x78] sm:$0xf] %v6353_v51  ;;  %6347 = vst [vmem:[#allocation2 + $0x6c] sm:$0xf] %v6346_v8  ;;  %v6136_v38 = vor.u32 %v6134_v35, %v6133_v48  ;;  %v6138_v41 = vrot.slane %v6133_v48, 4  ;;  %v5790_v16 = vmul.f32 %v15338_v6, %v5717_v18 }
 0x33e   : > { %v6114_v5 = vshrl.u32 %v12150_v26, 16  ;;  %v6117_v29 = vshll.u32 %v12150_v26, 16  ;;  %v5728_v61 = vadd.f32 %v15515_v0, %v15399_v47  ;;  %v5720_v25 = vadd.f32 %v15530_v31, %v15381_v7  ;;  %v6366_v48 = vld [vmem:[#allocation2 + $0x90] sm:$0xf] }
 0x33f   : > { %v5831_v4 = vadd.f32 %v15365_v13, %v5792_v33  ;;  %v6137_v46 = vsel %vm14175_vm13, %v6129_v42, %v6136_v38  ;;  %v6357_v9 = vsel %vm14131_vm3, %v6138_v41, %v6356_v60  ;;  %v5741_v49 = vadd.f32 %v15539_v36, %v15405_v27  ;;  %v6359_v41 = vld [vmem:[#allocation2 + $0x84] sm:$0xf] }
 0x340   : > { %v6116_v1 = vrot.slane %v6114_v5, 7  ;;  %6355 = vst [vmem:[#allocation2 + $0x7c] sm:$0xf] %v6137_v46  ;;  %6358 = vst [vmem:[#allocation2 + $0x80] sm:$0x1] %v6357_v9  ;;  %v5829_v47 = vadd.f32 %v15365_v13, %v5790_v16  ;;  %v5793_v7 = vmul.f32 %v15338_v6, %v5728_v61  ;;  %v5791_v0 = vmul.f32 %v15338_v6, %v5720_v25  ;;  %v13157_v25 = vpop.f32.mrf.mxu0 }
 0x341   : > { %v5863_v56 = vmax.f32 %v5831_v4, 0.0  ;;  %v5796_v3 = vmul.f32 %v15338_v6, %v5741_v49  ;;  %v5733_v45 = vadd.f32 %v5732_v58, %v15408_v11  ;;  %v15592_v28 = vadd.f32 %v15428_v2, %v15355_v54  ;;  %v6370_v46 = vld [vmem:[#allocation2 + $0x98] sm:$0x1] }
 0x342   : > { %v6119_v31 = vor.u32 %v6117_v29, %v6116_v1  ;;  %v6121_v22 = vrot.slane %v6116_v1, 4  ;;  %v5861_v21 = vmax.f32 %v5829_v47, 0.0  ;;  %v5832_v27 = vadd.f32 %v15365_v13, %v5793_v7 }
 0x343   : > { %v12155_v20 = vpack.c.bf16 %v5863_v56, %v5863_v56  ;;  %v5830_v36 = vadd.f32 %v15365_v13, %v5791_v0  ;;  %v5835_v35 = vadd.f32 %v15365_v13, %v5796_v3  ;;  %v5794_v10 = vmul.f32 %v15338_v6, %v5733_v45  ;;  %v6363_v0 = vld [vmem:[#allocation2 + $0x8c] sm:$0x1] }
 0x344   : > { %v6120_v32 = vsel %vm14175_vm13, %v6112_v23, %v6119_v31  ;;  %v6350_v55 = vsel %vm14131_vm3, %v6121_v22, %v6349_v57  ;;  %v12153_v58 = vpack.c.bf16 %v5861_v21, %v5861_v21  ;;  %v5864_v14 = vmax.f32 %v5832_v27, 0.0  ;;  %v6380_v31 = vld [vmem:[#allocation2 + $0xa8] sm:$0xf] }
 0x345   : > { %6348 = vst [vmem:[#allocation2 + $0x70] sm:$0xf] %v6120_v32  ;;  %6351 = vst [vmem:[#allocation2 + $0x74] sm:$0x1] %v6350_v55  ;;  %v6157_v11 = vshrl.u32 %v12155_v20, 16  ;;  %v5862_v43 = vmax.f32 %v5830_v36, 0.0  ;;  %v5833_v30 = vadd.f32 %v15365_v13, %v5794_v10  ;;  %v5744_v37 = vadd.f32 %v13153_v53, %v15411_v39 }
 0x346   : > { %v5867_v63 = vmax.f32 %v5835_v35, 0.0  ;;  %v6160_v24 = vshll.u32 %v12155_v20, 16  ;;  %v6140_v23 = vshrl.u32 %v12153_v58, 16  ;;  %v12156_v17 = vpack.c.bf16 %v5864_v14, %v5864_v14  ;;  %v5751_v35 = vpop.f32.mrf.mxu0 }
 0x347   : > { %v6159_v42 = vrot.slane %v6157_v11, 7  ;;  %v6143_v26 = vshll.u32 %v12153_v58, 16  ;;  %v12154_v51 = vpack.c.bf16 %v5862_v43, %v5862_v43  ;;  %v5865_v60 = vmax.f32 %v5833_v30, 0.0 }
 0x348   : > { %v12159_v8 = vpack.c.bf16 %v5867_v63, %v5867_v63  ;;  %v6142_v18 = vrot.slane %v6140_v23, 7  ;;  %v6165_v54 = vshrl.u32 %v12156_v17, 16  ;;  %v5797_v2 = vmul.f32 %v15338_v6, %v5744_v37 }
 0x349   : > { %v6162_v33 = vor.u32 %v6160_v24, %v6159_v42  ;;  %v6163_v38 = vrot.slane %v6159_v42, 4  ;;  %v6168_v5 = vshll.u32 %v12156_v17, 16  ;;  %v6148_v29 = vshrl.u32 %v12154_v51, 16  ;;  %v6373_v42 = vld [vmem:[#allocation2 + $0x9c] sm:$0xf] }
 0x34a   : > { %v6191_v39 = vshrl.u32 %v12159_v8, 16  ;;  %v6145_v4 = vor.u32 %v6143_v26, %v6142_v18  ;;  %v6167_v16 = vrot.slane %v6165_v54, 7  ;;  %v6151_v61 = vshll.u32 %v12154_v51, 16  ;;  %v6384_v54 = vld [vmem:[#allocation2 + $0xb0] sm:$0x1] }
 0x34b   : > { %v6367_v53 = vsel %vm14164_vm12, %v6162_v33, %v6366_v48  ;;  %v6150_v9 = vrot.slane %v6148_v29, 7  ;;  %v6194_v49 = vshll.u32 %v12159_v8, 16  ;;  %v12157_v57 = vpack.c.bf16 %v5865_v60, %v5865_v60 }
 0x34c   : > { %6368 = vst [vmem:[#allocation2 + $0x90] sm:$0xf] %v6367_v53  ;;  %v15599_v1 = vrot.slane %v6191_v39, 7  ;;  %v6360_v56 = vsel %vm14164_vm12, %v6145_v4, %v6359_v41  ;;  %v6170_v47 = vor.u32 %v6168_v5, %v6167_v16  ;;  %v6172_v7 = vrot.slane %v6167_v16, 4 }
 0x34d   : > { %v5836_v22 = vadd.f32 %v15365_v13, %v5797_v2  ;;  %v6146_v3 = vrot.slane %v6142_v18, 4  ;;  %6361 = vst [vmem:[#allocation2 + $0x84] sm:$0xf] %v6360_v56  ;;  %v6153_v45 = vor.u32 %v6151_v61, %v6150_v9  ;;  %v6155_v20 = vrot.slane %v6150_v9, 4 }
 0x34e   : > { %v6196_v21 = vor.u32 %v6194_v49, %v15599_v1  ;;  %v6171_v27 = vsel %vm14175_vm13, %v6163_v38, %v6170_v47  ;;  %v6371_v36 = vsel %vm14131_vm3, %v6172_v7, %v6370_v46  ;;  %v6174_v32 = vshrl.u32 %v12157_v57, 16  ;;  %v6377_v7 = vld [vmem:[#allocation2 + $0xa4] sm:$0x1] }
 0x34f   : > { %v6177_v55 = vshll.u32 %v12157_v57, 16  ;;  %6369 = vst [vmem:[#allocation2 + $0x94] sm:$0xf] %v6171_v27  ;;  %6372 = vst [vmem:[#allocation2 + $0x98] sm:$0x1] %v6371_v36  ;;  %v6154_v10 = vsel %vm14175_vm13, %v6146_v3, %v6153_v45  ;;  %v6364_v11 = vsel %vm14131_vm3, %v6155_v20, %v6363_v0  ;;  %v5868_v14 = vmax.f32 %v5836_v22, 0.0 }
 0x350   : > { %v6381_v58 = vsel %vm14164_vm12, %v6196_v21, %v6380_v31  ;;  %6362 = vst [vmem:[#allocation2 + $0x88] sm:$0xf] %v6154_v10  ;;  %6365 = vst [vmem:[#allocation2 + $0x8c] sm:$0x1] %v6364_v11  ;;  %v15615_v43 = vrot.slane %v6174_v32, 7  ;;  %v5736_v63 = vadd.f32 %v15567_v44, %v15414_v15  ;;  %v5757_v30 = vadd.f32 %v15582_v34, %v15420_v19 }
 0x351   : > { %6382 = vst [vmem:[#allocation2 + $0xa8] sm:$0xf] %v6381_v58  ;;  %v5749_v37 = vadd.f32 %v5748_v12, %v15423_v50  ;;  %v12160_v24 = vpack.c.bf16 %v5868_v14, %v5868_v14  ;;  %v5760_v23 = vadd.f32 %v13157_v25, %v15592_v28  ;;  %v5752_v17 = vadd.f32 %v5751_v35, %v15426_v59  ;;  %v6394_v3 = vld [vmem:[#allocation2 + $0xc0] sm:$0xf]  ;;  %v6387_v10 = vld [vmem:[#allocation2 + $0xb4] sm:$0xf] }
 0x352   : > { %v6179_v48 = vor.u32 %v6177_v55, %v15615_v43  ;;  %v5795_v26 = vmul.f32 %v15338_v6, %v5736_v63  ;;  %v5800_v51 = vmul.f32 %v15338_v6, %v5757_v30  ;;  %v6197_v18 = vrot.slane %v15599_v1, 4  ;;  %v6398_v11 = vld [vmem:[#allocation2 + $0xc8] sm:$0x1] }
 0x353   : > { %v6199_v8 = vshrl.u32 %v12160_v24, 16  ;;  %v5798_v15 = vmul.f32 %v15338_v6, %v5749_v37  ;;  %v5801_v44 = vmul.f32 %v15338_v6, %v5760_v23  ;;  %v5799_v59 = vmul.f32 %v15338_v6, %v5752_v17 }
 0x354   : > { %v6374_v19 = vsel %vm14164_vm12, %v6179_v48, %v6373_v42  ;;  %v5834_v50 = vadd.f32 %v15365_v13, %v5795_v26  ;;  %v5839_v34 = vadd.f32 %v15365_v13, %v5800_v51  ;;  %v6202_v12 = vshll.u32 %v12160_v24, 16 }
 0x355   : > { %6375 = vst [vmem:[#allocation2 + $0x9c] sm:$0xf] %v6374_v19  ;;  %v6201_v28 = vrot.slane %v6199_v8, 7  ;;  %v5837_v60 = vadd.f32 %v15365_v13, %v5798_v15  ;;  %v5840_v33 = vadd.f32 %v15365_v13, %v5801_v44  ;;  %v5838_v41 = vadd.f32 %v15365_v13, %v5799_v59  ;;  %v6391_v8 = vld [vmem:[#allocation2 + $0xbc] sm:$0x1] }
 0x356   : > { %v5866_v2 = vmax.f32 %v5834_v50, 0.0  ;;  %v5871_v38 = vmax.f32 %v5839_v34, 0.0  ;;  %v6180_v36 = vrot.slane %v15615_v43, 4 }
 0x357   : > { %v6204_v5 = vor.u32 %v6202_v12, %v6201_v28  ;;  %v6206_v29 = vrot.slane %v6201_v28, 4  ;;  %v5869_v39 = vmax.f32 %v5837_v60, 0.0  ;;  %v5872_v53 = vmax.f32 %v5840_v33, 0.0 }
 0x358   : > { %v12158_v4 = vpack.c.bf16 %v5866_v2, %v5866_v2  ;;  %v12163_v6 = vpack.c.bf16 %v5871_v38, %v5871_v38  ;;  %v5870_v16 = vmax.f32 %v5838_v41, 0.0 }
 0x359   : > { %v6205_v61 = vsel %vm14175_vm13, %v6197_v18, %v6204_v5  ;;  %v6385_v25 = vsel %vm14131_vm3, %v6206_v29, %v6384_v54  ;;  %v12161_v46 = vpack.c.bf16 %v5869_v39, %v5869_v39  ;;  %v12164_v9 = vpack.c.bf16 %v5872_v53, %v5872_v53 }
 0x35a   : > { %6383 = vst [vmem:[#allocation2 + $0xac] sm:$0xf] %v6205_v61  ;;  %6386 = vst [vmem:[#allocation2 + $0xb0] sm:$0x1] %v6385_v25  ;;  %v6182_v1 = vshrl.u32 %v12158_v4, 16  ;;  %v6225_v49 = vshrl.u32 %v12163_v6, 16  ;;  %v12162_v22 = vpack.c.bf16 %v5870_v16, %v5870_v16 }
 0x35b   : > { %v6185_v13 = vshll.u32 %v12158_v4, 16  ;;  %v6208_v57 = vshrl.u32 %v12161_v46, 16  ;;  %v6233_v56 = vshrl.u32 %v12164_v9, 16  ;;  %v6228_v31 = vshll.u32 %v12163_v6, 16 }
 0x35c   : > { %v6184_v47 = vrot.slane %v6182_v1, 7  ;;  %v6227_v0 = vrot.slane %v6225_v49, 7  ;;  %v6211_v20 = vshll.u32 %v12161_v46, 16  ;;  %v6236_v27 = vshll.u32 %v12164_v9, 16 }
 0x35d   : > { %v6210_v45 = vrot.slane %v6208_v57, 7  ;;  %v6235_v21 = vrot.slane %v6233_v56, 7  ;;  %v6216_v23 = vshrl.u32 %v12162_v22, 16  ;;  %v6219_v51 = vshll.u32 %v12162_v22, 16 }
 0x35e   : > { %v6187_v32 = vor.u32 %v6185_v13, %v6184_v47  ;;  %v6189_v55 = vrot.slane %v6184_v47, 4  ;;  %v6230_v35 = vor.u32 %v6228_v31, %v6227_v0  ;;  %v6231_v58 = vrot.slane %v6227_v0, 4 }
 0x35f   : > { %v6213_v14 = vor.u32 %v6211_v20, %v6210_v45  ;;  %v6238_v63 = vor.u32 %v6236_v27, %v6235_v21  ;;  %v6240_v30 = vrot.slane %v6235_v21, 4  ;;  %v6218_v26 = vrot.slane %v6216_v23, 7 }
 0x360   : > { %v6188_v37 = vsel %vm14175_vm13, %v6180_v36, %v6187_v32  ;;  %v6378_v42 = vsel %vm14131_vm3, %v6189_v55, %v6377_v7  ;;  %v6395_v24 = vsel %vm14164_vm12, %v6230_v35, %v6394_v3  ;;  %v6214_v15 = vrot.slane %v6210_v45, 4 }
 0x361   : > { %6376 = vst [vmem:[#allocation2 + $0xa0] sm:$0xf] %v6188_v37  ;;  %6379 = vst [vmem:[#allocation2 + $0xa4] sm:$0x1] %v6378_v42  ;;  %v6388_v43 = vsel %vm14164_vm12, %v6213_v14, %v6387_v10  ;;  %v6239_v17 = vsel %vm14175_vm13, %v6231_v58, %v6238_v63  ;;  %v6399_v48 = vsel %vm14131_vm3, %v6240_v30, %v6398_v11  ;;  %v6223_v19 = vrot.slane %v6218_v26, 4 }
 0x362   : > { %6396 = vst [vmem:[#allocation2 + $0xc0] sm:$0xf] %v6395_v24  ;;  %6389 = vst [vmem:[#allocation2 + $0xb4] sm:$0xf] %v6388_v43  ;;  %v6221_v44 = vor.u32 %v6219_v51, %v6218_v26 }
 0x363   : > { %6397 = vst [vmem:[#allocation2 + $0xc4] sm:$0xf] %v6239_v17  ;;  %6400 = vst [vmem:[#allocation2 + $0xc8] sm:$0x1] %v6399_v48  ;;  %v6392_v50 = vsel %vm14131_vm3, %v6223_v19, %v6391_v8 }
 0x364   : > { %v6222_v40 = vsel %vm14175_vm13, %v6214_v15, %v6221_v44  ;;  %6393 = vst [vmem:[#allocation2 + $0xbc] sm:$0x1] %v6392_v50 }
 0x365   : > { %6390 = vst [vmem:[#allocation2 + $0xb8] sm:$0xf] %v6222_v40 }
 0x366   : > { %13925 = dma.done.wait [#allocation5], 9216 }
 0x367   : > { %13926 = vsyncadd [#allocation5], 4294958080  ;;  %v13536_v34 = vld [vmem:[#allocation4 + $0x78] sm:$0xff]   ;;  %v13540_v60 = vld [vmem:[#allocation4 + $0x70] sm:$0xff]   ;;  %s12165_s9 = sshll.u32 %s14019_s28, 12  ;;  %s11398_s19 = sshll.u32 %s15661_s18, 4  ;;  %s16791_s19 = int_to_ptr.vmem [resolvable:$true] %s11398_s19 }
 0x368   : > { %v13537_v59 = vld [vmem:[#allocation4 + $0xf8] sm:$0xff]   ;;  %12638 = vmatprep.subr.bf16.mxu1 %v13536_v34  ;;  %v13541_v62 = vld [vmem:[#allocation4 + $0xf0] sm:$0xff]   ;;  %v13544_v18 = vld [vmem:[#allocation4 + $0x68] sm:$0xff]   ;;  %s16789_s17 = scalar_lea.hbm %s16843_s7, %s12165_s9  ;;  %s13875_s28 = scalar_lea.vmem %s16791_s19, 4096 }
 0x369   : > { %v13538_v28 = vld [vmem:[#allocation4 + $0x38] sm:$0xff]   ;;  %12750 = vmatprep.subr.bf16.mxu0 %v13537_v59  ;;  %v13542_v52 = vld [vmem:[#allocation4 + $0x30] sm:$0xff]   ;;  %v13545_v54 = vld [vmem:[#allocation4 + $0xe8] sm:$0xff]   ;;  %p13876_p2 = scmp.ne.s32.totalorder %s16791_s19, %s13875_s28  ;;  %p17021_p13 = scmp.ne.s32.totalorder %s16865_s22, 0 }
 0x36a   : > { %v13539_v12 = vld [vmem:[#allocation4 + $0xb8] sm:$0xff]   ;;  %12639 = vmatpush3.bf16.msra.mxu1 %v13538_v28  ;;  %v13543_v33 = vld [vmem:[#allocation4 + $0xb0] sm:$0xff]   ;;  %v13546_v2 = vld [vmem:[#allocation4 + $0x28] sm:$0xff]   ;;  %s13955_s23 = smov [#allocation11]  }
 0x36b   : > { %12751 = vmatpush3.bf16.msra.mxu0 %v13539_v12  ;;  %12640 = vmatprep.subr.bf16.mxu1 %v13540_v60  ;;  %v13547_v38 = vld [vmem:[#allocation4 + $0xa8] sm:$0xff]   ;;  %v13548_v41 = vld [vmem:[#allocation4 + $0x60] sm:$0xff]   ;;  %v13552_v53 = vld [vmem:[#allocation4 + $0x58] sm:$0xff]   ;;  %p13877_p0 = pnand %p13876_p2, %p17021_p13  ;;  %s13879_s11 = sshll.u32 %s13955_s23, 4  ;;  %s13880_s11 = int_to_ptr.vmem [resolvable:$false] %s13879_s11 }
 0x36c   : > { %12752 = vmatprep.subr.bf16.mxu0 %v13541_v62  ;;  %v13549_v5 = vld [vmem:[#allocation4 + $0xe0] sm:$0xff]   ;;  %v13553_v4 = vld [vmem:[#allocation4 + $0xd8] sm:$0xff]   ;;  %v13556_v61 = vld [vmem:[#allocation4 + $0x50] sm:$0xff]   ;;  %s13881_s20 = scalar_lea.vmem %s13880_s11, 8192  ;;  %p13882_p9 = scmp.lt.s32.totalorder %s16791_s19, %s13880_s11 }
 0x36d   : > { %v13550_v29 = vld [vmem:[#allocation4 + $0x20] sm:$0xff]   ;;  %v13554_v6 = vld [vmem:[#allocation4 + $0x18] sm:$0xff]   ;;  %v13557_v25 = vld [vmem:[#allocation4 + $0xd0] sm:$0xff]   ;;  %p13878_p5 = pneg %p13877_p0  ;;  %p13883_p1 = scmp.lt.s32.totalorder %s13881_s20, %s13875_s28 }
 0x36e   : > { %12641 = vmatpush3.bf16.msra.mxu1 %v13542_v52  ;;  %v13551_v39 = vld [vmem:[#allocation4 + $0xa0] sm:$0xff]   ;;  %v13555_v16 = vld [vmem:[#allocation4 + $0x98] sm:$0xff]   ;;  %v13558_v46 = vld [vmem:[#allocation4 + $0x10] sm:$0xff]  }
 0x36f   : > { %12753 = vmatpush3.bf16.msra.mxu0 %v13543_v33  ;;  %12642 = vmatprep.subr.bf16.mxu1 %v13544_v18  ;;  %v13559_v9 = vld [vmem:[#allocation4 + $0x90] sm:$0xff]   ;;  %v13560_v1 = vld [vmem:[#allocation4 + $0x48] sm:$0xff]   ;;  %v13564_v56 = vld [vmem:[#allocation4 + $0x40] sm:$0xff]   ;;  %p13884_p4 = por %p13883_p1, %p13882_p9 }
 0x370   : > { %12754 = vmatprep.subr.bf16.mxu0 %v13545_v54  ;;  %v13561_v49 = vld [vmem:[#allocation4 + $0xc8] sm:$0xff]   ;;  %v13565_v47 = vld [vmem:[#allocation4 + $0xc0] sm:$0xff]   ;;  %v6615_v20 = vld [vmem:[#allocation2 + $0x8] sm:$0x1] }
 0x371   : > { %v13562_v13 = vld [vmem:[#allocation4 + $0x8] sm:$0xff]   ;;  %v13566_v7 = vld [vmem:[#allocation4] sm:$0xff]   ;;  %v6681_v55 = vshll.u32 %v6615_v20, 16  ;;  %v13574_v10 = vld [vmem:[#allocation4 + $0x178] sm:$0xff]   ;;  %p13885_p6 = pnand %p13884_p4, %p13878_p5 }
 0x372   : > { %12643 = vmatpush3.bf16.msra.mxu1 %v13546_v2  ;;  %v13563_v57 = vld [vmem:[#allocation4 + $0x88] sm:$0xff]   ;;  %v13567_v0 = vld [vmem:[#allocation4 + $0x80] sm:$0xff]   ;;  %v7111_v63 = vld [vmem:[#allocation2 + $0x8] sm:$0x1] }
 0x373   : > { %12755 = vmatpush3.bf16.msra.mxu0 %v13547_v38  ;;  %12644 = vmatprep.subr.bf16.mxu1 %v13548_v41  ;;  %v6549_v31 = vld [vmem:[#allocation2] sm:$0xf]  ;;  %v6550_v22 = vld [vmem:[#allocation2 + $0x4] sm:$0xf]  ;;  %v6683_v42 = vrot.slane %v6681_v55, 5  ;;  %v7210_v48 = vrot.slane %v7111_v63, 5 }
 0x374   : > { %12756 = vmatprep.subr.bf16.mxu0 %v13549_v5  ;;  %v6613_v3 = vld [vmem:[#allocation2] sm:$0xf]  ;;  %6581 = vst [vmem:[#allocation3] sm:$0xf] %v6549_v31  ;;  %6582 = vst [vmem:[#allocation3 + $0x24] sm:$0xf] %v6550_v22 }
 0x375   : > { %v6614_v45 = vld [vmem:[#allocation2 + $0x4] sm:$0xf]  ;;  %v6662_v21 = vshrl.u32 %v6613_v3, 16  ;;  %v6665_v27 = vshll.u32 %v6613_v3, 16  ;;  %v7109_v35 = vld [vmem:[#allocation2] sm:$0xe] }
 0x376   : > { %12645 = vmatpush3.bf16.msra.mxu1 %v13550_v29  ;;  %v6671_v36 = vshll.u32 %v6614_v45, 16  ;;  %v6675_v32 = vshrl.u32 %v6614_v45, 16  ;;  %v7110_v14 = vld [vmem:[#allocation2 + $0x4] sm:$0xf]  ;;  %v11828_v24 = vrot.slane %v7109_v35, 9 }
 0x377   : > { %12757 = vmatpush3.bf16.msra.mxu0 %v13551_v39  ;;  %12646 = vmatprep.subr.bf16.mxu1 %v13552_v53  ;;  %v6664_v11 = vrot.slane %v6662_v21, 4  ;;  %v6667_v58 = vrot.slane %v6665_v27, 5  ;;  %v7381_v23 = vld [vmem:[#allocation2 + $0xc] sm:$0xf]  ;;  %v7207_v17 = vrot.slane %v7110_v14, 5  ;;  %v13575_v21 = vld [vmem:[#allocation4 + $0x138] sm:$0xff]  }
 0x378   : > { %12758 = vmatprep.subr.bf16.mxu0 %v13553_v4  ;;  %v6673_v30 = vrot.slane %v6671_v36, 5  ;;  %v6677_v37 = vrot.slane %v6675_v32, 4  ;;  %v7382_v26 = vld [vmem:[#allocation2 + $0x10] sm:$0xf]  ;;  %7413 = vst [vmem:[#allocation3 + $0xc] sm:$0xf] %v7381_v23 }
 0x379   : > { %v6668_v43 = vor.u32 %v6667_v58, %v6664_v11  ;;  %7414 = vst [vmem:[#allocation3 + $0x30] sm:$0xf] %v7382_v26  ;;  %v7208_v44 = vsel %vm14154_vm10, %v11828_v24, %v7207_v17  ;;  %v7209_v19 = vrot.slane %v7207_v17, 4  ;;  %v6551_v40 = vld [vmem:[#allocation2 + $0xc] sm:$0xf] }
 0x37a   : > { %12647 = vmatpush3.bf16.msra.mxu1 %v13554_v6  ;;  %v6678_v51 = vor.u32 %v6677_v37, %v6673_v30  ;;  %7349 = vst [vmem:[#allocation3 + $0x8] sm:$0xf] %v7208_v44  ;;  %v6552_v34 = vld [vmem:[#allocation2 + $0x10] sm:$0xf]  ;;  %6583 = vst [vmem:[#allocation3 + $0x48] sm:$0xf] %v6551_v40 }
 0x37b   : > { %12759 = vmatpush3.bf16.msra.mxu0 %v13555_v16  ;;  %12648 = vmatprep.subr.bf16.mxu1 %v13556_v61  ;;  %v6669_v8 = vrot.slane %v6668_v43, 4  ;;  %v6616_v59 = vld [vmem:[#allocation2 + $0xc] sm:$0xf]  ;;  %v7211_v60 = vsel %vm14154_vm10, %v7209_v19, %v7210_v48  ;;  %6584 = vst [vmem:[#allocation3 + $0x6c] sm:$0xf] %v6552_v34 }
 0x37c   : > { %12760 = vmatprep.subr.bf16.mxu0 %v13557_v25  ;;  %v6679_v50 = vrot.slane %v6678_v51, 4  ;;  %v6617_v62 = vld [vmem:[#allocation2 + $0x10] sm:$0xf]  ;;  %v6618_v52 = vld [vmem:[#allocation2 + $0x14] sm:$0x1]  ;;  %v6686_v33 = vshrl.u32 %v6616_v59, 16 }
 0x37d   : > { %v6674_v12 = vsel %vm14181_vm14, %v6669_v8, %v6673_v30  ;;  %v6689_v18 = vshll.u32 %v6616_v59, 16  ;;  %7350 = vst [vmem:[#allocation3 + $0x2c] sm:$0xf] %v7211_v60  ;;  %v6695_v2 = vshll.u32 %v6617_v62, 16  ;;  %v6699_v38 = vshrl.u32 %v6617_v62, 16  ;;  %v13586_v30 = vld [vmem:[#allocation4 + $0x170] sm:$0xff]  }
 0x37e   : > { %12649 = vmatpush3.bf16.msra.mxu1 %v13558_v46  ;;  %v6684_v54 = vsel %vm14181_vm14, %v6679_v50, %v6683_v42  ;;  %7077 = vst [vmem:[#allocation3 + $0x4] sm:$0xf] %v6674_v12  ;;  %v6705_v41 = vshll.u32 %v6618_v52, 16  ;;  %v7112_v5 = vld [vmem:[#allocation2 + $0xc] sm:$0xe]  ;;  %v6688_v29 = vrot.slane %v6686_v33, 4 }
 0x37f   : > { %12761 = vmatpush3.bf16.msra.mxu0 %v13559_v9  ;;  %12650 = vmatprep.subr.bf16.mxu1 %v13560_v1  ;;  %7078 = vst [vmem:[#allocation3 + $0x28] sm:$0xf] %v6684_v54  ;;  %v6691_v39 = vrot.slane %v6689_v18, 5  ;;  %v7113_v53 = vld [vmem:[#allocation2 + $0x10] sm:$0xf]  ;;  %v6697_v6 = vrot.slane %v6695_v2, 5 }
 0x380   : > { %12762 = vmatprep.subr.bf16.mxu0 %v13561_v49  ;;  %v7114_v4 = vld [vmem:[#allocation2 + $0x14] sm:$0x1]  ;;  %v6701_v16 = vrot.slane %v6699_v38, 4  ;;  %v6707_v61 = vrot.slane %v6705_v41, 5  ;;  %v11829_v25 = vrot.slane %v7112_v5, 9  ;;  %v7214_v1 = vrot.slane %v7113_v53, 5 }
 0x381   : > { %v7383_v46 = vld [vmem:[#allocation2 + $0x18] sm:$0xf]  ;;  %v6692_v9 = vor.u32 %v6691_v39, %v6688_v29  ;;  %v7217_v49 = vrot.slane %v7114_v4, 5  ;;  %v6621_v45 = vld [vmem:[#allocation2 + $0x20] sm:$0x1]  ;;  %v13587_v62 = vld [vmem:[#allocation4 + $0x130] sm:$0xff]  }
 0x382   : > { %12651 = vmatpush3.bf16.msra.mxu1 %v13562_v13  ;;  %v7384_v13 = vld [vmem:[#allocation2 + $0x1c] sm:$0xf]  ;;  %7415 = vst [vmem:[#allocation3 + $0x54] sm:$0xf] %v7383_v46  ;;  %v7215_v22 = vsel %vm14154_vm10, %v11829_v25, %v7214_v1  ;;  %v7216_v3 = vrot.slane %v7214_v1, 4  ;;  %v6729_v63 = vshll.u32 %v6621_v45, 16 }
 0x383   : > { %12763 = vmatpush3.bf16.msra.mxu0 %v13563_v57  ;;  %12652 = vmatprep.subr.bf16.mxu1 %v13564_v56  ;;  %v6553_v57 = vld [vmem:[#allocation2 + $0x18] sm:$0xf]  ;;  %v6702_v56 = vor.u32 %v6701_v16, %v6697_v6  ;;  %7416 = vst [vmem:[#allocation3 + $0x78] sm:$0xf] %v7384_v13  ;;  %v6693_v31 = vrot.slane %v6692_v9, 4  ;;  %v13598_v54 = vld [vmem:[#allocation4 + $0x168] sm:$0xff]  }
 0x384   : > { %12764 = vmatprep.subr.bf16.mxu0 %v13565_v47  ;;  %v6554_v47 = vld [vmem:[#allocation2 + $0x1c] sm:$0xf]  ;;  %6585 = vst [vmem:[#allocation3 + $0x90] sm:$0xf] %v6553_v57  ;;  %7351 = vst [vmem:[#allocation3 + $0x50] sm:$0xf] %v7215_v22  ;;  %v7218_v58 = vsel %vm14154_vm10, %v7216_v3, %v7217_v49 }
 0x385   : > { %6586 = vst [vmem:[#allocation3 + $0xb4] sm:$0xf] %v6554_v47  ;;  %v6703_v27 = vrot.slane %v6702_v56, 4  ;;  %v7115_v35 = vld [vmem:[#allocation2 + $0x18] sm:$0xe]  ;;  %v6698_v11 = vsel %vm14181_vm14, %v6693_v31, %v6697_v6  ;;  %v6731_v26 = vrot.slane %v6729_v63, 5 }
 0x386   : > { %12653 = vmatpush3.bf16.msra.mxu1 %v13566_v7  ;;  %v6619_v7 = vld [vmem:[#allocation2 + $0x18] sm:$0xf]  ;;  %v13570_v42 = vld [vmem:[#allocation3 + $0x4] ss:$36 sps:$4 sm:$0xff]   ;;  %7079 = vst [vmem:[#allocation3 + $0x4c] sm:$0xf] %v6698_v11 }
 0x387   : > { %12765 = vmatpush3.bf16.msra.mxu0 %v13567_v0  ;;  %12862 = vmatprep.subr.bf16.mxu1 %v13574_v10  ;;  %v6620_v0 = vld [vmem:[#allocation2 + $0x1c] sm:$0xf]  ;;  %v6710_v20 = vshrl.u32 %v6619_v7, 16  ;;  %v6713_v36 = vshll.u32 %v6619_v7, 16  ;;  %v13571_v10 = vld [vmem:[#allocation3 + $0x8] ss:$36 sps:$4 sm:$0xff]   ;;  %v6708_v24 = vsel %vm14181_vm14, %v6703_v27, %v6707_v61 }
 0x388   : > { %v6719_v32 = vshll.u32 %v6620_v0, 16  ;;  %v6723_v55 = vshrl.u32 %v6620_v0, 16  ;;  %v13568_v37 = vld [vmem:[#allocation3] ss:$36 sps:$4 sm:$0xff]   ;;  %7352 = vst [vmem:[#allocation3 + $0x74] sm:$0xf] %v7218_v58  ;;  %10405 = vmatprep.mubr.bf16.mxu1 %v13570_v42 }
 0x389   : > { %v6712_v14 = vrot.slane %v6710_v20, 4  ;;  %v6715_v23 = vrot.slane %v6713_v36, 5  ;;  %v13573_v43 = vld [vmem:[#allocation3 + $0xc] ss:$36 sps:$4 sm:$0xff]   ;;  %7080 = vst [vmem:[#allocation3 + $0x70] sm:$0xf] %v6708_v24  ;;  %10406 = vmatmul.mubr.bf16.vlgmr.msra.gmra.mxu1 %v13568_v37 }
 0x38a   : > { %v6721_v17 = vrot.slane %v6719_v32, 5  ;;  %v6725_v48 = vrot.slane %v6723_v55, 4  ;;  %v11830_v51 = vrot.slane %v7115_v35, 9  ;;  %v7116_v44 = vld [vmem:[#allocation2 + $0x1c] sm:$0xf]  ;;  %10566 = vmatprep.mubr.bf16.mxu0 %v13573_v43  ;;  %12863 = vmatpush3.bf16.msra.mxu1 %v13575_v21  ;;  %v13599_v29 = vld [vmem:[#allocation4 + $0x128] sm:$0xff]  }
 0x38b   : > { %v6716_v8 = vor.u32 %v6715_v23, %v6712_v14  ;;  %v7117_v19 = vld [vmem:[#allocation2 + $0x20] sm:$0x1]  ;;  %v7385_v40 = vld [vmem:[#allocation2 + $0x24] sm:$0xf]  ;;  %v7221_v34 = vrot.slane %v7116_v44, 5  ;;  %10567 = vmatmul.mubr.bf16.vlgmr.msra.gmra.mxu0 %v13571_v10  ;;  %12864 = vmatprep.subr.bf16.mxu1 %v13586_v30  ;;  %v13610_v25 = vld [vmem:[#allocation4 + $0x160] sm:$0xff]  }
 0x38c   : > { %v6726_v50 = vor.u32 %v6725_v48, %v6721_v17  ;;  %v7224_v59 = vrot.slane %v7117_v19, 5  ;;  %v7386_v12 = vld [vmem:[#allocation2 + $0x28] sm:$0xf]  ;;  %7417 = vst [vmem:[#allocation3 + $0x9c] sm:$0xf] %v7385_v40  ;;  %v13611_v3 = vld [vmem:[#allocation4 + $0x120] sm:$0xff]  }
 0x38d   : > { %v6717_v60 = vrot.slane %v6716_v8, 4  ;;  %7418 = vst [vmem:[#allocation3 + $0xc0] sm:$0xf] %v7386_v12  ;;  %v7222_v33 = vsel %vm14154_vm10, %v11830_v51, %v7221_v34  ;;  %v7223_v18 = vrot.slane %v7221_v34, 4  ;;  %v6555_v38 = vld [vmem:[#allocation2 + $0x24] sm:$0xf] }
 0x38e   : > { %v6727_v52 = vrot.slane %v6726_v50, 4  ;;  %7353 = vst [vmem:[#allocation3 + $0x98] sm:$0xf] %v7222_v33  ;;  %v6556_v41 = vld [vmem:[#allocation2 + $0x28] sm:$0xf]  ;;  %v9055_v39 = vld [vmem:[#allocation3 + $0x48] sm:$0xff]  ;;  %12865 = vmatpush3.bf16.msra.mxu1 %v13587_v62 }
 0x38f   : > { %v6722_v2 = vsel %vm14181_vm14, %v6717_v60, %v6721_v17  ;;  %v6622_v5 = vld [vmem:[#allocation2 + $0x24] sm:$0xf]  ;;  %v13578_v53 = vld [vmem:[#allocation3 + $0x54] ss:$36 sps:$4 sm:$0xff]   ;;  %v7225_v6 = vsel %vm14154_vm10, %v7223_v18, %v7224_v59  ;;  %6587 = vst [vmem:[#allocation3 + $0xd8] sm:$0xf] %v6555_v38  ;;  %12866 = vmatprep.subr.bf16.mxu1 %v13598_v54 }
 0x390   : > { %v6732_v4 = vsel %vm14181_vm14, %v6727_v52, %v6731_v26  ;;  %7081 = vst [vmem:[#allocation3 + $0x94] sm:$0xf] %v6722_v2  ;;  %6588 = vst [vmem:[#allocation3 + $0xfc] sm:$0xf] %v6556_v41  ;;  %v6734_v16 = vshrl.u32 %v6622_v5, 16  ;;  %v6737_v61 = vshll.u32 %v6622_v5, 16  ;;  %10574 = vmatprep.mubr.bf16.mxu0 %v13578_v53 }
 0x391   : > { %v9060_v46 = vld [vmem:[#allocation3 + $0x6c] sm:$0xff]  ;;  %7082 = vst [vmem:[#allocation3 + $0xb8] sm:$0xf] %v6732_v4  ;;  %7354 = vst [vmem:[#allocation3 + $0xbc] sm:$0xf] %v7225_v6  ;;  %v13617_v36 = vld [vmem:[#allocation4 + $0x1f8] sm:$0xff]  }
 0x392   : > { %v13576_v9 = vld [vmem:[#allocation3 + $0x4c] ss:$36 sps:$4 sm:$0xff]   ;;  %v11885_v49 = vcombine.low %v9055_v39, %v9060_v46  ;;  %v6624_v57 = vld [vmem:[#allocation2 + $0x2c] sm:$0x1]  ;;  %v6736_v56 = vrot.slane %v6734_v16, 4  ;;  %v6739_v47 = vrot.slane %v6737_v61, 5  ;;  %12867 = vmatpush3.bf16.msra.mxu1 %v13599_v29  ;;  %12974 = vmatprep.subr.bf16.mxu0 %v13617_v36 }
 0x393   : > { %v13580_v1 = vld [vmem:[#allocation3 + $0x50] ss:$36 sps:$4 sm:$0xff]   ;;  %10413 = vmatprep.mubr.bf16.mxu1 %v13576_v9  ;;  %v6753_v31 = vshll.u32 %v6624_v57, 16  ;;  %v7118_v22 = vld [vmem:[#allocation2 + $0x24] sm:$0xe]  ;;  %12868 = vmatprep.subr.bf16.mxu1 %v13610_v25  ;;  %v13618_v30 = vld [vmem:[#allocation4 + $0x1b8] sm:$0xff]  }
 0x394   : > { %v6623_v13 = vld [vmem:[#allocation2 + $0x28] sm:$0xf]  ;;  %10414 = vmatmul.mubr.bf16.gmra.mxu1 %v11885_v49  ;;  %v6740_v45 = vor.u32 %v6739_v47, %v6736_v56  ;;  %v7120_v21 = vld [vmem:[#allocation2 + $0x2c] sm:$0x1]  ;;  %v11831_v27 = vrot.slane %v7118_v22, 9  ;;  %10575 = vmatmul.mubr.bf16.gmra.mxu0 %v13580_v1  ;;  %v13624_v34 = vld [vmem:[#allocation4 + $0x158] sm:$0xff]  }
 0x395   : > { %v6743_v7 = vshll.u32 %v6623_v13, 16  ;;  %v6747_v0 = vshrl.u32 %v6623_v13, 16  ;;  %v7119_v20 = vld [vmem:[#allocation2 + $0x28] sm:$0xf]  ;;  %v6755_v35 = vrot.slane %v6753_v31, 5  ;;  %v7231_v14 = vrot.slane %v7120_v21, 5  ;;  %12975 = vmatpush3.bf16.msra.mxu0 %v13618_v30 }
 0x396   : > { %v7228_v10 = vrot.slane %v7119_v20, 5  ;;  %v7387_v11 = vld [vmem:[#allocation2 + $0x30] sm:$0xf]  ;;  %v6741_v58 = vrot.slane %v6740_v45, 4  ;;  %v7388_v63 = vld [vmem:[#allocation2 + $0x34] sm:$0xf]  ;;  %12869 = vmatpush3.bf16.msra.mxu1 %v13611_v3 }
 0x397   : > { %v6745_v32 = vrot.slane %v6743_v7, 5  ;;  %v6749_v55 = vrot.slane %v6747_v0, 4  ;;  %7419 = vst [vmem:[#allocation3 + $0xe4] sm:$0xf] %v7387_v11  ;;  %v9065_v37 = vld [vmem:[#allocation3 + $0x90] sm:$0xff]  ;;  %12870 = vmatprep.subr.bf16.mxu1 %v13624_v34  ;;  %v13625_v2 = vld [vmem:[#allocation4 + $0x118] sm:$0xff]  }
 0x398   : > { %v7229_v24 = vsel %vm14154_vm10, %v11831_v27, %v7228_v10  ;;  %v7230_v23 = vrot.slane %v7228_v10, 4  ;;  %7420 = vst [vmem:[#allocation3 + $0x108] sm:$0xf] %v7388_v63  ;;  %v6557_v43 = vld [vmem:[#allocation2 + $0x30] sm:$0xf]  ;;  %v13631_v21 = vld [vmem:[#allocation4 + $0x1f0] sm:$0xff]  }
 0x399   : > { %v6750_v42 = vor.u32 %v6749_v55, %v6745_v32  ;;  %v6558_v17 = vld [vmem:[#allocation2 + $0x34] sm:$0xf]  ;;  %v9070_v48 = vld [vmem:[#allocation3 + $0xb4] sm:$0xff]  ;;  %v6746_v51 = vsel %vm14181_vm14, %v6741_v58, %v6745_v32  ;;  %7355 = vst [vmem:[#allocation3 + $0xe0] sm:$0xf] %v7229_v24  ;;  %12976 = vmatprep.subr.bf16.mxu0 %v13631_v21 }
 0x39a   : > { %v13581_v26 = vld [vmem:[#allocation3 + $0x94] ss:$36 sps:$4 sm:$0xff]   ;;  %6589 = vst [vmem:[#allocation3 + $0x120] sm:$0xf] %v6557_v43  ;;  %6590 = vst [vmem:[#allocation3 + $0x144] sm:$0xf] %v6558_v17  ;;  %v11894_v44 = vcombine.low %v9065_v37, %v9070_v48  ;;  %v7232_v50 = vsel %vm14154_vm10, %v7230_v23, %v7231_v14  ;;  %12871 = vmatpush3.bf16.msra.mxu1 %v13625_v2 }
 0x39b   : > { %v13583_v8 = vld [vmem:[#allocation3 + $0x9c] ss:$36 sps:$4 sm:$0xff]   ;;  %v6751_v40 = vrot.slane %v6750_v42, 4  ;;  %7083 = vst [vmem:[#allocation3 + $0xdc] sm:$0xf] %v6746_v51  ;;  %10421 = vmatprep.mubr.bf16.mxu1 %v13581_v26  ;;  %v13632_v23 = vld [vmem:[#allocation4 + $0x1b0] sm:$0xff]  }
 0x39c   : > { %v13585_v19 = vld [vmem:[#allocation3 + $0x98] ss:$36 sps:$4 sm:$0xff]   ;;  %7356 = vst [vmem:[#allocation3 + $0x104] sm:$0xf] %v7232_v50  ;;  %v6627_v60 = vld [vmem:[#allocation2 + $0x38] sm:$0x1]  ;;  %10582 = vmatprep.mubr.bf16.mxu0 %v13583_v8  ;;  %10422 = vmatmul.mubr.bf16.gmra.mxu1 %v11894_v44 }
 0x39d   : > { %v6625_v59 = vld [vmem:[#allocation2 + $0x30] sm:$0xf]  ;;  %v6626_v12 = vld [vmem:[#allocation2 + $0x34] sm:$0xf]  ;;  %v6756_v62 = vsel %vm14181_vm14, %v6751_v40, %v6755_v35  ;;  %v6777_v41 = vshll.u32 %v6627_v60, 16  ;;  %10583 = vmatmul.mubr.bf16.gmra.mxu0 %v13585_v19  ;;  %v13638_v60 = vld [vmem:[#allocation4 + $0x150] sm:$0xff]  }
 0x39e   : > { %v6758_v52 = vshrl.u32 %v6625_v59, 16  ;;  %v6761_v33 = vshll.u32 %v6625_v59, 16  ;;  %v6767_v18 = vshll.u32 %v6626_v12, 16  ;;  %v7121_v54 = vld [vmem:[#allocation2 + $0x30] sm:$0xe]  ;;  %v6771_v38 = vshrl.u32 %v6626_v12, 16  ;;  %12977 = vmatpush3.bf16.msra.mxu0 %v13632_v23  ;;  %12872 = vmatprep.subr.bf16.mxu1 %v13638_v60 }
 0x39f   : > { %7084 = vst [vmem:[#allocation3 + $0x100] sm:$0xf] %v6756_v62  ;;  %v7122_v5 = vld [vmem:[#allocation2 + $0x34] sm:$0xf]  ;;  %v7123_v29 = vld [vmem:[#allocation2 + $0x38] sm:$0x1] }
 0x3a0   : > { %v6760_v39 = vrot.slane %v6758_v52, 4  ;;  %v6763_v53 = vrot.slane %v6761_v33, 5  ;;  %v6769_v4 = vrot.slane %v6767_v18, 5  ;;  %v11832_v6 = vrot.slane %v7121_v54, 9  ;;  %v7389_v16 = vld [vmem:[#allocation2 + $0x3c] sm:$0xf] }
 0x3a1   : > { %v6773_v61 = vrot.slane %v6771_v38, 4  ;;  %v7235_v25 = vrot.slane %v7122_v5, 5  ;;  %v7238_v46 = vrot.slane %v7123_v29, 5  ;;  %v7390_v9 = vld [vmem:[#allocation2 + $0x40] sm:$0xf]  ;;  %v6779_v49 = vrot.slane %v6777_v41, 5 }
 0x3a2   : > { %7421 = vst [vmem:[#allocation3 + $0x12c] sm:$0xf] %v7389_v16  ;;  %v6764_v1 = vor.u32 %v6763_v53, %v6760_v39  ;;  %7422 = vst [vmem:[#allocation3 + $0x150] sm:$0xf] %v7390_v9  ;;  %v9075_v13 = vld [vmem:[#allocation3 + $0xd8] sm:$0xff] }
 0x3a3   : > { %v6774_v57 = vor.u32 %v6773_v61, %v6769_v4  ;;  %v7236_v56 = vsel %vm14154_vm10, %v11832_v6, %v7235_v25  ;;  %v7237_v47 = vrot.slane %v7235_v25, 4  ;;  %v13590_v7 = vld [vmem:[#allocation3 + $0xe4] ss:$36 sps:$4 sm:$0xff]   ;;  %v6630_v58 = vld [vmem:[#allocation2 + $0x44] sm:$0x1] }
 0x3a4   : > { %v13592_v0 = vld [vmem:[#allocation3 + $0xe0] ss:$36 sps:$4 sm:$0xff]   ;;  %v6765_v31 = vrot.slane %v6764_v1, 4  ;;  %7357 = vst [vmem:[#allocation3 + $0x128] sm:$0xf] %v7236_v56  ;;  %10590 = vmatprep.mubr.bf16.mxu0 %v13590_v7  ;;  %v6801_v42 = vshll.u32 %v6630_v58, 16 }
 0x3a5   : > { %v6775_v22 = vrot.slane %v6774_v57, 4  ;;  %v7239_v3 = vsel %vm14154_vm10, %v7237_v47, %v7238_v46  ;;  %v6559_v45 = vld [vmem:[#allocation2 + $0x3c] sm:$0xf]  ;;  %v6560_v20 = vld [vmem:[#allocation2 + $0x40] sm:$0xf]  ;;  %10591 = vmatmul.mubr.bf16.gmra.mxu0 %v13592_v0  ;;  %v13639_v47 = vld [vmem:[#allocation4 + $0x110] sm:$0xff]  }
 0x3a6   : > { %v9080_v27 = vld [vmem:[#allocation3 + $0xfc] sm:$0xff]  ;;  %v6770_v32 = vsel %vm14181_vm14, %v6765_v31, %v6769_v4  ;;  %7358 = vst [vmem:[#allocation3 + $0x14c] sm:$0xf] %v7239_v3  ;;  %6591 = vst [vmem:[#allocation3 + $0x168] sm:$0xf] %v6559_v45  ;;  %v6803_v44 = vrot.slane %v6801_v42, 5  ;;  %12873 = vmatpush3.bf16.msra.mxu1 %v13639_v47 }
 0x3a7   : > { %v13588_v36 = vld [vmem:[#allocation3 + $0xdc] ss:$36 sps:$4 sm:$0xff]   ;;  %6592 = vst [vmem:[#allocation3 + $0x18c] sm:$0xf] %v6560_v20  ;;  %v6628_v55 = vld [vmem:[#allocation2 + $0x3c] sm:$0xf]  ;;  %v11903_v35 = vcombine.low %v9075_v13, %v9080_v27  ;;  %v6780_v10 = vsel %vm14181_vm14, %v6775_v22, %v6779_v49 }
 0x3a8   : > { %7085 = vst [vmem:[#allocation3 + $0x124] sm:$0xf] %v6770_v32  ;;  %v6629_v11 = vld [vmem:[#allocation2 + $0x40] sm:$0xf]  ;;  %v6782_v14 = vshrl.u32 %v6628_v55, 16  ;;  %v6785_v63 = vshll.u32 %v6628_v55, 16  ;;  %10429 = vmatprep.mubr.bf16.mxu1 %v13588_v36 }
 0x3a9   : > { %7086 = vst [vmem:[#allocation3 + $0x148] sm:$0xf] %v6780_v10  ;;  %v6791_v30 = vshll.u32 %v6629_v11, 16  ;;  %v6795_v37 = vshrl.u32 %v6629_v11, 16  ;;  %v7124_v24 = vld [vmem:[#allocation2 + $0x3c] sm:$0xe]  ;;  %10430 = vmatmul.mubr.bf16.gmra.mxu1 %v11903_v35 }
 0x3aa   : > { %v6784_v43 = vrot.slane %v6782_v14, 4  ;;  %v6787_v17 = vrot.slane %v6785_v63, 5  ;;  %v7125_v48 = vld [vmem:[#allocation2 + $0x40] sm:$0xf]  ;;  %v7126_v26 = vld [vmem:[#allocation2 + $0x44] sm:$0x1] }
 0x3ab   : > { %v6793_v51 = vrot.slane %v6791_v30, 5  ;;  %v6797_v8 = vrot.slane %v6795_v37, 4  ;;  %v11833_v19 = vrot.slane %v7124_v24, 9  ;;  %v7391_v40 = vld [vmem:[#allocation2 + $0x48] sm:$0xf]  ;;  %v7242_v34 = vrot.slane %v7125_v48, 5 }
 0x3ac   : > { %v6788_v50 = vor.u32 %v6787_v17, %v6784_v43  ;;  %v7245_v59 = vrot.slane %v7126_v26, 5  ;;  %v7392_v12 = vld [vmem:[#allocation2 + $0x4c] sm:$0xf]  ;;  %7423 = vst [vmem:[#allocation3 + $0x174] sm:$0xf] %v7391_v40  ;;  %v13645_v36 = vld [vmem:[#allocation4 + $0x1e8] sm:$0xff]  }
 0x3ad   : > { %v6798_v62 = vor.u32 %v6797_v8, %v6793_v51  ;;  %7424 = vst [vmem:[#allocation3 + $0x198] sm:$0xf] %v7392_v12  ;;  %v6561_v52 = vld [vmem:[#allocation2 + $0x48] sm:$0xf]  ;;  %v6562_v33 = vld [vmem:[#allocation2 + $0x4c] sm:$0xf]  ;;  %v7243_v41 = vsel %vm14154_vm10, %v11833_v19, %v7242_v34  ;;  %12978 = vmatprep.subr.bf16.mxu0 %v13645_v36 }
 0x3ae   : > { %v6631_v18 = vld [vmem:[#allocation2 + $0x48] sm:$0xf]  ;;  %v13597_v2 = vld [vmem:[#allocation3 + $0x128] ss:$36 sps:$4 sm:$0xff]   ;;  %v6789_v38 = vrot.slane %v6788_v50, 4  ;;  %v7244_v39 = vrot.slane %v7242_v34, 4 }
 0x3af   : > { %v13595_v54 = vld [vmem:[#allocation3 + $0x12c] ss:$36 sps:$4 sm:$0xff]   ;;  %6593 = vst [vmem:[#allocation3 + $0x1b0] sm:$0xf] %v6561_v52  ;;  %6594 = vst [vmem:[#allocation3 + $0x1d4] sm:$0xf] %v6562_v33 }
 0x3b0   : > { %v9085_v5 = vld [vmem:[#allocation3 + $0x120] sm:$0xff]  ;;  %v6799_v29 = vrot.slane %v6798_v62, 4  ;;  %7359 = vst [vmem:[#allocation3 + $0x170] sm:$0xf] %v7243_v41  ;;  %v6632_v53 = vld [vmem:[#allocation2 + $0x4c] sm:$0xf]  ;;  %10598 = vmatprep.mubr.bf16.mxu0 %v13595_v54  ;;  %v6794_v61 = vsel %vm14181_vm14, %v6789_v38, %v6793_v51  ;;  %v7246_v49 = vsel %vm14154_vm10, %v7244_v39, %v7245_v59 }
 0x3b1   : > { %v6806_v4 = vshrl.u32 %v6631_v18, 16  ;;  %v9090_v6 = vld [vmem:[#allocation3 + $0x144] sm:$0xff]  ;;  %v6633_v25 = vld [vmem:[#allocation2 + $0x50] sm:$0x1]  ;;  %v6809_v46 = vshll.u32 %v6631_v18, 16  ;;  %10599 = vmatmul.mubr.bf16.gmra.mxu0 %v13597_v2  ;;  %v6815_v0 = vshll.u32 %v6632_v53, 16 }
 0x3b2   : > { %v13593_v16 = vld [vmem:[#allocation3 + $0x124] ss:$36 sps:$4 sm:$0xff]   ;;  %v11912_v9 = vcombine.low %v9085_v5, %v9090_v6  ;;  %v6804_v1 = vsel %vm14181_vm14, %v6799_v29, %v6803_v44  ;;  %7087 = vst [vmem:[#allocation3 + $0x16c] sm:$0xf] %v6794_v61  ;;  %v7127_v57 = vld [vmem:[#allocation2 + $0x48] sm:$0xe] }
 0x3b3   : > { %v6808_v13 = vrot.slane %v6806_v4, 4  ;;  %v7128_v56 = vld [vmem:[#allocation2 + $0x4c] sm:$0xf]  ;;  %10437 = vmatprep.mubr.bf16.mxu1 %v13593_v16  ;;  %7088 = vst [vmem:[#allocation3 + $0x190] sm:$0xf] %v6804_v1  ;;  %v6811_v7 = vrot.slane %v6809_v46, 5 }
 0x3b4   : > { %7360 = vst [vmem:[#allocation3 + $0x194] sm:$0xf] %v7246_v49  ;;  %v6819_v31 = vshrl.u32 %v6632_v53, 16  ;;  %v6825_v22 = vshll.u32 %v6633_v25, 16  ;;  %v7129_v3 = vld [vmem:[#allocation2 + $0x50] sm:$0x1]  ;;  %10438 = vmatmul.mubr.bf16.gmra.mxu1 %v11912_v9 }
 0x3b5   : > { %v11834_v45 = vrot.slane %v7127_v57, 9  ;;  %v7249_v20 = vrot.slane %v7128_v56, 5  ;;  %v7252_v21 = vrot.slane %v7129_v3, 5  ;;  %v7393_v27 = vld [vmem:[#allocation2 + $0x54] sm:$0xf]  ;;  %v6812_v32 = vor.u32 %v6811_v7, %v6808_v13  ;;  %v13646_v58 = vld [vmem:[#allocation4 + $0x1a8] sm:$0xff]  }
 0x3b6   : > { %v6817_v55 = vrot.slane %v6815_v0, 5  ;;  %v6821_v35 = vrot.slane %v6819_v31, 4  ;;  %v6827_v10 = vrot.slane %v6825_v22, 5  ;;  %v7394_v11 = vld [vmem:[#allocation2 + $0x58] sm:$0xf]  ;;  %v13652_v30 = vld [vmem:[#allocation4 + $0x148] sm:$0xff]   ;;  %12979 = vmatpush3.bf16.msra.mxu0 %v13646_v58 }
 0x3b7   : > { %7425 = vst [vmem:[#allocation3 + $0x1bc] sm:$0xf] %v7393_v27  ;;  %v7250_v14 = vsel %vm14154_vm10, %v11834_v45, %v7249_v20  ;;  %v7251_v63 = vrot.slane %v7249_v20, 4  ;;  %7426 = vst [vmem:[#allocation3 + $0x1e0] sm:$0xf] %v7394_v11  ;;  %v6813_v37 = vrot.slane %v6812_v32, 4  ;;  %12874 = vmatprep.subr.bf16.mxu1 %v13652_v30 }
 0x3b8   : > { %v6822_v42 = vor.u32 %v6821_v35, %v6817_v55  ;;  %7361 = vst [vmem:[#allocation3 + $0x1b8] sm:$0xf] %v7250_v14  ;;  %v6563_v23 = vld [vmem:[#allocation2 + $0x54] sm:$0xf]  ;;  %v6564_v43 = vld [vmem:[#allocation2 + $0x58] sm:$0xf] }
 0x3b9   : > { %v7253_v24 = vsel %vm14154_vm10, %v7251_v63, %v7252_v21  ;;  %v6634_v17 = vld [vmem:[#allocation2 + $0x54] sm:$0xf]  ;;  %v9095_v48 = vld [vmem:[#allocation3 + $0x168] sm:$0xff]  ;;  %v6818_v26 = vsel %vm14181_vm14, %v6813_v37, %v6817_v55  ;;  %6595 = vst [vmem:[#allocation3 + $0x1f8] sm:$0xf] %v6563_v23  ;;  %v13659_v49 = vld [vmem:[#allocation4 + $0x1e0] sm:$0xff]  }
 0x3ba   : > { %v6823_v51 = vrot.slane %v6822_v42, 4  ;;  %7362 = vst [vmem:[#allocation3 + $0x1dc] sm:$0xf] %v7253_v24  ;;  %6596 = vst [vmem:[#allocation3 + $0x21c] sm:$0xf] %v6564_v43  ;;  %v9100_v19 = vld [vmem:[#allocation3 + $0x18c] sm:$0xff]  ;;  %12980 = vmatprep.subr.bf16.mxu0 %v13659_v49 }
 0x3bb   : > { %v6635_v8 = vld [vmem:[#allocation2 + $0x58] sm:$0xf]  ;;  %v6636_v44 = vld [vmem:[#allocation2 + $0x5c] sm:$0x1]  ;;  %v13600_v40 = vld [vmem:[#allocation3 + $0x16c] ss:$36 sps:$4 sm:$0xff]   ;;  %v11921_v12 = vcombine.low %v9095_v48, %v9100_v19 }
 0x3bc   : > { %7089 = vst [vmem:[#allocation3 + $0x1b4] sm:$0xf] %v6818_v26  ;;  %v6830_v50 = vshrl.u32 %v6634_v17, 16  ;;  %v6833_v34 = vshll.u32 %v6634_v17, 16  ;;  %v13602_v59 = vld [vmem:[#allocation3 + $0x174] ss:$36 sps:$4 sm:$0xff]   ;;  %v6828_v62 = vsel %vm14181_vm14, %v6823_v51, %v6827_v10  ;;  %10445 = vmatprep.mubr.bf16.mxu1 %v13600_v40 }
 0x3bd   : > { %v13604_v60 = vld [vmem:[#allocation3 + $0x170] ss:$36 sps:$4 sm:$0xff]   ;;  %v6839_v52 = vshll.u32 %v6635_v8, 16  ;;  %v6843_v33 = vshrl.u32 %v6635_v8, 16  ;;  %7090 = vst [vmem:[#allocation3 + $0x1d8] sm:$0xf] %v6828_v62  ;;  %10606 = vmatprep.mubr.bf16.mxu0 %v13602_v59  ;;  %10446 = vmatmul.mubr.bf16.gmra.mxu1 %v11921_v12 }
 0x3be   : > { %v6832_v18 = vrot.slane %v6830_v50, 4  ;;  %v6835_v54 = vrot.slane %v6833_v34, 5  ;;  %v6849_v2 = vshll.u32 %v6636_v44, 16  ;;  %v7130_v38 = vld [vmem:[#allocation2 + $0x54] sm:$0xe]  ;;  %v13653_v41 = vld [vmem:[#allocation4 + $0x108] sm:$0xff]   ;;  %10607 = vmatmul.mubr.bf16.gmra.mxu0 %v13604_v60 }
 0x3bf   : > { %v6841_v5 = vrot.slane %v6839_v52, 5  ;;  %v6845_v29 = vrot.slane %v6843_v33, 4  ;;  %v7131_v39 = vld [vmem:[#allocation2 + $0x58] sm:$0xf]  ;;  %v7132_v53 = vld [vmem:[#allocation2 + $0x5c] sm:$0x1]  ;;  %12875 = vmatpush3.bf16.msra.mxu1 %v13653_v41 }
 0x3c0   : > { %v6836_v4 = vor.u32 %v6835_v54, %v6832_v18  ;;  %v6851_v6 = vrot.slane %v6849_v2, 5  ;;  %v11835_v16 = vrot.slane %v7130_v38, 9  ;;  %v7256_v61 = vrot.slane %v7131_v39, 5  ;;  %v7395_v25 = vld [vmem:[#allocation2 + $0x60] sm:$0xf]  ;;  %v13660_v22 = vld [vmem:[#allocation4 + $0x1a0] sm:$0xff]  }
 0x3c1   : > { %v6846_v46 = vor.u32 %v6845_v29, %v6841_v5  ;;  %v7259_v9 = vrot.slane %v7132_v53, 5  ;;  %v7396_v1 = vld [vmem:[#allocation2 + $0x64] sm:$0xf]  ;;  %7427 = vst [vmem:[#allocation3 + $0x204] sm:$0xf] %v7395_v25  ;;  %12981 = vmatpush3.bf16.msra.mxu0 %v13660_v22 }
 0x3c2   : > { %v13607_v13 = vld [vmem:[#allocation3 + $0x1bc] ss:$36 sps:$4 sm:$0xff]   ;;  %v6837_v56 = vrot.slane %v6836_v4, 4  ;;  %v7257_v47 = vsel %vm14154_vm10, %v11835_v16, %v7256_v61  ;;  %7428 = vst [vmem:[#allocation3 + $0x228] sm:$0xf] %v7396_v1  ;;  %v7258_v31 = vrot.slane %v7256_v61, 4 }
 0x3c3   : > { %v13609_v57 = vld [vmem:[#allocation3 + $0x1b8] ss:$36 sps:$4 sm:$0xff]   ;;  %v9105_v7 = vld [vmem:[#allocation3 + $0x1b0] sm:$0xff]  ;;  %v6847_v0 = vrot.slane %v6846_v46, 4  ;;  %7363 = vst [vmem:[#allocation3 + $0x200] sm:$0xf] %v7257_v47  ;;  %10614 = vmatprep.mubr.bf16.mxu0 %v13607_v13 }
 0x3c4   : > { %v6842_v3 = vsel %vm14181_vm14, %v6837_v56, %v6841_v5  ;;  %v6565_v45 = vld [vmem:[#allocation2 + $0x60] sm:$0xf]  ;;  %v9110_v20 = vld [vmem:[#allocation3 + $0x1d4] sm:$0xff]  ;;  %v7260_v36 = vsel %vm14154_vm10, %v7258_v31, %v7259_v9  ;;  %v6566_v32 = vld [vmem:[#allocation2 + $0x64] sm:$0xf] }
 0x3c5   : > { %v13605_v21 = vld [vmem:[#allocation3 + $0x1b4] ss:$36 sps:$4 sm:$0xff]   ;;  %v6852_v27 = vsel %vm14181_vm14, %v6847_v0, %v6851_v6  ;;  %7091 = vst [vmem:[#allocation3 + $0x1fc] sm:$0xf] %v6842_v3  ;;  %6597 = vst [vmem:[#allocation3 + $0x240] sm:$0xf] %v6565_v45  ;;  %v11930_v55 = vcombine.low %v9105_v7, %v9110_v20 }
 0x3c6   : > { %7092 = vst [vmem:[#allocation3 + $0x220] sm:$0xf] %v6852_v27  ;;  %7364 = vst [vmem:[#allocation3 + $0x224] sm:$0xf] %v7260_v36  ;;  %v6637_v35 = vld [vmem:[#allocation2 + $0x60] sm:$0xf]  ;;  %10453 = vmatprep.mubr.bf16.mxu1 %v13605_v21  ;;  %10615 = vmatmul.mubr.bf16.gmra.mxu0 %v13609_v57 }
 0x3c7   : > { %6598 = vst [vmem:[#allocation3 + $0x264] sm:$0xf] %v6566_v32  ;;  %v6638_v10 = vld [vmem:[#allocation2 + $0x64] sm:$0xf]  ;;  %v6639_v11 = vld [vmem:[#allocation2 + $0x68] sm:$0x1]  ;;  %10454 = vmatmul.mubr.bf16.gmra.mxu1 %v11930_v55 }
 0x3c8   : > { %v6854_v58 = vshrl.u32 %v6637_v35, 16  ;;  %v6857_v14 = vshll.u32 %v6637_v35, 16  ;;  %v6863_v63 = vshll.u32 %v6638_v10, 16  ;;  %v6867_v30 = vshrl.u32 %v6638_v10, 16  ;;  %v7133_v37 = vld [vmem:[#allocation2 + $0x60] sm:$0xe] }
 0x3c9   : > { %v6873_v42 = vshll.u32 %v6639_v11, 16  ;;  %v7134_v24 = vld [vmem:[#allocation2 + $0x64] sm:$0xf]  ;;  %v7135_v23 = vld [vmem:[#allocation2 + $0x68] sm:$0x1]  ;;  %v11836_v43 = vrot.slane %v7133_v37, 9 }
 0x3ca   : > { %v6856_v17 = vrot.slane %v6854_v58, 4  ;;  %v6859_v48 = vrot.slane %v6857_v14, 5  ;;  %v6865_v26 = vrot.slane %v6863_v63, 5  ;;  %v6869_v51 = vrot.slane %v6867_v30, 4  ;;  %v7397_v8 = vld [vmem:[#allocation2 + $0x6c] sm:$0xf] }
 0x3cb   : > { %v6875_v44 = vrot.slane %v6873_v42, 5  ;;  %v7263_v19 = vrot.slane %v7134_v24, 5  ;;  %v7266_v40 = vrot.slane %v7135_v23, 5  ;;  %v7398_v50 = vld [vmem:[#allocation2 + $0x70] sm:$0xf]  ;;  %v13666_v27 = vld [vmem:[#allocation4 + $0x140] sm:$0xff]  }
 0x3cc   : > { %7429 = vst [vmem:[#allocation3 + $0x24c] sm:$0xf] %v7397_v8  ;;  %v6860_v34 = vor.u32 %v6859_v48, %v6856_v17  ;;  %v6870_v59 = vor.u32 %v6869_v51, %v6865_v26  ;;  %7430 = vst [vmem:[#allocation3 + $0x270] sm:$0xf] %v7398_v50  ;;  %v9115_v12 = vld [vmem:[#allocation3 + $0x1f8] sm:$0xff]  ;;  %12876 = vmatprep.subr.bf16.mxu1 %v13666_v27  ;;  %v13667_v11 = vld [vmem:[#allocation4 + $0x100] sm:$0xff]  }
 0x3cd   : > { %v7264_v60 = vsel %vm14154_vm10, %v11836_v43, %v7263_v19  ;;  %v7265_v62 = vrot.slane %v7263_v19, 4  ;;  %v6567_v52 = vld [vmem:[#allocation2 + $0x6c] sm:$0xf]  ;;  %v9120_v33 = vld [vmem:[#allocation3 + $0x21c] sm:$0xff]  ;;  %v13614_v38 = vld [vmem:[#allocation3 + $0x204] ss:$36 sps:$4 sm:$0xff]   ;;  %12877 = vmatpush3.bf16.msra.mxu1 %v13667_v11 }
 0x3ce   : > { %v13612_v18 = vld [vmem:[#allocation3 + $0x1fc] ss:$36 sps:$4 sm:$0xff]   ;;  %v6861_v54 = vrot.slane %v6860_v34, 4  ;;  %v6871_v2 = vrot.slane %v6870_v59, 4  ;;  %7365 = vst [vmem:[#allocation3 + $0x248] sm:$0xf] %v7264_v60  ;;  %v11939_v41 = vcombine.low %v9115_v12, %v9120_v33  ;;  %10622 = vmatprep.mubr.bf16.mxu0 %v13614_v38 }
 0x3cf   : > { %6599 = vst [vmem:[#allocation3 + $0x288] sm:$0xf] %v6567_v52  ;;  %v13616_v5 = vld [vmem:[#allocation3 + $0x200] ss:$36 sps:$4 sm:$0xff]   ;;  %v7267_v29 = vsel %vm14154_vm10, %v7265_v62, %v7266_v40  ;;  %v6568_v39 = vld [vmem:[#allocation2 + $0x70] sm:$0xf]  ;;  %10461 = vmatprep.mubr.bf16.mxu1 %v13612_v18 }
 0x3d0   : > { %v6866_v53 = vsel %vm14181_vm14, %v6861_v54, %v6865_v26  ;;  %v6876_v4 = vsel %vm14181_vm14, %v6871_v2, %v6875_v44  ;;  %7366 = vst [vmem:[#allocation3 + $0x26c] sm:$0xf] %v7267_v29  ;;  %6600 = vst [vmem:[#allocation3 + $0x2ac] sm:$0xf] %v6568_v39  ;;  %v6640_v6 = vld [vmem:[#allocation2 + $0x6c] sm:$0xf]  ;;  %10462 = vmatmul.mubr.bf16.gmra.mxu1 %v11939_v41  ;;  %10623 = vmatmul.mubr.bf16.gmra.mxu0 %v13616_v5 }
 0x3d1   : > { %v6641_v16 = vld [vmem:[#allocation2 + $0x70] sm:$0xf]  ;;  %v6642_v61 = vld [vmem:[#allocation2 + $0x74] sm:$0x1]  ;;  %7093 = vst [vmem:[#allocation3 + $0x244] sm:$0xf] %v6866_v53 }
 0x3d2   : > { %7094 = vst [vmem:[#allocation3 + $0x268] sm:$0xf] %v6876_v4  ;;  %v6878_v25 = vshrl.u32 %v6640_v6, 16  ;;  %v6881_v46 = vshll.u32 %v6640_v6, 16  ;;  %v6887_v9 = vshll.u32 %v6641_v16, 16  ;;  %v6891_v1 = vshrl.u32 %v6641_v16, 16 }
 0x3d3   : > { %v7136_v49 = vld [vmem:[#allocation2 + $0x6c] sm:$0xe]  ;;  %v6897_v13 = vshll.u32 %v6642_v61, 16  ;;  %v7137_v57 = vld [vmem:[#allocation2 + $0x70] sm:$0xf] }
 0x3d4   : > { %v7138_v56 = vld [vmem:[#allocation2 + $0x74] sm:$0x1]  ;;  %v11837_v47 = vrot.slane %v7136_v49, 9  ;;  %v6880_v7 = vrot.slane %v6878_v25, 4  ;;  %v6883_v0 = vrot.slane %v6881_v46, 5  ;;  %v6889_v31 = vrot.slane %v6887_v9, 5 }
 0x3d5   : > { %v6893_v22 = vrot.slane %v6891_v1, 4  ;;  %v7399_v3 = vld [vmem:[#allocation2 + $0x78] sm:$0xf]  ;;  %v7270_v45 = vrot.slane %v7137_v57, 5  ;;  %v7273_v20 = vrot.slane %v7138_v56, 5  ;;  %v6899_v55 = vrot.slane %v6897_v13, 5 }
 0x3d6   : > { %v7400_v21 = vld [vmem:[#allocation2 + $0x7c] sm:$0xf]  ;;  %7431 = vst [vmem:[#allocation3 + $0x294] sm:$0xf] %v7399_v3  ;;  %v6884_v36 = vor.u32 %v6883_v0, %v6880_v7  ;;  %v13621_v58 = vld [vmem:[#allocation3 + $0x24c] ss:$36 sps:$4 sm:$0xff]  }
 0x3d7   : > { %v6894_v32 = vor.u32 %v6893_v22, %v6889_v31  ;;  %7432 = vst [vmem:[#allocation3 + $0x2b8] sm:$0xf] %v7400_v21  ;;  %v7271_v35 = vsel %vm14154_vm10, %v11837_v47, %v7270_v45  ;;  %v7272_v10 = vrot.slane %v7270_v45, 4  ;;  %v13623_v14 = vld [vmem:[#allocation3 + $0x248] ss:$36 sps:$4 sm:$0xff]   ;;  %10630 = vmatprep.mubr.bf16.mxu0 %v13621_v58  ;;  %v13668_v62 = vld [vmem:[#allocation4 + $0x1d8] sm:$0xff]  }
 0x3d8   : > { %v6885_v63 = vrot.slane %v6884_v36, 4  ;;  %7367 = vst [vmem:[#allocation3 + $0x290] sm:$0xf] %v7271_v35  ;;  %v9125_v30 = vld [vmem:[#allocation3 + $0x240] sm:$0xff]  ;;  %10631 = vmatmul.mubr.bf16.gmra.mxu0 %v13623_v14  ;;  %v6645_v19 = vld [vmem:[#allocation2 + $0x80] sm:$0x1]  ;;  %12982 = vmatprep.subr.bf16.mxu0 %v13668_v62 }
 0x3d9   : > { %v9130_v37 = vld [vmem:[#allocation3 + $0x264] sm:$0xff]  ;;  %v6895_v24 = vrot.slane %v6894_v32, 4  ;;  %v7274_v23 = vsel %vm14154_vm10, %v7272_v10, %v7273_v20  ;;  %v6569_v48 = vld [vmem:[#allocation2 + $0x78] sm:$0xf]  ;;  %v6921_v12 = vshll.u32 %v6645_v19, 16  ;;  %v13669_v16 = vld [vmem:[#allocation4 + $0x198] sm:$0xff]  }
 0x3da   : > { %v13619_v42 = vld [vmem:[#allocation3 + $0x244] ss:$36 sps:$4 sm:$0xff]   ;;  %v11948_v43 = vcombine.low %v9125_v30, %v9130_v37  ;;  %v6890_v17 = vsel %vm14181_vm14, %v6885_v63, %v6889_v31  ;;  %7368 = vst [vmem:[#allocation3 + $0x2b4] sm:$0xf] %v7274_v23  ;;  %v6643_v51 = vld [vmem:[#allocation2 + $0x78] sm:$0xf]  ;;  %12983 = vmatpush3.bf16.msra.mxu0 %v13669_v16 }
 0x3db   : > { %v6570_v26 = vld [vmem:[#allocation2 + $0x7c] sm:$0xf]  ;;  %10469 = vmatprep.mubr.bf16.mxu1 %v13619_v42  ;;  %v6900_v8 = vsel %vm14181_vm14, %v6895_v24, %v6899_v55  ;;  %7095 = vst [vmem:[#allocation3 + $0x28c] sm:$0xf] %v6890_v17  ;;  %6601 = vst [vmem:[#allocation3 + $0x2d0] sm:$0xf] %v6569_v48 }
 0x3dc   : > { %6602 = vst [vmem:[#allocation3 + $0x2f4] sm:$0xf] %v6570_v26  ;;  %v6644_v44 = vld [vmem:[#allocation2 + $0x7c] sm:$0xf]  ;;  %v6902_v40 = vshrl.u32 %v6643_v51, 16  ;;  %v6905_v50 = vshll.u32 %v6643_v51, 16  ;;  %10470 = vmatmul.mubr.bf16.gmra.mxu1 %v11948_v43 }
 0x3dd   : > { %7096 = vst [vmem:[#allocation3 + $0x2b0] sm:$0xf] %v6900_v8  ;;  %v6911_v34 = vshll.u32 %v6644_v44, 16  ;;  %v6915_v59 = vshrl.u32 %v6644_v44, 16  ;;  %v7139_v60 = vld [vmem:[#allocation2 + $0x78] sm:$0xe] }
 0x3de   : > { %v6904_v52 = vrot.slane %v6902_v40, 4  ;;  %v6907_v33 = vrot.slane %v6905_v50, 5  ;;  %v7140_v18 = vld [vmem:[#allocation2 + $0x7c] sm:$0xf]  ;;  %v7141_v54 = vld [vmem:[#allocation2 + $0x80] sm:$0x1] }
 0x3df   : > { %v6913_v2 = vrot.slane %v6911_v34, 5  ;;  %v6917_v38 = vrot.slane %v6915_v59, 4  ;;  %v6923_v41 = vrot.slane %v6921_v12, 5  ;;  %v11838_v5 = vrot.slane %v7139_v60, 9  ;;  %v7401_v29 = vld [vmem:[#allocation2 + $0x84] sm:$0xf] }
 0x3e0   : > { %v6908_v39 = vor.u32 %v6907_v33, %v6904_v52  ;;  %v7277_v53 = vrot.slane %v7140_v18, 5  ;;  %v7280_v4 = vrot.slane %v7141_v54, 5  ;;  %v7402_v6 = vld [vmem:[#allocation2 + $0x88] sm:$0xf]  ;;  %7433 = vst [vmem:[#allocation3 + $0x2dc] sm:$0xf] %v7401_v29 }
 0x3e1   : > { %v6918_v61 = vor.u32 %v6917_v38, %v6913_v2  ;;  %7434 = vst [vmem:[#allocation3 + $0x300] sm:$0xf] %v7402_v6  ;;  %v13628_v25 = vld [vmem:[#allocation3 + $0x294] ss:$36 sps:$4 sm:$0xff]   ;;  %v6571_v31 = vld [vmem:[#allocation2 + $0x84] sm:$0xf] }
 0x3e2   : > { %v13630_v46 = vld [vmem:[#allocation3 + $0x290] ss:$36 sps:$4 sm:$0xff]   ;;  %v6909_v9 = vrot.slane %v6908_v39, 4  ;;  %v7278_v1 = vsel %vm14154_vm10, %v11838_v5, %v7277_v53  ;;  %v9135_v49 = vld [vmem:[#allocation3 + $0x288] sm:$0xff]  ;;  %v7279_v57 = vrot.slane %v7277_v53, 4  ;;  %10638 = vmatprep.mubr.bf16.mxu0 %v13628_v25 }
 0x3e3   : > { %v6919_v13 = vrot.slane %v6918_v61, 4  ;;  %7369 = vst [vmem:[#allocation3 + $0x2d8] sm:$0xf] %v7278_v1  ;;  %v13670_v56 = vld [vmem:[#allocation4 + $0x1d0] sm:$0xff]   ;;  %10639 = vmatmul.mubr.bf16.gmra.mxu0 %v13630_v46  ;;  %6603 = vst [vmem:[#allocation3 + $0x318] sm:$0xf] %v6571_v31 }
 0x3e4   : > { %v9140_v47 = vld [vmem:[#allocation3 + $0x2ac] sm:$0xff]  ;;  %v6914_v0 = vsel %vm14181_vm14, %v6909_v9, %v6913_v2  ;;  %v7281_v45 = vsel %vm14154_vm10, %v7279_v57, %v7280_v4  ;;  %12984 = vmatprep.subr.bf16.mxu0 %v13670_v56  ;;  %v6648_v36 = vld [vmem:[#allocation2 + $0x8c] sm:$0x1]  ;;  %v7403_v26 = vld [vmem:[#allocation2 + $0x90] sm:$0xf] }
 0x3e5   : > { %v13626_v7 = vld [vmem:[#allocation3 + $0x28c] ss:$36 sps:$4 sm:$0xff]   ;;  %v11957_v22 = vcombine.low %v9135_v49, %v9140_v47  ;;  %v6924_v3 = vsel %vm14181_vm14, %v6919_v13, %v6923_v41  ;;  %7097 = vst [vmem:[#allocation3 + $0x2d4] sm:$0xf] %v6914_v0  ;;  %7370 = vst [vmem:[#allocation3 + $0x2fc] sm:$0xf] %v7281_v45 }
 0x3e6   : > { %v6572_v20 = vld [vmem:[#allocation2 + $0x88] sm:$0xf]  ;;  %v6646_v21 = vld [vmem:[#allocation2 + $0x84] sm:$0xf]  ;;  %10477 = vmatprep.mubr.bf16.mxu1 %v13626_v7  ;;  %7098 = vst [vmem:[#allocation3 + $0x2f8] sm:$0xf] %v6924_v3 }
 0x3e7   : > { %v6647_v27 = vld [vmem:[#allocation2 + $0x88] sm:$0xf]  ;;  %6604 = vst [vmem:[#allocation3 + $0x33c] sm:$0xf] %v6572_v20  ;;  %v6926_v32 = vshrl.u32 %v6646_v21, 16  ;;  %v6929_v55 = vshll.u32 %v6646_v21, 16  ;;  %10478 = vmatmul.mubr.bf16.gmra.mxu1 %v11957_v22 }
 0x3e8   : > { %v6935_v35 = vshll.u32 %v6647_v27, 16  ;;  %v6939_v10 = vshrl.u32 %v6647_v27, 16  ;;  %v6945_v11 = vshll.u32 %v6648_v36, 16  ;;  %v7142_v58 = vld [vmem:[#allocation2 + $0x84] sm:$0xe]  ;;  %v13675_v63 = vld [vmem:[#allocation4 + $0x190] sm:$0xff]  }
 0x3e9   : > { %v7143_v14 = vld [vmem:[#allocation2 + $0x88] sm:$0xf]  ;;  %v6928_v30 = vrot.slane %v6926_v32, 4  ;;  %v6931_v37 = vrot.slane %v6929_v55, 5  ;;  %v7144_v23 = vld [vmem:[#allocation2 + $0x8c] sm:$0x1]  ;;  %12985 = vmatpush3.bf16.msra.mxu0 %v13675_v63 }
 0x3ea   : > { %v6937_v42 = vrot.slane %v6935_v35, 5  ;;  %v6941_v24 = vrot.slane %v6939_v10, 4  ;;  %v11839_v43 = vrot.slane %v7142_v58, 9  ;;  %v7284_v17 = vrot.slane %v7143_v14, 5  ;;  %v7404_v19 = vld [vmem:[#allocation2 + $0x94] sm:$0xf] }
 0x3eb   : > { %v7287_v48 = vrot.slane %v7144_v23, 5  ;;  %v6932_v51 = vor.u32 %v6931_v37, %v6928_v30  ;;  %v6947_v44 = vrot.slane %v6945_v11, 5  ;;  %7435 = vst [vmem:[#allocation3 + $0x324] sm:$0xf] %v7403_v26  ;;  %7436 = vst [vmem:[#allocation3 + $0x348] sm:$0xf] %v7404_v19 }
 0x3ec   : > { %v6942_v8 = vor.u32 %v6941_v24, %v6937_v42  ;;  %v7285_v40 = vsel %vm14154_vm10, %v11839_v43, %v7284_v17  ;;  %v7286_v50 = vrot.slane %v7284_v17, 4  ;;  %v13677_v34 = vld [vmem:[#allocation4 + $0x1c8] sm:$0xff]   ;;  %v9145_v59 = vld [vmem:[#allocation3 + $0x2d0] sm:$0xff]  ;;  %v13635_v54 = vld [vmem:[#allocation3 + $0x2dc] ss:$36 sps:$4 sm:$0xff]  }
 0x3ed   : > { %v6933_v12 = vrot.slane %v6932_v51, 4  ;;  %7371 = vst [vmem:[#allocation3 + $0x320] sm:$0xf] %v7285_v40  ;;  %v13678_v62 = vld [vmem:[#allocation4 + $0x188] sm:$0xff]   ;;  %v9150_v52 = vld [vmem:[#allocation3 + $0x2f4] sm:$0xff]  ;;  %12986 = vmatprep.subr.bf16.mxu0 %v13677_v34  ;;  %10646 = vmatprep.mubr.bf16.mxu0 %v13635_v54  ;;  %v13679_v13 = vld [vmem:[#allocation4 + $0x1c0] sm:$0xff]  }
 0x3ee   : > { %v6943_v60 = vrot.slane %v6942_v8, 4  ;;  %v13633_v33 = vld [vmem:[#allocation3 + $0x2d4] ss:$36 sps:$4 sm:$0xff]   ;;  %v7288_v18 = vsel %vm14154_vm10, %v7286_v50, %v7287_v48  ;;  %v11966_v2 = vcombine.low %v9145_v59, %v9150_v52  ;;  %12987 = vmatpush3.bf16.msra.mxu0 %v13678_v62  ;;  %v6574_v39 = vld [vmem:[#allocation2 + $0x94] sm:$0xf]  ;;  %v13683_v20 = vld [vmem:[#allocation4 + $0x180] sm:$0xff]  }
 0x3ef   : > { %v13637_v38 = vld [vmem:[#allocation3 + $0x2d8] ss:$36 sps:$4 sm:$0xff]   ;;  %v6938_v41 = vsel %vm14181_vm14, %v6933_v12, %v6937_v42  ;;  %7372 = vst [vmem:[#allocation3 + $0x344] sm:$0xf] %v7288_v18  ;;  %10485 = vmatprep.mubr.bf16.mxu1 %v13633_v33  ;;  %6606 = vst [vmem:[#allocation3 + $0x384] sm:$0xf] %v6574_v39  ;;  %12988 = vmatprep.subr.bf16.mxu0 %v13679_v13 }
 0x3f0   : > { %v6948_v5 = vsel %vm14181_vm14, %v6943_v60, %v6947_v44  ;;  %v6573_v29 = vld [vmem:[#allocation2 + $0x90] sm:$0xf]  ;;  %7099 = vst [vmem:[#allocation3 + $0x31c] sm:$0xf] %v6938_v41  ;;  %v6650_v4 = vld [vmem:[#allocation2 + $0x94] sm:$0xf]  ;;  %10486 = vmatmul.mubr.bf16.gmra.mxu1 %v11966_v2  ;;  %10647 = vmatmul.mubr.bf16.gmra.mxu0 %v13637_v38 }
 0x3f1   : > { %7100 = vst [vmem:[#allocation3 + $0x340] sm:$0xf] %v6948_v5  ;;  %6605 = vst [vmem:[#allocation3 + $0x360] sm:$0xf] %v6573_v29  ;;  %v6649_v53 = vld [vmem:[#allocation2 + $0x90] sm:$0xf] }
 0x3f2   : > { %v6651_v6 = vld [vmem:[#allocation2 + $0x98] sm:$0x1]  ;;  %v6950_v16 = vshrl.u32 %v6649_v53, 16  ;;  %v6953_v61 = vshll.u32 %v6649_v53, 16  ;;  %v6959_v25 = vshll.u32 %v6650_v4, 16  ;;  %v6963_v46 = vshrl.u32 %v6650_v4, 16  ;;  %12989 = vmatpush3.bf16.msra.mxu0 %v13683_v20 }
 0x3f3   : > { %v6969_v9 = vshll.u32 %v6651_v6, 16  ;;  %v7145_v1 = vld [vmem:[#allocation2 + $0x90] sm:$0xe]  ;;  %v7146_v49 = vld [vmem:[#allocation2 + $0x94] sm:$0xf] }
 0x3f4   : > { %v6952_v57 = vrot.slane %v6950_v16, 4  ;;  %v6955_v56 = vrot.slane %v6953_v61, 5  ;;  %v6961_v47 = vrot.slane %v6959_v25, 5  ;;  %v6965_v7 = vrot.slane %v6963_v46, 4  ;;  %v7147_v0 = vld [vmem:[#allocation2 + $0x98] sm:$0x1] }
 0x3f5   : > { %v6971_v31 = vrot.slane %v6969_v9, 5  ;;  %v11840_v22 = vrot.slane %v7145_v1, 9  ;;  %v7291_v3 = vrot.slane %v7146_v49, 5  ;;  %v7294_v45 = vrot.slane %v7147_v0, 5  ;;  %v7405_v36 = vld [vmem:[#allocation2 + $0x9c] sm:$0xf] }
 0x3f6   : > { %v6956_v21 = vor.u32 %v6955_v56, %v6952_v57  ;;  %v6966_v27 = vor.u32 %v6965_v7, %v6961_v47  ;;  %v7406_v32 = vld [vmem:[#allocation2 + $0xa0] sm:$0xf]  ;;  %v13644_v35 = vld [vmem:[#allocation3 + $0x320] ss:$36 sps:$4 sm:$0xff]   ;;  %7437 = vst [vmem:[#allocation3 + $0x36c] sm:$0xf] %v7405_v36 }
 0x3f7   : > { %v13642_v55 = vld [vmem:[#allocation3 + $0x324] ss:$36 sps:$4 sm:$0xff]   ;;  %v7292_v10 = vsel %vm14154_vm10, %v11840_v22, %v7291_v3  ;;  %v7293_v11 = vrot.slane %v7291_v3, 4  ;;  %7438 = vst [vmem:[#allocation3 + $0x390] sm:$0xf] %v7406_v32  ;;  %v9155_v58 = vld [vmem:[#allocation3 + $0x318] sm:$0xff] }
 0x3f8   : > { %v9160_v14 = vld [vmem:[#allocation3 + $0x33c] sm:$0xff]  ;;  %v6957_v30 = vrot.slane %v6956_v21, 4  ;;  %v6967_v37 = vrot.slane %v6966_v27, 4  ;;  %7373 = vst [vmem:[#allocation3 + $0x368] sm:$0xf] %v7292_v10  ;;  %10654 = vmatprep.mubr.bf16.mxu0 %v13642_v55 }
 0x3f9   : > { %v13640_v63 = vld [vmem:[#allocation3 + $0x31c] ss:$36 sps:$4 sm:$0xff]   ;;  %v11975_v42 = vcombine.low %v9155_v58, %v9160_v14  ;;  %v7295_v24 = vsel %vm14154_vm10, %v7293_v11, %v7294_v45  ;;  %v6575_v17 = vld [vmem:[#allocation2 + $0x9c] sm:$0xf]  ;;  %v6576_v48 = vld [vmem:[#allocation2 + $0xa0] sm:$0xf]  ;;  %10655 = vmatmul.mubr.bf16.gmra.mxu0 %v13644_v35 }
 0x3fa   : > { %10493 = vmatprep.mubr.bf16.mxu1 %v13640_v63  ;;  %v6962_v23 = vsel %vm14181_vm14, %v6957_v30, %v6961_v47  ;;  %v6972_v43 = vsel %vm14181_vm14, %v6967_v37, %v6971_v31  ;;  %7374 = vst [vmem:[#allocation3 + $0x38c] sm:$0xf] %v7295_v24  ;;  %v6652_v26 = vld [vmem:[#allocation2 + $0x9c] sm:$0xf]  ;;  %6607 = vst [vmem:[#allocation3 + $0x3a8] sm:$0xf] %v6575_v17 }
 0x3fb   : > { %10494 = vmatmul.mubr.bf16.gmra.mxu1 %v11975_v42  ;;  %7101 = vst [vmem:[#allocation3 + $0x364] sm:$0xf] %v6962_v23  ;;  %7102 = vst [vmem:[#allocation3 + $0x388] sm:$0xf] %v6972_v43  ;;  %v6653_v51 = vld [vmem:[#allocation2 + $0xa0] sm:$0xf] }
 0x3fc   : > { %6608 = vst [vmem:[#allocation3 + $0x3cc] sm:$0xf] %v6576_v48  ;;  %v6654_v8 = vld [vmem:[#allocation2 + $0xa4] sm:$0x1]  ;;  %v6974_v44 = vshrl.u32 %v6652_v26, 16  ;;  %v6977_v19 = vshll.u32 %v6652_v26, 16 }
 0x3fd   : > { %v6983_v40 = vshll.u32 %v6653_v51, 16  ;;  %v6987_v50 = vshrl.u32 %v6653_v51, 16  ;;  %v6993_v34 = vshll.u32 %v6654_v8, 16  ;;  %v7148_v59 = vld [vmem:[#allocation2 + $0x9c] sm:$0xe]  ;;  %v15767_v12 = vld [vmem:[#allocation4 + $0x238] sm:$0xff]  }
 0x3fe   : > { %v6976_v60 = vrot.slane %v6974_v44, 4  ;;  %v6979_v62 = vrot.slane %v6977_v19, 5  ;;  %v7149_v52 = vld [vmem:[#allocation2 + $0xa0] sm:$0xf]  ;;  %v7150_v33 = vld [vmem:[#allocation2 + $0xa4] sm:$0x1]  ;;  %13158 = vmatprep.subr.bf16.mxu1 %v15767_v12 }
 0x3ff   : > { %v6985_v18 = vrot.slane %v6983_v40, 5  ;;  %v6989_v54 = vrot.slane %v6987_v50, 4  ;;  %v11841_v2 = vrot.slane %v7148_v59, 9  ;;  %v7407_v38 = vld [vmem:[#allocation2 + $0xa8] sm:$0xf]  ;;  %v6995_v5 = vrot.slane %v6993_v34, 5 }
 0x400   : > { %v6980_v41 = vor.u32 %v6979_v62, %v6976_v60  ;;  %v7298_v29 = vrot.slane %v7149_v52, 5  ;;  %v7301_v39 = vrot.slane %v7150_v33, 5  ;;  %v7408_v53 = vld [vmem:[#allocation2 + $0xac] sm:$0xf]  ;;  %7439 = vst [vmem:[#allocation3 + $0x3b4] sm:$0xf] %v7407_v38 }
 0x401   : > { %v6990_v4 = vor.u32 %v6989_v54, %v6985_v18  ;;  %7440 = vst [vmem:[#allocation3 + $0x3d8] sm:$0xf] %v7408_v53  ;;  %v13649_v6 = vld [vmem:[#allocation3 + $0x36c] ss:$36 sps:$4 sm:$0xff]   ;;  %v6578_v7 = vld [vmem:[#allocation2 + $0xac] sm:$0xf] }
 0x402   : > { %v13651_v16 = vld [vmem:[#allocation3 + $0x368] ss:$36 sps:$4 sm:$0xff]   ;;  %v6981_v61 = vrot.slane %v6980_v41, 4  ;;  %v7299_v25 = vsel %vm14154_vm10, %v11841_v2, %v7298_v29  ;;  %v9165_v46 = vld [vmem:[#allocation3 + $0x360] sm:$0xff]  ;;  %v7300_v13 = vrot.slane %v7298_v29, 4  ;;  %10662 = vmatprep.mubr.bf16.mxu0 %v13649_v6 }
 0x403   : > { %v9170_v9 = vld [vmem:[#allocation3 + $0x384] sm:$0xff]  ;;  %v6991_v49 = vrot.slane %v6990_v4, 4  ;;  %7375 = vst [vmem:[#allocation3 + $0x3b0] sm:$0xf] %v7299_v25  ;;  %v6577_v47 = vld [vmem:[#allocation2 + $0xa8] sm:$0xf]  ;;  %10663 = vmatmul.mubr.bf16.gmra.mxu0 %v13651_v16 }
 0x404   : > { %v13647_v1 = vld [vmem:[#allocation3 + $0x364] ss:$36 sps:$4 sm:$0xff]   ;;  %v11984_v57 = vcombine.low %v9165_v46, %v9170_v9  ;;  %v6986_v56 = vsel %vm14181_vm14, %v6981_v61, %v6985_v18  ;;  %v7302_v31 = vsel %vm14154_vm10, %v7300_v13, %v7301_v39  ;;  %6609 = vst [vmem:[#allocation3 + $0x3f0] sm:$0xf] %v6577_v47  ;;  %6610 = vst [vmem:[#allocation3 + $0x414] sm:$0xf] %v6578_v7 }
 0x405   : > { %10501 = vmatprep.mubr.bf16.mxu1 %v13647_v1  ;;  %v6996_v0 = vsel %vm14181_vm14, %v6991_v49, %v6995_v5  ;;  %7103 = vst [vmem:[#allocation3 + $0x3ac] sm:$0xf] %v6986_v56  ;;  %v6655_v22 = vld [vmem:[#allocation2 + $0xa8] sm:$0xf]  ;;  %v6656_v3 = vld [vmem:[#allocation2 + $0xac] sm:$0xf] }
 0x406   : > { %v6657_v45 = vld [vmem:[#allocation2 + $0xb0] sm:$0x1]  ;;  %10502 = vmatmul.mubr.bf16.gmra.mxu1 %v11984_v57  ;;  %7104 = vst [vmem:[#allocation3 + $0x3d0] sm:$0xf] %v6996_v0  ;;  %7376 = vst [vmem:[#allocation3 + $0x3d4] sm:$0xf] %v7302_v31 }
 0x407   : > { %v6998_v20 = vshrl.u32 %v6655_v22, 16  ;;  %v7001_v21 = vshll.u32 %v6655_v22, 16  ;;  %v7007_v27 = vshll.u32 %v6656_v3, 16  ;;  %v7011_v36 = vshrl.u32 %v6656_v3, 16  ;;  %v7151_v32 = vld [vmem:[#allocation2 + $0xa8] sm:$0xe] }
 0x408   : > { %v7017_v55 = vshll.u32 %v6657_v45, 16  ;;  %v7152_v35 = vld [vmem:[#allocation2 + $0xac] sm:$0xf]  ;;  %v7153_v10 = vld [vmem:[#allocation2 + $0xb0] sm:$0x1]  ;;  %v11842_v11 = vrot.slane %v7151_v32, 9 }
 0x409   : > { %v7000_v58 = vrot.slane %v6998_v20, 4  ;;  %v7003_v14 = vrot.slane %v7001_v21, 5  ;;  %v7009_v63 = vrot.slane %v7007_v27, 5  ;;  %v7013_v30 = vrot.slane %v7011_v36, 4  ;;  %v7409_v37 = vld [vmem:[#allocation2 + $0xb4] sm:$0xf] }
 0x40a   : > { %v7305_v42 = vrot.slane %v7152_v35, 5  ;;  %v7308_v24 = vrot.slane %v7153_v10, 5  ;;  %v7410_v23 = vld [vmem:[#allocation2 + $0xb8] sm:$0xf]  ;;  %7441 = vst [vmem:[#allocation3 + $0x3fc] sm:$0xf] %v7409_v37 }
 0x40b   : > { %v7004_v43 = vor.u32 %v7003_v14, %v7000_v58  ;;  %v7014_v17 = vor.u32 %v7013_v30, %v7009_v63  ;;  %v7019_v48 = vrot.slane %v7017_v55, 5  ;;  %7442 = vst [vmem:[#allocation3 + $0x420] sm:$0xf] %v7410_v23  ;;  %v13656_v59 = vld [vmem:[#allocation3 + $0x3b4] ss:$36 sps:$4 sm:$0xff]  }
 0x40c   : > { %v7306_v26 = vsel %vm14154_vm10, %v11842_v11, %v7305_v42  ;;  %v7307_v51 = vrot.slane %v7305_v42, 4  ;;  %v9175_v8 = vld [vmem:[#allocation3 + $0x3a8] sm:$0xff]  ;;  %10670 = vmatprep.mubr.bf16.mxu0 %v13656_v59  ;;  %v6579_v18 = vld [vmem:[#allocation2 + $0xb4] sm:$0xf]  ;;  %v6580_v54 = vld [vmem:[#allocation2 + $0xb8] sm:$0xf] }
 0x40d   : > { %v7005_v44 = vrot.slane %v7004_v43, 4  ;;  %v7015_v19 = vrot.slane %v7014_v17, 4  ;;  %7377 = vst [vmem:[#allocation3 + $0x3f8] sm:$0xf] %v7306_v26  ;;  %v9180_v40 = vld [vmem:[#allocation3 + $0x3cc] sm:$0xff] }
 0x40e   : > { %v13654_v50 = vld [vmem:[#allocation3 + $0x3ac] ss:$36 sps:$4 sm:$0xff]   ;;  %v7309_v34 = vsel %vm14154_vm10, %v7307_v51, %v7308_v24  ;;  %v11993_v60 = vcombine.low %v9175_v8, %v9180_v40  ;;  %6611 = vst [vmem:[#allocation3 + $0x438] sm:$0xf] %v6579_v18  ;;  %6612 = vst [vmem:[#allocation3 + $0x45c] sm:$0xf] %v6580_v54 }
 0x40f   : > { %v13658_v62 = vld [vmem:[#allocation3 + $0x3b0] ss:$36 sps:$4 sm:$0xff]   ;;  %v7010_v52 = vsel %vm14181_vm14, %v7005_v44, %v7009_v63  ;;  %v7020_v33 = vsel %vm14181_vm14, %v7015_v19, %v7019_v48  ;;  %7378 = vst [vmem:[#allocation3 + $0x41c] sm:$0xf] %v7309_v34  ;;  %10509 = vmatprep.mubr.bf16.mxu1 %v13654_v50  ;;  %v6658_v2 = vld [vmem:[#allocation2 + $0xb4] sm:$0xf] }
 0x410   : > { %7105 = vst [vmem:[#allocation3 + $0x3f4] sm:$0xf] %v7010_v52  ;;  %7106 = vst [vmem:[#allocation3 + $0x418] sm:$0xf] %v7020_v33  ;;  %10510 = vmatmul.mubr.bf16.gmra.mxu1 %v11993_v60  ;;  %10671 = vmatmul.mubr.bf16.gmra.mxu0 %v13658_v62  ;;  %v6659_v38 = vld [vmem:[#allocation2 + $0xb8] sm:$0xf] }
 0x411   : > { %v6660_v41 = vld [vmem:[#allocation2 + $0xbc] sm:$0x1]  ;;  %v7022_v5 = vshrl.u32 %v6658_v2, 16  ;;  %v7025_v29 = vshll.u32 %v6658_v2, 16  ;;  %v7031_v39 = vshll.u32 %v6659_v38, 16  ;;  %v7035_v53 = vshrl.u32 %v6659_v38, 16 }
 0x412   : > { %v7154_v4 = vld [vmem:[#allocation2 + $0xb4] sm:$0xe]  ;;  %v7041_v6 = vshll.u32 %v6660_v41, 16  ;;  %v7155_v16 = vld [vmem:[#allocation2 + $0xb8] sm:$0xf] }
 0x413   : > { %v7156_v61 = vld [vmem:[#allocation2 + $0xbc] sm:$0x1]  ;;  %v7024_v25 = vrot.slane %v7022_v5, 4  ;;  %v7027_v46 = vrot.slane %v7025_v29, 5  ;;  %v7033_v9 = vrot.slane %v7031_v39, 5  ;;  %v7037_v1 = vrot.slane %v7035_v53, 4 }
 0x414   : > { %v7411_v49 = vld [vmem:[#allocation2 + $0xc0] sm:$0xf]  ;;  %v13663_v13 = vld [vmem:[#allocation3 + $0x3fc] ss:$36 sps:$4 sm:$0xff]   ;;  %v7043_v56 = vrot.slane %v7041_v6, 5  ;;  %v11843_v3 = vrot.slane %v7154_v4, 9 }
 0x415   : > { %7443 = vst [vmem:[#allocation3 + $0x444] sm:$0xf] %v7411_v49  ;;  %v7028_v31 = vor.u32 %v7027_v46, %v7024_v25  ;;  %v7038_v22 = vor.u32 %v7037_v1, %v7033_v9  ;;  %v7312_v45 = vrot.slane %v7155_v16, 5  ;;  %10678 = vmatprep.mubr.bf16.mxu0 %v13663_v13  ;;  %v7315_v21 = vrot.slane %v7156_v61, 5  ;;  %v7412_v27 = vld [vmem:[#allocation2 + $0xc4] sm:$0xf] }
 0x416   : > { %v13665_v57 = vld [vmem:[#allocation3 + $0x3f8] ss:$36 sps:$4 sm:$0xff]   ;;  %7444 = vst [vmem:[#allocation3 + $0x468] sm:$0xf] %v7412_v27  ;;  %v7445_v14 = vld [vmem:[#allocation2 + $0xc] sm:$0xf] }
 0x417   : > { %v9185_v47 = vld [vmem:[#allocation3 + $0x3f0] sm:$0xff]  ;;  %v7029_v36 = vrot.slane %v7028_v31, 4  ;;  %v7039_v32 = vrot.slane %v7038_v22, 4  ;;  %v7313_v55 = vsel %vm14154_vm10, %v11843_v3, %v7312_v45  ;;  %v7314_v35 = vrot.slane %v7312_v45, 4  ;;  %v7446_v63 = vld [vmem:[#allocation2 + $0x10] sm:$0xf] }
 0x418   : > { %v9190_v7 = vld [vmem:[#allocation3 + $0x414] sm:$0xff]  ;;  %10679 = vmatmul.mubr.bf16.gmra.mxu0 %v13665_v57  ;;  %7379 = vst [vmem:[#allocation3 + $0x440] sm:$0xf] %v7313_v55  ;;  %v7447_v30 = vld [vmem:[#allocation2 + $0x14] sm:$0x1]  ;;  %v7494_v37 = vshrl.u32 %v7445_v14, 16 }
 0x419   : > { %v13661_v0 = vld [vmem:[#allocation3 + $0x3f4] ss:$36 sps:$4 sm:$0xff]   ;;  %v12002_v20 = vcombine.low %v9185_v47, %v9190_v7  ;;  %v7034_v10 = vsel %vm14181_vm14, %v7029_v36, %v7033_v9  ;;  %v7044_v11 = vsel %vm14181_vm14, %v7039_v32, %v7043_v56  ;;  %v7316_v58 = vsel %vm14154_vm10, %v7314_v35, %v7315_v21  ;;  %v7943_v26 = vld [vmem:[#allocation2 + $0x14] sm:$0x1]  ;;  %v8213_v18 = vld [vmem:[#allocation2 + $0x18] sm:$0xf] }
 0x41a   : > { %10517 = vmatprep.mubr.bf16.mxu1 %v13661_v0  ;;  %7107 = vst [vmem:[#allocation3 + $0x43c] sm:$0xf] %v7034_v10  ;;  %7108 = vst [vmem:[#allocation3 + $0x460] sm:$0xf] %v7044_v11  ;;  %v7497_v42 = vshll.u32 %v7445_v14, 16  ;;  %v7503_v24 = vshll.u32 %v7446_v63, 16 }
 0x41b   : > { %10518 = vmatmul.mubr.bf16.gmra.mxu1 %v12002_v20  ;;  %7380 = vst [vmem:[#allocation3 + $0x464] sm:$0xf] %v7316_v58  ;;  %v7507_v23 = vshrl.u32 %v7446_v63, 16  ;;  %v7941_v43 = vld [vmem:[#allocation2 + $0xc] sm:$0xe]  ;;  %v7513_v17 = vshll.u32 %v7447_v30, 16 }
 0x41c   : > { %v7942_v48 = vld [vmem:[#allocation2 + $0x10] sm:$0xf]  ;;  %v11844_v51 = vrot.slane %v7941_v43, 9  ;;  %v7496_v8 = vrot.slane %v7494_v37, 4  ;;  %v7499_v44 = vrot.slane %v7497_v42, 5  ;;  %v7505_v19 = vrot.slane %v7503_v24, 5 }
 0x41d   : > { %v7509_v40 = vrot.slane %v7507_v23, 4  ;;  %v8039_v50 = vrot.slane %v7942_v48, 5  ;;  %v8042_v34 = vrot.slane %v7943_v26, 5  ;;  %v7515_v62 = vrot.slane %v7513_v17, 5  ;;  %v8214_v54 = vld [vmem:[#allocation2 + $0x1c] sm:$0xf] }
 0x41e   : > { %v7500_v59 = vor.u32 %v7499_v44, %v7496_v8  ;;  %8245 = vst [vmem:[#allocation3 + $0x18] sm:$0xf] %v8213_v18  ;;  %8246 = vst [vmem:[#allocation3 + $0x3c] sm:$0xf] %v8214_v54  ;;  %v13673_v39 = vld [vmem:[#allocation3 + $0x444] ss:$36 sps:$4 sm:$0xff]  }
 0x41f   : > { %v7510_v60 = vor.u32 %v7509_v40, %v7505_v19  ;;  %v8040_v52 = vsel %vm14154_vm10, %v11844_v51, %v8039_v50  ;;  %v8041_v33 = vrot.slane %v8039_v50, 4  ;;  %v8277_v25 = vld [vmem:[#allocation2 + $0x18] sm:$0xf]  ;;  %v8278_v46 = vld [vmem:[#allocation2 + $0x1c] sm:$0xf]  ;;  %10686 = vmatprep.mubr.bf16.mxu0 %v13673_v39 }
 0x420   : > { %v7501_v5 = vrot.slane %v7500_v59, 4  ;;  %8181 = vst [vmem:[#allocation3 + $0x14] sm:$0xf] %v8040_v52  ;;  %v8279_v9 = vld [vmem:[#allocation2 + $0x20] sm:$0x1]  ;;  %v8326_v1 = vshrl.u32 %v8277_v25, 16 }
 0x421   : > { %v9195_v2 = vld [vmem:[#allocation3 + $0x438] sm:$0xff]  ;;  %v7511_v29 = vrot.slane %v7510_v60, 4  ;;  %v8043_v6 = vsel %vm14154_vm10, %v8041_v33, %v8042_v34  ;;  %v8329_v49 = vshll.u32 %v8277_v25, 16  ;;  %v8335_v13 = vshll.u32 %v8278_v46, 16  ;;  %v7448_v56 = vld [vmem:[#allocation2 + $0x18] sm:$0xf] }
 0x422   : > { %v9200_v38 = vld [vmem:[#allocation3 + $0x45c] sm:$0xff]  ;;  %v7506_v16 = vsel %vm14181_vm14, %v7501_v5, %v7505_v19  ;;  %8182 = vst [vmem:[#allocation3 + $0x38] sm:$0xf] %v8043_v6  ;;  %v8339_v57 = vshrl.u32 %v8278_v46, 16  ;;  %v8345_v47 = vshll.u32 %v8279_v9, 16  ;;  %v7518_v31 = vshrl.u32 %v7448_v56, 16 }
 0x423   : > { %v13671_v41 = vld [vmem:[#allocation3 + $0x43c] ss:$36 sps:$4 sm:$0xff]   ;;  %v12011_v53 = vcombine.low %v9195_v2, %v9200_v38  ;;  %v7516_v61 = vsel %vm14181_vm14, %v7511_v29, %v7515_v62  ;;  %7909 = vst [vmem:[#allocation3 + $0x10] sm:$0xf] %v7506_v16  ;;  %v7449_v7 = vld [vmem:[#allocation2 + $0x1c] sm:$0xf] }
 0x424   : > { %v13676_v4 = vld [vmem:[#allocation3 + $0x440] ss:$36 sps:$4 sm:$0xff]   ;;  %10525 = vmatprep.mubr.bf16.mxu1 %v13671_v41  ;;  %7910 = vst [vmem:[#allocation3 + $0x34] sm:$0xf] %v7516_v61  ;;  %v7450_v0 = vld [vmem:[#allocation2 + $0x20] sm:$0x1] }
 0x425   : > { %10526 = vmatmul.mubr.bf16.gmra.mxu1 %v12011_v53  ;;  %10687 = vmatmul.mubr.bf16.gmra.mxu0 %v13676_v4  ;;  %v8328_v22 = vrot.slane %v8326_v1, 4  ;;  %v8331_v3 = vrot.slane %v8329_v49, 5  ;;  %v8337_v45 = vrot.slane %v8335_v13, 5  ;;  %v8341_v20 = vrot.slane %v8339_v57, 4  ;;  %v7944_v21 = vld [vmem:[#allocation2 + $0x18] sm:$0xe] }
 0x426   : > { %v8347_v27 = vrot.slane %v8345_v47, 5  ;;  %v7520_v36 = vrot.slane %v7518_v31, 4  ;;  %v7521_v32 = vshll.u32 %v7448_v56, 16  ;;  %v7527_v55 = vshll.u32 %v7449_v7, 16  ;;  %v7945_v35 = vld [vmem:[#allocation2 + $0x1c] sm:$0xf] }
 0x427   : > { %v8332_v10 = vor.u32 %v8331_v3, %v8328_v22  ;;  %v8342_v11 = vor.u32 %v8341_v20, %v8337_v45  ;;  %v7531_v58 = vshrl.u32 %v7449_v7, 16  ;;  %v7537_v14 = vshll.u32 %v7450_v0, 16  ;;  %v7946_v63 = vld [vmem:[#allocation2 + $0x20] sm:$0x1]  ;;  %v8215_v30 = vld [vmem:[#allocation2 + $0x24] sm:$0xf] }
 0x428   : > { %v7523_v37 = vrot.slane %v7521_v32, 5  ;;  %v7529_v42 = vrot.slane %v7527_v55, 5  ;;  %v11845_v24 = vrot.slane %v7944_v21, 9  ;;  %v8046_v23 = vrot.slane %v7945_v35, 5  ;;  %v8216_v43 = vld [vmem:[#allocation2 + $0x28] sm:$0xf] }
 0x429   : > { %8247 = vst [vmem:[#allocation3 + $0x60] sm:$0xf] %v8215_v30  ;;  %v8333_v17 = vrot.slane %v8332_v10, 4  ;;  %v8343_v48 = vrot.slane %v8342_v11, 4  ;;  %v7533_v26 = vrot.slane %v7531_v58, 4  ;;  %v7539_v51 = vrot.slane %v7537_v14, 5 }
 0x42a   : > { %8248 = vst [vmem:[#allocation3 + $0x84] sm:$0xf] %v8216_v43  ;;  %v8280_v8 = vld [vmem:[#allocation2 + $0x24] sm:$0xf]  ;;  %v7524_v19 = vor.u32 %v7523_v37, %v7520_v36  ;;  %v8047_v40 = vsel %vm14154_vm10, %v11845_v24, %v8046_v23  ;;  %v8048_v50 = vrot.slane %v8046_v23, 4  ;;  %v8049_v34 = vrot.slane %v7946_v63, 5 }
 0x42b   : > { %v13680_v44 = vld [vmem:[#allocation3 + $0x10] ss:$36 sps:$4 sm:$0xff]   ;;  %v8338_v60 = vsel %vm14181_vm14, %v8333_v17, %v8337_v45  ;;  %v8348_v62 = vsel %vm14181_vm14, %v8343_v48, %v8347_v27  ;;  %v7534_v52 = vor.u32 %v7533_v26, %v7529_v42  ;;  %8183 = vst [vmem:[#allocation3 + $0x5c] sm:$0xf] %v8047_v40  ;;  %v8350_v38 = vshrl.u32 %v8280_v8, 16  ;;  %v13710_v45 = vld [vmem:[#allocation4 + $0x228] sm:$0xff]  }
 0x42c   : > { %v13682_v59 = vld [vmem:[#allocation3 + $0x14] ss:$36 sps:$4 sm:$0xff]   ;;  %v8281_v33 = vld [vmem:[#allocation2 + $0x28] sm:$0xf]  ;;  %8741 = vst [vmem:[#allocation3 + $0x1c] sm:$0xf] %v8338_v60  ;;  %v8050_v2 = vsel %vm14154_vm10, %v8048_v50, %v8049_v34 }
 0x42d   : > { %v8282_v18 = vld [vmem:[#allocation2 + $0x2c] sm:$0x1]  ;;  %8742 = vst [vmem:[#allocation3 + $0x40] sm:$0xf] %v8348_v62  ;;  %v7525_v54 = vrot.slane %v7524_v19, 4  ;;  %v8353_v41 = vshll.u32 %v8280_v8, 16  ;;  %10727 = vmatprep.mubr.bf16.mxu1 %v13682_v59 }
 0x42e   : > { %v7451_v5 = vld [vmem:[#allocation2 + $0x24] sm:$0xf]  ;;  %v13697_v29 = vld [vmem:[#allocation4 + $0x230] sm:$0xff]   ;;  %v7535_v39 = vrot.slane %v7534_v52, 4  ;;  %8184 = vst [vmem:[#allocation3 + $0x80] sm:$0xf] %v8050_v2  ;;  %10728 = vmatmul.mubr.bf16.vlgmr.msra.gmra.mxu1 %v13680_v44 }
 0x42f   : > { %v8359_v53 = vshll.u32 %v8281_v33, 16  ;;  %v8363_v4 = vshrl.u32 %v8281_v33, 16  ;;  %v8369_v6 = vshll.u32 %v8282_v18, 16  ;;  %v7452_v16 = vld [vmem:[#allocation2 + $0x28] sm:$0xf]  ;;  %v7530_v61 = vsel %vm14181_vm14, %v7525_v54, %v7529_v42  ;;  %13159 = vmatpush3.bf16.msra.mxu1 %v15767_v12  ;;  %v13723_v23 = vld [vmem:[#allocation4 + $0x220] sm:$0xff]  }
 0x430   : > { %v8352_v25 = vrot.slane %v8350_v38, 4  ;;  %v8355_v46 = vrot.slane %v8353_v41, 5  ;;  %v7453_v9 = vld [vmem:[#allocation2 + $0x2c] sm:$0x1]  ;;  %v7542_v1 = vshrl.u32 %v7451_v5, 16  ;;  %v7540_v49 = vsel %vm14181_vm14, %v7535_v39, %v7539_v51  ;;  %13160 = vmatprep.subr.bf16.mxu1 %v13697_v29  ;;  %v13736_v2 = vld [vmem:[#allocation4 + $0x218] sm:$0xff]  }
 0x431   : > { %7911 = vst [vmem:[#allocation3 + $0x58] sm:$0xf] %v7530_v61  ;;  %v8361_v13 = vrot.slane %v8359_v53, 5  ;;  %v8365_v57 = vrot.slane %v8363_v4, 4  ;;  %v8371_v56 = vrot.slane %v8369_v6, 5  ;;  %v7545_v31 = vshll.u32 %v7451_v5, 16 }
 0x432   : > { %v7947_v47 = vld [vmem:[#allocation2 + $0x24] sm:$0xe]  ;;  %7912 = vst [vmem:[#allocation3 + $0x7c] sm:$0xf] %v7540_v49  ;;  %v8356_v7 = vor.u32 %v8355_v46, %v8352_v25  ;;  %v7544_v0 = vrot.slane %v7542_v1, 4  ;;  %v7551_v22 = vshll.u32 %v7452_v16, 16 }
 0x433   : > { %v7948_v3 = vld [vmem:[#allocation2 + $0x28] sm:$0xf]  ;;  %v8366_v20 = vor.u32 %v8365_v57, %v8361_v13  ;;  %v7555_v21 = vshrl.u32 %v7452_v16, 16  ;;  %v7561_v27 = vshll.u32 %v7453_v9, 16  ;;  %v7949_v12 = vld [vmem:[#allocation2 + $0x2c] sm:$0x1]  ;;  %13161 = vmatpush3.bf16.msra.mxu1 %v13697_v29 }
 0x434   : > { %v11846_v36 = vrot.slane %v7947_v47, 9  ;;  %v8357_v32 = vrot.slane %v8356_v7, 4  ;;  %v7547_v55 = vrot.slane %v7545_v31, 5  ;;  %v7553_v35 = vrot.slane %v7551_v22, 5  ;;  %v13685_v11 = vld [vmem:[#allocation3 + $0x18] ss:$36 sps:$4 sm:$0xff]   ;;  %13162 = vmatprep.subr.bf16.mxu1 %v13710_v45 }
 0x435   : > { %v8053_v10 = vrot.slane %v7948_v3, 5  ;;  %v8367_v58 = vrot.slane %v8366_v20, 4  ;;  %v7557_v14 = vrot.slane %v7555_v21, 4  ;;  %v13687_v63 = vld [vmem:[#allocation3 + $0x1c] ss:$36 sps:$4 sm:$0xff]   ;;  %v7563_v42 = vrot.slane %v7561_v27, 5 }
 0x436   : > { %v8362_v30 = vsel %vm14181_vm14, %v8357_v32, %v8361_v13  ;;  %v7548_v37 = vor.u32 %v7547_v55, %v7544_v0  ;;  %v8056_v26 = vrot.slane %v7949_v12, 5  ;;  %v8217_v51 = vld [vmem:[#allocation2 + $0x30] sm:$0xf]  ;;  %v8218_v8 = vld [vmem:[#allocation2 + $0x34] sm:$0xf]  ;;  %10888 = vmatprep.mubr.bf16.mxu0 %v13687_v63  ;;  %v13749_v25 = vld [vmem:[#allocation4 + $0x210] sm:$0xff]  }
 0x437   : > { %v8054_v24 = vsel %vm14154_vm10, %v11846_v36, %v8053_v10  ;;  %v8372_v43 = vsel %vm14181_vm14, %v8367_v58, %v8371_v56  ;;  %8743 = vst [vmem:[#allocation3 + $0x64] sm:$0xf] %v8362_v30  ;;  %v7558_v17 = vor.u32 %v7557_v14, %v7553_v35  ;;  %v8055_v48 = vrot.slane %v8053_v10, 4  ;;  %8249 = vst [vmem:[#allocation3 + $0xa8] sm:$0xf] %v8217_v51  ;;  %v13762_v58 = vld [vmem:[#allocation4 + $0x208] sm:$0xff]  }
 0x438   : > { %8185 = vst [vmem:[#allocation3 + $0xa4] sm:$0xf] %v8054_v24  ;;  %8744 = vst [vmem:[#allocation3 + $0x88] sm:$0xf] %v8372_v43  ;;  %v7549_v44 = vrot.slane %v7548_v37, 4  ;;  %10889 = vmatmul.mubr.bf16.vlgmr.msra.gmra.mxu0 %v13685_v11  ;;  %13163 = vmatpush3.bf16.msra.mxu1 %v13710_v45 }
 0x439   : > { %8250 = vst [vmem:[#allocation3 + $0xcc] sm:$0xf] %v8218_v8  ;;  %v8283_v19 = vld [vmem:[#allocation2 + $0x30] sm:$0xf]  ;;  %v8284_v40 = vld [vmem:[#allocation2 + $0x34] sm:$0xf]  ;;  %v8057_v60 = vsel %vm14154_vm10, %v8055_v48, %v8056_v26  ;;  %13164 = vmatprep.subr.bf16.mxu1 %v13723_v23 }
 0x43a   : > { %v13688_v50 = vld [vmem:[#allocation3 + $0x5c] ss:$36 sps:$4 sm:$0xff]   ;;  %v7559_v59 = vrot.slane %v7558_v17, 4  ;;  %v7554_v62 = vsel %vm14181_vm14, %v7549_v44, %v7553_v35  ;;  %8186 = vst [vmem:[#allocation3 + $0xc8] sm:$0xf] %v8057_v60  ;;  %v8374_v33 = vshrl.u32 %v8283_v19, 16 }
 0x43b   : > { %v13690_v34 = vld [vmem:[#allocation3 + $0x58] ss:$36 sps:$4 sm:$0xff]   ;;  %v8285_v52 = vld [vmem:[#allocation2 + $0x38] sm:$0x1]  ;;  %v8377_v18 = vshll.u32 %v8283_v19, 16  ;;  %v8383_v54 = vshll.u32 %v8284_v40, 16  ;;  %10735 = vmatprep.mubr.bf16.mxu1 %v13688_v50 }
 0x43c   : > { %v7564_v38 = vsel %vm14181_vm14, %v7559_v59, %v7563_v42  ;;  %7913 = vst [vmem:[#allocation3 + $0xa0] sm:$0xf] %v7554_v62  ;;  %v8387_v41 = vshrl.u32 %v8284_v40, 16  ;;  %v8393_v5 = vshll.u32 %v8285_v52, 16  ;;  %v7454_v29 = vld [vmem:[#allocation2 + $0x30] sm:$0xf]  ;;  %10736 = vmatmul.mubr.bf16.gmra.mxu1 %v13690_v34 }
 0x43d   : > { %v7455_v39 = vld [vmem:[#allocation2 + $0x34] sm:$0xf]  ;;  %7914 = vst [vmem:[#allocation3 + $0xc4] sm:$0xf] %v7564_v38  ;;  %v8376_v53 = vrot.slane %v8374_v33, 4  ;;  %v8379_v4 = vrot.slane %v8377_v18, 5  ;;  %13165 = vmatpush3.bf16.msra.mxu1 %v13723_v23 }
 0x43e   : > { %v8385_v6 = vrot.slane %v8383_v54, 5  ;;  %v7456_v16 = vld [vmem:[#allocation2 + $0x38] sm:$0x1]  ;;  %v7566_v61 = vshrl.u32 %v7454_v29, 16  ;;  %v8389_v46 = vrot.slane %v8387_v41, 4  ;;  %v8395_v9 = vrot.slane %v8393_v5, 5  ;;  %13166 = vmatprep.subr.bf16.mxu1 %v13736_v2 }
 0x43f   : > { %v7569_v1 = vshll.u32 %v7454_v29, 16  ;;  %v7575_v49 = vshll.u32 %v7455_v39, 16  ;;  %v7950_v13 = vld [vmem:[#allocation2 + $0x30] sm:$0xe]  ;;  %v8380_v57 = vor.u32 %v8379_v4, %v8376_v53  ;;  %v7579_v47 = vshrl.u32 %v7455_v39, 16 }
 0x440   : > { %v7568_v56 = vrot.slane %v7566_v61, 4  ;;  %v7585_v7 = vshll.u32 %v7456_v16, 16  ;;  %v7951_v0 = vld [vmem:[#allocation2 + $0x34] sm:$0xf]  ;;  %v13691_v31 = vld [vmem:[#allocation3 + $0x64] ss:$36 sps:$4 sm:$0xff]   ;;  %v8390_v3 = vor.u32 %v8389_v46, %v8385_v6 }
 0x441   : > { %v13693_v22 = vld [vmem:[#allocation3 + $0x60] ss:$36 sps:$4 sm:$0xff]   ;;  %v7571_v45 = vrot.slane %v7569_v1, 5  ;;  %v8381_v20 = vrot.slane %v8380_v57, 4  ;;  %v7577_v21 = vrot.slane %v7575_v49, 5  ;;  %v7581_v27 = vrot.slane %v7579_v47, 4  ;;  %10896 = vmatprep.mubr.bf16.mxu0 %v13691_v31  ;;  %13167 = vmatpush3.bf16.msra.mxu1 %v13736_v2 }
 0x442   : > { %v7587_v12 = vrot.slane %v7585_v7, 5  ;;  %v7952_v36 = vld [vmem:[#allocation2 + $0x38] sm:$0x1]  ;;  %v8391_v32 = vrot.slane %v8390_v3, 4  ;;  %v11847_v35 = vrot.slane %v7950_v13, 9  ;;  %v8060_v10 = vrot.slane %v7951_v0, 5  ;;  %10897 = vmatmul.mubr.bf16.gmra.mxu0 %v13693_v22  ;;  %13168 = vmatprep.subr.bf16.mxu1 %v13749_v25 }
 0x443   : > { %v7572_v55 = vor.u32 %v7571_v45, %v7568_v56  ;;  %v8219_v11 = vld [vmem:[#allocation2 + $0x3c] sm:$0xf]  ;;  %v8386_v14 = vsel %vm14181_vm14, %v8381_v20, %v8385_v6  ;;  %v7582_v63 = vor.u32 %v7581_v27, %v7577_v21  ;;  %v8063_v30 = vrot.slane %v7952_v36, 5  ;;  %v8220_v37 = vld [vmem:[#allocation2 + $0x40] sm:$0xf] }
 0x444   : > { %8251 = vst [vmem:[#allocation3 + $0xf0] sm:$0xf] %v8219_v11  ;;  %v8286_v42 = vld [vmem:[#allocation2 + $0x3c] sm:$0xf]  ;;  %v8396_v43 = vsel %vm14181_vm14, %v8391_v32, %v8395_v9  ;;  %8745 = vst [vmem:[#allocation3 + $0xac] sm:$0xf] %v8386_v14  ;;  %v8061_v48 = vsel %vm14154_vm10, %v11847_v35, %v8060_v10 }
 0x445   : > { %v13694_v24 = vld [vmem:[#allocation3 + $0xa4] ss:$36 sps:$4 sm:$0xff]   ;;  %v7573_v17 = vrot.slane %v7572_v55, 4  ;;  %8252 = vst [vmem:[#allocation3 + $0x114] sm:$0xf] %v8220_v37  ;;  %v7583_v26 = vrot.slane %v7582_v63, 4  ;;  %13169 = vmatpush3.bf16.msra.mxu1 %v13749_v25 }
 0x446   : > { %v13696_v23 = vld [vmem:[#allocation3 + $0xa0] ss:$36 sps:$4 sm:$0xff]   ;;  %8746 = vst [vmem:[#allocation3 + $0xd0] sm:$0xf] %v8396_v43  ;;  %v8062_v51 = vrot.slane %v8060_v10, 4  ;;  %10743 = vmatprep.mubr.bf16.mxu1 %v13694_v24  ;;  %v8398_v40 = vshrl.u32 %v8286_v42, 16  ;;  %13170 = vmatprep.subr.bf16.mxu1 %v13762_v58 }
 0x447   : > { %8187 = vst [vmem:[#allocation3 + $0xec] sm:$0xf] %v8061_v48  ;;  %v8287_v8 = vld [vmem:[#allocation2 + $0x40] sm:$0xf]  ;;  %v8288_v44 = vld [vmem:[#allocation2 + $0x44] sm:$0x1]  ;;  %v7578_v19 = vsel %vm14181_vm14, %v7573_v17, %v7577_v21  ;;  %10744 = vmatmul.mubr.bf16.gmra.mxu1 %v13696_v23  ;;  %v7588_v60 = vsel %vm14181_vm14, %v7583_v26, %v7587_v12 }
 0x448   : > { %v8401_v50 = vshll.u32 %v8286_v42, 16  ;;  %v8407_v34 = vshll.u32 %v8287_v8, 16  ;;  %v7457_v59 = vld [vmem:[#allocation2 + $0x3c] sm:$0xf]  ;;  %7915 = vst [vmem:[#allocation3 + $0xe8] sm:$0xf] %v7578_v19  ;;  %v8064_v62 = vsel %vm14154_vm10, %v8062_v51, %v8063_v30 }
 0x449   : > { %v8411_v52 = vshrl.u32 %v8287_v8, 16  ;;  %v8417_v33 = vshll.u32 %v8288_v44, 16  ;;  %v7458_v18 = vld [vmem:[#allocation2 + $0x40] sm:$0xf]  ;;  %v7459_v54 = vld [vmem:[#allocation2 + $0x44] sm:$0x1]  ;;  %13171 = vmatpush3.bf16.msra.mxu1 %v13762_v58 }
 0x44a   : > { %7916 = vst [vmem:[#allocation3 + $0x10c] sm:$0xf] %v7588_v60  ;;  %8188 = vst [vmem:[#allocation3 + $0x110] sm:$0xf] %v8064_v62  ;;  %v8400_v2 = vrot.slane %v8398_v40, 4  ;;  %v8403_v38 = vrot.slane %v8401_v50, 5 }
 0x44b   : > { %v8409_v41 = vrot.slane %v8407_v34, 5  ;;  %v7590_v5 = vshrl.u32 %v7457_v59, 16  ;;  %v7953_v29 = vld [vmem:[#allocation2 + $0x3c] sm:$0xe]  ;;  %v8413_v39 = vrot.slane %v8411_v52, 4  ;;  %v8419_v53 = vrot.slane %v8417_v33, 5 }
 0x44c   : > { %v7593_v4 = vshll.u32 %v7457_v59, 16  ;;  %v7599_v6 = vshll.u32 %v7458_v18, 16  ;;  %v7954_v16 = vld [vmem:[#allocation2 + $0x40] sm:$0xf]  ;;  %v8404_v61 = vor.u32 %v8403_v38, %v8400_v2  ;;  %v7603_v46 = vshrl.u32 %v7458_v18, 16  ;;  %v13775_v36 = vld [vmem:[#allocation4 + $0x200] sm:$0xff]  }
 0x44d   : > { %v7592_v25 = vrot.slane %v7590_v5, 4  ;;  %v7609_v9 = vshll.u32 %v7459_v54, 16  ;;  %v7955_v1 = vld [vmem:[#allocation2 + $0x44] sm:$0x1]  ;;  %v8414_v49 = vor.u32 %v8413_v39, %v8409_v41  ;;  %v11848_v56 = vrot.slane %v7953_v29, 9  ;;  %13172 = vmatprep.subr.bf16.mxu1 %v13775_v36 }
 0x44e   : > { %v7595_v13 = vrot.slane %v7593_v4, 5  ;;  %v7601_v57 = vrot.slane %v7599_v6, 5  ;;  %v13698_v47 = vld [vmem:[#allocation3 + $0xac] ss:$36 sps:$4 sm:$0xff]   ;;  %v8405_v0 = vrot.slane %v8404_v61, 4  ;;  %v7605_v3 = vrot.slane %v7603_v46, 4  ;;  %13173 = vmatpush3.bf16.msra.mxu1 %v13775_v36 }
 0x44f   : > { %v13700_v7 = vld [vmem:[#allocation3 + $0xa8] ss:$36 sps:$4 sm:$0xff]   ;;  %v8415_v31 = vrot.slane %v8414_v49, 4  ;;  %v7611_v45 = vrot.slane %v7609_v9, 5  ;;  %10904 = vmatprep.mubr.bf16.mxu0 %v13698_v47  ;;  %v8067_v21 = vrot.slane %v7954_v16, 5  ;;  %v8070_v27 = vrot.slane %v7955_v1, 5 }
 0x450   : > { %v7596_v22 = vor.u32 %v7595_v13, %v7592_v25  ;;  %v8410_v20 = vsel %vm14181_vm14, %v8405_v0, %v8409_v41  ;;  %v8221_v12 = vld [vmem:[#allocation2 + $0x48] sm:$0xf]  ;;  %10905 = vmatmul.mubr.bf16.gmra.mxu0 %v13700_v7  ;;  %v7606_v11 = vor.u32 %v7605_v3, %v7601_v57  ;;  %v8222_v63 = vld [vmem:[#allocation2 + $0x4c] sm:$0xf]  ;;  %v8291_v23 = vld [vmem:[#allocation2 + $0x50] sm:$0x1] }
 0x451   : > { %v13701_v32 = vld [vmem:[#allocation3 + $0xec] ss:$36 sps:$4 sm:$0xff]   ;;  %v8420_v35 = vsel %vm14181_vm14, %v8415_v31, %v8419_v53  ;;  %8747 = vst [vmem:[#allocation3 + $0xf4] sm:$0xf] %v8410_v20  ;;  %8253 = vst [vmem:[#allocation3 + $0x138] sm:$0xf] %v8221_v12  ;;  %v8068_v58 = vsel %vm14154_vm10, %v11848_v56, %v8067_v21 }
 0x452   : > { %v13703_v55 = vld [vmem:[#allocation3 + $0xe8] ss:$36 sps:$4 sm:$0xff]   ;;  %v7597_v10 = vrot.slane %v7596_v22, 4  ;;  %8748 = vst [vmem:[#allocation3 + $0x118] sm:$0xf] %v8420_v35  ;;  %v8069_v14 = vrot.slane %v8067_v21, 4  ;;  %10751 = vmatprep.mubr.bf16.mxu1 %v13701_v32  ;;  %v12654_v21 = vpop.f32.mrf.mxu1 }
 0x453   : > { %v8289_v30 = vld [vmem:[#allocation2 + $0x48] sm:$0xf]  ;;  %v7607_v42 = vrot.slane %v7606_v11, 4  ;;  %8189 = vst [vmem:[#allocation3 + $0x134] sm:$0xf] %v8068_v58  ;;  %10752 = vmatmul.mubr.bf16.gmra.mxu1 %v13703_v55  ;;  %v8441_v40 = vshll.u32 %v8291_v23, 16  ;;  %v12766_v55 = vpop.f32.mrf.mxu0 }
 0x454   : > { %v7602_v37 = vsel %vm14181_vm14, %v7597_v10, %v7601_v57  ;;  %8254 = vst [vmem:[#allocation3 + $0x15c] sm:$0xf] %v8222_v63  ;;  %v8290_v24 = vld [vmem:[#allocation2 + $0x4c] sm:$0xf]  ;;  %v8422_v43 = vshrl.u32 %v8289_v30, 16  ;;  %v8071_v17 = vsel %vm14154_vm10, %v8069_v14, %v8070_v27  ;;  %v8425_v48 = vshll.u32 %v8289_v30, 16  ;;  %v12655_v63 = vpop.f32.mrf.mxu1 }
 0x455   : > { %7917 = vst [vmem:[#allocation3 + $0x130] sm:$0xf] %v7602_v37  ;;  %v8431_v26 = vshll.u32 %v8290_v24, 16  ;;  %v8435_v51 = vshrl.u32 %v8290_v24, 16  ;;  %v7460_v8 = vld [vmem:[#allocation2 + $0x48] sm:$0xf]  ;;  %v7612_v44 = vsel %vm14181_vm14, %v7607_v42, %v7611_v45 }
 0x456   : > { %8190 = vst [vmem:[#allocation3 + $0x158] sm:$0xf] %v8071_v17  ;;  %v8424_v19 = vrot.slane %v8422_v43, 4  ;;  %v7461_v50 = vld [vmem:[#allocation2 + $0x4c] sm:$0xf]  ;;  %v8427_v59 = vrot.slane %v8425_v48, 5  ;;  %v12767_v43 = vpop.f32.mrf.mxu0 }
 0x457   : > { %v7462_v34 = vld [vmem:[#allocation2 + $0x50] sm:$0x1]  ;;  %7918 = vst [vmem:[#allocation3 + $0x154] sm:$0xf] %v7612_v44  ;;  %v8433_v60 = vrot.slane %v8431_v26, 5  ;;  %v8437_v62 = vrot.slane %v8435_v51, 4 }
 0x458   : > { %v7614_v52 = vshrl.u32 %v7460_v8, 16  ;;  %v7956_v33 = vld [vmem:[#allocation2 + $0x48] sm:$0xe]  ;;  %v8443_v18 = vrot.slane %v8441_v40, 5  ;;  %v7617_v54 = vshll.u32 %v7460_v8, 16  ;;  %v7623_v2 = vshll.u32 %v7461_v50, 16 }
 0x459   : > { %v7627_v38 = vshrl.u32 %v7461_v50, 16  ;;  %v7957_v41 = vld [vmem:[#allocation2 + $0x4c] sm:$0xf]  ;;  %v8428_v5 = vor.u32 %v8427_v59, %v8424_v19  ;;  %v8438_v29 = vor.u32 %v8437_v62, %v8433_v60  ;;  %v7633_v53 = vshll.u32 %v7462_v34, 16  ;;  %v7958_v4 = vld [vmem:[#allocation2 + $0x50] sm:$0x1]  ;;  %v12657_v19 = vpop.f32.mrf.mxu1  ;;  %v12769_v62 = vpop.f32.mrf.mxu0 }
 0x45a   : > { %v7616_v39 = vrot.slane %v7614_v52, 4  ;;  %v13704_v6 = vld [vmem:[#allocation3 + $0xf4] ss:$36 sps:$4 sm:$0xff]   ;;  %v7619_v61 = vrot.slane %v7617_v54, 5  ;;  %v7625_v9 = vrot.slane %v7623_v2, 5  ;;  %v11849_v56 = vrot.slane %v7956_v33, 9 }
 0x45b   : > { %v13706_v16 = vld [vmem:[#allocation3 + $0xf0] ss:$36 sps:$4 sm:$0xff]   ;;  %v8429_v25 = vrot.slane %v8428_v5, 4  ;;  %v8439_v46 = vrot.slane %v8438_v29, 4  ;;  %v7629_v1 = vrot.slane %v7627_v38, 4  ;;  %10912 = vmatprep.mubr.bf16.mxu0 %v13704_v6  ;;  %v7635_v57 = vrot.slane %v7633_v53, 5  ;;  %v12658_v38 = vpop.f32.mrf.mxu1 }
 0x45c   : > { %v8223_v49 = vld [vmem:[#allocation2 + $0x54] sm:$0xf]  ;;  %v7620_v13 = vor.u32 %v7619_v61, %v7616_v39  ;;  %v8074_v47 = vrot.slane %v7957_v41, 5  ;;  %v8224_v7 = vld [vmem:[#allocation2 + $0x58] sm:$0xf]  ;;  %10913 = vmatmul.mubr.bf16.gmra.mxu0 %v13706_v16  ;;  %v8077_v3 = vrot.slane %v7958_v4, 5  ;;  %v12770_v4 = vpop.f32.mrf.mxu0 }
 0x45d   : > { %8255 = vst [vmem:[#allocation3 + $0x180] sm:$0xf] %v8223_v49  ;;  %v8434_v0 = vsel %vm14181_vm14, %v8429_v25, %v8433_v60  ;;  %v8444_v31 = vsel %vm14181_vm14, %v8439_v46, %v8443_v18  ;;  %v7630_v22 = vor.u32 %v7629_v1, %v7625_v9  ;;  %8256 = vst [vmem:[#allocation3 + $0x1a4] sm:$0xf] %v8224_v7  ;;  %v8292_v45 = vld [vmem:[#allocation2 + $0x54] sm:$0xf] }
 0x45e   : > { %v8293_v20 = vld [vmem:[#allocation2 + $0x58] sm:$0xf]  ;;  %v13707_v27 = vld [vmem:[#allocation3 + $0x134] ss:$36 sps:$4 sm:$0xff]   ;;  %8749 = vst [vmem:[#allocation3 + $0x13c] sm:$0xf] %v8434_v0  ;;  %v8075_v32 = vsel %vm14154_vm10, %v11849_v56, %v8074_v47  ;;  %v12656_v25 = vadd.f32 %v12655_v63, %v12654_v21  ;;  %v12768_v46 = vadd.f32 %v12767_v43, %v12766_v55  ;;  %v12772_v56 = vpop.f32.mrf.mxu0 }
 0x45f   : > { %v13709_v12 = vld [vmem:[#allocation3 + $0x130] ss:$36 sps:$4 sm:$0xff]   ;;  %8750 = vst [vmem:[#allocation3 + $0x160] sm:$0xf] %v8444_v31  ;;  %v7621_v36 = vrot.slane %v7620_v13, 4  ;;  %v7631_v35 = vrot.slane %v7630_v22, 4  ;;  %10759 = vmatprep.mubr.bf16.mxu1 %v13707_v27 }
 0x460   : > { %v8076_v10 = vrot.slane %v8074_v47, 4  ;;  %8191 = vst [vmem:[#allocation3 + $0x17c] sm:$0xf] %v8075_v32  ;;  %v8294_v11 = vld [vmem:[#allocation2 + $0x5c] sm:$0x1]  ;;  %v8446_v58 = vshrl.u32 %v8292_v45, 16  ;;  %10760 = vmatmul.mubr.bf16.gmra.mxu1 %v13709_v12  ;;  %v15867_v12 = vadd.f32 %v12768_v46, %v12656_v25 }
 0x461   : > { %v8449_v14 = vshll.u32 %v8292_v45, 16  ;;  %v7626_v30 = vsel %vm14181_vm14, %v7621_v36, %v7625_v9  ;;  %v8455_v37 = vshll.u32 %v8293_v20, 16  ;;  %v8459_v42 = vshrl.u32 %v8293_v20, 16  ;;  %v7463_v23 = vld [vmem:[#allocation2 + $0x54] sm:$0xf]  ;;  %v12660_v9 = vpop.f32.mrf.mxu1  ;;  %v12773_v36 = vpop.f32.mrf.mxu0 }
 0x462   : > { %v8465_v24 = vshll.u32 %v8294_v11, 16  ;;  %v7636_v17 = vsel %vm14181_vm14, %v7631_v35, %v7635_v57  ;;  %7919 = vst [vmem:[#allocation3 + $0x178] sm:$0xf] %v7626_v30  ;;  %v8078_v48 = vsel %vm14154_vm10, %v8076_v10, %v8077_v3  ;;  %v8448_v26 = vrot.slane %v8446_v58, 4  ;;  %v7464_v8 = vld [vmem:[#allocation2 + $0x58] sm:$0xf] }
 0x463   : > { %v8451_v51 = vrot.slane %v8449_v14, 5  ;;  %v7465_v44 = vld [vmem:[#allocation2 + $0x5c] sm:$0x1]  ;;  %7920 = vst [vmem:[#allocation3 + $0x19c] sm:$0xf] %v7636_v17  ;;  %v8457_v40 = vrot.slane %v8455_v37, 5  ;;  %v12661_v22 = vpop.f32.mrf.mxu1  ;;  %v12659_v11 = vadd.f32 %v12658_v38, %v12657_v19  ;;  %v15873_v43 = vpop.f32.mrf.mxu0 }
 0x464   : > { %8192 = vst [vmem:[#allocation3 + $0x1a0] sm:$0xf] %v8078_v48  ;;  %v8461_v50 = vrot.slane %v8459_v42, 4  ;;  %v8467_v34 = vrot.slane %v8465_v24, 5  ;;  %v7638_v59 = vshrl.u32 %v7463_v23, 16  ;;  %v7641_v33 = vshll.u32 %v7463_v23, 16 }
 0x465   : > { %v7959_v60 = vld [vmem:[#allocation2 + $0x54] sm:$0xe]  ;;  %v8452_v52 = vor.u32 %v8451_v51, %v8448_v26  ;;  %v7647_v18 = vshll.u32 %v7464_v8, 16  ;;  %v7651_v54 = vshrl.u32 %v7464_v8, 16  ;;  %v7960_v2 = vld [vmem:[#allocation2 + $0x58] sm:$0xf]  ;;  %v12662_v58 = vadd.f32 %v12661_v22, %v12660_v9  ;;  %v15871_v14 = vpop.f32.mrf.mxu1 }
 0x466   : > { %v8462_v41 = vor.u32 %v8461_v50, %v8457_v40  ;;  %v7640_v5 = vrot.slane %v7638_v59, 4  ;;  %v7657_v29 = vshll.u32 %v7465_v44, 16  ;;  %v7961_v39 = vld [vmem:[#allocation2 + $0x5c] sm:$0x1]  ;;  %v11850_v53 = vrot.slane %v7959_v60, 9 }
 0x467   : > { %v13711_v6 = vld [vmem:[#allocation3 + $0x13c] ss:$36 sps:$4 sm:$0xff]   ;;  %v8453_v16 = vrot.slane %v8452_v52, 4  ;;  %v7643_v61 = vrot.slane %v7641_v33, 5  ;;  %v7649_v13 = vrot.slane %v7647_v18, 5  ;;  %v7653_v57 = vrot.slane %v7651_v54, 4  ;;  %v12664_v44 = vpop.f32.mrf.mxu1 }
 0x468   : > { %v13713_v1 = vld [vmem:[#allocation3 + $0x138] ss:$36 sps:$4 sm:$0xff]   ;;  %v8463_v49 = vrot.slane %v8462_v41, 4  ;;  %10920 = vmatprep.mubr.bf16.mxu0 %v13711_v6  ;;  %v7659_v0 = vrot.slane %v7657_v29, 5  ;;  %v8081_v31 = vrot.slane %v7960_v2, 5  ;;  %v8084_v20 = vrot.slane %v7961_v39, 5 }
 0x469   : > { %v8458_v47 = vsel %vm14181_vm14, %v8453_v16, %v8457_v40  ;;  %v7644_v7 = vor.u32 %v7643_v61, %v7640_v5  ;;  %10921 = vmatmul.mubr.bf16.gmra.mxu0 %v13713_v1  ;;  %v7654_v45 = vor.u32 %v7653_v57, %v7649_v13  ;;  %v8225_v21 = vld [vmem:[#allocation2 + $0x60] sm:$0xf]  ;;  %v8226_v27 = vld [vmem:[#allocation2 + $0x64] sm:$0xf]  ;;  %v12771_v24 = vadd.f32 %v12770_v4, %v12769_v62  ;;  %v8297_v48 = vld [vmem:[#allocation2 + $0x68] sm:$0x1]  ;;  %v12776_v62 = vpop.f32.mrf.mxu0  ;;  %v12666_v38 = vpop.f32.mrf.mxu1 }
 0x46a   : > { %v8468_v3 = vsel %vm14181_vm14, %v8463_v49, %v8467_v34  ;;  %8751 = vst [vmem:[#allocation3 + $0x184] sm:$0xf] %v8458_v47  ;;  %v13716_v55 = vld [vmem:[#allocation3 + $0x178] ss:$36 sps:$4 sm:$0xff]   ;;  %v8082_v10 = vsel %vm14154_vm10, %v11850_v53, %v8081_v31  ;;  %8257 = vst [vmem:[#allocation3 + $0x1c8] sm:$0xf] %v8225_v21  ;;  %v12774_v23 = vadd.f32 %v12773_v36, %v12772_v56 }
 0x46b   : > { %v13714_v32 = vld [vmem:[#allocation3 + $0x17c] ss:$36 sps:$4 sm:$0xff]   ;;  %8752 = vst [vmem:[#allocation3 + $0x1a8] sm:$0xf] %v8468_v3  ;;  %v7645_v35 = vrot.slane %v7644_v7, 4  ;;  %v7655_v63 = vrot.slane %v7654_v45, 4  ;;  %v12778_v4 = vpop.f32.mrf.mxu0  ;;  %v12667_v9 = vpop.f32.mrf.mxu1  ;;  %v15881_v56 = vadd.f32 %v12771_v24, %v12659_v11 }
 0x46c   : > { %8258 = vst [vmem:[#allocation3 + $0x1ec] sm:$0xf] %v8226_v27  ;;  %v8083_v30 = vrot.slane %v8081_v31, 4  ;;  %8193 = vst [vmem:[#allocation3 + $0x1c4] sm:$0xf] %v8082_v10  ;;  %10767 = vmatprep.mubr.bf16.mxu1 %v13714_v32  ;;  %v8489_v34 = vshll.u32 %v8297_v48, 16  ;;  %v15883_v47 = vadd.f32 %v12774_v23, %v12662_v58 }
 0x46d   : > { %v8295_v37 = vld [vmem:[#allocation2 + $0x60] sm:$0xf]  ;;  %v8296_v42 = vld [vmem:[#allocation2 + $0x64] sm:$0xf]  ;;  %v7650_v17 = vsel %vm14181_vm14, %v7645_v35, %v7649_v13  ;;  %10768 = vmatmul.mubr.bf16.gmra.mxu1 %v13716_v55  ;;  %v7660_v19 = vsel %vm14181_vm14, %v7655_v63, %v7659_v0  ;;  %v7468_v54 = vld [vmem:[#allocation2 + $0x68] sm:$0x1]  ;;  %v12779_v7 = vpop.f32.mrf.mxu0 }
 0x46e   : > { %v8470_v26 = vshrl.u32 %v8295_v37, 16  ;;  %v8473_v51 = vshll.u32 %v8295_v37, 16  ;;  %v8479_v8 = vshll.u32 %v8296_v42, 16  ;;  %7921 = vst [vmem:[#allocation3 + $0x1c0] sm:$0xf] %v7650_v17  ;;  %v8085_v40 = vsel %vm14154_vm10, %v8083_v30, %v8084_v20  ;;  %v15885_v20 = vpop.f32.mrf.mxu1 }
 0x46f   : > { %v8483_v50 = vshrl.u32 %v8296_v42, 16  ;;  %v7466_v59 = vld [vmem:[#allocation2 + $0x60] sm:$0xf]  ;;  %v7467_v60 = vld [vmem:[#allocation2 + $0x64] sm:$0xf]  ;;  %v8491_v5 = vrot.slane %v8489_v34, 5  ;;  %v15887_v35 = vpop.f32.mrf.mxu0  ;;  %v15892_v37 = vadd.f32 %v12664_v44, %v15871_v14  ;;  %v12780_v34 = vadd.f32 %v12779_v7, %v12778_v4 }
 0x470   : > { %7922 = vst [vmem:[#allocation3 + $0x1e4] sm:$0xf] %v7660_v19  ;;  %8194 = vst [vmem:[#allocation3 + $0x1e8] sm:$0xf] %v8085_v40  ;;  %v8472_v52 = vrot.slane %v8470_v26, 4  ;;  %v8475_v33 = vrot.slane %v8473_v51, 5  ;;  %v15894_v42 = vpop.f32.mrf.mxu1  ;;  %v12777_v51 = vadd.f32 %v12776_v62, %v15873_v43 }
 0x471   : > { %v8481_v18 = vrot.slane %v8479_v8, 5  ;;  %v7662_v2 = vshrl.u32 %v7466_v59, 16  ;;  %v8485_v41 = vrot.slane %v8483_v50, 4  ;;  %v7665_v29 = vshll.u32 %v7466_v59, 16  ;;  %v7962_v53 = vld [vmem:[#allocation2 + $0x60] sm:$0xe]  ;;  %v15901_v8 = vpop.f32.mrf.mxu0 }
 0x472   : > { %v7671_v39 = vshll.u32 %v7467_v60, 16  ;;  %v8476_v6 = vor.u32 %v8475_v33, %v8472_v52  ;;  %v7675_v61 = vshrl.u32 %v7467_v60, 16  ;;  %v7681_v25 = vshll.u32 %v7468_v54, 16  ;;  %v7963_v46 = vld [vmem:[#allocation2 + $0x64] sm:$0xf] }
 0x473   : > { %v7664_v16 = vrot.slane %v7662_v2, 4  ;;  %v13717_v1 = vld [vmem:[#allocation3 + $0x184] ss:$36 sps:$4 sm:$0xff]   ;;  %v8486_v13 = vor.u32 %v8485_v41, %v8481_v18  ;;  %v7667_v57 = vrot.slane %v7665_v29, 5  ;;  %v7964_v45 = vld [vmem:[#allocation2 + $0x68] sm:$0x1]  ;;  %v12668_v50 = vadd.f32 %v12667_v9, %v12666_v38  ;;  %v15905_v54 = vpop.f32.mrf.mxu0  ;;  %v12672_v29 = vpop.f32.mrf.mxu1 }
 0x474   : > { %v13719_v49 = vld [vmem:[#allocation3 + $0x180] ss:$36 sps:$4 sm:$0xff]   ;;  %v8477_v0 = vrot.slane %v8476_v6, 4  ;;  %v7673_v31 = vrot.slane %v7671_v39, 5  ;;  %v7677_v22 = vrot.slane %v7675_v61, 4  ;;  %v7683_v3 = vrot.slane %v7681_v25, 5  ;;  %10928 = vmatprep.mubr.bf16.mxu0 %v13717_v1 }
 0x475   : > { %v8487_v21 = vrot.slane %v8486_v13, 4  ;;  %v7668_v27 = vor.u32 %v7667_v57, %v7664_v16  ;;  %v11851_v36 = vrot.slane %v7962_v53, 9  ;;  %v8088_v32 = vrot.slane %v7963_v46, 5  ;;  %v8227_v55 = vld [vmem:[#allocation2 + $0x6c] sm:$0xf]  ;;  %10929 = vmatmul.mubr.bf16.gmra.mxu0 %v13719_v49  ;;  %v12785_v61 = vpop.f32.mrf.mxu0  ;;  %v12673_v13 = vpop.f32.mrf.mxu1 }
 0x476   : > { %v8482_v10 = vsel %vm14181_vm14, %v8477_v0, %v8481_v18  ;;  %v7678_v11 = vor.u32 %v7677_v22, %v7673_v31  ;;  %v8091_v58 = vrot.slane %v7964_v45, 5  ;;  %v8228_v63 = vld [vmem:[#allocation2 + $0x70] sm:$0xf]  ;;  %8259 = vst [vmem:[#allocation3 + $0x210] sm:$0xf] %v8227_v55 }
 0x477   : > { %v8298_v30 = vld [vmem:[#allocation2 + $0x6c] sm:$0xf]  ;;  %v13720_v24 = vld [vmem:[#allocation3 + $0x1c4] ss:$36 sps:$4 sm:$0xff]   ;;  %v8492_v17 = vsel %vm14181_vm14, %v8487_v21, %v8491_v5  ;;  %8753 = vst [vmem:[#allocation3 + $0x1cc] sm:$0xf] %v8482_v10  ;;  %v8089_v26 = vsel %vm14154_vm10, %v11851_v36, %v8088_v32 }
 0x478   : > { %v13722_v23 = vld [vmem:[#allocation3 + $0x1c0] ss:$36 sps:$4 sm:$0xff]   ;;  %v7669_v48 = vrot.slane %v7668_v27, 4  ;;  %8260 = vst [vmem:[#allocation3 + $0x234] sm:$0xf] %v8228_v63  ;;  %v7679_v14 = vrot.slane %v7678_v11, 4  ;;  %10775 = vmatprep.mubr.bf16.mxu1 %v13720_v24  ;;  %v15916_v63 = vadd.f32 %v12780_v34, %v12668_v50 }
 0x479   : > { %8754 = vst [vmem:[#allocation3 + $0x1f0] sm:$0xf] %v8492_v17  ;;  %v8090_v44 = vrot.slane %v8088_v32, 4  ;;  %8195 = vst [vmem:[#allocation3 + $0x20c] sm:$0xf] %v8089_v26  ;;  %v8494_v60 = vshrl.u32 %v8298_v30, 16  ;;  %10776 = vmatmul.mubr.bf16.gmra.mxu1 %v13722_v23  ;;  %v12675_v32 = vpop.f32.mrf.mxu1 }
 0x47a   : > { %v8299_v19 = vld [vmem:[#allocation2 + $0x70] sm:$0xf]  ;;  %v8300_v40 = vld [vmem:[#allocation2 + $0x74] sm:$0x1]  ;;  %v7674_v59 = vsel %vm14181_vm14, %v7669_v48, %v7673_v31  ;;  %v8497_v52 = vshll.u32 %v8298_v30, 16  ;;  %v7684_v43 = vsel %vm14181_vm14, %v7679_v14, %v7683_v3  ;;  %v15911_v3 = vpop.f32.mrf.mxu0  ;;  %v12671_v30 = vadd.f32 %v15894_v42, %v15885_v20 }
 0x47b   : > { %v8503_v33 = vshll.u32 %v8299_v19, 16  ;;  %v7469_v18 = vld [vmem:[#allocation2 + $0x6c] sm:$0xf]  ;;  %7923 = vst [vmem:[#allocation3 + $0x208] sm:$0xf] %v7674_v59  ;;  %v8092_v62 = vsel %vm14154_vm10, %v8090_v44, %v8091_v58  ;;  %v8507_v2 = vshrl.u32 %v8299_v19, 16  ;;  %v15914_v58 = vadd.f32 %v12777_v51, %v15892_v37  ;;  %v12676_v14 = vpop.f32.mrf.mxu1 }
 0x47c   : > { %v8513_v38 = vshll.u32 %v8300_v40, 16  ;;  %v7470_v41 = vld [vmem:[#allocation2 + $0x70] sm:$0xf]  ;;  %v7471_v5 = vld [vmem:[#allocation2 + $0x74] sm:$0x1]  ;;  %v8496_v39 = vrot.slane %v8494_v60, 4  ;;  %v15920_v24 = vpop.f32.mrf.mxu0  ;;  %v12783_v51 = vadd.f32 %v15901_v8, %v15887_v35 }
 0x47d   : > { %7924 = vst [vmem:[#allocation3 + $0x22c] sm:$0xf] %v7684_v43  ;;  %8196 = vst [vmem:[#allocation3 + $0x230] sm:$0xf] %v8092_v62  ;;  %v8499_v53 = vrot.slane %v8497_v52, 5  ;;  %v8505_v4 = vrot.slane %v8503_v33, 5  ;;  %v12674_v52 = vadd.f32 %v12673_v13, %v12672_v29  ;;  %v12786_v62 = vadd.f32 %v12785_v61, %v15905_v54 }
 0x47e   : > { %v7686_v6 = vshrl.u32 %v7469_v18, 16  ;;  %v7965_v16 = vld [vmem:[#allocation2 + $0x6c] sm:$0xe]  ;;  %v8509_v25 = vrot.slane %v8507_v2, 4  ;;  %v8515_v46 = vrot.slane %v8513_v38, 5  ;;  %v7689_v9 = vshll.u32 %v7469_v18, 16  ;;  %v15926_v50 = vpop.f32.mrf.mxu0  ;;  %v12678_v2 = vpop.f32.mrf.mxu1 }
 0x47f   : > { %v7695_v1 = vshll.u32 %v7470_v41, 16  ;;  %v7966_v49 = vld [vmem:[#allocation2 + $0x70] sm:$0xf]  ;;  %v8500_v57 = vor.u32 %v8499_v53, %v8496_v39  ;;  %v7699_v0 = vshrl.u32 %v7470_v41, 16  ;;  %v7705_v31 = vshll.u32 %v7471_v5, 16 }
 0x480   : > { %v7688_v7 = vrot.slane %v7686_v6, 4  ;;  %v7967_v22 = vld [vmem:[#allocation2 + $0x74] sm:$0x1]  ;;  %v8510_v45 = vor.u32 %v8509_v25, %v8505_v4  ;;  %v7691_v21 = vrot.slane %v7689_v9, 5  ;;  %v11852_v36 = vrot.slane %v7965_v16, 9  ;;  %v12791_v38 = vpop.f32.mrf.mxu0 }
 0x481   : > { %v7697_v27 = vrot.slane %v7695_v1, 5  ;;  %v13724_v55 = vld [vmem:[#allocation3 + $0x1cc] ss:$36 sps:$4 sm:$0xff]   ;;  %v8501_v11 = vrot.slane %v8500_v57, 4  ;;  %v7701_v48 = vrot.slane %v7699_v0, 4  ;;  %v7707_v26 = vrot.slane %v7705_v31, 5 }
 0x482   : > { %v13726_v10 = vld [vmem:[#allocation3 + $0x1c8] ss:$36 sps:$4 sm:$0xff]   ;;  %v8511_v23 = vrot.slane %v8510_v45, 4  ;;  %v7692_v17 = vor.u32 %v7691_v21, %v7688_v7  ;;  %10936 = vmatprep.mubr.bf16.mxu0 %v13724_v55  ;;  %v8095_v19 = vrot.slane %v7966_v49, 5  ;;  %v8098_v40 = vrot.slane %v7967_v22, 5  ;;  %v15941_v9 = vpop.f32.mrf.mxu0 }
 0x483   : > { %v8506_v44 = vsel %vm14181_vm14, %v8501_v11, %v8505_v4  ;;  %v8229_v37 = vld [vmem:[#allocation2 + $0x78] sm:$0xf]  ;;  %10937 = vmatmul.mubr.bf16.gmra.mxu0 %v13726_v10  ;;  %v7702_v60 = vor.u32 %v7701_v48, %v7697_v27  ;;  %v8230_v43 = vld [vmem:[#allocation2 + $0x7c] sm:$0xf]  ;;  %v15932_v8 = vadd.f32 %v12783_v51, %v12671_v30  ;;  %v8303_v39 = vld [vmem:[#allocation2 + $0x80] sm:$0x1]  ;;  %v15937_v4 = vadd.f32 %v12676_v14, %v12675_v32 }
 0x484   : > { %v13727_v20 = vld [vmem:[#allocation3 + $0x20c] ss:$36 sps:$4 sm:$0xff]   ;;  %v8516_v34 = vsel %vm14181_vm14, %v8511_v23, %v8515_v46  ;;  %8755 = vst [vmem:[#allocation3 + $0x214] sm:$0xf] %v8506_v44  ;;  %v7693_v59 = vrot.slane %v7692_v17, 4  ;;  %v8096_v33 = vsel %vm14154_vm10, %v11852_v36, %v8095_v19  ;;  %v8097_v18 = vrot.slane %v8095_v19, 4  ;;  %v12679_v46 = vpop.f32.mrf.mxu1  ;;  %v15951_v19 = vpop.f32.mrf.mxu0 }
 0x485   : > { %v13729_v42 = vld [vmem:[#allocation3 + $0x208] ss:$36 sps:$4 sm:$0xff]   ;;  %8261 = vst [vmem:[#allocation3 + $0x258] sm:$0xf] %v8229_v37  ;;  %8756 = vst [vmem:[#allocation3 + $0x238] sm:$0xf] %v8516_v34  ;;  %10783 = vmatprep.mubr.bf16.mxu1 %v13727_v20  ;;  %v15945_v0 = vadd.f32 %v12786_v62, %v12674_v52  ;;  %v12789_v20 = vadd.f32 %v15920_v24, %v15911_v3  ;;  %v12792_v34 = vadd.f32 %v12791_v38, %v15926_v50 }
 0x486   : > { %v8301_v35 = vld [vmem:[#allocation2 + $0x78] sm:$0xf]  ;;  %v7698_v41 = vsel %vm14181_vm14, %v7693_v59, %v7697_v27  ;;  %v7703_v5 = vrot.slane %v7702_v60, 4  ;;  %8197 = vst [vmem:[#allocation3 + $0x254] sm:$0xf] %v8096_v33  ;;  %10784 = vmatmul.mubr.bf16.gmra.mxu1 %v13729_v42  ;;  %v8099_v6 = vsel %vm14154_vm10, %v8097_v18, %v8098_v40  ;;  %v8537_v13 = vshll.u32 %v8303_v39, 16  ;;  %v15947_v36 = vpop.f32.mrf.mxu1 }
 0x487   : > { %8262 = vst [vmem:[#allocation3 + $0x27c] sm:$0xf] %v8230_v43  ;;  %v8302_v29 = vld [vmem:[#allocation2 + $0x7c] sm:$0xf]  ;;  %v8518_v53 = vshrl.u32 %v8301_v35, 16  ;;  %v8521_v54 = vshll.u32 %v8301_v35, 16  ;;  %v12680_v42 = vadd.f32 %v12679_v46, %v12678_v2 }
 0x488   : > { %7925 = vst [vmem:[#allocation3 + $0x250] sm:$0xf] %v7698_v41  ;;  %v8527_v16 = vshll.u32 %v8302_v29, 16  ;;  %v8531_v61 = vshrl.u32 %v8302_v29, 16  ;;  %v7472_v25 = vld [vmem:[#allocation2 + $0x78] sm:$0xf]  ;;  %v7708_v1 = vsel %vm14181_vm14, %v7703_v5, %v7707_v26  ;;  %v15949_v44 = vpop.f32.mrf.mxu1 }
 0x489   : > { %8198 = vst [vmem:[#allocation3 + $0x278] sm:$0xf] %v8099_v6  ;;  %v8520_v49 = vrot.slane %v8518_v53, 4  ;;  %v7473_v57 = vld [vmem:[#allocation2 + $0x7c] sm:$0xf]  ;;  %v8523_v31 = vrot.slane %v8521_v54, 5  ;;  %v15962_v53 = vpop.f32.mrf.mxu0  ;;  %v15969_v46 = vadd.f32 %v12792_v34, %v12680_v42 }
 0x48a   : > { %v7474_v7 = vld [vmem:[#allocation2 + $0x80] sm:$0x1]  ;;  %7926 = vst [vmem:[#allocation3 + $0x274] sm:$0xf] %v7708_v1  ;;  %v8529_v22 = vrot.slane %v8527_v16, 5  ;;  %v8533_v45 = vrot.slane %v8531_v61, 4  ;;  %v15956_v29 = vpop.f32.mrf.mxu1 }
 0x48b   : > { %v7710_v21 = vshrl.u32 %v7472_v25, 16  ;;  %v7968_v27 = vld [vmem:[#allocation2 + $0x78] sm:$0xe]  ;;  %v8539_v32 = vrot.slane %v8537_v13, 5  ;;  %v7713_v55 = vshll.u32 %v7472_v25, 16  ;;  %v7719_v10 = vshll.u32 %v7473_v57, 16 }
 0x48c   : > { %v7723_v11 = vshrl.u32 %v7473_v57, 16  ;;  %v7969_v30 = vld [vmem:[#allocation2 + $0x7c] sm:$0xf]  ;;  %v8524_v23 = vor.u32 %v8523_v31, %v8520_v49  ;;  %v8534_v17 = vor.u32 %v8533_v45, %v8529_v22  ;;  %v7729_v26 = vshll.u32 %v7474_v7, 16  ;;  %v7970_v14 = vld [vmem:[#allocation2 + $0x80] sm:$0x1]  ;;  %v15971_v1 = vpop.f32.mrf.mxu1 }
 0x48d   : > { %v7712_v48 = vrot.slane %v7710_v21, 4  ;;  %v13730_v40 = vld [vmem:[#allocation3 + $0x214] ss:$36 sps:$4 sm:$0xff]   ;;  %v7715_v51 = vrot.slane %v7713_v55, 5  ;;  %v7721_v52 = vrot.slane %v7719_v10, 5  ;;  %v11853_v62 = vrot.slane %v7968_v27, 9 }
 0x48e   : > { %v13732_v37 = vld [vmem:[#allocation3 + $0x210] ss:$36 sps:$4 sm:$0xff]   ;;  %v8525_v59 = vrot.slane %v8524_v23, 4  ;;  %v8535_v60 = vrot.slane %v8534_v17, 4  ;;  %v7725_v33 = vrot.slane %v7723_v11, 4  ;;  %10944 = vmatprep.mubr.bf16.mxu0 %v13730_v40  ;;  %v7731_v35 = vrot.slane %v7729_v26, 5  ;;  %v15977_v55 = vpop.f32.mrf.mxu1 }
 0x48f   : > { %v8231_v18 = vld [vmem:[#allocation2 + $0x84] sm:$0xf]  ;;  %v7716_v43 = vor.u32 %v7715_v51, %v7712_v48  ;;  %v8102_v41 = vrot.slane %v7969_v30, 5  ;;  %v8232_v5 = vld [vmem:[#allocation2 + $0x88] sm:$0xf]  ;;  %10945 = vmatmul.mubr.bf16.gmra.mxu0 %v13732_v37  ;;  %v8105_v2 = vrot.slane %v7970_v14, 5  ;;  %v15967_v25 = vadd.f32 %v12789_v20, %v15937_v4 }
 0x490   : > { %8263 = vst [vmem:[#allocation3 + $0x2a0] sm:$0xf] %v8231_v18  ;;  %v8530_v3 = vsel %vm14181_vm14, %v8525_v59, %v8529_v22  ;;  %v8540_v24 = vsel %vm14181_vm14, %v8535_v60, %v8539_v32  ;;  %v7726_v50 = vor.u32 %v7725_v33, %v7721_v52  ;;  %8264 = vst [vmem:[#allocation3 + $0x2c4] sm:$0xf] %v8232_v5  ;;  %v8304_v38 = vld [vmem:[#allocation2 + $0x84] sm:$0xf]  ;;  %v15973_v22 = vpop.f32.mrf.mxu0  ;;  %v12688_v42 = vpop.f32.mrf.mxu1 }
 0x491   : > { %v8305_v39 = vld [vmem:[#allocation2 + $0x88] sm:$0xf]  ;;  %v13733_v6 = vld [vmem:[#allocation3 + $0x254] ss:$36 sps:$4 sm:$0xff]   ;;  %8757 = vst [vmem:[#allocation3 + $0x25c] sm:$0xf] %v8530_v3  ;;  %v8103_v61 = vsel %vm14154_vm10, %v11853_v62, %v8102_v41 }
 0x492   : > { %v13735_v54 = vld [vmem:[#allocation3 + $0x250] ss:$36 sps:$4 sm:$0xff]   ;;  %8758 = vst [vmem:[#allocation3 + $0x280] sm:$0xf] %v8540_v24  ;;  %v7717_v16 = vrot.slane %v7716_v43, 4  ;;  %v7727_v49 = vrot.slane %v7726_v50, 4  ;;  %10791 = vmatprep.mubr.bf16.mxu1 %v13733_v6  ;;  %v15983_v26 = vpop.f32.mrf.mxu0 }
 0x493   : > { %v8104_v13 = vrot.slane %v8102_v41, 4  ;;  %8199 = vst [vmem:[#allocation3 + $0x29c] sm:$0xf] %v8103_v61  ;;  %v8306_v57 = vld [vmem:[#allocation2 + $0x8c] sm:$0x1]  ;;  %v8542_v7 = vshrl.u32 %v8304_v38, 16  ;;  %10792 = vmatmul.mubr.bf16.gmra.mxu1 %v13735_v54 }
 0x494   : > { %v8545_v31 = vshll.u32 %v8304_v38, 16  ;;  %v7722_v45 = vsel %vm14181_vm14, %v7717_v16, %v7721_v52  ;;  %v8551_v21 = vshll.u32 %v8305_v39, 16  ;;  %v8555_v27 = vshrl.u32 %v8305_v39, 16  ;;  %v7475_v32 = vld [vmem:[#allocation2 + $0x84] sm:$0xf]  ;;  %v12800_v18 = vpop.f32.mrf.mxu0  ;;  %v12690_v39 = vpop.f32.mrf.mxu1 }
 0x495   : > { %v8561_v4 = vshll.u32 %v8306_v57, 16  ;;  %v7732_v10 = vsel %vm14181_vm14, %v7727_v49, %v7731_v35  ;;  %7927 = vst [vmem:[#allocation3 + $0x298] sm:$0xf] %v7722_v45  ;;  %v8106_v11 = vsel %vm14154_vm10, %v8104_v13, %v8105_v2  ;;  %v8544_v30 = vrot.slane %v8542_v7, 4  ;;  %v7476_v17 = vld [vmem:[#allocation2 + $0x88] sm:$0xf] }
 0x496   : > { %v8547_v23 = vrot.slane %v8545_v31, 5  ;;  %v7477_v48 = vld [vmem:[#allocation2 + $0x8c] sm:$0x1]  ;;  %7928 = vst [vmem:[#allocation3 + $0x2bc] sm:$0xf] %v7732_v10  ;;  %v8553_v14 = vrot.slane %v8551_v21, 5  ;;  %v12683_v2 = vadd.f32 %v15949_v44, %v15947_v36  ;;  %v12795_v38 = vadd.f32 %v15951_v19, %v15941_v9  ;;  %v15989_v6 = vpop.f32.mrf.mxu0  ;;  %v12691_v21 = vpop.f32.mrf.mxu1 }
 0x497   : > { %8200 = vst [vmem:[#allocation3 + $0x2c0] sm:$0xf] %v8106_v11  ;;  %v8557_v40 = vrot.slane %v8555_v27, 4  ;;  %v8563_v37 = vrot.slane %v8561_v4, 5  ;;  %v7734_v51 = vshrl.u32 %v7475_v32, 16  ;;  %v7737_v59 = vshll.u32 %v7475_v32, 16 }
 0x498   : > { %v7971_v20 = vld [vmem:[#allocation2 + $0x84] sm:$0xe]  ;;  %v8548_v34 = vor.u32 %v8547_v23, %v8544_v30  ;;  %v7743_v60 = vshll.u32 %v7476_v17, 16  ;;  %v7747_v52 = vshrl.u32 %v7476_v17, 16  ;;  %v7972_v33 = vld [vmem:[#allocation2 + $0x88] sm:$0xf]  ;;  %v15993_v36 = vpop.f32.mrf.mxu0  ;;  %v15997_v4 = vadd.f32 %v12795_v38, %v12683_v2 }
 0x499   : > { %v8558_v43 = vor.u32 %v8557_v40, %v8553_v14  ;;  %v7736_v35 = vrot.slane %v7734_v51, 4  ;;  %v7753_v62 = vshll.u32 %v7477_v48, 16  ;;  %v7973_v41 = vld [vmem:[#allocation2 + $0x8c] sm:$0x1]  ;;  %v11854_v5 = vrot.slane %v7971_v20, 9 }
 0x49a   : > { %v13737_v3 = vld [vmem:[#allocation3 + $0x25c] ss:$36 sps:$4 sm:$0xff]   ;;  %v8549_v24 = vrot.slane %v8548_v34, 4  ;;  %v7739_v50 = vrot.slane %v7737_v59, 5  ;;  %v7745_v61 = vrot.slane %v7743_v60, 5  ;;  %v7749_v49 = vrot.slane %v7747_v52, 4  ;;  %v16008_v40 = vpop.f32.mrf.mxu0 }
 0x49b   : > { %v13739_v54 = vld [vmem:[#allocation3 + $0x258] ss:$36 sps:$4 sm:$0xff]   ;;  %v8559_v16 = vrot.slane %v8558_v43, 4  ;;  %v7755_v13 = vrot.slane %v7753_v62, 5  ;;  %10952 = vmatprep.mubr.bf16.mxu0 %v13737_v3  ;;  %v8109_v31 = vrot.slane %v7972_v33, 5  ;;  %v8112_v45 = vrot.slane %v7973_v41, 5 }
 0x49c   : > { %v8554_v57 = vsel %vm14181_vm14, %v8549_v24, %v8553_v14  ;;  %v7740_v7 = vor.u32 %v7739_v50, %v7736_v35  ;;  %10953 = vmatmul.mubr.bf16.gmra.mxu0 %v13739_v54  ;;  %v7750_v44 = vor.u32 %v7749_v49, %v7745_v61  ;;  %v8233_v19 = vld [vmem:[#allocation2 + $0x90] sm:$0xf]  ;;  %v8234_v27 = vld [vmem:[#allocation2 + $0x94] sm:$0xf]  ;;  %v12686_v32 = vadd.f32 %v15971_v1, %v15956_v29  ;;  %v16006_v14 = vpop.f32.mrf.mxu1  ;;  %v16017_v52 = vpop.f32.mrf.mxu0  ;;  %v7480_v24 = vld [vmem:[#allocation2 + $0x98] sm:$0x1] }
 0x49d   : > { %v8564_v9 = vsel %vm14181_vm14, %v8559_v16, %v8563_v37  ;;  %8759 = vst [vmem:[#allocation3 + $0x2a4] sm:$0xf] %v8554_v57  ;;  %v13742_v11 = vld [vmem:[#allocation3 + $0x298] ss:$36 sps:$4 sm:$0xff]   ;;  %v8110_v23 = vsel %vm14154_vm10, %v11854_v5, %v8109_v31  ;;  %8265 = vst [vmem:[#allocation3 + $0x2e8] sm:$0xf] %v8233_v19  ;;  %v12798_v17 = vadd.f32 %v15973_v22, %v15962_v53 }
 0x49e   : > { %v13740_v10 = vld [vmem:[#allocation3 + $0x29c] ss:$36 sps:$4 sm:$0xff]   ;;  %8760 = vst [vmem:[#allocation3 + $0x2c8] sm:$0xf] %v8564_v9  ;;  %v7741_v30 = vrot.slane %v7740_v7, 4  ;;  %v12689_v48 = vadd.f32 %v12688_v42, %v15977_v55  ;;  %v7751_v37 = vrot.slane %v7750_v44, 4  ;;  %v12801_v20 = vadd.f32 %v12800_v18, %v15983_v26  ;;  %v16015_v60 = vpop.f32.mrf.mxu1  ;;  %v16025_v49 = vpop.f32.mrf.mxu0 }
 0x49f   : > { %8266 = vst [vmem:[#allocation3 + $0x30c] sm:$0xf] %v8234_v27  ;;  %v8111_v29 = vrot.slane %v8109_v31, 4  ;;  %8201 = vst [vmem:[#allocation3 + $0x2e4] sm:$0xf] %v8110_v23  ;;  %v16011_v34 = vadd.f32 %v12691_v21, %v12690_v39  ;;  %10799 = vmatprep.mubr.bf16.mxu1 %v13740_v10  ;;  %v7777_v31 = vshll.u32 %v7480_v24, 16  ;;  %v16029_v10 = vadd.f32 %v12798_v17, %v12686_v32 }
 0x4a0   : > { %v8307_v1 = vld [vmem:[#allocation2 + $0x90] sm:$0xf]  ;;  %v8308_v51 = vld [vmem:[#allocation2 + $0x94] sm:$0xf]  ;;  %v7746_v59 = vsel %vm14181_vm14, %v7741_v30, %v7745_v61  ;;  %v8309_v53 = vld [vmem:[#allocation2 + $0x98] sm:$0x1]  ;;  %10800 = vmatmul.mubr.bf16.gmra.mxu1 %v13742_v11  ;;  %v7756_v33 = vsel %vm14181_vm14, %v7751_v37, %v7755_v13  ;;  %v16023_v2 = vpop.f32.mrf.mxu1  ;;  %v16031_v11 = vadd.f32 %v12801_v20, %v12689_v48  ;;  %v16033_v30 = vpop.f32.mrf.mxu0 }
 0x4a1   : > { %v8566_v22 = vshrl.u32 %v8307_v1, 16  ;;  %v8569_v55 = vshll.u32 %v8307_v1, 16  ;;  %v8575_v42 = vshll.u32 %v8308_v51, 16  ;;  %7929 = vst [vmem:[#allocation3 + $0x2e0] sm:$0xf] %v7746_v59  ;;  %v8113_v26 = vsel %vm14154_vm10, %v8111_v29, %v8112_v45 }
 0x4a2   : > { %v8579_v18 = vshrl.u32 %v8308_v51, 16  ;;  %v8585_v43 = vshll.u32 %v8309_v53, 16  ;;  %v7478_v35 = vld [vmem:[#allocation2 + $0x90] sm:$0xf]  ;;  %v7479_v62 = vld [vmem:[#allocation2 + $0x94] sm:$0xf]  ;;  %v16027_v21 = vpop.f32.mrf.mxu1 }
 0x4a3   : > { %7930 = vst [vmem:[#allocation3 + $0x304] sm:$0xf] %v7756_v33  ;;  %8202 = vst [vmem:[#allocation3 + $0x308] sm:$0xf] %v8113_v26  ;;  %v8568_v41 = vrot.slane %v8566_v22, 4  ;;  %v8571_v5 = vrot.slane %v8569_v55, 5  ;;  %v16037_v26 = vpop.f32.mrf.mxu0 }
 0x4a4   : > { %v8577_v3 = vrot.slane %v8575_v42, 5  ;;  %v7758_v50 = vshrl.u32 %v7478_v35, 16  ;;  %v8581_v38 = vrot.slane %v8579_v18, 4  ;;  %v8587_v39 = vrot.slane %v8585_v43, 5  ;;  %v7974_v61 = vld [vmem:[#allocation2 + $0x90] sm:$0xe]  ;;  %v16035_v59 = vpop.f32.mrf.mxu1 }
 0x4a5   : > { %v7761_v54 = vshll.u32 %v7478_v35, 16  ;;  %v7767_v16 = vshll.u32 %v7479_v62, 16  ;;  %v8572_v13 = vor.u32 %v8571_v5, %v8568_v41  ;;  %v7771_v7 = vshrl.u32 %v7479_v62, 16  ;;  %v7975_v45 = vld [vmem:[#allocation2 + $0x94] sm:$0xf] }
 0x4a6   : > { %v7760_v57 = vrot.slane %v7758_v50, 4  ;;  %v13743_v9 = vld [vmem:[#allocation3 + $0x2a4] ss:$36 sps:$4 sm:$0xff]   ;;  %v8582_v19 = vor.u32 %v8581_v38, %v8577_v3  ;;  %v7779_v1 = vrot.slane %v7777_v31, 5  ;;  %v7976_v51 = vld [vmem:[#allocation2 + $0x98] sm:$0x1]  ;;  %v12804_v43 = vadd.f32 %v15993_v36, %v15989_v6  ;;  %v16043_v35 = vpop.f32.mrf.mxu1  ;;  %v16051_v38 = vpop.f32.mrf.mxu0 }
 0x4a7   : > { %v13745_v44 = vld [vmem:[#allocation3 + $0x2a0] ss:$36 sps:$4 sm:$0xff]   ;;  %v7763_v27 = vrot.slane %v7761_v54, 5  ;;  %v8573_v23 = vrot.slane %v8572_v13, 4  ;;  %v7769_v37 = vrot.slane %v7767_v16, 5  ;;  %v7773_v29 = vrot.slane %v7771_v7, 4  ;;  %10960 = vmatprep.mubr.bf16.mxu0 %v13743_v9 }
 0x4a8   : > { %v8583_v53 = vrot.slane %v8582_v19, 4  ;;  %v11855_v55 = vrot.slane %v7974_v61, 9  ;;  %v8116_v42 = vrot.slane %v7975_v45, 5  ;;  %v8235_v33 = vld [vmem:[#allocation2 + $0x9c] sm:$0xf]  ;;  %10961 = vmatmul.mubr.bf16.gmra.mxu0 %v13745_v44  ;;  %v8119_v48 = vrot.slane %v7976_v51, 5  ;;  %v16060_v31 = vpop.f32.mrf.mxu0  ;;  %v12702_v19 = vpop.f32.mrf.mxu1 }
 0x4a9   : > { %v7764_v22 = vor.u32 %v7763_v27, %v7760_v57  ;;  %v8578_v32 = vsel %vm14181_vm14, %v8573_v23, %v8577_v3  ;;  %v7774_v17 = vor.u32 %v7773_v29, %v7769_v37  ;;  %v8236_v20 = vld [vmem:[#allocation2 + $0xa0] sm:$0xf]  ;;  %8267 = vst [vmem:[#allocation3 + $0x330] sm:$0xf] %v8235_v33  ;;  %v8310_v18 = vld [vmem:[#allocation2 + $0x9c] sm:$0xf]  ;;  %v12695_v50 = vadd.f32 %v16015_v60, %v16006_v14 }
 0x4aa   : > { %v13746_v62 = vld [vmem:[#allocation3 + $0x2e4] ss:$36 sps:$4 sm:$0xff]   ;;  %v8588_v5 = vsel %vm14181_vm14, %v8583_v53, %v8587_v39  ;;  %8761 = vst [vmem:[#allocation3 + $0x2ec] sm:$0xf] %v8578_v32  ;;  %v8117_v3 = vsel %vm14154_vm10, %v11855_v55, %v8116_v42  ;;  %8268 = vst [vmem:[#allocation3 + $0x354] sm:$0xf] %v8236_v20  ;;  %v16054_v61 = vadd.f32 %v12804_v43, %v16011_v34  ;;  %v12815_v53 = vpop.f32.mrf.mxu0  ;;  %v12703_v32 = vpop.f32.mrf.mxu1 }
 0x4ab   : > { %v13748_v41 = vld [vmem:[#allocation3 + $0x2e0] ss:$36 sps:$4 sm:$0xff]   ;;  %v7765_v24 = vrot.slane %v7764_v22, 4  ;;  %8762 = vst [vmem:[#allocation3 + $0x310] sm:$0xf] %v8588_v5  ;;  %v7775_v6 = vrot.slane %v7774_v17, 4  ;;  %v12807_v39 = vadd.f32 %v16017_v52, %v16008_v40  ;;  %10807 = vmatprep.mubr.bf16.mxu1 %v13746_v62 }
 0x4ac   : > { %v8118_v36 = vrot.slane %v8116_v42, 4  ;;  %8203 = vst [vmem:[#allocation3 + $0x32c] sm:$0xf] %v8117_v3  ;;  %v8311_v54 = vld [vmem:[#allocation2 + $0xa0] sm:$0xf]  ;;  %v8590_v57 = vshrl.u32 %v8310_v18, 16  ;;  %10808 = vmatmul.mubr.bf16.gmra.mxu1 %v13748_v41  ;;  %v16066_v62 = vpop.f32.mrf.mxu0 }
 0x4ad   : > { %v8312_v16 = vld [vmem:[#allocation2 + $0xa4] sm:$0x1]  ;;  %v7770_v13 = vsel %vm14181_vm14, %v7765_v24, %v7769_v37  ;;  %v8593_v14 = vshll.u32 %v8310_v18, 16  ;;  %v8599_v60 = vshll.u32 %v8311_v54, 16  ;;  %v7481_v7 = vld [vmem:[#allocation2 + $0x9c] sm:$0xf]  ;;  %v7780_v45 = vsel %vm14181_vm14, %v7775_v6, %v7779_v1  ;;  %v16068_v6 = vpop.f32.mrf.mxu1 }
 0x4ae   : > { %7931 = vst [vmem:[#allocation3 + $0x328] sm:$0xf] %v7770_v13  ;;  %v8120_v34 = vsel %vm14154_vm10, %v8118_v36, %v8119_v48  ;;  %v8603_v9 = vshrl.u32 %v8311_v54, 16  ;;  %v8609_v40 = vshll.u32 %v8312_v16, 16  ;;  %v7482_v52 = vld [vmem:[#allocation2 + $0xa0] sm:$0xf]  ;;  %v16070_v13 = vadd.f32 %v12807_v39, %v12695_v50 }
 0x4af   : > { %v7483_v44 = vld [vmem:[#allocation2 + $0xa4] sm:$0x1]  ;;  %7932 = vst [vmem:[#allocation3 + $0x34c] sm:$0xf] %v7780_v45  ;;  %8204 = vst [vmem:[#allocation3 + $0x350] sm:$0xf] %v8120_v34 }
 0x4b0   : > { %v8592_v27 = vrot.slane %v8590_v57, 4  ;;  %v8595_v23 = vrot.slane %v8593_v14, 5  ;;  %v8601_v37 = vrot.slane %v8599_v60, 5  ;;  %v7782_v29 = vshrl.u32 %v7481_v7, 16  ;;  %v7977_v51 = vld [vmem:[#allocation2 + $0x9c] sm:$0xe]  ;;  %v16076_v60 = vpop.f32.mrf.mxu0 }
 0x4b1   : > { %v8605_v22 = vrot.slane %v8603_v9, 4  ;;  %v8611_v55 = vrot.slane %v8609_v40, 5  ;;  %v7785_v1 = vshll.u32 %v7481_v7, 16  ;;  %v7791_v42 = vshll.u32 %v7482_v52, 16  ;;  %v7978_v33 = vld [vmem:[#allocation2 + $0xa0] sm:$0xf]  ;;  %v16078_v40 = vpop.f32.mrf.mxu1 }
 0x4b2   : > { %v8596_v17 = vor.u32 %v8595_v23, %v8592_v27  ;;  %v7784_v48 = vrot.slane %v7782_v29, 4  ;;  %v7795_v20 = vshrl.u32 %v7482_v52, 16  ;;  %v7801_v18 = vshll.u32 %v7483_v44, 16  ;;  %v7979_v43 = vld [vmem:[#allocation2 + $0xa4] sm:$0x1] }
 0x4b3   : > { %v8606_v41 = vor.u32 %v8605_v22, %v8601_v37  ;;  %v7787_v5 = vrot.slane %v7785_v1, 5  ;;  %v7793_v24 = vrot.slane %v7791_v42, 5  ;;  %v11856_v3 = vrot.slane %v7977_v51, 9  ;;  %v13750_v36 = vld [vmem:[#allocation3 + $0x2ec] ss:$36 sps:$4 sm:$0xff]   ;;  %v16088_v51 = vpop.f32.mrf.mxu0 }
 0x4b4   : > { %v13752_v54 = vld [vmem:[#allocation3 + $0x2e8] ss:$36 sps:$4 sm:$0xff]   ;;  %v8597_v16 = vrot.slane %v8596_v17, 4  ;;  %v12698_v57 = vadd.f32 %v16027_v21, %v16023_v2  ;;  %v12810_v14 = vadd.f32 %v16033_v30, %v16025_v49  ;;  %v7797_v34 = vrot.slane %v7795_v20, 4  ;;  %10968 = vmatprep.mubr.bf16.mxu0 %v13750_v36  ;;  %v8237_v44 = vld [vmem:[#allocation2 + $0xa8] sm:$0xf] }
 0x4b5   : > { %v8607_v7 = vrot.slane %v8606_v41, 4  ;;  %v7788_v45 = vor.u32 %v7787_v5, %v7784_v48  ;;  %v7803_v9 = vrot.slane %v7801_v18, 5  ;;  %v8123_v50 = vrot.slane %v7978_v33, 5  ;;  %10969 = vmatmul.mubr.bf16.gmra.mxu0 %v13752_v54  ;;  %8269 = vst [vmem:[#allocation3 + $0x378] sm:$0xf] %v8237_v44  ;;  %v16099_v41 = vpop.f32.mrf.mxu0 }
 0x4b6   : > { %v8602_v52 = vsel %vm14181_vm14, %v8597_v16, %v8601_v37  ;;  %v8126_v39 = vrot.slane %v7979_v43, 5  ;;  %v16082_v27 = vadd.f32 %v12810_v14, %v12698_v57  ;;  %v13753_v2 = vld [vmem:[#allocation3 + $0x32c] ss:$36 sps:$4 sm:$0xff]   ;;  %v7798_v23 = vor.u32 %v7797_v34, %v7793_v24  ;;  %v8238_v1 = vld [vmem:[#allocation2 + $0xac] sm:$0xf]  ;;  %v16097_v43 = vpop.f32.mrf.mxu1 }
 0x4b7   : > { %v13755_v49 = vld [vmem:[#allocation3 + $0x328] ss:$36 sps:$4 sm:$0xff]   ;;  %v8612_v21 = vsel %vm14181_vm14, %v8607_v7, %v8611_v55  ;;  %8763 = vst [vmem:[#allocation3 + $0x334] sm:$0xf] %v8602_v52  ;;  %v7789_v30 = vrot.slane %v7788_v45, 4  ;;  %v12701_v29 = vadd.f32 %v16043_v35, %v16035_v59  ;;  %v8124_v37 = vsel %vm14154_vm10, %v11856_v3, %v8123_v50  ;;  %10815 = vmatprep.mubr.bf16.mxu1 %v13753_v2  ;;  %v16107_v57 = vpop.f32.mrf.mxu0 }
 0x4b8   : > { %8764 = vst [vmem:[#allocation3 + $0x358] sm:$0xf] %v8612_v21  ;;  %v8125_v22 = vrot.slane %v8123_v50, 4  ;;  %v8313_v42 = vld [vmem:[#allocation2 + $0xa8] sm:$0xf]  ;;  %v12813_v33 = vadd.f32 %v16051_v38, %v16037_v26  ;;  %v12704_v55 = vadd.f32 %v12703_v32, %v12702_v19  ;;  %v7799_v48 = vrot.slane %v7798_v23, 4  ;;  %10816 = vmatmul.mubr.bf16.gmra.mxu1 %v13755_v49  ;;  %v12709_v16 = vpop.f32.mrf.mxu1 }
 0x4b9   : > { %v7794_v17 = vsel %vm14181_vm14, %v7789_v30, %v7793_v24  ;;  %8205 = vst [vmem:[#allocation3 + $0x374] sm:$0xf] %v8124_v37  ;;  %8270 = vst [vmem:[#allocation3 + $0x39c] sm:$0xf] %v8238_v1  ;;  %v8314_v59 = vld [vmem:[#allocation2 + $0xac] sm:$0xf]  ;;  %v12816_v18 = vadd.f32 %v12815_v53, %v16060_v31 }
 0x4ba   : > { %v8315_v35 = vld [vmem:[#allocation2 + $0xb0] sm:$0x1]  ;;  %v8614_v20 = vshrl.u32 %v8313_v42, 16  ;;  %7933 = vst [vmem:[#allocation3 + $0x370] sm:$0xf] %v7794_v17  ;;  %v8127_v26 = vsel %vm14154_vm10, %v8125_v22, %v8126_v39  ;;  %v8617_v38 = vshll.u32 %v8313_v42, 16  ;;  %v7804_v24 = vsel %vm14181_vm14, %v7799_v48, %v7803_v9  ;;  %v16109_v49 = vpop.f32.mrf.mxu1 }
 0x4bb   : > { %v8623_v19 = vshll.u32 %v8314_v59, 16  ;;  %v8627_v32 = vshrl.u32 %v8314_v59, 16  ;;  %v7484_v5 = vld [vmem:[#allocation2 + $0xa8] sm:$0xf]  ;;  %8206 = vst [vmem:[#allocation3 + $0x398] sm:$0xf] %v8127_v26  ;;  %v16105_v54 = vadd.f32 %v12813_v33, %v12701_v29  ;;  %v16111_v33 = vadd.f32 %v12816_v18, %v12704_v55 }
 0x4bc   : > { %v8616_v3 = vrot.slane %v8614_v20, 4  ;;  %v8633_v36 = vshll.u32 %v8315_v35, 16  ;;  %v7485_v31 = vld [vmem:[#allocation2 + $0xac] sm:$0xf]  ;;  %v7486_v53 = vld [vmem:[#allocation2 + $0xb0] sm:$0x1]  ;;  %v12707_v17 = vadd.f32 %v16078_v40, %v16068_v6  ;;  %v12819_v48 = vadd.f32 %v16076_v60, %v16066_v62  ;;  %v16117_v59 = vpop.f32.mrf.mxu1  ;;  %v16119_v35 = vpop.f32.mrf.mxu0 }
 0x4bd   : > { %7934 = vst [vmem:[#allocation3 + $0x394] sm:$0xf] %v7804_v24  ;;  %v8619_v14 = vrot.slane %v8617_v38, 5  ;;  %v8625_v7 = vrot.slane %v8623_v19, 5  ;;  %v8629_v45 = vrot.slane %v8627_v32, 4  ;;  %v7806_v34 = vshrl.u32 %v7484_v5, 16 }
 0x4be   : > { %v7980_v52 = vld [vmem:[#allocation2 + $0xa8] sm:$0xe]  ;;  %v8635_v50 = vrot.slane %v8633_v36, 5  ;;  %v7809_v39 = vshll.u32 %v7484_v5, 16  ;;  %v7815_v44 = vshll.u32 %v7485_v31, 16  ;;  %v7819_v9 = vshrl.u32 %v7485_v31, 16 }
 0x4bf   : > { %v7981_v2 = vld [vmem:[#allocation2 + $0xac] sm:$0xf]  ;;  %v8620_v21 = vor.u32 %v8619_v14, %v8616_v3  ;;  %v8630_v30 = vor.u32 %v8629_v45, %v8625_v7  ;;  %v7808_v23 = vrot.slane %v7806_v34, 4  ;;  %v7825_v29 = vshll.u32 %v7486_v53, 16  ;;  %v7982_v37 = vld [vmem:[#allocation2 + $0xb0] sm:$0x1]  ;;  %v16125_v53 = vpop.f32.mrf.mxu1 }
 0x4c0   : > { %v13756_v22 = vld [vmem:[#allocation3 + $0x334] ss:$36 sps:$4 sm:$0xff]   ;;  %v7811_v42 = vrot.slane %v7809_v39, 5  ;;  %v7817_v38 = vrot.slane %v7815_v44, 5  ;;  %v7821_v19 = vrot.slane %v7819_v9, 4  ;;  %v11857_v55 = vrot.slane %v7980_v52, 9 }
 0x4c1   : > { %v13758_v1 = vld [vmem:[#allocation3 + $0x330] ss:$36 sps:$4 sm:$0xff]   ;;  %v8621_v20 = vrot.slane %v8620_v21, 4  ;;  %v8631_v26 = vrot.slane %v8630_v30, 4  ;;  %v8239_v32 = vld [vmem:[#allocation2 + $0xb4] sm:$0xf]  ;;  %10976 = vmatprep.mubr.bf16.mxu0 %v13756_v22  ;;  %v16129_v39 = vadd.f32 %v12819_v48, %v12707_v17 }
 0x4c2   : > { %v7812_v5 = vor.u32 %v7811_v42, %v7808_v23  ;;  %v7827_v24 = vrot.slane %v7825_v29, 5  ;;  %v8130_v18 = vrot.slane %v7981_v2, 5  ;;  %v8240_v3 = vld [vmem:[#allocation2 + $0xb8] sm:$0xf]  ;;  %8271 = vst [vmem:[#allocation3 + $0x3c0] sm:$0xf] %v8239_v32  ;;  %10977 = vmatmul.mubr.bf16.gmra.mxu0 %v13758_v1  ;;  %v7822_v60 = vor.u32 %v7821_v19, %v7817_v38  ;;  %v16136_v23 = vpop.f32.mrf.mxu1 }
 0x4c3   : > { %v8626_v62 = vsel %vm14181_vm14, %v8621_v20, %v8625_v7  ;;  %v8636_v6 = vsel %vm14181_vm14, %v8631_v26, %v8635_v50  ;;  %v8133_v40 = vrot.slane %v7982_v37, 5  ;;  %8272 = vst [vmem:[#allocation3 + $0x3e4] sm:$0xf] %v8240_v3  ;;  %v8316_v36 = vld [vmem:[#allocation2 + $0xb4] sm:$0xf]  ;;  %v16132_v7 = vadd.f32 %v12709_v16, %v16097_v43  ;;  %v16134_v50 = vpop.f32.mrf.mxu0 }
 0x4c4   : > { %v8317_v31 = vld [vmem:[#allocation2 + $0xb8] sm:$0xf]  ;;  %v13759_v14 = vld [vmem:[#allocation3 + $0x370] ss:$36 sps:$4 sm:$0xff]   ;;  %8765 = vst [vmem:[#allocation3 + $0x37c] sm:$0xf] %v8626_v62  ;;  %v8131_v52 = vsel %vm14154_vm10, %v11857_v55, %v8130_v18  ;;  %v16146_v32 = vpop.f32.mrf.mxu1 }
 0x4c5   : > { %v13761_v45 = vld [vmem:[#allocation3 + $0x374] ss:$36 sps:$4 sm:$0xff]   ;;  %8766 = vst [vmem:[#allocation3 + $0x3a0] sm:$0xf] %v8636_v6  ;;  %v7813_v34 = vrot.slane %v7812_v5, 4  ;;  %v7823_v44 = vrot.slane %v7822_v60, 4  ;;  %v16140_v43 = vpop.f32.mrf.mxu0 }
 0x4c6   : > { %v8132_v9 = vrot.slane %v8130_v18, 4  ;;  %8207 = vst [vmem:[#allocation3 + $0x3bc] sm:$0xf] %v8131_v52  ;;  %v8318_v2 = vld [vmem:[#allocation2 + $0xbc] sm:$0x1]  ;;  %v8638_v21 = vshrl.u32 %v8316_v36, 16  ;;  %10823 = vmatprep.mubr.bf16.mxu1 %v13761_v45 }
 0x4c7   : > { %v8641_v30 = vshll.u32 %v8316_v36, 16  ;;  %v7818_v29 = vsel %vm14181_vm14, %v7813_v34, %v7817_v38  ;;  %v8647_v37 = vshll.u32 %v8317_v31, 16  ;;  %v8651_v22 = vshrl.u32 %v8317_v31, 16  ;;  %v7487_v42 = vld [vmem:[#allocation2 + $0xb4] sm:$0xf]  ;;  %10824 = vmatmul.mubr.bf16.gmra.mxu1 %v13759_v14  ;;  %v16148_v62 = vpop.f32.mrf.mxu0  ;;  %v12718_v31 = vpop.f32.mrf.mxu1 }
 0x4c8   : > { %v8657_v1 = vshll.u32 %v8318_v2, 16  ;;  %v7828_v16 = vsel %vm14181_vm14, %v7823_v44, %v7827_v24  ;;  %7935 = vst [vmem:[#allocation3 + $0x3b8] sm:$0xf] %v7818_v29  ;;  %v8134_v17 = vsel %vm14154_vm10, %v8132_v9, %v8133_v40  ;;  %v8640_v48 = vrot.slane %v8638_v21, 4  ;;  %v7488_v26 = vld [vmem:[#allocation2 + $0xb8] sm:$0xf] }
 0x4c9   : > { %v8643_v20 = vrot.slane %v8641_v30, 5  ;;  %v7489_v19 = vld [vmem:[#allocation2 + $0xbc] sm:$0x1]  ;;  %7936 = vst [vmem:[#allocation3 + $0x3dc] sm:$0xf] %v7828_v16  ;;  %v8649_v38 = vrot.slane %v8647_v37, 5  ;;  %v16150_v9 = vpop.f32.mrf.mxu0  ;;  %v12822_v29 = vadd.f32 %v16099_v41, %v16088_v51  ;;  %v12713_v37 = vadd.f32 %v16117_v59, %v16109_v49 }
 0x4ca   : > { %8208 = vst [vmem:[#allocation3 + $0x3e0] sm:$0xf] %v8134_v17  ;;  %v8653_v5 = vrot.slane %v8651_v22, 4  ;;  %v8659_v55 = vrot.slane %v8657_v1, 5  ;;  %v7830_v18 = vshrl.u32 %v7487_v42, 16  ;;  %v7833_v6 = vshll.u32 %v7487_v42, 16 }
 0x4cb   : > { %v7983_v3 = vld [vmem:[#allocation2 + $0xb4] sm:$0xe]  ;;  %v8644_v24 = vor.u32 %v8643_v20, %v8640_v48  ;;  %v7839_v60 = vshll.u32 %v7488_v26, 16  ;;  %v7843_v36 = vshrl.u32 %v7488_v26, 16  ;;  %v7984_v40 = vld [vmem:[#allocation2 + $0xb8] sm:$0xf]  ;;  %v16156_v48 = vpop.f32.mrf.mxu1  ;;  %v16158_v20 = vpop.f32.mrf.mxu0 }
 0x4cc   : > { %v8654_v14 = vor.u32 %v8653_v5, %v8649_v38  ;;  %v7832_v45 = vrot.slane %v7830_v18, 4  ;;  %v7849_v34 = vshll.u32 %v7489_v19, 16  ;;  %v7985_v52 = vld [vmem:[#allocation2 + $0xbc] sm:$0x1]  ;;  %v11858_v44 = vrot.slane %v7983_v3, 9 }
 0x4cd   : > { %v13763_v2 = vld [vmem:[#allocation3 + $0x378] ss:$36 sps:$4 sm:$0xff]   ;;  %v8645_v21 = vrot.slane %v8644_v24, 4  ;;  %v7835_v30 = vrot.slane %v7833_v6, 5  ;;  %v7841_v42 = vrot.slane %v7839_v60, 5  ;;  %v7845_v16 = vrot.slane %v7843_v36, 4  ;;  %v16169_v6 = vpop.f32.mrf.mxu1 }
 0x4ce   : > { %v13765_v22 = vld [vmem:[#allocation3 + $0x37c] ss:$36 sps:$4 sm:$0xff]   ;;  %v8655_v1 = vrot.slane %v8654_v14, 4  ;;  %v7851_v17 = vrot.slane %v7849_v34, 5  ;;  %v8137_v5 = vrot.slane %v7984_v40, 5  ;;  %v8140_v18 = vrot.slane %v7985_v52, 5 }
 0x4cf   : > { %v8650_v26 = vsel %vm14181_vm14, %v8645_v21, %v8649_v38  ;;  %v7836_v19 = vor.u32 %v7835_v30, %v7832_v45  ;;  %10984 = vmatprep.mubr.bf16.mxu0 %v13765_v22  ;;  %v7846_v41 = vor.u32 %v7845_v16, %v7841_v42  ;;  %v8241_v49 = vld [vmem:[#allocation2 + $0xc0] sm:$0xf]  ;;  %v8242_v59 = vld [vmem:[#allocation2 + $0xc4] sm:$0xf]  ;;  %v16165_v3 = vadd.f32 %v12822_v29, %v16132_v7  ;;  %v16171_v38 = vpop.f32.mrf.mxu0  ;;  %v16184_v21 = vpop.f32.mrf.mxu1 }
 0x4d0   : > { %v8660_v51 = vsel %vm14181_vm14, %v8655_v1, %v8659_v55  ;;  %8767 = vst [vmem:[#allocation3 + $0x3c4] sm:$0xf] %v8650_v26  ;;  %v12825_v24 = vadd.f32 %v16119_v35, %v16107_v57  ;;  %10985 = vmatmul.mubr.bf16.gmra.mxu0 %v13763_v2  ;;  %v13766_v60 = vld [vmem:[#allocation3 + $0x3b8] ss:$36 sps:$4 sm:$0xff]   ;;  %v8138_v55 = vsel %vm14154_vm10, %v11858_v44, %v8137_v5  ;;  %8273 = vst [vmem:[#allocation3 + $0x408] sm:$0xf] %v8241_v49 }
 0x4d1   : > { %v13768_v36 = vld [vmem:[#allocation3 + $0x3bc] ss:$36 sps:$4 sm:$0xff]   ;;  %8768 = vst [vmem:[#allocation3 + $0x3e8] sm:$0xf] %v8660_v51  ;;  %v7837_v40 = vrot.slane %v7836_v19, 4  ;;  %v12716_v7 = vadd.f32 %v16136_v23, %v16125_v53  ;;  %v12828_v57 = vadd.f32 %v16140_v43, %v16134_v50  ;;  %v7847_v35 = vrot.slane %v7846_v41, 4  ;;  %v16186_v44 = vpop.f32.mrf.mxu0  ;;  %v16194_v16 = vpop.f32.mrf.mxu1 }
 0x4d2   : > { %8274 = vst [vmem:[#allocation3 + $0x42c] sm:$0xf] %v8242_v59  ;;  %v8139_v14 = vrot.slane %v8137_v5, 4  ;;  %8209 = vst [vmem:[#allocation3 + $0x404] sm:$0xf] %v8138_v55  ;;  %v16179_v52 = vadd.f32 %v12825_v24, %v12713_v37  ;;  %v16182_v2 = vadd.f32 %v12718_v31, %v16146_v32  ;;  %10831 = vmatprep.mubr.bf16.mxu1 %v13768_v36 }
 0x4d3   : > { %v8319_v45 = vld [vmem:[#allocation2 + $0xc0] sm:$0xf]  ;;  %v8320_v34 = vld [vmem:[#allocation2 + $0xc4] sm:$0xf]  ;;  %v7842_v53 = vsel %vm14181_vm14, %v7837_v40, %v7841_v42  ;;  %v8321_v23 = vld [vmem:[#allocation2 + $0xc8] sm:$0x1]  ;;  %10832 = vmatmul.mubr.bf16.gmra.mxu1 %v13766_v60  ;;  %v7852_v29 = vsel %vm14181_vm14, %v7847_v35, %v7851_v17  ;;  %v16196_v26 = vpop.f32.mrf.mxu0 }
 0x4d4   : > { %v8662_v50 = vshrl.u32 %v8319_v45, 16  ;;  %v8665_v43 = vshll.u32 %v8319_v45, 16  ;;  %v8671_v30 = vshll.u32 %v8320_v34, 16  ;;  %7937 = vst [vmem:[#allocation3 + $0x400] sm:$0xf] %v7842_v53  ;;  %v8141_v32 = vsel %vm14154_vm10, %v8139_v14, %v8140_v18 }
 0x4d5   : > { %v8675_v31 = vshrl.u32 %v8320_v34, 16  ;;  %v8681_v37 = vshll.u32 %v8321_v23, 16  ;;  %v7490_v22 = vld [vmem:[#allocation2 + $0xc0] sm:$0xf]  ;;  %v7491_v1 = vld [vmem:[#allocation2 + $0xc4] sm:$0xf]  ;;  %v16198_v14 = vpop.f32.mrf.mxu0 }
 0x4d6   : > { %7938 = vst [vmem:[#allocation3 + $0x424] sm:$0xf] %v7852_v29  ;;  %8210 = vst [vmem:[#allocation3 + $0x428] sm:$0xf] %v8141_v32  ;;  %v8664_v42 = vrot.slane %v8662_v50, 4  ;;  %v8667_v19 = vrot.slane %v8665_v43, 5  ;;  %v16200_v50 = vadd.f32 %v12828_v57, %v12716_v7  ;;  %v12831_v43 = vadd.f32 %v16150_v9, %v16148_v62 }
 0x4d7   : > { %v8673_v5 = vrot.slane %v8671_v30, 5  ;;  %v7492_v51 = vld [vmem:[#allocation2 + $0xc8] sm:$0x1]  ;;  %v7854_v41 = vshrl.u32 %v7490_v22, 16  ;;  %v8677_v17 = vrot.slane %v8675_v31, 4  ;;  %v8683_v49 = vrot.slane %v8681_v37, 5  ;;  %v16204_v30 = vpop.f32.mrf.mxu1 }
 0x4d8   : > { %v7857_v59 = vshll.u32 %v7490_v22, 16  ;;  %v7863_v24 = vshll.u32 %v7491_v1, 16  ;;  %v7986_v18 = vld [vmem:[#allocation2 + $0xc0] sm:$0xe]  ;;  %v8668_v60 = vor.u32 %v8667_v19, %v8664_v42  ;;  %v7867_v40 = vshrl.u32 %v7491_v1, 16  ;;  %v16206_v1 = vpop.f32.mrf.mxu0 }
 0x4d9   : > { %v7856_v36 = vrot.slane %v7854_v41, 4  ;;  %v7873_v55 = vshll.u32 %v7492_v51, 16  ;;  %v7987_v35 = vld [vmem:[#allocation2 + $0xc4] sm:$0xf]  ;;  %v13769_v45 = vld [vmem:[#allocation3 + $0x3c0] ss:$36 sps:$4 sm:$0xff]   ;;  %v8678_v53 = vor.u32 %v8677_v17, %v8673_v5  ;;  %v16208_v7 = vpop.f32.mrf.mxu1 }
 0x4da   : > { %v13771_v34 = vld [vmem:[#allocation3 + $0x3c4] ss:$36 sps:$4 sm:$0xff]   ;;  %v7859_v23 = vrot.slane %v7857_v59, 5  ;;  %v8669_v29 = vrot.slane %v8668_v60, 4  ;;  %v7865_v32 = vrot.slane %v7863_v24, 5  ;;  %v7869_v31 = vrot.slane %v7867_v40, 4  ;;  %v16215_v40 = vpop.f32.mrf.mxu0 }
 0x4db   : > { %v7875_v37 = vrot.slane %v7873_v55, 5  ;;  %v7988_v22 = vld [vmem:[#allocation2 + $0xc8] sm:$0x1]  ;;  %10992 = vmatprep.mubr.bf16.mxu0 %v13771_v34  ;;  %v8679_v42 = vrot.slane %v8678_v53, 4  ;;  %v11859_v51 = vrot.slane %v7986_v18, 9  ;;  %v8144_v41 = vrot.slane %v7987_v35, 5  ;;  %v16223_v34 = vpop.f32.mrf.mxu1 }
 0x4dc   : > { %v7860_v19 = vor.u32 %v7859_v23, %v7856_v36  ;;  %v8243_v17 = vld [vmem:[#allocation2 + $0xcc] sm:$0xf]  ;;  %10993 = vmatmul.mubr.bf16.gmra.mxu0 %v13769_v45  ;;  %v8674_v62 = vsel %vm14181_vm14, %v8669_v29, %v8673_v5  ;;  %v7870_v9 = vor.u32 %v7869_v31, %v7865_v32  ;;  %v8147_v57 = vrot.slane %v7988_v22, 5  ;;  %v8244_v59 = vld [vmem:[#allocation2 + $0xd0] sm:$0xf] }
 0x4dd   : > { %8275 = vst [vmem:[#allocation3 + $0x450] sm:$0xf] %v8243_v17  ;;  %v8322_v24 = vld [vmem:[#allocation2 + $0xcc] sm:$0xf]  ;;  %v16213_v60 = vadd.f32 %v12831_v43, %v16182_v2  ;;  %v13772_v36 = vld [vmem:[#allocation3 + $0x400] ss:$36 sps:$4 sm:$0xff]   ;;  %v8684_v55 = vsel %vm14181_vm14, %v8679_v42, %v8683_v49  ;;  %v8145_v5 = vsel %vm14154_vm10, %v11859_v51, %v8144_v41  ;;  %v12722_v45 = vadd.f32 %v16169_v6, %v16156_v48  ;;  %v16239_v17 = vpop.f32.mrf.mxu0 }
 0x4de   : > { %v13774_v18 = vld [vmem:[#allocation3 + $0x404] ss:$36 sps:$4 sm:$0xff]   ;;  %8769 = vst [vmem:[#allocation3 + $0x40c] sm:$0xf] %v8674_v62  ;;  %v7861_v35 = vrot.slane %v7860_v19, 4  ;;  %v7871_v2 = vrot.slane %v7870_v9, 4  ;;  %v12834_v49 = vadd.f32 %v16171_v38, %v16158_v20  ;;  %v16229_v29 = vadd.f32 %v16194_v16, %v16184_v21  ;;  %v16233_v19 = vpop.f32.mrf.mxu1 }
 0x4df   : > { %8276 = vst [vmem:[#allocation3 + $0x474] sm:$0xf] %v8244_v59  ;;  %8770 = vst [vmem:[#allocation3 + $0x430] sm:$0xf] %v8684_v55  ;;  %v8146_v53 = vrot.slane %v8144_v41, 4  ;;  %10839 = vmatprep.mubr.bf16.mxu1 %v13774_v18  ;;  %v8686_v48 = vshrl.u32 %v8322_v24, 16  ;;  %v12731_v28 = vadd.f32 %v16233_v19, %v16223_v34 }
 0x4e0   : > { %8211 = vst [vmem:[#allocation3 + $0x44c] sm:$0xf] %v8145_v5  ;;  %v8323_v23 = vld [vmem:[#allocation2 + $0xd0] sm:$0xf]  ;;  %v8324_v43 = vld [vmem:[#allocation2 + $0xd4] sm:$0x1]  ;;  %v7866_v31 = vsel %vm14181_vm14, %v7861_v35, %v7865_v32  ;;  %10840 = vmatmul.mubr.bf16.gmra.mxu1 %v13772_v36  ;;  %v7876_v51 = vsel %vm14181_vm14, %v7871_v2, %v7875_v37 }
 0x4e1   : > { %v8689_v6 = vshll.u32 %v8322_v24, 16  ;;  %v8695_v22 = vshll.u32 %v8323_v23, 16  ;;  %v8773_v42 = vld [vmem:[#allocation2 + $0x18] sm:$0xe]  ;;  %7939 = vst [vmem:[#allocation3 + $0x448] sm:$0xf] %v7866_v31  ;;  %v8148_v20 = vsel %vm14154_vm10, %v8146_v53, %v8147_v57  ;;  %v12732_v31 = vpop.f32.mrf.mxu1 }
 0x4e2   : > { %v8699_v38 = vshrl.u32 %v8323_v23, 16  ;;  %v8705_v21 = vshll.u32 %v8324_v43, 16  ;;  %v8774_v16 = vld [vmem:[#allocation2 + $0x1c] sm:$0xf]  ;;  %v8775_v41 = vld [vmem:[#allocation2 + $0x20] sm:$0x1]  ;;  %v16241_v43 = vadd.f32 %v12834_v49, %v12722_v45  ;;  %v12837_v45 = vadd.f32 %v16196_v26, %v16186_v44 }
 0x4e3   : > { %7940 = vst [vmem:[#allocation3 + $0x46c] sm:$0xf] %v7876_v51  ;;  %8212 = vst [vmem:[#allocation3 + $0x470] sm:$0xf] %v8148_v20  ;;  %v8688_v32 = vrot.slane %v8686_v48, 4  ;;  %v8691_v62 = vrot.slane %v8689_v6, 5  ;;  %v16245_v20 = vpop.f32.mrf.mxu0  ;;  %v12728_v49 = vadd.f32 %v16208_v7, %v16204_v30 }
 0x4e4   : > { %v8697_v9 = vrot.slane %v8695_v22, 5  ;;  %v11860_v59 = vrot.slane %v8773_v42, 9  ;;  %v8776_v24 = vld [vmem:[#allocation2 + $0x24] sm:$0xe]  ;;  %v8701_v36 = vrot.slane %v8699_v38, 4  ;;  %v8707_v18 = vrot.slane %v8705_v21, 5 }
 0x4e5   : > { %v8871_v37 = vrot.slane %v8774_v16, 5  ;;  %v8874_v55 = vrot.slane %v8775_v41, 5  ;;  %v8777_v35 = vld [vmem:[#allocation2 + $0x28] sm:$0xf]  ;;  %v8692_v5 = vor.u32 %v8691_v62, %v8688_v32  ;;  %v8778_v57 = vld [vmem:[#allocation2 + $0x2c] sm:$0x1]  ;;  %v12733_v32 = vpop.f32.mrf.mxu1  ;;  %v16258_v30 = vadd.f32 %v12837_v45, %v16229_v29 }
 0x4e6   : > { %v11861_v2 = vrot.slane %v8776_v24, 9  ;;  %v8878_v53 = vrot.slane %v8777_v35, 5  ;;  %v8779_v23 = vld [vmem:[#allocation2 + $0x30] sm:$0xe]  ;;  %v8702_v51 = vor.u32 %v8701_v36, %v8697_v9  ;;  %v8881_v22 = vrot.slane %v8778_v57, 5  ;;  %v12845_v35 = vpop.f32.mrf.mxu0 }
 0x4e7   : > { %v8872_v48 = vsel %vm14154_vm10, %v11860_v59, %v8871_v37  ;;  %v8873_v6 = vrot.slane %v8871_v37, 4  ;;  %v8780_v42 = vld [vmem:[#allocation2 + $0x34] sm:$0xf]  ;;  %v13776_v38 = vld [vmem:[#allocation3 + $0x408] ss:$36 sps:$4 sm:$0xff]   ;;  %v8693_v16 = vrot.slane %v8692_v5, 4  ;;  %v12735_v7 = vpop.f32.mrf.mxu1  ;;  %v12734_v45 = vadd.f32 %v12733_v32, %v12732_v31 }
 0x4e8   : > { %v13778_v21 = vld [vmem:[#allocation3 + $0x40c] ss:$36 sps:$4 sm:$0xff]   ;;  %9013 = vst [vmem:[#allocation3 + $0x20] sm:$0xf] %v8872_v48  ;;  %v8879_v41 = vsel %vm14154_vm10, %v11861_v2, %v8878_v53  ;;  %v8703_v62 = vrot.slane %v8702_v51, 4  ;;  %v8880_v24 = vrot.slane %v8878_v53, 4  ;;  %v12847_v48 = vpop.f32.mrf.mxu0  ;;  %v12846_v31 = vadd.f32 %v12845_v35, %v16245_v20 }
 0x4e9   : > { %v8875_v59 = vsel %vm14154_vm10, %v8873_v6, %v8874_v55  ;;  %9015 = vst [vmem:[#allocation3 + $0x68] sm:$0xf] %v8879_v41  ;;  %v8781_v36 = vld [vmem:[#allocation2 + $0x38] sm:$0x1]  ;;  %v11862_v37 = vrot.slane %v8779_v23, 9  ;;  %11000 = vmatprep.mubr.bf16.mxu0 %v13778_v21  ;;  %v8698_v5 = vsel %vm14181_vm14, %v8693_v16, %v8697_v9  ;;  %v8885_v57 = vrot.slane %v8780_v42, 5 }
 0x4ea   : > { %9014 = vst [vmem:[#allocation3 + $0x44] sm:$0xf] %v8875_v59  ;;  %v8888_v44 = vrot.slane %v8781_v36, 5  ;;  %v8782_v26 = vld [vmem:[#allocation2 + $0x3c] sm:$0xe]  ;;  %11001 = vmatmul.mubr.bf16.gmra.mxu0 %v13776_v38  ;;  %v8708_v53 = vsel %vm14181_vm14, %v8703_v62, %v8707_v18  ;;  %v8882_v23 = vsel %vm14154_vm10, %v8880_v24, %v8881_v22  ;;  %v12840_v9 = vadd.f32 %v16206_v1, %v16198_v14  ;;  %v12736_v22 = vpop.f32.mrf.mxu1  ;;  %v12848_v62 = vpop.f32.mrf.mxu0 }
 0x4eb   : > { %v13779_v2 = vld [vmem:[#allocation3 + $0x448] ss:$36 sps:$4 sm:$0xff]   ;;  %8771 = vst [vmem:[#allocation3 + $0x454] sm:$0xf] %v8698_v5  ;;  %v11863_v51 = vrot.slane %v8782_v26, 9  ;;  %v8886_v29 = vsel %vm14154_vm10, %v11862_v37, %v8885_v57  ;;  %v8887_v6 = vrot.slane %v8885_v57, 4  ;;  %v12843_v18 = vadd.f32 %v16239_v17, %v16215_v40 }
 0x4ec   : > { %v13781_v55 = vld [vmem:[#allocation3 + $0x44c] ss:$36 sps:$4 sm:$0xff]   ;;  %8772 = vst [vmem:[#allocation3 + $0x478] sm:$0xf] %v8708_v53  ;;  %9016 = vst [vmem:[#allocation3 + $0x8c] sm:$0xf] %v8882_v23  ;;  %v16272_v41 = vadd.f32 %v12840_v9, %v12728_v49  ;;  %v12738_v32 = vpop.f32.mrf.mxu1  ;;  %v12850_v57 = vpop.f32.mrf.mxu0  ;;  %v12737_v53 = vadd.f32 %v12736_v22, %v12735_v7 }
 0x4ed   : > { %v8783_v42 = vld [vmem:[#allocation2 + $0x40] sm:$0xf]  ;;  %v8784_v38 = vld [vmem:[#allocation2 + $0x44] sm:$0x1]  ;;  %10847 = vmatprep.mubr.bf16.mxu1 %v13781_v55  ;;  %9017 = vst [vmem:[#allocation3 + $0xb0] sm:$0xf] %v8886_v29  ;;  %v8889_v59 = vsel %vm14154_vm10, %v8887_v6, %v8888_v44  ;;  %v16276_v40 = vadd.f32 %v12843_v18, %v12731_v28  ;;  %v16285_v6 = vadd.f32 %v12846_v31, %v12734_v45 }
 0x4ee   : > { %v8892_v21 = vrot.slane %v8783_v42, 5  ;;  %v8895_v14 = vrot.slane %v8784_v38, 5  ;;  %v8785_v1 = vld [vmem:[#allocation2 + $0x48] sm:$0xe]  ;;  %v8786_v16 = vld [vmem:[#allocation2 + $0x4c] sm:$0xf]  ;;  %10848 = vmatmul.mubr.bf16.gmra.mxu1 %v13779_v2  ;;  %v12739_v20 = vpop.f32.mrf.mxu1  ;;  %v12851_v35 = vpop.f32.mrf.mxu0  ;;  %v12849_v18 = vadd.f32 %v12848_v62, %v12847_v48 }
 0x4ef   : > { %v8787_v24 = vld [vmem:[#allocation2 + $0x50] sm:$0x1]  ;;  %v11864_v34 = vrot.slane %v8785_v1, 9  ;;  %v8899_v19 = vrot.slane %v8786_v16, 5  ;;  %v8788_v36 = vld [vmem:[#allocation2 + $0x54] sm:$0xe]  ;;  %v12852_v7 = vadd.f32 %v12851_v35, %v12850_v57 }
 0x4f0   : > { %9018 = vst [vmem:[#allocation3 + $0xd4] sm:$0xf] %v8889_v59  ;;  %v8893_v17 = vsel %vm14154_vm10, %v11863_v51, %v8892_v21  ;;  %v8894_v37 = vrot.slane %v8892_v21, 4  ;;  %v8902_v5 = vrot.slane %v8787_v24, 5  ;;  %v8789_v49 = vld [vmem:[#allocation2 + $0x58] sm:$0xf]  ;;  %v12740_v21 = vadd.f32 %v12739_v20, %v12738_v32  ;;  %v12741_v45 = vpop.f32.mrf.mxu1  ;;  %v12853_v59 = vpop.f32.mrf.mxu0 }
 0x4f1   : > { %9019 = vst [vmem:[#allocation3 + $0xf8] sm:$0xf] %v8893_v17  ;;  %v8900_v44 = vsel %vm14154_vm10, %v11864_v34, %v8899_v19  ;;  %v8901_v26 = vrot.slane %v8899_v19, 4  ;;  %v8790_v2 = vld [vmem:[#allocation2 + $0x5c] sm:$0x1]  ;;  %v11865_v55 = vrot.slane %v8788_v36, 9  ;;  %v16291_v34 = vadd.f32 %v12849_v18, %v12737_v53 }
 0x4f2   : > { %v13785_v23 = vld [vmem:[#allocation3 + $0x20] ss:$36 sps:$4 sm:$0xff]   ;;  %v8896_v9 = vsel %vm14154_vm10, %v8894_v37, %v8895_v14  ;;  %9021 = vst [vmem:[#allocation3 + $0x140] sm:$0xf] %v8900_v44  ;;  %v8906_v51 = vrot.slane %v8789_v49, 5  ;;  %v8909_v29 = vrot.slane %v8790_v2, 5  ;;  %v16293_v19 = vadd.f32 %v12852_v7, %v12740_v21  ;;  %v12854_v49 = vpop.f32.mrf.mxu0 }
 0x4f3   : > { %9020 = vst [vmem:[#allocation3 + $0x11c] sm:$0xf] %v8896_v9  ;;  %v8903_v42 = vsel %vm14154_vm10, %v8901_v26, %v8902_v5  ;;  %v8791_v38 = vld [vmem:[#allocation2 + $0x60] sm:$0xe]  ;;  %v8792_v28 = vld [vmem:[#allocation2 + $0x64] sm:$0xf]  ;;  %13174 = vmatprep.mubr.bf16.mxu1 %v13785_v23  ;;  %v12742_v5 = vpop.f32.mrf.mxu1  ;;  %v12855_v26 = vadd.f32 %v12854_v49, %v12853_v59 }
 0x4f4   : > { %v13782_v22 = vld [vmem:[#allocation3 + $0x450] ss:$36 sps:$4 sm:$0xff]   ;;  %9022 = vst [vmem:[#allocation3 + $0x164] sm:$0xf] %v8903_v42  ;;  %v8907_v14 = vsel %vm14154_vm10, %v11865_v55, %v8906_v51  ;;  %v8908_v16 = vrot.slane %v8906_v51, 4  ;;  %v11866_v36 = vrot.slane %v8791_v38, 9  ;;  %v12743_v44 = vadd.f32 %v12742_v5, %v12741_v45  ;;  %v12856_v59 = vpop.f32.mrf.mxu0 }
 0x4f5   : > { %v13784_v1 = vld [vmem:[#allocation3 + $0x454] ss:$36 sps:$4 sm:$0xff]   ;;  %v13786_v24 = vld [vmem:[#allocation3 + $0x68] ss:$36 sps:$4 sm:$0xff]   ;;  %9023 = vst [vmem:[#allocation3 + $0x188] sm:$0xf] %v8907_v14  ;;  %v12744_v7 = vpop.f32.mrf.mxu1 }
 0x4f6   : > { %11008 = vmatprep.mubr.bf16.mxu0 %v13784_v1  ;;  %v8910_v48 = vsel %vm14154_vm10, %v8908_v16, %v8909_v29  ;;  %v8793_v62 = vld [vmem:[#allocation2 + $0x68] sm:$0x1]  ;;  %v8913_v17 = vrot.slane %v8792_v28, 5  ;;  %v8794_v37 = vld [vmem:[#allocation2 + $0x6c] sm:$0xe]  ;;  %13175 = vmatmul.mubr.bf16.vlgmr.msra.gmra.mxu1 %v13786_v24  ;;  %v16299_v51 = vadd.f32 %v12855_v26, %v12743_v44 }
 0x4f7   : > { %11009 = vmatmul.mubr.bf16.gmra.mxu0 %v13782_v22  ;;  %v13787_v31 = vld [vmem:[#allocation3 + $0xb0] ss:$36 sps:$4 sm:$0xff]   ;;  %9024 = vst [vmem:[#allocation3 + $0x1ac] sm:$0xf] %v8910_v48  ;;  %v8916_v32 = vrot.slane %v8793_v62, 5  ;;  %v11867_v57 = vrot.slane %v8794_v37, 9  ;;  %v12745_v62 = vpop.f32.mrf.mxu1 }
 0x4f8   : > { %v8914_v2 = vsel %vm14154_vm10, %v11866_v36, %v8913_v17  ;;  %v8915_v55 = vrot.slane %v8913_v17, 4  ;;  %v8795_v53 = vld [vmem:[#allocation2 + $0x70] sm:$0xf]  ;;  %13178 = vmatprep.mubr.bf16.mxu1 %v13787_v31  ;;  %v8796_v23 = vld [vmem:[#allocation2 + $0x74] sm:$0x1]  ;;  %v12746_v49 = vadd.f32 %v12745_v62, %v12744_v7  ;;  %v12857_v31 = vpop.f32.mrf.mxu0 }
 0x4f9   : > { %9025 = vst [vmem:[#allocation3 + $0x1d0] sm:$0xf] %v8914_v2  ;;  %v8920_v9 = vrot.slane %v8795_v53, 5  ;;  %v8923_v35 = vrot.slane %v8796_v23, 5  ;;  %v8797_v18 = vld [vmem:[#allocation2 + $0x78] sm:$0xe]  ;;  %v12858_v26 = vadd.f32 %v12857_v31, %v12856_v59  ;;  %v12747_v2 = vpop.f32.mrf.mxu1 }
 0x4fa   : > { %v13788_v29 = vld [vmem:[#allocation3 + $0xf8] ss:$36 sps:$4 sm:$0xff]   ;;  %v8917_v20 = vsel %vm14154_vm10, %v8915_v55, %v8916_v32  ;;  %v8798_v21 = vld [vmem:[#allocation2 + $0x7c] sm:$0xf]  ;;  %v8799_v1 = vld [vmem:[#allocation2 + $0x80] sm:$0x1] }
 0x4fb   : > { %v13789_v42 = vld [vmem:[#allocation3 + $0x140] ss:$36 sps:$4 sm:$0xff]   ;;  %9026 = vst [vmem:[#allocation3 + $0x1f4] sm:$0xf] %v8917_v20  ;;  %v8921_v38 = vsel %vm14154_vm10, %v11867_v57, %v8920_v9  ;;  %v8922_v28 = vrot.slane %v8920_v9, 4  ;;  %v11868_v14 = vrot.slane %v8797_v18, 9  ;;  %v12859_v20 = vpop.f32.mrf.mxu0  ;;  %v16313_v18 = vadd.f32 %v12858_v26, %v12746_v49 }
 0x4fc   : > { %9027 = vst [vmem:[#allocation3 + $0x218] sm:$0xf] %v8921_v38  ;;  %v8927_v16 = vrot.slane %v8798_v21, 5  ;;  %v8800_v45 = vld [vmem:[#allocation2 + $0x84] sm:$0xe]  ;;  %v8930_v24 = vrot.slane %v8799_v1, 5  ;;  %v12748_v21 = vpop.f32.mrf.mxu1 }
 0x4fd   : > { %v8924_v22 = vsel %vm14154_vm10, %v8922_v28, %v8923_v35  ;;  %v11869_v48 = vrot.slane %v8800_v45, 9  ;;  %v8801_v37 = vld [vmem:[#allocation2 + $0x88] sm:$0xf]  ;;  %v8802_v5 = vld [vmem:[#allocation2 + $0x8c] sm:$0x1]  ;;  %16959 = vst [vmem:[#allocation33_spill] sm:$0xff] %v16313_v18  ;;  %v12749_v1 = vadd.f32 %v12748_v21, %v12747_v2 }
 0x4fe   : > { %9028 = vst [vmem:[#allocation3 + $0x23c] sm:$0xf] %v8924_v22  ;;  %13179 = vmatmul.mubr.bf16.gmra.mxu1 %v13788_v29  ;;  %v8928_v36 = vsel %vm14154_vm10, %v11868_v14, %v8927_v16  ;;  %v8929_v17 = vrot.slane %v8927_v16, 4  ;;  %v8934_v32 = vrot.slane %v8801_v37, 5  ;;  %v8937_v57 = vrot.slane %v8802_v5, 5  ;;  %v12860_v14 = vpop.f32.mrf.mxu0 }
 0x4ff   : > { %13182 = vmatprep.mubr.bf16.mxu1 %v13789_v42  ;;  %9029 = vst [vmem:[#allocation3 + $0x260] sm:$0xf] %v8928_v36  ;;  %v8803_v44 = vld [vmem:[#allocation2 + $0x90] sm:$0xe]  ;;  %v13790_v55 = vld [vmem:[#allocation3 + $0x188] ss:$36 sps:$4 sm:$0xff]   ;;  %v12861_v37 = vadd.f32 %v12860_v14, %v12859_v20 }
 0x500   : > { %v8931_v53 = vsel %vm14154_vm10, %v8929_v17, %v8930_v24  ;;  %v8804_v23 = vld [vmem:[#allocation2 + $0x94] sm:$0xf]  ;;  %v8805_v9 = vld [vmem:[#allocation2 + $0x98] sm:$0x1]  ;;  %v11870_v29 = vrot.slane %v8803_v44, 9  ;;  %v8935_v38 = vsel %vm14154_vm10, %v11869_v48, %v8934_v32  ;;  %v8936_v42 = vrot.slane %v8934_v32, 4 }
 0x501   : > { %9030 = vst [vmem:[#allocation3 + $0x284] sm:$0xf] %v8931_v53  ;;  %v8941_v28 = vrot.slane %v8804_v23, 5  ;;  %9031 = vst [vmem:[#allocation3 + $0x2a8] sm:$0xf] %v8935_v38  ;;  %v8944_v7 = vrot.slane %v8805_v9, 5  ;;  %v12878_v53 = vpop.f32.mrf.mxu1  ;;  %v16323_v20 = vadd.f32 %v12861_v37, %v12749_v1 }
 0x502   : > { %v13791_v35 = vld [vmem:[#allocation3 + $0x1d0] ss:$36 sps:$4 sm:$0xff]   ;;  %v8806_v22 = vld [vmem:[#allocation2 + $0x9c] sm:$0xe]  ;;  %v8938_v16 = vsel %vm14154_vm10, %v8936_v42, %v8937_v57  ;;  %v8807_v24 = vld [vmem:[#allocation2 + $0xa0] sm:$0xf] }
 0x503   : > { %v8942_v45 = vsel %vm14154_vm10, %v11870_v29, %v8941_v28  ;;  %v8943_v59 = vrot.slane %v8941_v28, 4  ;;  %v8808_v62 = vld [vmem:[#allocation2 + $0xa4] sm:$0x1]  ;;  %v11871_v48 = vrot.slane %v8806_v22, 9  ;;  %9032 = vst [vmem:[#allocation3 + $0x2cc] sm:$0xf] %v8938_v16 }
 0x504   : > { %9033 = vst [vmem:[#allocation3 + $0x2f0] sm:$0xf] %v8942_v45  ;;  %v8948_v36 = vrot.slane %v8807_v24, 5  ;;  %v8951_v17 = vrot.slane %v8808_v62, 5  ;;  %v8809_v49 = vld [vmem:[#allocation2 + $0xa8] sm:$0xe] }
 0x505   : > { %v8945_v5 = vsel %vm14154_vm10, %v8943_v59, %v8944_v7  ;;  %v8810_v31 = vld [vmem:[#allocation2 + $0xac] sm:$0xf]  ;;  %v8811_v32 = vld [vmem:[#allocation2 + $0xb0] sm:$0x1]  ;;  %v11872_v26 = vrot.slane %v8809_v49, 9  ;;  %16960 = vst [vmem:[#allocation34_spill] sm:$0xff] %v16323_v20  ;;  %v12879_v7 = vpop.f32.mrf.mxu1 }
 0x506   : > { %13183 = vmatmul.mubr.bf16.gmra.mxu1 %v13790_v55  ;;  %9034 = vst [vmem:[#allocation3 + $0x314] sm:$0xf] %v8945_v5  ;;  %v8949_v57 = vsel %vm14154_vm10, %v11871_v48, %v8948_v36  ;;  %v8950_v44 = vrot.slane %v8948_v36, 4  ;;  %v8955_v2 = vrot.slane %v8810_v31, 5  ;;  %v8958_v23 = vrot.slane %v8811_v32, 5 }
 0x507   : > { %13186 = vmatprep.mubr.bf16.mxu1 %v13791_v35  ;;  %9035 = vst [vmem:[#allocation3 + $0x338] sm:$0xf] %v8949_v57  ;;  %v8812_v9 = vld [vmem:[#allocation2 + $0xb4] sm:$0xe]  ;;  %v8813_v29 = vld [vmem:[#allocation2 + $0xb8] sm:$0xf]  ;;  %v12880_v14 = vadd.f32 %v12879_v7, %v12878_v53  ;;  %v12881_v24 = vpop.f32.mrf.mxu1 }
 0x508   : > { %v13792_v38 = vld [vmem:[#allocation3 + $0x218] ss:$36 sps:$4 sm:$0xff]   ;;  %v8952_v42 = vsel %vm14154_vm10, %v8950_v44, %v8951_v17  ;;  %v8956_v55 = vsel %vm14154_vm10, %v11872_v26, %v8955_v2  ;;  %v8957_v28 = vrot.slane %v8955_v2, 4  ;;  %v11873_v21 = vrot.slane %v8812_v9, 9  ;;  %v8814_v22 = vld [vmem:[#allocation2 + $0xbc] sm:$0x1] }
 0x509   : > { %9036 = vst [vmem:[#allocation3 + $0x35c] sm:$0xf] %v8952_v42  ;;  %9037 = vst [vmem:[#allocation3 + $0x380] sm:$0xf] %v8956_v55  ;;  %v8962_v35 = vrot.slane %v8813_v29, 5  ;;  %v8965_v1 = vrot.slane %v8814_v22, 5  ;;  %v10730_v36 = vadd.f32 %v12880_v14, %v15867_v12  ;;  %v12882_v31 = vpop.f32.mrf.mxu1  ;;  %v12990_v29 = vpop.f32.mrf.mxu0 }
 0x50a   : > { %v8959_v16 = vsel %vm14154_vm10, %v8957_v28, %v8958_v23  ;;  %v8815_v45 = vld [vmem:[#allocation2 + $0xc0] sm:$0xe]  ;;  %v8816_v59 = vld [vmem:[#allocation2 + $0xc4] sm:$0xf]  ;;  %v13793_v62 = vld [vmem:[#allocation3 + $0x260] ss:$36 sps:$4 sm:$0xff]   ;;  %v12883_v57 = vadd.f32 %v12882_v31, %v12881_v24 }
 0x50b   : > { %9038 = vst [vmem:[#allocation3 + $0x3a4] sm:$0xf] %v8959_v16  ;;  %v8963_v48 = vsel %vm14154_vm10, %v11873_v21, %v8962_v35  ;;  %v8964_v17 = vrot.slane %v8962_v35, 4  ;;  %v8817_v37 = vld [vmem:[#allocation2 + $0xc8] sm:$0x1]  ;;  %v11874_v5 = vrot.slane %v8815_v45, 9  ;;  %v12991_v21 = vpop.f32.mrf.mxu0  ;;  %v12884_v35 = vpop.f32.mrf.mxu1 }
 0x50c   : > { %9039 = vst [vmem:[#allocation3 + $0x3c8] sm:$0xf] %v8963_v48  ;;  %v8969_v49 = vrot.slane %v8816_v59, 5  ;;  %v8972_v32 = vrot.slane %v8817_v37, 5  ;;  %v8818_v53 = vld [vmem:[#allocation2 + $0xcc] sm:$0xe]  ;;  %v10733_v42 = vadd.f32 %v12883_v57, %v15881_v56  ;;  %v12992_v22 = vadd.f32 %v12991_v21, %v12990_v29 }
 0x50d   : > { %v8966_v44 = vsel %vm14154_vm10, %v8964_v17, %v8965_v1  ;;  %v8819_v12 = vld [vmem:[#allocation2 + $0xd0] sm:$0xf]  ;;  %v8820_v23 = vld [vmem:[#allocation2 + $0xd4] sm:$0x1]  ;;  %v11875_v9 = vrot.slane %v8818_v53, 9  ;;  %v12993_v45 = vpop.f32.mrf.mxu0  ;;  %v12885_v59 = vpop.f32.mrf.mxu1 }
 0x50e   : > { %13187 = vmatmul.mubr.bf16.gmra.mxu1 %v13792_v38  ;;  %v8970_v26 = vsel %vm14154_vm10, %v11874_v5, %v8969_v49  ;;  %v8971_v2 = vrot.slane %v8969_v49, 4  ;;  %9040 = vst [vmem:[#allocation3 + $0x3ec] sm:$0xf] %v8966_v44  ;;  %v8976_v55 = vrot.slane %v8819_v12, 5  ;;  %v8979_v28 = vrot.slane %v8820_v23, 5 }
 0x50f   : > { %13190 = vmatprep.mubr.bf16.mxu1 %v13793_v62  ;;  %9041 = vst [vmem:[#allocation3 + $0x410] sm:$0xf] %v8970_v26  ;;  %v13794_v7 = vld [vmem:[#allocation3 + $0x2a8] ss:$36 sps:$4 sm:$0xff]   ;;  %v13795_v14 = vld [vmem:[#allocation3 + $0x2f0] ss:$36 sps:$4 sm:$0xff]   ;;  %v16343_v24 = vadd.f32 %v12992_v22, %v10730_v36  ;;  %v12994_v62 = vpop.f32.mrf.mxu0  ;;  %v12886_v48 = vadd.f32 %v12885_v59, %v12884_v35  ;;  %v12887_v37 = vpop.f32.mrf.mxu1 }
 0x510   : > { %v8973_v38 = vsel %vm14154_vm10, %v8971_v2, %v8972_v32  ;;  %v8977_v16 = vsel %vm14154_vm10, %v11875_v9, %v8976_v55  ;;  %v8978_v1 = vrot.slane %v8976_v55, 4  ;;  %v12995_v17 = vadd.f32 %v12994_v62, %v12993_v45  ;;  %v13796_v57 = vld [vmem:[#allocation3 + $0x338] ss:$36 sps:$4 sm:$0xff]  }
 0x511   : > { %9042 = vst [vmem:[#allocation3 + $0x434] sm:$0xf] %v8973_v38  ;;  %9043 = vst [vmem:[#allocation3 + $0x458] sm:$0xf] %v8977_v16  ;;  %v16348_v5 = vadd.f32 %v12886_v48, %v15883_v47  ;;  %v16350_v49 = vpop.f32.mrf.mxu0  ;;  %v12888_v31 = vpop.f32.mrf.mxu1 }
 0x512   : > { %v8980_v56 = vsel %vm14154_vm10, %v8978_v1, %v8979_v28  ;;  %v16352_v32 = vadd.f32 %v12995_v17, %v10733_v42  ;;  %v12889_v36 = vadd.f32 %v12888_v31, %v12887_v37  ;;  %v13797_v15 = vld [vmem:[#allocation3 + $0x380] ss:$36 sps:$4 sm:$0xff]  }
 0x513   : > { %9044 = vst [vmem:[#allocation3 + $0x47c] sm:$0xf] %v8980_v56  ;;  %v16354_v44 = vpop.f32.mrf.mxu0  ;;  %v12890_v53 = vpop.f32.mrf.mxu1 }
 0x514   : > { %v16357_v26 = vadd.f32 %v12889_v36, %v15914_v58 }
 0x515   : > { %v16359_v2 = vpop.f32.mrf.mxu0  ;;  %v12891_v12 = vpop.f32.mrf.mxu1  ;;  %v13798_v42 = vld [vmem:[#allocation3 + $0x3c8] ss:$36 sps:$4 sm:$0xff]  }
 0x516   : > { %13191 = vmatmul.mubr.bf16.gmra.mxu1 %v13794_v7  ;;  %v12892_v47 = vadd.f32 %v12891_v12, %v12890_v53 }
 0x517   : > { %13194 = vmatprep.mubr.bf16.mxu1 %v13795_v14  ;;  %v16361_v23 = vpop.f32.mrf.mxu0  ;;  %v12893_v9 = vpop.f32.mrf.mxu1 }
 0x518   : > { %v16364_v29 = vadd.f32 %v12892_v47, %v15916_v63  ;;  %v13799_v55 = vld [vmem:[#allocation3 + $0x410] ss:$36 sps:$4 sm:$0xff]  }
 0x519   : > { %v12894_v38 = vpop.f32.mrf.mxu1  ;;  %v16366_v21 = vpop.f32.mrf.mxu0 }
 0x51a   : > { %v12895_v28 = vadd.f32 %v12894_v38, %v12893_v9  ;;  %v13800_v16 = vld [vmem:[#allocation3 + $0x458] ss:$36 sps:$4 sm:$0xff]  }
 0x51b   : > { %v16371_v7 = vpop.f32.mrf.mxu0  ;;  %v12896_v22 = vpop.f32.mrf.mxu1 }
 0x51c   : > { %v16369_v58 = vadd.f32 %v12895_v28, %v15932_v8 }
 0x51d   : > { %v16373_v35 = vpop.f32.mrf.mxu0  ;;  %v12897_v14 = vpop.f32.mrf.mxu1 }
 0x51e   : > { %13195 = vmatmul.mubr.bf16.gmra.mxu1 %v13796_v57  ;;  %v12898_v63 = vadd.f32 %v12897_v14, %v12896_v22 }
 0x51f   : > { %13198 = vmatprep.mubr.bf16.mxu1 %v13797_v15  ;;  %v16375_v1 = vpop.f32.mrf.mxu0  ;;  %v12899_v45 = vpop.f32.mrf.mxu1 }
 0x520   : > { %v16378_v59 = vadd.f32 %v12898_v63, %v15945_v0 }
 0x521   : > { %v12900_v56 = vpop.f32.mrf.mxu1  ;;  %v16380_v62 = vpop.f32.mrf.mxu0 }
 0x522   : > { %v12901_v8 = vadd.f32 %v12900_v56, %v12899_v45 }
 0x523   : > { %v16385_v17 = vpop.f32.mrf.mxu0  ;;  %v12902_v31 = vpop.f32.mrf.mxu1 }
 0x524   : > { %v16383_v48 = vadd.f32 %v12901_v8, %v15967_v25 }
 0x525   : > { %v16387_v37 = vpop.f32.mrf.mxu0  ;;  %v12903_v36 = vpop.f32.mrf.mxu1 }
 0x526   : > { %13199 = vmatmul.mubr.bf16.gmra.mxu1 %v13798_v42  ;;  %v12904_v15 = vadd.f32 %v12903_v36, %v12902_v31 }
 0x527   : > { %13202 = vmatprep.mubr.bf16.mxu1 %v13799_v55  ;;  %v16389_v57 = vpop.f32.mrf.mxu0  ;;  %v12905_v53 = vpop.f32.mrf.mxu1 }
 0x528   : > { %v16392_v0 = vadd.f32 %v12904_v15, %v15969_v46 }
 0x529   : > { %v12906_v12 = vpop.f32.mrf.mxu1  ;;  %v16394_v47 = vpop.f32.mrf.mxu0 }
 0x52a   : > { %v12907_v9 = vadd.f32 %v12906_v12, %v12905_v53 }
 0x52b   : > { %v16396_v42 = vpop.f32.mrf.mxu0 }
 0x52c   : > { %v16399_v25 = vadd.f32 %v12907_v9, %v15997_v4 }
 0x52d   : > { %v16401_v38 = vpop.f32.mrf.mxu0  ;;  %v12908_v55 = vpop.f32.mrf.mxu1 }
 0x52e   : > { %13203 = vmatmul.mubr.bf16.gmra.mxu1 %v13800_v16 }
 0x52f   : > { %v12909_v28 = vpop.f32.mrf.mxu1  ;;  %v16403_v22 = vpop.f32.mrf.mxu0 }
 0x530   : > { %v12910_v14 = vadd.f32 %v12909_v28, %v12908_v55 }
 0x531   : > { %v12911_v16 = vpop.f32.mrf.mxu1 }
 0x532   : > { %v16406_v46 = vadd.f32 %v12910_v14, %v16029_v10 }
 0x533   : > { %v12912_v63 = vpop.f32.mrf.mxu1 }
 0x534   : > { %v12913_v56 = vadd.f32 %v12912_v63, %v12911_v16 }
 0x535   : > { %v16408_v45 = vpop.f32.mrf.mxu0 }
 0x536   : > { %v16413_v4 = vadd.f32 %v12913_v56, %v16031_v11 }
 0x537   : > { %v16410_v8 = vpop.f32.mrf.mxu0 }
 0x539   : > { %v16415_v31 = vpop.f32.mrf.mxu0  ;;  %v12914_v36 = vpop.f32.mrf.mxu1 }
 0x53b   : > { %v12915_v15 = vpop.f32.mrf.mxu1  ;;  %v16417_v12 = vpop.f32.mrf.mxu0 }
 0x53c   : > { %v12916_v53 = vadd.f32 %v12915_v15, %v12914_v36 }
 0x53d   : > { %v12917_v9 = vpop.f32.mrf.mxu1 }
 0x53e   : > { %v16420_v10 = vadd.f32 %v12916_v53, %v16054_v61 }
 0x53f   : > { %v12918_v55 = vpop.f32.mrf.mxu1 }
 0x540   : > { %16961 = vst [vmem:[#allocation37_spill] sm:$0xff] %v16420_v10  ;;  %v12919_v28 = vadd.f32 %v12918_v55, %v12917_v9 }
 0x542   : > { %v16425_v16 = vadd.f32 %v12919_v28, %v16070_v13 }
 0x543   : > { %v16422_v14 = vpop.f32.mrf.mxu0 }
 0x544   : > { %16962 = vst [vmem:[#allocation38_spill] sm:$0xff] %v16425_v16 }
 0x545   : > { %v16427_v11 = vpop.f32.mrf.mxu0 }
 0x546   : > { %16963 = vst [vmem:[#allocation25_spill] sm:$0xff] %v16427_v11  ;;  %v12920_v63 = vpop.f32.mrf.mxu1 }
 0x547   : > { %v16429_v56 = vpop.f32.mrf.mxu0 }
 0x548   : > { %16964 = vst [vmem:[#allocation27_spill] sm:$0xff] %v16429_v56  ;;  %v12921_v20 = vpop.f32.mrf.mxu1 }
 0x549   : > { %v12922_v36 = vadd.f32 %v12921_v20, %v12920_v63  ;;  %v16431_v18 = vpop.f32.mrf.mxu0 }
 0x54a   : > { %v12923_v15 = vpop.f32.mrf.mxu1  ;;  %16965 = vst [vmem:[#allocation28_spill] sm:$0xff] %v16431_v18 }
 0x54b   : > { %v16434_v61 = vadd.f32 %v12922_v36, %v16082_v27 }
 0x54c   : > { %v12924_v53 = vpop.f32.mrf.mxu1 }
 0x54d   : > { %16966 = vst [vmem:[#allocation41_spill] sm:$0xff] %v16434_v61  ;;  %v12925_v9 = vadd.f32 %v12924_v53, %v12923_v15 }
 0x54f   : > { %v16436_v55 = vpop.f32.mrf.mxu0  ;;  %v16439_v13 = vadd.f32 %v12925_v9, %v16105_v54 }
 0x551   : > { %16967 = vst [vmem:[#allocation42_spill] sm:$0xff] %v16439_v13  ;;  %v16441_v16 = vpop.f32.mrf.mxu0 }
 0x553   : > { %v12926_v28 = vpop.f32.mrf.mxu1  ;;  %v16443_v20 = vpop.f32.mrf.mxu0 }
 0x555   : > { %v12927_v10 = vpop.f32.mrf.mxu1  ;;  %v16448_v18 = vpop.f32.mrf.mxu0 }
 0x556   : > { %v12928_v56 = vadd.f32 %v12927_v10, %v12926_v28 }
 0x557   : > { %v12929_v11 = vpop.f32.mrf.mxu1 }
 0x558   : > { %v16446_v63 = vadd.f32 %v12928_v56, %v16111_v33 }
 0x559   : > { %v12930_v27 = vpop.f32.mrf.mxu1 }
 0x55a   : > { %16968 = vst [vmem:[#allocation45_spill] sm:$0xff] %v16446_v63  ;;  %v12931_v36 = vadd.f32 %v12930_v27, %v12929_v11 }
 0x55c   : > { %v16451_v15 = vadd.f32 %v12931_v36, %v16129_v39  ;;  %v16453_v53 = vpop.f32.mrf.mxu0 }
 0x55d   : > { %16970 = vst [vmem:[#allocation29_spill] sm:$0xff] %v16453_v53 }
 0x55e   : > { %16969 = vst [vmem:[#allocation46_spill] sm:$0xff] %v16451_v15  ;;  %v16458_v28 = vpop.f32.mrf.mxu0 }
 0x560   : > { %v12932_v54 = vpop.f32.mrf.mxu1  ;;  %v16463_v27 = vpop.f32.mrf.mxu0 }
 0x561   : > { %16972 = vst [vmem:[#allocation50_spill] sm:$0xff] %v16463_v27 }
 0x562   : > { %v12933_v9 = vpop.f32.mrf.mxu1  ;;  %v16465_v15 = vpop.f32.mrf.mxu0 }
 0x563   : > { %v12934_v13 = vadd.f32 %v12933_v9, %v12932_v54  ;;  %16973 = vst [vmem:[#allocation51_spill] sm:$0xff] %v16465_v15 }
 0x564   : > { %v12935_v61 = vpop.f32.mrf.mxu1 }
 0x565   : > { %v16456_v10 = vadd.f32 %v12934_v13, %v16165_v3 }
 0x566   : > { %v12936_v33 = vpop.f32.mrf.mxu1 }
 0x567   : > { %v12937_v56 = vadd.f32 %v12936_v33, %v12935_v61 }
 0x568   : > { %v16470_v13 = vpop.f32.mrf.mxu0 }
 0x569   : > { %v16461_v11 = vadd.f32 %v12937_v56, %v16179_v52 }
 0x56a   : > { %v16475_v52 = vpop.f32.mrf.mxu0 }
 0x56b   : > { %16971 = vst [vmem:[#allocation48_spill] sm:$0xff] %v16461_v11 }
 0x56c   : > { %v12938_v39 = vpop.f32.mrf.mxu1  ;;  %v16477_v27 = vpop.f32.mrf.mxu0 }
 0x56e   : > { %v12939_v36 = vpop.f32.mrf.mxu1 }
 0x56f   : > { %v12940_v63 = vadd.f32 %v12939_v36, %v12938_v39  ;;  %v16482_v36 = vpop.f32.mrf.mxu0 }
 0x570   : > { %v12941_v53 = vpop.f32.mrf.mxu1 }
 0x571   : > { %v16468_v54 = vadd.f32 %v12940_v63, %v16200_v50 }
 0x572   : > { %v12942_v3 = vpop.f32.mrf.mxu1 }
 0x573   : > { %16974 = vst [vmem:[#allocation30_spill] sm:$0xff] %v16468_v54  ;;  %v12943_v9 = vadd.f32 %v12942_v3, %v12941_v53 }
 0x575   : > { %v16473_v61 = vadd.f32 %v12943_v9, %v16213_v60  ;;  %v16487_v60 = vpop.f32.mrf.mxu0 }
 0x576   : > { %16978 = vst [vmem:[#allocation32_spill] sm:$0xff] %v16487_v60 }
 0x577   : > { %16975 = vst [vmem:[#allocation35_spill] sm:$0xff] %v16473_v61  ;;  %v16489_v54 = vpop.f32.mrf.mxu0 }
 0x578   : > { %v12944_v33 = vpop.f32.mrf.mxu1 }
 0x57a   : > { %v12945_v56 = vpop.f32.mrf.mxu1 }
 0x57b   : > { %v12946_v11 = vadd.f32 %v12945_v56, %v12944_v33 }
 0x57c   : > { %v12947_v15 = vpop.f32.mrf.mxu1 }
 0x57d   : > { %v16480_v39 = vadd.f32 %v12946_v11, %v16241_v43 }
 0x57e   : > { %v12948_v50 = vpop.f32.mrf.mxu1 }
 0x57f   : > { %16976 = vst [vmem:[#allocation31_spill] sm:$0xff] %v16480_v39  ;;  %v12949_v63 = vadd.f32 %v12948_v50, %v12947_v15  ;;  %v16494_v39 = vpop.f32.mrf.mxu0 }
 0x581   : > { %v16485_v53 = vadd.f32 %v12949_v63, %v16258_v30  ;;  %v16499_v50 = vpop.f32.mrf.mxu0 }
 0x582   : > { %16981 = vst [vmem:[#allocation54_spill] sm:$0xff] %v16499_v50 }
 0x583   : > { %16977 = vst [vmem:[#allocation36_spill] sm:$0xff] %v16485_v53 }
 0x587   : > { %v12950_v3 = vpop.f32.mrf.mxu1 }
 0x589   : > { %v12951_v9 = vpop.f32.mrf.mxu1 }
 0x58a   : > { %v12952_v61 = vadd.f32 %v12951_v9, %v12950_v3  ;;  %v16501_v3 = vpop.f32.mrf.mxu0 }
 0x58b   : > { %v12953_v33 = vpop.f32.mrf.mxu1 }
 0x58c   : > { %v16492_v56 = vadd.f32 %v12952_v61, %v16272_v41 }
 0x58d   : > { %v12954_v43 = vpop.f32.mrf.mxu1 }
 0x58e   : > { %16979 = vst [vmem:[#allocation26_spill] sm:$0xff] %v16492_v56  ;;  %v12955_v11 = vadd.f32 %v12954_v43, %v12953_v33  ;;  %v16506_v56 = vpop.f32.mrf.mxu0 }
 0x590   : > { %v16497_v15 = vadd.f32 %v12955_v11, %v16276_v40  ;;  %v16511_v43 = vpop.f32.mrf.mxu0 }
 0x592   : > { %16980 = vst [vmem:[#allocation39_spill] sm:$0xff] %v16497_v15 }
 0x593   : > { %v12956_v30 = vpop.f32.mrf.mxu1 }
 0x595   : > { %v12957_v63 = vpop.f32.mrf.mxu1 }
 0x596   : > { %v12958_v53 = vadd.f32 %v12957_v63, %v12956_v30  ;;  %v16516_v63 = vpop.f32.mrf.mxu0 }
 0x597   : > { %v12959_v60 = vpop.f32.mrf.mxu1 }
 0x598   : > { %v16504_v9 = vadd.f32 %v12958_v53, %v16285_v6 }
 0x599   : > { %v12960_v41 = vpop.f32.mrf.mxu1 }
 0x59a   : > { %16982 = vst [vmem:[#allocation43_spill] sm:$0xff] %v16504_v9  ;;  %v12961_v61 = vadd.f32 %v12960_v41, %v12959_v60  ;;  %v16521_v41 = vpop.f32.mrf.mxu0 }
 0x59c   : > { %v16509_v33 = vadd.f32 %v12961_v61, %v16291_v34 }
 0x59e   : > { %16983 = vst [vmem:[#allocation44_spill] sm:$0xff] %v16509_v33 }
 0x5a0   : > { %v12962_v40 = vpop.f32.mrf.mxu1 }
 0x5a2   : > { %v12963_v11 = vpop.f32.mrf.mxu1 }
 0x5a3   : > { %v12964_v15 = vadd.f32 %v12963_v11, %v12962_v40  ;;  %v12998_v40 = vadd.f32 %v16354_v44, %v16350_v49  ;;  %v16529_v11 = vpop.f32.mrf.mxu0  ;;  %v16548_v44 = vld [vmem:[%s16842_s6] ss:$0 sm:$0xff] }
 0x5a4   : > { %v12965_v50 = vpop.f32.mrf.mxu1 }
 0x5a5   : > { %v16514_v30 = vadd.f32 %v12964_v15, %v16293_v19 }
 0x5a6   : > { %v12966_v6 = vpop.f32.mrf.mxu1 }
 0x5a7   : > { %16984 = vst [vmem:[#allocation40_spill] sm:$0xff] %v16514_v30  ;;  %v12967_v53 = vadd.f32 %v12966_v6, %v12965_v50  ;;  %v16537_v50 = vpop.f32.mrf.mxu0  ;;  %v10899_v6 = vadd.f32 %v12998_v40, %v16348_v5 }
 0x5a9   : > { %v16519_v60 = vadd.f32 %v12967_v53, %v16299_v51  ;;  %v13001_v51 = vadd.f32 %v16361_v23, %v16359_v2  ;;  %v13010_v2 = vadd.f32 %v16385_v17, %v16380_v62  ;;  %v16552_v23 = vpop.f32.mrf.mxu0  ;;  %v13013_v62 = vadd.f32 %v16389_v57, %v16387_v37  ;;  %v11256_v17 = vld [vmem:[%s14120_s16] sm:$0xff] }
 0x5ab   : > { %16985 = vst [vmem:[#allocation47_spill] sm:$0xff] %v16519_v60  ;;  %v16543_v60 = vld [vmem:[%s16841_s5] ss:$0 sm:$0xff]  ;;  %v10902_v33 = vadd.f32 %v13001_v51, %v16357_v26  ;;  %v16565_v9 = vpop.f32.mrf.mxu0 }
 0x5ae   : > { %v16523_v34 = vpop.f32.mrf.mxu1 }
 0x5af   : > { %16986 = vst [vmem:[#allocation49_spill] sm:$0xff] %v16523_v34 }
 0x5b0   : > { %v16525_v61 = vpop.f32.mrf.mxu1 }
 0x5b1   : > { %16987 = vst [vmem:[#allocation57_spill] sm:$0xff] %v16525_v61 }
 0x5b2   : > { %v16531_v19 = vpop.f32.mrf.mxu1 }
 0x5b3   : > { %16988 = vst [vmem:[#allocation52_spill] sm:$0xff] %v16531_v19 }
 0x5b4   : > { %v16533_v15 = vpop.f32.mrf.mxu1 }
 0x5b5   : > { %16989 = vst [vmem:[#allocation53_spill] sm:$0xff] %v16533_v15 }
 0x5b6   : > { %v13176_v53 = vpop.f32.mrf.mxu1 }
 0x5b7   : > { %v11060_v49 = vadd.f32 %v13176_v53, %v10899_v6  ;;  %v13004_v6 = vadd.f32 %v16371_v7, %v16366_v21  ;;  %v11258_v53 = vld [vmem:[%s14120_s16 + $0x10] sm:$0xff]  ;;  %v10915_v7 = vadd.f32 %v13010_v2, %v16378_v59  ;;  %v10918_v2 = vadd.f32 %v13013_v62, %v16383_v48 }
 0x5b8   : > { %v11051_v30 = vpop.f32.mrf.mxu1  ;;  %v11262_v48 = vld [vmem:[%s14120_s16 + $0x30] sm:$0xff] }
 0x5b9   : > { %v11187_v5 = vmul.f32 %v16543_v60, %v11060_v49  ;;  %v11052_v40 = vadd.f32 %v11051_v30, %v16343_v24  ;;  %v13007_v30 = vadd.f32 %v16375_v1, %v16373_v35  ;;  %v10907_v57 = vadd.f32 %v13004_v6, %v16364_v29  ;;  %v16578_v35 = vpop.f32.mrf.mxu0 }
 0x5ba   : > { %v13177_v15 = vpop.f32.mrf.mxu1 }
 0x5bb   : > { %v11226_v19 = vadd.f32 %v16548_v44, %v11187_v5  ;;  %v11185_v61 = vmul.f32 %v16543_v60, %v11052_v40  ;;  %v11063_v34 = vadd.f32 %v13177_v15, %v10902_v33  ;;  %v11259_v33 = vld [vmem:[%s14120_s16 + $0x18] sm:$0xff]  ;;  %v11257_v40 = vld [vmem:[%s14120_s16 + $0x8] sm:$0xff] }
 0x5bc   : > { %v11054_v49 = vpop.f32.mrf.mxu1 }
 0x5bd   : > { %v11290_v24 = vadd.f32 %v11258_v53, %v11226_v19  ;;  %v11224_v26 = vadd.f32 %v16548_v44, %v11185_v61  ;;  %v11188_v21 = vmul.f32 %v16543_v60, %v11063_v34  ;;  %v11055_v15 = vadd.f32 %v11054_v49, %v16352_v32 }
 0x5be   : > { %v13180_v37 = vpop.f32.mrf.mxu1  ;;  %v13016_v53 = vadd.f32 %v16396_v42, %v16394_v47  ;;  %v13025_v47 = vadd.f32 %v16417_v12, %v16415_v31  ;;  %v11263_v31 = vld [vmem:[%s14120_s16 + $0x38] sm:$0xff] }
 0x5bf   : > { %v11322_v51 = vmax.f32 %v11290_v24, 0.0  ;;  %v11288_v5 = vadd.f32 %v11256_v17, %v11224_v26  ;;  %v11227_v61 = vadd.f32 %v16548_v44, %v11188_v21  ;;  %v11076_v19 = vadd.f32 %v13180_v37, %v10915_v7 }
 0x5c0   : > { %v11186_v34 = vmul.f32 %v16543_v60, %v11055_v15  ;;  %v11067_v59 = vpop.f32.mrf.mxu1  ;;  %v13022_v17 = vadd.f32 %v16410_v8, %v16408_v45  ;;  %v10910_v24 = vadd.f32 %v13007_v30, %v16369_v58  ;;  %v11260_v15 = vld [vmem:[%s14120_s16 + $0x20] sm:$0xff]  ;;  %v16596_v8 = vpop.f32.mrf.mxu0 }
 0x5c1   : > { %11354 = vst [vmem:[%s15661_s18 + $0x10] sm:$0xff] %v11322_v51  ;;  %v11320_v1 = vmax.f32 %v11288_v5, 0.0  ;;  %v11291_v32 = vadd.f32 %v11259_v33, %v11227_v61  ;;  %v11191_v29 = vmul.f32 %v16543_v60, %v11076_v19  ;;  %v11068_v6 = vadd.f32 %v11067_v59, %v10907_v57 }
 0x5c2   : > { %v11225_v49 = vadd.f32 %v16548_v44, %v11186_v34  ;;  %v13181_v62 = vpop.f32.mrf.mxu1  ;;  %v13019_v51 = vadd.f32 %v16403_v22, %v16401_v38  ;;  %v10931_v12 = vadd.f32 %v13022_v17, %v16406_v46  ;;  %v10923_v19 = vadd.f32 %v13016_v53, %v16392_v0  ;;  %v11261_v38 = vld [vmem:[%s14120_s16 + $0x28] sm:$0xff] }
 0x5c3   : > { %11352 = vst [vmem:[%s15661_s18] sm:$0xff] %v11320_v1  ;;  %v11323_v26 = vmax.f32 %v11291_v32, 0.0  ;;  %v11230_v21 = vadd.f32 %v16548_v44, %v11191_v29  ;;  %v11189_v7 = vmul.f32 %v16543_v60, %v11068_v6  ;;  %v11079_v33 = vadd.f32 %v13181_v62, %v10918_v2  ;;  %v16613_v29 = vpop.f32.mrf.mxu0 }
 0x5c4   : > { %v11289_v42 = vadd.f32 %v11257_v40, %v11225_v49  ;;  %v11070_v45 = vpop.f32.mrf.mxu1  ;;  %v13034_v32 = vadd.f32 %v16441_v16, %v16436_v55  ;;  %v10934_v46 = vadd.f32 %v13025_v47, %v16413_v4  ;;  %v10926_v55 = vadd.f32 %v13019_v51, %v16399_v25  ;;  %v16991_v25 = vld [vmem:[#allocation41_spill] sm:$0xff]  ;;  %v16992_v51 = vld [vmem:[#allocation27_spill] sm:$0xff] }
 0x5c5   : > { %11355 = vst [vmem:[%s15661_s18 + $0x18] sm:$0xff] %v11323_v26  ;;  %v11294_v37 = vadd.f32 %v11262_v48, %v11230_v21  ;;  %v11228_v58 = vadd.f32 %v16548_v44, %v11189_v7  ;;  %v11192_v30 = vmul.f32 %v16543_v60, %v11079_v33  ;;  %v11071_v57 = vadd.f32 %v11070_v45, %v10910_v24  ;;  %v11266_v24 = vld [vmem:[%s14120_s16 + $0x50] sm:$0xff]  ;;  %v16990_v21 = vld [vmem:[#allocation25_spill] sm:$0xff] }
 0x5c6   : > { %v11321_v5 = vmax.f32 %v11289_v42, 0.0  ;;  %v13184_v61 = vpop.f32.mrf.mxu1  ;;  %v13028_v7 = vadd.f32 %v16990_v21, %v16422_v14  ;;  %v13037_v33 = vadd.f32 %v16448_v18, %v16443_v20  ;;  %v11264_v42 = vld [vmem:[%s14120_s16 + $0x40] sm:$0xff]  ;;  %v10947_v45 = vadd.f32 %v13034_v32, %v16991_v25  ;;  %v11267_v20 = vld [vmem:[%s14120_s16 + $0x58] sm:$0xff]  ;;  %v11265_v32 = vld [vmem:[%s14120_s16 + $0x48] sm:$0xff] }
 0x5c7   : > { %v11326_v34 = vmax.f32 %v11294_v37, 0.0  ;;  %v11292_v59 = vadd.f32 %v11260_v15, %v11228_v58  ;;  %v11231_v2 = vadd.f32 %v16548_v44, %v11192_v30  ;;  %v11190_v1 = vmul.f32 %v16543_v60, %v11071_v57  ;;  %v16629_v37 = vpop.f32.mrf.mxu0 }
 0x5c8   : > { %11353 = vst [vmem:[%s15661_s18 + $0x8] sm:$0xff] %v11321_v5  ;;  %v11092_v22 = vadd.f32 %v13184_v61, %v10931_v12  ;;  %v11083_v40 = vpop.f32.mrf.mxu1  ;;  %v16993_v5 = vld [vmem:[#allocation28_spill] sm:$0xff] }
 0x5c9   : > { %11358 = vst [vmem:[%s15661_s18 + $0x30] sm:$0xff] %v11326_v34  ;;  %v11324_v0 = vmax.f32 %v11292_v59, 0.0  ;;  %v11295_v6 = vadd.f32 %v11263_v31, %v11231_v2  ;;  %v11229_v53 = vadd.f32 %v16548_v44, %v11190_v1  ;;  %v11084_v17 = vadd.f32 %v11083_v40, %v10923_v19 }
 0x5ca   : > { %v11195_v49 = vmul.f32 %v16543_v60, %v11092_v22  ;;  %v13185_v16 = vpop.f32.mrf.mxu1  ;;  %v13031_v31 = vadd.f32 %v16993_v5, %v16992_v51  ;;  %v13046_v2 = vadd.f32 %v16475_v52, %v16470_v13  ;;  %v11270_v52 = vld [vmem:[%s14120_s16 + $0x70] sm:$0xff]  ;;  %v16999_v51 = vld [vmem:[#allocation51_spill] sm:$0xff] }
 0x5cb   : > { %11356 = vst [vmem:[%s15661_s18 + $0x20] sm:$0xff] %v11324_v0  ;;  %v11327_v48 = vmax.f32 %v11295_v6, 0.0  ;;  %v11293_v62 = vadd.f32 %v11261_v38, %v11229_v53  ;;  %v11193_v4 = vmul.f32 %v16543_v60, %v11084_v17  ;;  %v11095_v26 = vadd.f32 %v13185_v16, %v10934_v46  ;;  %v16994_v38 = vld [vmem:[#allocation37_spill] sm:$0xff]  ;;  %v16995_v46 = vld [vmem:[#allocation42_spill] sm:$0xff]  ;;  %v16645_v6 = vpop.f32.mrf.mxu0 }
 0x5cc   : > { %v11234_v47 = vadd.f32 %v16548_v44, %v11195_v49  ;;  %v11086_v15 = vpop.f32.mrf.mxu1  ;;  %v10939_v22 = vadd.f32 %v13028_v7, %v16994_v38  ;;  %v10950_v0 = vadd.f32 %v13037_v33, %v16995_v46  ;;  %v11269_v38 = vld [vmem:[%s14120_s16 + $0x68] sm:$0xff] }
 0x5cd   : > { %11359 = vst [vmem:[%s15661_s18 + $0x38] sm:$0xff] %v11327_v48  ;;  %v11325_v58 = vmax.f32 %v11293_v62, 0.0  ;;  %v11232_v30 = vadd.f32 %v16548_v44, %v11193_v4  ;;  %v11196_v57 = vmul.f32 %v16543_v60, %v11095_v26  ;;  %v11087_v14 = vadd.f32 %v11086_v15, %v10926_v55  ;;  %v16996_v55 = vld [vmem:[#allocation29_spill] sm:$0xff]  ;;  %v16658_v15 = vpop.f32.mrf.mxu0 }
 0x5ce   : > { %v11298_v18 = vadd.f32 %v11266_v24, %v11234_v47  ;;  %v13188_v12 = vpop.f32.mrf.mxu1  ;;  %v13040_v13 = vadd.f32 %v16458_v28, %v16996_v55  ;;  %v16997_v24 = vld [vmem:[#allocation38_spill] sm:$0xff]  ;;  %v10963_v28 = vadd.f32 %v13046_v2, %v16456_v10  ;;  %v11271_v10 = vld [vmem:[%s14120_s16 + $0x78] sm:$0xff] }
 0x5cf   : > { %11357 = vst [vmem:[%s15661_s18 + $0x28] sm:$0xff] %v11325_v58  ;;  %v11296_v61 = vadd.f32 %v11264_v42, %v11232_v30  ;;  %v11235_v19 = vadd.f32 %v16548_v44, %v11196_v57  ;;  %v11194_v34 = vmul.f32 %v16543_v60, %v11087_v14  ;;  %v11108_v59 = vadd.f32 %v13188_v12, %v10947_v45  ;;  %v11268_v58 = vld [vmem:[%s14120_s16 + $0x60] sm:$0xff]  ;;  %v16998_v14 = vld [vmem:[#allocation50_spill] sm:$0xff]  ;;  %v17000_v12 = vld [vmem:[#allocation45_spill] sm:$0xff] }
 0x5d0   : > { %v11330_v1 = vmax.f32 %v11298_v18, 0.0  ;;  %v11099_v40 = vpop.f32.mrf.mxu1  ;;  %v10942_v4 = vadd.f32 %v13031_v31, %v16997_v24  ;;  %v13043_v5 = vadd.f32 %v16999_v51, %v16998_v14  ;;  %v13049_v31 = vadd.f32 %v16482_v36, %v16477_v27  ;;  %v16676_v36 = vpop.f32.mrf.mxu0  ;;  %v17006_v14 = vld [vmem:[#allocation30_spill] sm:$0xff] }
 0x5d1   : > { %v11328_v53 = vmax.f32 %v11296_v61, 0.0  ;;  %v11299_v17 = vadd.f32 %v11267_v20, %v11235_v19  ;;  %v11233_v49 = vadd.f32 %v16548_v44, %v11194_v34  ;;  %v11199_v16 = vmul.f32 %v16543_v60, %v11108_v59 }
 0x5d2   : > { %11362 = vst [vmem:[%s15661_s18 + $0x50] sm:$0xff] %v11330_v1  ;;  %v11100_v48 = vadd.f32 %v11099_v40, %v10939_v22  ;;  %v13189_v62 = vpop.f32.mrf.mxu1  ;;  %v10955_v61 = vadd.f32 %v13040_v13, %v17000_v12  ;;  %v13058_v1 = vadd.f32 %v16506_v56, %v16501_v3  ;;  %v11274_v56 = vld [vmem:[%s14120_s16 + $0x90] sm:$0xff]  ;;  %v17002_v3 = vld [vmem:[#allocation48_spill] sm:$0xff]  ;;  %v13070_v12 = vadd.f32 %v16578_v35, %v16565_v9 }
 0x5d3   : > { %11360 = vst [vmem:[%s15661_s18 + $0x40] sm:$0xff] %v11328_v53  ;;  %v11331_v26 = vmax.f32 %v11299_v17, 0.0  ;;  %v11297_v21 = vadd.f32 %v11265_v32, %v11233_v49  ;;  %v11238_v7 = vadd.f32 %v16548_v44, %v11199_v16  ;;  %v11111_v33 = vadd.f32 %v13189_v62, %v10950_v0  ;;  %v17001_v53 = vld [vmem:[#allocation32_spill] sm:$0xff]  ;;  %v17003_v13 = vld [vmem:[#allocation46_spill] sm:$0xff] }
 0x5d4   : > { %v11197_v47 = vmul.f32 %v16543_v60, %v11100_v48  ;;  %v11102_v42 = vpop.f32.mrf.mxu1  ;;  %v13052_v17 = vadd.f32 %v16489_v54, %v17001_v53  ;;  %v10966_v16 = vadd.f32 %v13049_v31, %v17002_v3  ;;  %v11272_v54 = vld [vmem:[%s14120_s16 + $0x80] sm:$0xff]  ;;  %v11278_v35 = vld [vmem:[%s14120_s16 + $0xb0] sm:$0xff]  ;;  %v13067_v3 = vadd.f32 %v16552_v23, %v16537_v50  ;;  %v11279_v50 = vld [vmem:[%s14120_s16 + $0xb8] sm:$0xff] }
 0x5d5   : > { %11363 = vst [vmem:[%s15661_s18 + $0x58] sm:$0xff] %v11331_v26  ;;  %v11329_v25 = vmax.f32 %v11297_v21, 0.0  ;;  %v11302_v45 = vadd.f32 %v11270_v52, %v11238_v7  ;;  %v11200_v30 = vmul.f32 %v16543_v60, %v11111_v33  ;;  %v11103_v57 = vadd.f32 %v11102_v42, %v10942_v4  ;;  %v17004_v33 = vld [vmem:[#allocation31_spill] sm:$0xff]  ;;  %v16693_v42 = vpop.f32.mrf.mxu0 }
 0x5d6   : > { %v11236_v18 = vadd.f32 %v16548_v44, %v11197_v47  ;;  %v13192_v20 = vpop.f32.mrf.mxu1  ;;  %v10958_v52 = vadd.f32 %v13043_v5, %v17003_v13  ;;  %v13061_v26 = vadd.f32 %v16516_v63, %v16511_v43  ;;  %v10979_v47 = vadd.f32 %v13058_v1, %v17004_v33  ;;  %v17009_v13 = vld [vmem:[#allocation43_spill] sm:$0xff] }
 0x5d7   : > { %11361 = vst [vmem:[%s15661_s18 + $0x48] sm:$0xff] %v11329_v25  ;;  %v11334_v19 = vmax.f32 %v11302_v45, 0.0  ;;  %v11239_v34 = vadd.f32 %v16548_v44, %v11200_v30  ;;  %v11198_v59 = vmul.f32 %v16543_v60, %v11103_v57  ;;  %v11124_v2 = vadd.f32 %v13192_v20, %v10963_v28  ;;  %v17005_v30 = vld [vmem:[#allocation54_spill] sm:$0xff] }
 0x5d8   : > { %v11300_v32 = vadd.f32 %v11268_v58, %v11236_v18  ;;  %v11115_v27 = vpop.f32.mrf.mxu1  ;;  %v13055_v43 = vadd.f32 %v17005_v30, %v16494_v39  ;;  %v10971_v51 = vadd.f32 %v13052_v17, %v17006_v14  ;;  %v11275_v18 = vld [vmem:[%s14120_s16 + $0x98] sm:$0xff]  ;;  %v17014_v30 = vld [vmem:[#allocation53_spill] sm:$0xff]  ;;  %v17015_v14 = vld [vmem:[#allocation44_spill] sm:$0xff] }
 0x5d9   : > { %11366 = vst [vmem:[%s15661_s18 + $0x70] sm:$0xff] %v11334_v19  ;;  %v11303_v22 = vadd.f32 %v11271_v10, %v11239_v34  ;;  %v11237_v40 = vadd.f32 %v16548_v44, %v11198_v59  ;;  %v11203_v46 = vmul.f32 %v16543_v60, %v11124_v2  ;;  %v11116_v0 = vadd.f32 %v11115_v27, %v10955_v61  ;;  %v11273_v61 = vld [vmem:[%s14120_s16 + $0x88] sm:$0xff]  ;;  %v17007_v34 = vld [vmem:[#allocation36_spill] sm:$0xff]  ;;  %v13081_v2 = vpop.f32.mrf.mxu0 }
 0x5da   : > { %v11332_v49 = vmax.f32 %v11300_v32, 0.0  ;;  %v13193_v55 = vpop.f32.mrf.mxu1  ;;  %v10982_v59 = vadd.f32 %v13061_v26, %v17007_v34  ;;  %v17017_v34 = vld [vmem:[#allocation33_spill] sm:$0xff] }
 0x5db   : > { %v11335_v48 = vmax.f32 %v11303_v22, 0.0  ;;  %v11301_v62 = vadd.f32 %v11269_v38, %v11237_v40  ;;  %v11242_v24 = vadd.f32 %v16548_v44, %v11203_v46  ;;  %v11201_v4 = vmul.f32 %v16543_v60, %v11116_v0  ;;  %v17008_v46 = vld [vmem:[#allocation35_spill] sm:$0xff] }
 0x5dc   : > { %11364 = vst [vmem:[%s15661_s18 + $0x60] sm:$0xff] %v11332_v49  ;;  %v11127_v21 = vadd.f32 %v13193_v55, %v10966_v16  ;;  %v11118_v7 = vpop.f32.mrf.mxu1  ;;  %v13064_v22 = vadd.f32 %v16529_v11, %v16521_v41  ;;  %v10974_v0 = vadd.f32 %v13055_v43, %v17008_v46  ;;  %v13073_v41 = vadd.f32 %v16613_v29, %v16596_v8  ;;  %v11276_v16 = vld [vmem:[%s14120_s16 + $0xa0] sm:$0xff]  ;;  %v17012_v29 = vld [vmem:[#allocation26_spill] sm:$0xff] }
 0x5dd   : > { %11367 = vst [vmem:[%s15661_s18 + $0x78] sm:$0xff] %v11335_v48  ;;  %v11333_v28 = vmax.f32 %v11301_v62, 0.0  ;;  %v11306_v25 = vadd.f32 %v11274_v56, %v11242_v24  ;;  %v11240_v45 = vadd.f32 %v16548_v44, %v11201_v4  ;;  %v11119_v58 = vadd.f32 %v11118_v7, %v10958_v52  ;;  %v13083_v48 = vpop.f32.mrf.mxu0  ;;  %v17018_v46 = vld [vmem:[#allocation34_spill] sm:$0xff] }
 0x5de   : > { %v11204_v63 = vmul.f32 %v16543_v60, %v11127_v21  ;;  %v13196_v57 = vpop.f32.mrf.mxu1  ;;  %v10995_v52 = vadd.f32 %v13070_v12, %v17009_v13  ;;  %v17011_v21 = vld [vmem:[#allocation57_spill] sm:$0xff]  ;;  %v10987_v33 = vadd.f32 %v13064_v22, %v17012_v29  ;;  %v17019_v13 = vld [vmem:[#allocation40_spill] sm:$0xff] }
 0x5df   : > { %11365 = vst [vmem:[%s15661_s18 + $0x68] sm:$0xff] %v11333_v28  ;;  %v11338_v5 = vmax.f32 %v11306_v25, 0.0  ;;  %v11304_v31 = vadd.f32 %v11272_v54, %v11240_v45  ;;  %v11202_v10 = vmul.f32 %v16543_v60, %v11119_v58  ;;  %v11140_v20 = vadd.f32 %v13196_v57, %v10979_v47  ;;  %v17010_v54 = vld [vmem:[#allocation49_spill] sm:$0xff]  ;;  %v17013_v58 = vld [vmem:[#allocation52_spill] sm:$0xff] }
 0x5e0   : > { %v11243_v39 = vadd.f32 %v16548_v44, %v11204_v63  ;;  %v11131_v19 = vpop.f32.mrf.mxu1  ;;  %v12970_v7 = vadd.f32 %v17011_v21, %v17010_v54  ;;  %v12973_v43 = vadd.f32 %v17014_v30, %v17013_v58  ;;  %v11277_v12 = vld [vmem:[%s14120_s16 + $0xa8] sm:$0xff] }
 0x5e1   : > { %11370 = vst [vmem:[%s15661_s18 + $0x90] sm:$0xff] %v11338_v5  ;;  %v11336_v1 = vmax.f32 %v11304_v31, 0.0  ;;  %v11241_v32 = vadd.f32 %v16548_v44, %v11202_v10  ;;  %v11207_v38 = vmul.f32 %v16543_v60, %v11140_v20  ;;  %v11132_v27 = vadd.f32 %v11131_v19, %v10971_v51  ;;  %v17016_v5 = vld [vmem:[#allocation39_spill] sm:$0xff] }
 0x5e2   : > { %v11307_v9 = vadd.f32 %v11275_v18, %v11243_v39  ;;  %v13197_v40 = vpop.f32.mrf.mxu1  ;;  %v10998_v51 = vadd.f32 %v13073_v41, %v17015_v14  ;;  %v10990_v31 = vadd.f32 %v13067_v3, %v17016_v5  ;;  %v13084_v18 = vpop.f32.mrf.mxu0  ;;  %v13076_v19 = vadd.f32 %v16645_v6, %v16629_v37 }
 0x5e3   : > { %11368 = vst [vmem:[%s15661_s18 + $0x80] sm:$0xff] %v11336_v1  ;;  %v11305_v53 = vadd.f32 %v11273_v61, %v11241_v32  ;;  %v11246_v17 = vadd.f32 %v16548_v44, %v11207_v38  ;;  %v11205_v49 = vmul.f32 %v16543_v60, %v11132_v27  ;;  %v11143_v56 = vadd.f32 %v13197_v40, %v10982_v59  ;;  %v11282_v38 = vld [vmem:[%s14120_s16 + $0xd0] sm:$0xff] }
 0x5e4   : > { %v11339_v11 = vmax.f32 %v11307_v9, 0.0  ;;  %v11134_v55 = vpop.f32.mrf.mxu1  ;;  %v10850_v59 = vadd.f32 %v12970_v7, %v17017_v34  ;;  %v13082_v1 = vadd.f32 %v13081_v2, %v16693_v42  ;;  %v13085_v37 = vadd.f32 %v13084_v18, %v13083_v48 }
 0x5e5   : > { %v11337_v62 = vmax.f32 %v11305_v53, 0.0  ;;  %v11310_v24 = vadd.f32 %v11278_v35, %v11246_v17  ;;  %v11244_v4 = vadd.f32 %v16548_v44, %v11205_v49  ;;  %v11208_v26 = vmul.f32 %v16543_v60, %v11143_v56  ;;  %v11280_v53 = vld [vmem:[%s14120_s16 + $0xc0] sm:$0xff] }
 0x5e6   : > { %11371 = vst [vmem:[%s15661_s18 + $0x98] sm:$0xff] %v11339_v11  ;;  %v11135_v23 = vadd.f32 %v11134_v55, %v10974_v0  ;;  %v13200_v8 = vpop.f32.mrf.mxu1  ;;  %v10853_v0 = vadd.f32 %v12973_v43, %v17018_v46  ;;  %v13079_v3 = vadd.f32 %v16676_v36, %v16658_v15  ;;  %v11283_v11 = vld [vmem:[%s14120_s16 + $0xd8] sm:$0xff] }
 0x5e7   : > { %11369 = vst [vmem:[%s15661_s18 + $0x88] sm:$0xff] %v11337_v62  ;;  %v11342_v47 = vmax.f32 %v11310_v24, 0.0  ;;  %v11308_v28 = vadd.f32 %v11276_v16, %v11244_v4  ;;  %v11247_v25 = vadd.f32 %v16548_v44, %v11208_v26  ;;  %v11156_v45 = vadd.f32 %v13200_v8, %v10995_v52  ;;  %v11281_v26 = vld [vmem:[%s14120_s16 + $0xc8] sm:$0xff] }
 0x5e8   : > { %v11206_v63 = vmul.f32 %v16543_v60, %v11135_v23  ;;  %v11147_v57 = vpop.f32.mrf.mxu1  ;;  %v11011_v16 = vadd.f32 %v13082_v1, %v10850_v59  ;;  %v11003_v52 = vadd.f32 %v13076_v19, %v17019_v13  ;;  %v11014_v7 = vadd.f32 %v13085_v37, %v10853_v0  ;;  %v11285_v19 = vld [vmem:[%s14120_s16 + $0xe8] sm:$0xff] }
 0x5e9   : > { %11374 = vst [vmem:[%s15661_s18 + $0xb0] sm:$0xff] %v11342_v47  ;;  %v11340_v10 = vmax.f32 %v11308_v28, 0.0  ;;  %v11311_v20 = vadd.f32 %v11279_v50, %v11247_v25  ;;  %v11211_v39 = vmul.f32 %v16543_v60, %v11156_v45  ;;  %v11148_v61 = vadd.f32 %v11147_v57, %v10987_v33  ;;  %v17020_v33 = vld [vmem:[#allocation47_spill] sm:$0xff]  ;;  %v11286_v45 = vld [vmem:[%s14120_s16 + $0xf0] sm:$0xff] }
 0x5ea   : > { %v11245_v32 = vadd.f32 %v16548_v44, %v11206_v63  ;;  %v13201_v27 = vpop.f32.mrf.mxu1  ;;  %v11006_v47 = vadd.f32 %v13079_v3, %v17020_v33  ;;  %v11284_v63 = vld [vmem:[%s14120_s16 + $0xe0] sm:$0xff] }
 0x5eb   : > { %11372 = vst [vmem:[%s15661_s18 + $0xa0] sm:$0xff] %v11340_v10  ;;  %v11343_v22 = vmax.f32 %v11311_v20, 0.0  ;;  %v11250_v9 = vadd.f32 %v16548_v44, %v11211_v39  ;;  %v11209_v35 = vmul.f32 %v16543_v60, %v11148_v61  ;;  %v11159_v40 = vadd.f32 %v13201_v27, %v10998_v51  ;;  %v11287_v10 = vld [vmem:[%s14120_s16 + $0xf8] sm:$0xff]  ;;  %s11385_s16 = scalar_lea.sflag [#allocation8], %s14114_s10 }
 0x5ec   : > { %v11309_v6 = vadd.f32 %v11277_v12, %v11245_v32  ;;  %v11150_v17 = vpop.f32.mrf.mxu1 }
 0x5ed   : > { %11375 = vst [vmem:[%s15661_s18 + $0xb8] sm:$0xff] %v11343_v22  ;;  %v11314_v42 = vadd.f32 %v11282_v38, %v11250_v9  ;;  %v11248_v2 = vadd.f32 %v16548_v44, %v11209_v35  ;;  %v11212_v49 = vmul.f32 %v16543_v60, %v11159_v40  ;;  %v11151_v56 = vadd.f32 %v11150_v17, %v10990_v31 }
 0x5ee   : > { %v11341_v41 = vmax.f32 %v11309_v6, 0.0  ;;  %v13204_v55 = vpop.f32.mrf.mxu1 }
 0x5ef   : > { %v11346_v48 = vmax.f32 %v11314_v42, 0.0  ;;  %v11312_v62 = vadd.f32 %v11280_v53, %v11248_v2  ;;  %v11251_v24 = vadd.f32 %v16548_v44, %v11212_v49  ;;  %v11210_v4 = vmul.f32 %v16543_v60, %v11151_v56 }
 0x5f0   : > { %11373 = vst [vmem:[%s15661_s18 + $0xa8] sm:$0xff] %v11341_v41  ;;  %v11172_v54 = vadd.f32 %v13204_v55, %v11011_v16  ;;  %v11163_v21 = vpop.f32.mrf.mxu1 }
 0x5f1   : > { %11378 = vst [vmem:[%s15661_s18 + $0xd0] sm:$0xff] %v11346_v48  ;;  %v11344_v15 = vmax.f32 %v11312_v62, 0.0  ;;  %v11315_v36 = vadd.f32 %v11283_v11, %v11251_v24  ;;  %v11249_v50 = vadd.f32 %v16548_v44, %v11210_v4  ;;  %v11164_v23 = vadd.f32 %v11163_v21, %v11003_v52 }
 0x5f2   : > { %v11215_v8 = vmul.f32 %v16543_v60, %v11172_v54  ;;  %v13205_v29 = vpop.f32.mrf.mxu1 }
 0x5f3   : > { %11376 = vst [vmem:[%s15661_s18 + $0xc0] sm:$0xff] %v11344_v15  ;;  %v11347_v28 = vmax.f32 %v11315_v36, 0.0  ;;  %v11313_v25 = vadd.f32 %v11281_v26, %v11249_v50  ;;  %v11213_v58 = vmul.f32 %v16543_v60, %v11164_v23  ;;  %v11175_v30 = vadd.f32 %v13205_v29, %v11014_v7 }
 0x5f4   : > { %v11254_v43 = vadd.f32 %v16548_v44, %v11215_v8  ;;  %v11166_v57 = vpop.f32.mrf.mxu1 }
 0x5f5   : > { %11379 = vst [vmem:[%s15661_s18 + $0xd8] sm:$0xff] %v11347_v28  ;;  %v11345_v14 = vmax.f32 %v11313_v25, 0.0  ;;  %v11252_v51 = vadd.f32 %v16548_v44, %v11213_v58  ;;  %v11216_v5 = vmul.f32 %v16543_v60, %v11175_v30  ;;  %v11167_v31 = vadd.f32 %v11166_v57, %v11006_v47 }
 0x5f6   : > { %v11318_v18 = vadd.f32 %v11286_v45, %v11254_v43 }
 0x5f7   : > { %11377 = vst [vmem:[%s15661_s18 + $0xc8] sm:$0xff] %v11345_v14  ;;  %v11316_v20 = vadd.f32 %v11284_v63, %v11252_v51  ;;  %v11255_v12 = vadd.f32 %v16548_v44, %v11216_v5  ;;  %v11214_v39 = vmul.f32 %v16543_v60, %v11167_v31 }
 0x5f8   : > { %v11350_v61 = vmax.f32 %v11318_v18, 0.0 }
 0x5f9   : > { %v11348_v34 = vmax.f32 %v11316_v20, 0.0  ;;  %v11319_v59 = vadd.f32 %v11287_v10, %v11255_v12  ;;  %v11253_v1 = vadd.f32 %v16548_v44, %v11214_v39 }
 0x5fa   : > { %11382 = vst [vmem:[%s15661_s18 + $0xf0] sm:$0xff] %v11350_v61 }
 0x5fb   : > { %11380 = vst [vmem:[%s15661_s18 + $0xe0] sm:$0xff] %v11348_v34  ;;  %v11351_v32 = vmax.f32 %v11319_v59, 0.0  ;;  %v11317_v38 = vadd.f32 %v11285_v19, %v11253_v1 }
 0x5fd   : > { %11383 = vst [vmem:[%s15661_s18 + $0xf8] sm:$0xff] %v11351_v32  ;;  %v11349_v60 = vmax.f32 %v11317_v38, 0.0 }
 0x5ff   : > { %11381 = vst [vmem:[%s15661_s18 + $0xe8] sm:$0xff] %v11349_v60 }
 0x600   : > { %13888 = shalt.err (!%p13885_p6)
}
 0x601   : > { %s13889_s18 = scalar_lea.hbm %s16789_s17, 4096  ;;  %s13893_s12 = scalar_lea.hbm %s16843_s7, 8192 }
 0x602   : > { %p13890_p8 = scmp.ne.s32.totalorder %s16789_s17, %s13889_s18  ;;  %p13894_p7 = scmp.lt.s32.totalorder %s16789_s17, %s16843_s7 }
 0x603   : > { %p13895_p12 = scmp.lt.s32.totalorder %s13893_s12, %s13889_s18 }
 0x604   : > { %p13891_p3 = pnand %p13890_p8, %p17021_p13 }
 0x605   : > { %p13896_p10 = por %p13895_p12, %p13894_p7 }
 0x606   : > { %p13892_p11 = pneg %p13891_p3 }
 0x608   : > { %p13897_p2 = pnand %p13896_p10, %p13892_p11 }
 0x60a   : > { %13900 = shalt.err (!%p13897_p2)
}
 0x60b   : > { %s13956_s14 = smov 128   ;;  %s13957_s15 = smov 8  }
 0x60c   : > { %13212 = dma.vmem_to_hbm [thread:$0]  (%p17021_p13), %s16791_s19, 4096, %s16789_s17, %s11385_s16, %s13956_s14, %s13956_s14, %s13957_s15  }
 0x60d PF: > { %s11413_s28 = sand.u32 1, %s13933_s24   ;;  %p17022_p0 = scmp.ne.s32.totalorder %s16860_s8, 0 }
 0x60e   : > { %p17023_p5 = scmp.ge.s32.totalorder %s13945_s27, 2  ;;  %s11414_s23 = scalar_lea.sflag [#allocation8], %s11413_s28 }
 0x610   : > { %p13223_p9 = pnand %p17023_p5, %p17022_p0 }
 0x612   : > { %p13224_p1 = pneg %p13223_p9 }
 0x614   : > { %13928 = dma.done.wait (%p13224_p1), %s11414_s23, 4096  }
 0x615   : > { %13930 = vsyncadd (%p13224_p1), %s11414_s23, 4294963200  ;;  %p21_p4 = scmp.ge.s32.totalorder %s14052_s13, 4   ;;  %s17024_s24 = smov %s13937_s25 }
 0x616   : > { %s17025_s25 = smov %s13941_s26  ;;  %s17026_s26 = smov %s14069_s21 }
 0x617   : > { %s17027_s27 = smov %s14052_s13  ;;  %23 = sbr.rel (!%p21_p4) target bundleno = 8 (0x8), region = 100 }
 0x61c   :  { %11419 = vsyncpa [#allocation7], 1 }
 0x61d   :  { %11421 = vsyncpa [#allocation7 + $0x1], 1 }
 0x61e   :  { %11422 = vsyncpa [#allocation10], 1 }
 0x61f   :  { %11423 = vsyncpa [#allocation8], 1 }
 0x620   :  { %11425 = vsyncpa [#allocation8 + $0x1], 1 }
 0x621   :  { %11426 = vsyncmov [#allocation5] }
 0x624   :  { %s11427_s27 = vpop.sfrf %11426 }
 0x625   :  { %p12099_p13 = scmp.ne.s32.totalorder %s11427_s27, 0 }
 0x627   :  { %11431 = shalt.err (%p12099_p13)  }

</bundles_post_ra>
